<compile_context>
chip_gen: v7x
topology: tpu7x:2x2x1
jax: 0.10.0
libtpu: 0.0.40
codegen_flags: <defaults>
</compile_context>

<pallas_src>
import math
from functools import partial

import jax
import jax.numpy as jnp
from jax import lax
from jax.experimental import pallas as pl
from jax.experimental.pallas import tpu as pltpu


_PADL = 128   # zero lane-halo on each side of the flattened image (>= W+1, 128-aligned)


# ----------------------------------------------------------------------------
# Fused Pallas kernel: conv1 -> 4 residual blocks -> conv3 (+ final lms add)
# ----------------------------------------------------------------------------
def _make_fusionnet_kernel(H, W, S, C, n_blocks):
    HW = H * W
    TAPS = [(dy - 1, dx - 1) for dy in range(3) for dx in range(3)]
    interior = (slice(None), slice(_PADL, _PADL + HW))

    def kernel(x_ref, w1_ref, b1_ref, wb_ref, bb_ref, w3_ref, b3_ref,
               o_ref, act_ref, tmp_ref, lhs_ref):
        # act_ref / tmp_ref : (C, _PADL + HW + _PADL) f32, channel-major with the
        #   flattened spatial dim on lanes.  Interior = lanes [_PADL, _PADL+HW).
        # lhs_ref           : (9*C, HW) bf16 staged matmul RHS (taps folded into K).

        # ---- zero ONLY the halo stripes (scratch persists across grid steps) ----
        zpad = jnp.zeros((C, _PADL), jnp.float32)
        act_ref[:, :_PADL] = zpad
        act_ref[:, _PADL + HW:] = zpad
        tmp_ref[:, :_PADL] = zpad
        tmp_ref[:, _PADL + HW:] = zpad

        # x-boundary masks (y-boundary handled by the zero halos).
        lane = lax.broadcasted_iota(jnp.int32, (1, HW), 1)
        xpos = lane % W
        not_left = xpos != 0          # zero when reading x-1 at x == 0
        not_right = xpos != (W - 1)   # zero when reading x+1 at x == W-1

        def read_tap(src_ref, cin, dyo, dxo):
            """Shifted (cin, HW) window of a padded, flattened activation buffer."""
            start = _PADL + dyo * W + dxo
            p = src_ref[:cin, start:start + HW]            # (cin, HW) f32
            if dxo == -1:
                p = jnp.where(not_left, p, 0.0)
            elif dxo == 1:
                p = jnp.where(not_right, p, 0.0)
            return p

        def conv3x3_C(src_ref, w, b):
            """3x3 conv with cin=C as ONE MXU matmul: (Cout,9C) @ (9C,HW)."""
            for t, (dyo, dxo) in enumerate(TAPS):
                lhs_ref[t * C:(t + 1) * C, :] = (
                    read_tap(src_ref, C, dyo, dxo).astype(jnp.bfloat16))
            y = jnp.dot(w, lhs_ref[...], preferred_element_type=jnp.float32)
            return y + b                                    # (Cout, HW) f32

        # ---- build conv1 input (pan - lms), channel-major, in the padded buffer ----
        xv = x_ref[0]                                       # (S+1, HW) f32
        lms = xv[:S, :]                                     # (S, HW)
        pan = xv[S:S + 1, :]                                # (1, HW)
        act_ref[:S, _PADL:_PADL + HW] = pan - lms

        # ---- conv1 + ReLU: cin=S is tiny -> 9 small matmuls (K=S), f32 accumulate ----
        acc = jnp.zeros((C, HW), jnp.float32)
        for t, (dyo, dxo) in enumerate(TAPS):
            piece = read_tap(act_ref, S, dyo, dxo).astype(jnp.bfloat16)   # (S, HW)
            acc = acc + jnp.dot(w1_ref[:, t * S:(t + 1) * S], piece,
                                preferred_element_type=jnp.float32)
        act_ref[interior] = jnp.maximum(acc + b1_ref[...], 0.0)

        # ---- backbone: n_blocks x (conv -> ReLU -> conv -> +x), residuals in f32 ----
        for i in range(n_blocks):
            y = conv3x3_C(act_ref, wb_ref[2 * i], bb_ref[2 * i])
            tmp_ref[interior] = jnp.maximum(y, 0.0)
            y = conv3x3_C(tmp_ref, wb_ref[2 * i + 1], bb_ref[2 * i + 1])
            act_ref[interior] = act_ref[interior] + y

        # ---- conv3 with fused final residual:  sr = lms + conv3(rs) ----------------
        y = conv3x3_C(act_ref, w3_ref[...], b3_ref[...])    # (S, HW)
        o_ref[0] = (lms + y).astype(o_ref.dtype)

    return kernel


# ----------------------------------------------------------------------------
# Wrapper: one pallas_call for the whole forward pass
# ----------------------------------------------------------------------------
def fusionnet_forward(x_nchw, params, spectral_num, *, channel=32, n_blocks=4):
    """x_nchw: (N, spectral_num + 1, H, W) = (lms || pan).  Returns sr (N, S, H, W)."""
    N, Ctot, H, W = x_nchw.shape
    S, C = spectral_num, channel
    assert Ctot == S + 1
    assert W + 1 <= _PADL, "halo too small for this image width"
    HW = H * W
    HWP = 2 * _PADL + HW

    # NCHW is already channel-major for the lane-dense layout: only a free reshape.
    x_flat = x_nchw.reshape(N, Ctot, HW)

    # Fold the 3x3 taps into the contraction dim and transpose for the MXU:
    # (3, 3, Cin, Cout) -> (Cout, 9*Cin), bf16 (f32 accumulation in the kernel).
    def fold_t(w):
        kh, kw, cin, cout = w.shape
        return jnp.transpose(w.reshape(kh * kw * cin, cout)).astype(jnp.bfloat16)

    w1 = fold_t(params["conv1_w"])                                     # (C, 9S)
    b1 = params["conv1_b"].reshape(C, 1).astype(jnp.float32)
    wb = jnp.stack([fold_t(params[f"res{i}_c{j}_w"])
                    for i in range(n_blocks) for j in (1, 2)])         # (2n, C, 9C)
    bb = jnp.stack([params[f"res{i}_c{j}_b"].reshape(C, 1).astype(jnp.float32)
                    for i in range(n_blocks) for j in (1, 2)])         # (2n, C, 1)
    w3 = fold_t(params["conv3_w"])                                     # (S, 9C)
    b3 = params["conv3_b"].reshape(S, 1).astype(jnp.float32)

    kernel = _make_fusionnet_kernel(H, W, S, C, n_blocks)

    grid_spec = pltpu.PrefetchScalarGridSpec(
        num_scalar_prefetch=0,
        grid=(N,),
        in_specs=[
            pl.BlockSpec((1, Ctot, HW), lambda n: (n, 0, 0)),          # x (lms||pan)
            # Weights/biases: grid-invariant index_map -> DMA'd into VMEM only once.
            pl.BlockSpec((C, 9 * S), lambda n: (0, 0)),                # w1^T
            pl.BlockSpec((C, 1), lambda n: (0, 0)),                    # b1
            pl.BlockSpec((2 * n_blocks, C, 9 * C), lambda n: (0, 0, 0)),  # wb^T
            pl.BlockSpec((2 * n_blocks, C, 1), lambda n: (0, 0, 0)),   # bb
            pl.BlockSpec((S, 9 * C), lambda n: (0, 0)),                # w3^T
            pl.BlockSpec((S, 1), lambda n: (0, 0)),                    # b3
        ],
        out_specs=pl.BlockSpec((1, S, HW), lambda n: (n, 0, 0)),
        scratch_shapes=[
            pltpu.VMEM((C, HWP), jnp.float32),       # act : padded flattened rs
            pltpu.VMEM((C, HWP), jnp.float32),       # tmp : padded block mid
            pltpu.VMEM((9 * C, HW), jnp.bfloat16),   # staged matmul RHS (K folded)
        ],
    )

    sr_flat = pl.pallas_call(
        kernel,
        out_shape=jax.ShapeDtypeStruct((N, S, HW), x_nchw.dtype),
        grid_spec=grid_spec,
        compiler_params=pltpu.CompilerParams(
            dimension_semantics=("parallel",)),
    )(x_flat, w1, b1, wb, bb, w3, b3)

    return sr_flat.reshape(N, S, H, W)


def fusionnet_train_step(x_nchw, params, spectral_num, **kw):
    # Matches FusionNet.train_step: returns (sr, 0.0)
    return fusionnet_forward(x_nchw, params, spectral_num, **kw), 0.0


# ----------------------------------------------------------------------------
# Deterministic parameter init (mirrors the module's variance_scaling_initializer:
# factor=2.0, FAN_IN computed on the torch weight shape (cout, cin, 3, 3) -> n=3*cout*cin)
# ----------------------------------------------------------------------------
def _init_conv(key, cin, cout):
    n = 3.0 * cout * cin
    std = math.sqrt(1.3 * 2.0 / n)
    w = std * jax.random.truncated_normal(key, -2.0, 2.0, (3, 3, cin, cout),
                                          jnp.float32)
    b = jnp.zeros((cout,), jnp.float32)
    return w, b


def init_params(key, spectral_num, channel=32, n_blocks=4):
    keys = jax.random.split(key, 2 + 2 * n_blocks)
    params = {}
    params["conv1_w"], params["conv1_b"] = _init_conv(keys[0], spectral_num, channel)
    for i in range(n_blocks):
        params[f"res{i}_c1_w"], params[f"res{i}_c1_b"] = _init_conv(
            keys[1 + 2 * i], channel, channel)
        params[f"res{i}_c2_w"], params[f"res{i}_c2_b"] = _init_conv(
            keys[2 + 2 * i], channel, channel)
    params["conv3_w"], params["conv3_b"] = _init_conv(keys[-1], channel, spectral_num)
    return params


# ----------------------------------------------------------------------------
# Pure-JAX f32 reference (for correctness checking of the fused Pallas kernel)
# ----------------------------------------------------------------------------
def _ref_conv3x3(x, w, b):
    y = lax.conv_general_dilated(
        x, w, window_strides=(1, 1), padding="SAME",
        dimension_numbers=("NHWC", "HWIO", "NHWC"),
        precision=lax.Precision.HIGHEST)
    return y + b.reshape(1, 1, 1, -1)


def fusionnet_forward_ref(x_nchw, params, spectral_num, n_blocks=4):
    lms = jnp.transpose(x_nchw[:, :spectral_num], (0, 2, 3, 1))
    pan = jnp.transpose(x_nchw[:, spectral_num:], (0, 2, 3, 1))
    inp = pan - lms
    rs = jax.nn.relu(_ref_conv3x3(inp, params["conv1_w"], params["conv1_b"]))
    for i in range(n_blocks):
        t = jax.nn.relu(_ref_conv3x3(rs, params[f"res{i}_c1_w"],
                                     params[f"res{i}_c1_b"]))
        rs = rs + _ref_conv3x3(t, params[f"res{i}_c2_w"], params[f"res{i}_c2_b"])
    out = _ref_conv3x3(rs, params["conv3_w"], params["conv3_b"])
    return jnp.transpose(lms + out, (0, 3, 1, 2))


# ----------------------------------------------------------------------------
if __name__ == "__main__":
    import numpy as np

    N, SPECTRAL, CHANNEL, H, W = 2, 4, 32, 16, 16

    key = jax.random.PRNGKey(0)
    k_params, k_x = jax.random.split(key)
    params = init_params(k_params, SPECTRAL, CHANNEL)

    # Input mirrors the module's train/val input: channels = spectral_num + 1 (lms || pan)
    x = jax.random.normal(k_x, (N, SPECTRAL + 1, H, W), jnp.float32)

    fwd = jax.jit(partial(fusionnet_forward, spectral_num=SPECTRAL,
                          channel=CHANNEL))
    sr = fwd(x, params)
    jax.block_until_ready(sr)

    # Correctness vs. a pure-JAX f32 reference.  Matmul operands inside the kernel
    # are bf16 (f32 MXU accumulation), hence the bf16-level tolerance.
    sr_ref = fusionnet_forward_ref(x, params, SPECTRAL)
    np.testing.assert_allclose(np.asarray(sr), np.asarray(sr_ref),
                               rtol=2e-2, atol=2e-2)

    assert sr.shape == (N, SPECTRAL, H, W)
    print("KERNEL_OK")
</pallas_src>

<mosaic_0001>
module attributes {stable_mosaic.version = 11 : i64} {
  func.func @kernel(%arg0: i32, %arg1: memref<1x5x256xf32, #tpu.memory_space<vmem>>, %arg2: memref<32x36xbf16, #tpu.memory_space<vmem>>, %arg3: memref<32x1xf32, #tpu.memory_space<vmem>>, %arg4: memref<8x32x288xbf16, #tpu.memory_space<vmem>>, %arg5: memref<8x32x1xf32, #tpu.memory_space<vmem>>, %arg6: memref<4x288xbf16, #tpu.memory_space<vmem>>, %arg7: memref<4x1xf32, #tpu.memory_space<vmem>>, %arg8: memref<1x4x256xf32, #tpu.memory_space<vmem>>, %arg9: memref<32x512xf32, #tpu.memory_space<vmem>>, %arg10: memref<32x512xf32, #tpu.memory_space<vmem>>, %arg11: memref<288x256xbf16, #tpu.memory_space<vmem>>) attributes {dimension_semantics = [#tpu.dimension_semantics<parallel>], iteration_bounds = array<i64: 2>, scalar_prefetch = 0 : i64, scratch_operands = 3 : i64, tpu.core_type = #tpu.core_type<tc>, window_params = [{transform_indices = @transform_0, window_bounds = array<i64: 1, 5, 256>}, {pipeline_mode = #tpu.pipeline_mode<synchronous>, transform_indices = @transform_1, window_bounds = array<i64: 32, 36>}, {pipeline_mode = #tpu.pipeline_mode<synchronous>, transform_indices = @transform_2, window_bounds = array<i64: 32, 1>}, {pipeline_mode = #tpu.pipeline_mode<synchronous>, transform_indices = @transform_3, window_bounds = array<i64: 8, 32, 288>}, {pipeline_mode = #tpu.pipeline_mode<synchronous>, transform_indices = @transform_4, window_bounds = array<i64: 8, 32, 1>}, {pipeline_mode = #tpu.pipeline_mode<synchronous>, transform_indices = @transform_5, window_bounds = array<i64: 4, 288>}, {pipeline_mode = #tpu.pipeline_mode<synchronous>, transform_indices = @transform_6, window_bounds = array<i64: 4, 1>}, {transform_indices = @transform_7, window_bounds = array<i64: 1, 4, 256>}]} {
    %cst = arith.constant 0.000000e+00 : f32
    %0 = vector.broadcast %cst : f32 to vector<32x128xf32>
    %c0 = arith.constant 0 : index
    %c0_0 = arith.constant 0 : index
    %1 = vector.load %arg9[%c0, %c0_0] : memref<32x512xf32, #tpu.memory_space<vmem>>, vector<32x128xf32>
    tpu.vector_store %arg9[%c0, %c0_0], %0 {strides = array<i32>} : memref<32x512xf32, #tpu.memory_space<vmem>>, vector<32x128xf32>,
    %c0_1 = arith.constant 0 : index
    %c384 = arith.constant 384 : index
    %2 = vector.load %arg9[%c0_1, %c384] : memref<32x512xf32, #tpu.memory_space<vmem>>, vector<32x128xf32>
    tpu.vector_store %arg9[%c0_1, %c384], %0 {strides = array<i32>} : memref<32x512xf32, #tpu.memory_space<vmem>>, vector<32x128xf32>,
    %c0_2 = arith.constant 0 : index
    %c0_3 = arith.constant 0 : index
    %3 = vector.load %arg10[%c0_2, %c0_3] : memref<32x512xf32, #tpu.memory_space<vmem>>, vector<32x128xf32>
    tpu.vector_store %arg10[%c0_2, %c0_3], %0 {strides = array<i32>} : memref<32x512xf32, #tpu.memory_space<vmem>>, vector<32x128xf32>,
    %c0_4 = arith.constant 0 : index
    %c384_5 = arith.constant 384 : index
    %4 = vector.load %arg10[%c0_4, %c384_5] : memref<32x512xf32, #tpu.memory_space<vmem>>, vector<32x128xf32>
    tpu.vector_store %arg10[%c0_4, %c384_5], %0 {strides = array<i32>} : memref<32x512xf32, #tpu.memory_space<vmem>>, vector<32x128xf32>,
    %5 = tpu.iota {dimensions = array<i32: 1>} : vector<1x256xi32>
    %c16_i32 = arith.constant 16 : i32
    %c0_i32 = arith.constant 0 : i32
    %6 = arith.cmpi eq, %c16_i32, %c0_i32 : i32
    %c1_i32 = arith.constant 1 : i32
    %7 = arith.select %6, %c1_i32, %c16_i32 : i32
    %8 = vector.broadcast %7 : i32 to vector<1x256xi32>
    %9 = arith.remsi %5, %8 : vector<1x256xi32>
    %c0_i32_6 = arith.constant 0 : i32
    %10 = vector.broadcast %c0_i32_6 : i32 to vector<1x256xi32>
    %11 = arith.cmpi ne, %9, %10 : vector<1x256xi32>
    %c0_i32_7 = arith.constant 0 : i32
    %12 = vector.broadcast %c0_i32_7 : i32 to vector<1x256xi32>
    %13 = arith.cmpi slt, %9, %12 : vector<1x256xi32>
    %c0_i32_8 = arith.constant 0 : i32
    %14 = arith.cmpi slt, %7, %c0_i32_8 : i32
    %15 = vector.broadcast %14 : i1 to vector<1x256xi1>
    %16 = vector.broadcast %15 : vector<1x256xi1> to vector<1x256xi1>
    %17 = arith.xori %13, %16 : vector<1x256xi1>
    %18 = arith.andi %17, %11 : vector<1x256xi1>
    %19 = vector.broadcast %7 : i32 to vector<1x256xi32>
    %20 = arith.addi %9, %19 : vector<1x256xi32>
    %21 = arith.select %18, %20, %9 : vector<1x256xi1>, vector<1x256xi32>
    %c0_i32_9 = arith.constant 0 : i32
    %22 = vector.broadcast %c0_i32_9 : i32 to vector<1x256xi32>
    %23 = arith.cmpi ne, %21, %22 : vector<1x256xi32>
    %c15_i32 = arith.constant 15 : i32
    %24 = vector.broadcast %c15_i32 : i32 to vector<1x256xi32>
    %25 = arith.cmpi ne, %21, %24 : vector<1x256xi32>
    %c0_10 = arith.constant 0 : index
    %c0_11 = arith.constant 0 : index
    %c0_12 = arith.constant 0 : index
    %26 = vector.load %arg1[%c0_10, %c0_11, %c0_12] : memref<1x5x256xf32, #tpu.memory_space<vmem>>, vector<1x5x256xf32>
    %27 = vector.shape_cast %26 : vector<1x5x256xf32> to vector<5x256xf32>
    %28 = vector.extract_strided_slice %27 {offsets = [0, 0], sizes = [4, 256], strides = [1, 1]} : vector<5x256xf32> to vector<4x256xf32>
    %29 = vector.extract_strided_slice %27 {offsets = [4, 0], sizes = [1, 256], strides = [1, 1]} : vector<5x256xf32> to vector<1x256xf32>
    %30 = vector.broadcast %29 : vector<1x256xf32> to vector<4x256xf32>
    %31 = arith.subf %30, %28 : vector<4x256xf32>
    %c0_13 = arith.constant 0 : index
    %c128 = arith.constant 128 : index
    %32 = vector.load %arg9[%c0_13, %c128] : memref<32x512xf32, #tpu.memory_space<vmem>>, vector<4x256xf32>
    tpu.vector_store %arg9[%c0_13, %c128], %31 {strides = array<i32>} : memref<32x512xf32, #tpu.memory_space<vmem>>, vector<4x256xf32>,
    %cst_14 = arith.constant 0.000000e+00 : f32
    %33 = vector.broadcast %cst_14 : f32 to vector<32x256xf32>
    %c0_15 = arith.constant 0 : index
    %c111 = arith.constant 111 : index
    %34 = vector.load %arg9[%c0_15, %c111] : memref<32x512xf32, #tpu.memory_space<vmem>>, vector<4x256xf32>
    %cst_16 = arith.constant 0.000000e+00 : f32
    %35 = vector.shape_cast %23 : vector<1x256xi1> to vector<1x256xi1>
    %36 = vector.broadcast %35 : vector<1x256xi1> to vector<4x256xi1>
    %37 = vector.broadcast %cst_16 : f32 to vector<4x256xf32>
    %38 = arith.select %36, %34, %37 : vector<4x256xi1>, vector<4x256xf32>
    %39 = arith.truncf %38 : vector<4x256xf32> to vector<4x256xbf16>
    %c0_17 = arith.constant 0 : index
    %c0_18 = arith.constant 0 : index
    %40 = vector.load %arg2[%c0_17, %c0_18] : memref<32x36xbf16, #tpu.memory_space<vmem>>, vector<32x4xbf16>
    %cst_19 = arith.constant dense<0.000000e+00> : vector<32x256xf32>
    %41 = tpu.matmul %40, %39, %cst_19 {dimension_numbers = #tpu.dot_dimension_numbers<[1], [0], [0], [1], [0, 0, 1, 1], [], []>} : vector<32x4xbf16>, vector<4x256xbf16>, vector<32x256xf32> -> vector<32x256xf32>
    %42 = arith.addf %33, %41 : vector<32x256xf32>
    %c0_20 = arith.constant 0 : index
    %c112 = arith.constant 112 : index
    %43 = vector.load %arg9[%c0_20, %c112] : memref<32x512xf32, #tpu.memory_space<vmem>>, vector<4x256xf32>
    %44 = arith.truncf %43 : vector<4x256xf32> to vector<4x256xbf16>
    %c0_21 = arith.constant 0 : index
    %c4 = arith.constant 4 : index
    %45 = vector.load %arg2[%c0_21, %c4] : memref<32x36xbf16, #tpu.memory_space<vmem>>, vector<32x4xbf16>
    %cst_22 = arith.constant dense<0.000000e+00> : vector<32x256xf32>
    %46 = tpu.matmul %45, %44, %cst_22 {dimension_numbers = #tpu.dot_dimension_numbers<[1], [0], [0], [1], [0, 0, 1, 1], [], []>} : vector<32x4xbf16>, vector<4x256xbf16>, vector<32x256xf32> -> vector<32x256xf32>
    %47 = arith.addf %42, %46 : vector<32x256xf32>
    %c0_23 = arith.constant 0 : index
    %c113 = arith.constant 113 : index
    %48 = vector.load %arg9[%c0_23, %c113] : memref<32x512xf32, #tpu.memory_space<vmem>>, vector<4x256xf32>
    %cst_24 = arith.constant 0.000000e+00 : f32
    %49 = vector.shape_cast %25 : vector<1x256xi1> to vector<1x256xi1>
    %50 = vector.broadcast %49 : vector<1x256xi1> to vector<4x256xi1>
    %51 = vector.broadcast %cst_24 : f32 to vector<4x256xf32>
    %52 = arith.select %50, %48, %51 : vector<4x256xi1>, vector<4x256xf32>
    %53 = arith.truncf %52 : vector<4x256xf32> to vector<4x256xbf16>
    %c0_25 = arith.constant 0 : index
    %c8 = arith.constant 8 : index
    %54 = vector.load %arg2[%c0_25, %c8] : memref<32x36xbf16, #tpu.memory_space<vmem>>, vector<32x4xbf16>
    %cst_26 = arith.constant dense<0.000000e+00> : vector<32x256xf32>
    %55 = tpu.matmul %54, %53, %cst_26 {dimension_numbers = #tpu.dot_dimension_numbers<[1], [0], [0], [1], [0, 0, 1, 1], [], []>} : vector<32x4xbf16>, vector<4x256xbf16>, vector<32x256xf32> -> vector<32x256xf32>
    %56 = arith.addf %47, %55 : vector<32x256xf32>
    %c0_27 = arith.constant 0 : index
    %c127 = arith.constant 127 : index
    %57 = vector.load %arg9[%c0_27, %c127] : memref<32x512xf32, #tpu.memory_space<vmem>>, vector<4x256xf32>
    %cst_28 = arith.constant 0.000000e+00 : f32
    %58 = vector.shape_cast %23 : vector<1x256xi1> to vector<1x256xi1>
    %59 = vector.broadcast %58 : vector<1x256xi1> to vector<4x256xi1>
    %60 = vector.broadcast %cst_28 : f32 to vector<4x256xf32>
    %61 = arith.select %59, %57, %60 : vector<4x256xi1>, vector<4x256xf32>
    %62 = arith.truncf %61 : vector<4x256xf32> to vector<4x256xbf16>
    %c0_29 = arith.constant 0 : index
    %c12 = arith.constant 12 : index
    %63 = vector.load %arg2[%c0_29, %c12] : memref<32x36xbf16, #tpu.memory_space<vmem>>, vector<32x4xbf16>
    %cst_30 = arith.constant dense<0.000000e+00> : vector<32x256xf32>
    %64 = tpu.matmul %63, %62, %cst_30 {dimension_numbers = #tpu.dot_dimension_numbers<[1], [0], [0], [1], [0, 0, 1, 1], [], []>} : vector<32x4xbf16>, vector<4x256xbf16>, vector<32x256xf32> -> vector<32x256xf32>
    %65 = arith.addf %56, %64 : vector<32x256xf32>
    %c0_31 = arith.constant 0 : index
    %c128_32 = arith.constant 128 : index
    %66 = vector.load %arg9[%c0_31, %c128_32] : memref<32x512xf32, #tpu.memory_space<vmem>>, vector<4x256xf32>
    %67 = arith.truncf %66 : vector<4x256xf32> to vector<4x256xbf16>
    %c0_33 = arith.constant 0 : index
    %c16 = arith.constant 16 : index
    %68 = vector.load %arg2[%c0_33, %c16] : memref<32x36xbf16, #tpu.memory_space<vmem>>, vector<32x4xbf16>
    %cst_34 = arith.constant dense<0.000000e+00> : vector<32x256xf32>
    %69 = tpu.matmul %68, %67, %cst_34 {dimension_numbers = #tpu.dot_dimension_numbers<[1], [0], [0], [1], [0, 0, 1, 1], [], []>} : vector<32x4xbf16>, vector<4x256xbf16>, vector<32x256xf32> -> vector<32x256xf32>
    %70 = arith.addf %65, %69 : vector<32x256xf32>
    %c0_35 = arith.constant 0 : index
    %c129 = arith.constant 129 : index
    %71 = vector.load %arg9[%c0_35, %c129] : memref<32x512xf32, #tpu.memory_space<vmem>>, vector<4x256xf32>
    %cst_36 = arith.constant 0.000000e+00 : f32
    %72 = vector.shape_cast %25 : vector<1x256xi1> to vector<1x256xi1>
    %73 = vector.broadcast %72 : vector<1x256xi1> to vector<4x256xi1>
    %74 = vector.broadcast %cst_36 : f32 to vector<4x256xf32>
    %75 = arith.select %73, %71, %74 : vector<4x256xi1>, vector<4x256xf32>
    %76 = arith.truncf %75 : vector<4x256xf32> to vector<4x256xbf16>
    %c0_37 = arith.constant 0 : index
    %c20 = arith.constant 20 : index
    %77 = vector.load %arg2[%c0_37, %c20] : memref<32x36xbf16, #tpu.memory_space<vmem>>, vector<32x4xbf16>
    %cst_38 = arith.constant dense<0.000000e+00> : vector<32x256xf32>
    %78 = tpu.matmul %77, %76, %cst_38 {dimension_numbers = #tpu.dot_dimension_numbers<[1], [0], [0], [1], [0, 0, 1, 1], [], []>} : vector<32x4xbf16>, vector<4x256xbf16>, vector<32x256xf32> -> vector<32x256xf32>
    %79 = arith.addf %70, %78 : vector<32x256xf32>
    %c0_39 = arith.constant 0 : index
    %c143 = arith.constant 143 : index
    %80 = vector.load %arg9[%c0_39, %c143] : memref<32x512xf32, #tpu.memory_space<vmem>>, vector<4x256xf32>
    %cst_40 = arith.constant 0.000000e+00 : f32
    %81 = vector.shape_cast %23 : vector<1x256xi1> to vector<1x256xi1>
    %82 = vector.broadcast %81 : vector<1x256xi1> to vector<4x256xi1>
    %83 = vector.broadcast %cst_40 : f32 to vector<4x256xf32>
    %84 = arith.select %82, %80, %83 : vector<4x256xi1>, vector<4x256xf32>
    %85 = arith.truncf %84 : vector<4x256xf32> to vector<4x256xbf16>
    %c0_41 = arith.constant 0 : index
    %c24 = arith.constant 24 : index
    %86 = vector.load %arg2[%c0_41, %c24] : memref<32x36xbf16, #tpu.memory_space<vmem>>, vector<32x4xbf16>
    %cst_42 = arith.constant dense<0.000000e+00> : vector<32x256xf32>
    %87 = tpu.matmul %86, %85, %cst_42 {dimension_numbers = #tpu.dot_dimension_numbers<[1], [0], [0], [1], [0, 0, 1, 1], [], []>} : vector<32x4xbf16>, vector<4x256xbf16>, vector<32x256xf32> -> vector<32x256xf32>
    %88 = arith.addf %79, %87 : vector<32x256xf32>
    %c0_43 = arith.constant 0 : index
    %c144 = arith.constant 144 : index
    %89 = vector.load %arg9[%c0_43, %c144] : memref<32x512xf32, #tpu.memory_space<vmem>>, vector<4x256xf32>
    %90 = arith.truncf %89 : vector<4x256xf32> to vector<4x256xbf16>
    %c0_44 = arith.constant 0 : index
    %c28 = arith.constant 28 : index
    %91 = vector.load %arg2[%c0_44, %c28] : memref<32x36xbf16, #tpu.memory_space<vmem>>, vector<32x4xbf16>
    %cst_45 = arith.constant dense<0.000000e+00> : vector<32x256xf32>
    %92 = tpu.matmul %91, %90, %cst_45 {dimension_numbers = #tpu.dot_dimension_numbers<[1], [0], [0], [1], [0, 0, 1, 1], [], []>} : vector<32x4xbf16>, vector<4x256xbf16>, vector<32x256xf32> -> vector<32x256xf32>
    %93 = arith.addf %88, %92 : vector<32x256xf32>
    %c0_46 = arith.constant 0 : index
    %c145 = arith.constant 145 : index
    %94 = vector.load %arg9[%c0_46, %c145] : memref<32x512xf32, #tpu.memory_space<vmem>>, vector<4x256xf32>
    %cst_47 = arith.constant 0.000000e+00 : f32
    %95 = vector.shape_cast %25 : vector<1x256xi1> to vector<1x256xi1>
    %96 = vector.broadcast %95 : vector<1x256xi1> to vector<4x256xi1>
    %97 = vector.broadcast %cst_47 : f32 to vector<4x256xf32>
    %98 = arith.select %96, %94, %97 : vector<4x256xi1>, vector<4x256xf32>
    %99 = arith.truncf %98 : vector<4x256xf32> to vector<4x256xbf16>
    %c0_48 = arith.constant 0 : index
    %c32 = arith.constant 32 : index
    %100 = vector.load %arg2[%c0_48, %c32] : memref<32x36xbf16, #tpu.memory_space<vmem>>, vector<32x4xbf16>
    %cst_49 = arith.constant dense<0.000000e+00> : vector<32x256xf32>
    %101 = tpu.matmul %100, %99, %cst_49 {dimension_numbers = #tpu.dot_dimension_numbers<[1], [0], [0], [1], [0, 0, 1, 1], [], []>} : vector<32x4xbf16>, vector<4x256xbf16>, vector<32x256xf32> -> vector<32x256xf32>
    %102 = arith.addf %93, %101 : vector<32x256xf32>
    %c0_50 = arith.constant 0 : index
    %c0_51 = arith.constant 0 : index
    %103 = vector.load %arg3[%c0_50, %c0_51] : memref<32x1xf32, #tpu.memory_space<vmem>>, vector<32x1xf32>
    %104 = vector.broadcast %103 : vector<32x1xf32> to vector<32x256xf32>
    %105 = arith.addf %102, %104 : vector<32x256xf32>
    %cst_52 = arith.constant 0.000000e+00 : f32
    %106 = vector.broadcast %cst_52 : f32 to vector<32x256xf32>
    %107 = arith.maximumf %105, %106 : vector<32x256xf32>
    %c0_53 = arith.constant 0 : index
    %c128_54 = arith.constant 128 : index
    %108 = vector.load %arg9[%c0_53, %c128_54] : memref<32x512xf32, #tpu.memory_space<vmem>>, vector<32x256xf32>
    tpu.vector_store %arg9[%c0_53, %c128_54], %107 {strides = array<i32>} : memref<32x512xf32, #tpu.memory_space<vmem>>, vector<32x256xf32>,
    %c0_55 = arith.constant 0 : index
    %c0_56 = arith.constant 0 : index
    %c0_57 = arith.constant 0 : index
    %109 = vector.load %arg4[%c0_55, %c0_56, %c0_57] : memref<8x32x288xbf16, #tpu.memory_space<vmem>>, vector<1x32x288xbf16>
    %110 = vector.shape_cast %109 : vector<1x32x288xbf16> to vector<32x288xbf16>
    %c0_58 = arith.constant 0 : index
    %c0_59 = arith.constant 0 : index
    %c0_60 = arith.constant 0 : index
    %111 = vector.load %arg5[%c0_58, %c0_59, %c0_60] : memref<8x32x1xf32, #tpu.memory_space<vmem>>, vector<1x32x1xf32>
    %112 = vector.shape_cast %111 : vector<1x32x1xf32> to vector<32x1xf32>
    %c0_61 = arith.constant 0 : index
    %c111_62 = arith.constant 111 : index
    %113 = vector.load %arg9[%c0_61, %c111_62] : memref<32x512xf32, #tpu.memory_space<vmem>>, vector<32x256xf32>
    %cst_63 = arith.constant 0.000000e+00 : f32
    %114 = vector.shape_cast %23 : vector<1x256xi1> to vector<1x256xi1>
    %115 = vector.broadcast %114 : vector<1x256xi1> to vector<32x256xi1>
    %116 = vector.broadcast %cst_63 : f32 to vector<32x256xf32>
    %117 = arith.select %115, %113, %116 : vector<32x256xi1>, vector<32x256xf32>
    %118 = arith.truncf %117 : vector<32x256xf32> to vector<32x256xbf16>
    %c0_64 = arith.constant 0 : index
    %c0_65 = arith.constant 0 : index
    %119 = vector.load %arg11[%c0_64, %c0_65] : memref<288x256xbf16, #tpu.memory_space<vmem>>, vector<32x256xbf16>
    tpu.vector_store %arg11[%c0_64, %c0_65], %118 {strides = array<i32>} : memref<288x256xbf16, #tpu.memory_space<vmem>>, vector<32x256xbf16>,
    %c0_66 = arith.constant 0 : index
    %c112_67 = arith.constant 112 : index
    %120 = vector.load %arg9[%c0_66, %c112_67] : memref<32x512xf32, #tpu.memory_space<vmem>>, vector<32x256xf32>
    %121 = arith.truncf %120 : vector<32x256xf32> to vector<32x256xbf16>
    %c32_68 = arith.constant 32 : index
    %c0_69 = arith.constant 0 : index
    %122 = vector.load %arg11[%c32_68, %c0_69] : memref<288x256xbf16, #tpu.memory_space<vmem>>, vector<32x256xbf16>
    tpu.vector_store %arg11[%c32_68, %c0_69], %121 {strides = array<i32>} : memref<288x256xbf16, #tpu.memory_space<vmem>>, vector<32x256xbf16>,
    %c0_70 = arith.constant 0 : index
    %c113_71 = arith.constant 113 : index
    %123 = vector.load %arg9[%c0_70, %c113_71] : memref<32x512xf32, #tpu.memory_space<vmem>>, vector<32x256xf32>
    %cst_72 = arith.constant 0.000000e+00 : f32
    %124 = vector.shape_cast %25 : vector<1x256xi1> to vector<1x256xi1>
    %125 = vector.broadcast %124 : vector<1x256xi1> to vector<32x256xi1>
    %126 = vector.broadcast %cst_72 : f32 to vector<32x256xf32>
    %127 = arith.select %125, %123, %126 : vector<32x256xi1>, vector<32x256xf32>
    %128 = arith.truncf %127 : vector<32x256xf32> to vector<32x256xbf16>
    %c64 = arith.constant 64 : index
    %c0_73 = arith.constant 0 : index
    %129 = vector.load %arg11[%c64, %c0_73] : memref<288x256xbf16, #tpu.memory_space<vmem>>, vector<32x256xbf16>
    tpu.vector_store %arg11[%c64, %c0_73], %128 {strides = array<i32>} : memref<288x256xbf16, #tpu.memory_space<vmem>>, vector<32x256xbf16>,
    %c0_74 = arith.constant 0 : index
    %c127_75 = arith.constant 127 : index
    %130 = vector.load %arg9[%c0_74, %c127_75] : memref<32x512xf32, #tpu.memory_space<vmem>>, vector<32x256xf32>
    %cst_76 = arith.constant 0.000000e+00 : f32
    %131 = vector.shape_cast %23 : vector<1x256xi1> to vector<1x256xi1>
    %132 = vector.broadcast %131 : vector<1x256xi1> to vector<32x256xi1>
    %133 = vector.broadcast %cst_76 : f32 to vector<32x256xf32>
    %134 = arith.select %132, %130, %133 : vector<32x256xi1>, vector<32x256xf32>
    %135 = arith.truncf %134 : vector<32x256xf32> to vector<32x256xbf16>
    %c96 = arith.constant 96 : index
    %c0_77 = arith.constant 0 : index
    %136 = vector.load %arg11[%c96, %c0_77] : memref<288x256xbf16, #tpu.memory_space<vmem>>, vector<32x256xbf16>
    tpu.vector_store %arg11[%c96, %c0_77], %135 {strides = array<i32>} : memref<288x256xbf16, #tpu.memory_space<vmem>>, vector<32x256xbf16>,
    %c0_78 = arith.constant 0 : index
    %c128_79 = arith.constant 128 : index
    %137 = vector.load %arg9[%c0_78, %c128_79] : memref<32x512xf32, #tpu.memory_space<vmem>>, vector<32x256xf32>
    %138 = arith.truncf %137 : vector<32x256xf32> to vector<32x256xbf16>
    %c128_80 = arith.constant 128 : index
    %c0_81 = arith.constant 0 : index
    %139 = vector.load %arg11[%c128_80, %c0_81] : memref<288x256xbf16, #tpu.memory_space<vmem>>, vector<32x256xbf16>
    tpu.vector_store %arg11[%c128_80, %c0_81], %138 {strides = array<i32>} : memref<288x256xbf16, #tpu.memory_space<vmem>>, vector<32x256xbf16>,
    %c0_82 = arith.constant 0 : index
    %c129_83 = arith.constant 129 : index
    %140 = vector.load %arg9[%c0_82, %c129_83] : memref<32x512xf32, #tpu.memory_space<vmem>>, vector<32x256xf32>
    %cst_84 = arith.constant 0.000000e+00 : f32
    %141 = vector.shape_cast %25 : vector<1x256xi1> to vector<1x256xi1>
    %142 = vector.broadcast %141 : vector<1x256xi1> to vector<32x256xi1>
    %143 = vector.broadcast %cst_84 : f32 to vector<32x256xf32>
    %144 = arith.select %142, %140, %143 : vector<32x256xi1>, vector<32x256xf32>
    %145 = arith.truncf %144 : vector<32x256xf32> to vector<32x256xbf16>
    %c160 = arith.constant 160 : index
    %c0_85 = arith.constant 0 : index
    %146 = vector.load %arg11[%c160, %c0_85] : memref<288x256xbf16, #tpu.memory_space<vmem>>, vector<32x256xbf16>
    tpu.vector_store %arg11[%c160, %c0_85], %145 {strides = array<i32>} : memref<288x256xbf16, #tpu.memory_space<vmem>>, vector<32x256xbf16>,
    %c0_86 = arith.constant 0 : index
    %c143_87 = arith.constant 143 : index
    %147 = vector.load %arg9[%c0_86, %c143_87] : memref<32x512xf32, #tpu.memory_space<vmem>>, vector<32x256xf32>
    %cst_88 = arith.constant 0.000000e+00 : f32
    %148 = vector.shape_cast %23 : vector<1x256xi1> to vector<1x256xi1>
    %149 = vector.broadcast %148 : vector<1x256xi1> to vector<32x256xi1>
    %150 = vector.broadcast %cst_88 : f32 to vector<32x256xf32>
    %151 = arith.select %149, %147, %150 : vector<32x256xi1>, vector<32x256xf32>
    %152 = arith.truncf %151 : vector<32x256xf32> to vector<32x256xbf16>
    %c192 = arith.constant 192 : index
    %c0_89 = arith.constant 0 : index
    %153 = vector.load %arg11[%c192, %c0_89] : memref<288x256xbf16, #tpu.memory_space<vmem>>, vector<32x256xbf16>
    tpu.vector_store %arg11[%c192, %c0_89], %152 {strides = array<i32>} : memref<288x256xbf16, #tpu.memory_space<vmem>>, vector<32x256xbf16>,
    %c0_90 = arith.constant 0 : index
    %c144_91 = arith.constant 144 : index
    %154 = vector.load %arg9[%c0_90, %c144_91] : memref<32x512xf32, #tpu.memory_space<vmem>>, vector<32x256xf32>
    %155 = arith.truncf %154 : vector<32x256xf32> to vector<32x256xbf16>
    %c224 = arith.constant 224 : index
    %c0_92 = arith.constant 0 : index
    %156 = vector.load %arg11[%c224, %c0_92] : memref<288x256xbf16, #tpu.memory_space<vmem>>, vector<32x256xbf16>
    tpu.vector_store %arg11[%c224, %c0_92], %155 {strides = array<i32>} : memref<288x256xbf16, #tpu.memory_space<vmem>>, vector<32x256xbf16>,
    %c0_93 = arith.constant 0 : index
    %c145_94 = arith.constant 145 : index
    %157 = vector.load %arg9[%c0_93, %c145_94] : memref<32x512xf32, #tpu.memory_space<vmem>>, vector<32x256xf32>
    %cst_95 = arith.constant 0.000000e+00 : f32
    %158 = vector.shape_cast %25 : vector<1x256xi1> to vector<1x256xi1>
    %159 = vector.broadcast %158 : vector<1x256xi1> to vector<32x256xi1>
    %160 = vector.broadcast %cst_95 : f32 to vector<32x256xf32>
    %161 = arith.select %159, %157, %160 : vector<32x256xi1>, vector<32x256xf32>
    %162 = arith.truncf %161 : vector<32x256xf32> to vector<32x256xbf16>
    %c256 = arith.constant 256 : index
    %c0_96 = arith.constant 0 : index
    %163 = vector.load %arg11[%c256, %c0_96] : memref<288x256xbf16, #tpu.memory_space<vmem>>, vector<32x256xbf16>
    tpu.vector_store %arg11[%c256, %c0_96], %162 {strides = array<i32>} : memref<288x256xbf16, #tpu.memory_space<vmem>>, vector<32x256xbf16>,
    %c0_97 = arith.constant 0 : index
    %c0_98 = arith.constant 0 : index
    %164 = vector.load %arg11[%c0_97, %c0_98] : memref<288x256xbf16, #tpu.memory_space<vmem>>, vector<288x256xbf16>
    %cst_99 = arith.constant dense<0.000000e+00> : vector<32x256xf32>
    %165 = tpu.matmul %110, %164, %cst_99 {dimension_numbers = #tpu.dot_dimension_numbers<[1], [0], [0], [1], [0, 0, 1, 1], [], []>} : vector<32x288xbf16>, vector<288x256xbf16>, vector<32x256xf32> -> vector<32x256xf32>
    %166 = vector.broadcast %112 : vector<32x1xf32> to vector<32x256xf32>
    %167 = arith.addf %165, %166 : vector<32x256xf32>
    %cst_100 = arith.constant 0.000000e+00 : f32
    %168 = vector.broadcast %cst_100 : f32 to vector<32x256xf32>
    %169 = arith.maximumf %167, %168 : vector<32x256xf32>
    %c0_101 = arith.constant 0 : index
    %c128_102 = arith.constant 128 : index
    %170 = vector.load %arg10[%c0_101, %c128_102] : memref<32x512xf32, #tpu.memory_space<vmem>>, vector<32x256xf32>
    tpu.vector_store %arg10[%c0_101, %c128_102], %169 {strides = array<i32>} : memref<32x512xf32, #tpu.memory_space<vmem>>, vector<32x256xf32>,
    %c1 = arith.constant 1 : index
    %c0_103 = arith.constant 0 : index
    %c0_104 = arith.constant 0 : index
    %171 = vector.load %arg4[%c1, %c0_103, %c0_104] : memref<8x32x288xbf16, #tpu.memory_space<vmem>>, vector<1x32x288xbf16>
    %172 = vector.shape_cast %171 : vector<1x32x288xbf16> to vector<32x288xbf16>
    %c1_105 = arith.constant 1 : index
    %c0_106 = arith.constant 0 : index
    %c0_107 = arith.constant 0 : index
    %173 = vector.load %arg5[%c1_105, %c0_106, %c0_107] : memref<8x32x1xf32, #tpu.memory_space<vmem>>, vector<1x32x1xf32>
    %174 = vector.shape_cast %173 : vector<1x32x1xf32> to vector<32x1xf32>
    %c0_108 = arith.constant 0 : index
    %c111_109 = arith.constant 111 : index
    %175 = vector.load %arg10[%c0_108, %c111_109] : memref<32x512xf32, #tpu.memory_space<vmem>>, vector<32x256xf32>
    %cst_110 = arith.constant 0.000000e+00 : f32
    %176 = vector.shape_cast %23 : vector<1x256xi1> to vector<1x256xi1>
    %177 = vector.broadcast %176 : vector<1x256xi1> to vector<32x256xi1>
    %178 = vector.broadcast %cst_110 : f32 to vector<32x256xf32>
    %179 = arith.select %177, %175, %178 : vector<32x256xi1>, vector<32x256xf32>
    %180 = arith.truncf %179 : vector<32x256xf32> to vector<32x256xbf16>
    %c0_111 = arith.constant 0 : index
    %c0_112 = arith.constant 0 : index
    %181 = vector.load %arg11[%c0_111, %c0_112] : memref<288x256xbf16, #tpu.memory_space<vmem>>, vector<32x256xbf16>
    tpu.vector_store %arg11[%c0_111, %c0_112], %180 {strides = array<i32>} : memref<288x256xbf16, #tpu.memory_space<vmem>>, vector<32x256xbf16>,
    %c0_113 = arith.constant 0 : index
    %c112_114 = arith.constant 112 : index
    %182 = vector.load %arg10[%c0_113, %c112_114] : memref<32x512xf32, #tpu.memory_space<vmem>>, vector<32x256xf32>
    %183 = arith.truncf %182 : vector<32x256xf32> to vector<32x256xbf16>
    %c32_115 = arith.constant 32 : index
    %c0_116 = arith.constant 0 : index
    %184 = vector.load %arg11[%c32_115, %c0_116] : memref<288x256xbf16, #tpu.memory_space<vmem>>, vector<32x256xbf16>
    tpu.vector_store %arg11[%c32_115, %c0_116], %183 {strides = array<i32>} : memref<288x256xbf16, #tpu.memory_space<vmem>>, vector<32x256xbf16>,
    %c0_117 = arith.constant 0 : index
    %c113_118 = arith.constant 113 : index
    %185 = vector.load %arg10[%c0_117, %c113_118] : memref<32x512xf32, #tpu.memory_space<vmem>>, vector<32x256xf32>
    %cst_119 = arith.constant 0.000000e+00 : f32
    %186 = vector.shape_cast %25 : vector<1x256xi1> to vector<1x256xi1>
    %187 = vector.broadcast %186 : vector<1x256xi1> to vector<32x256xi1>
    %188 = vector.broadcast %cst_119 : f32 to vector<32x256xf32>
    %189 = arith.select %187, %185, %188 : vector<32x256xi1>, vector<32x256xf32>
    %190 = arith.truncf %189 : vector<32x256xf32> to vector<32x256xbf16>
    %c64_120 = arith.constant 64 : index
    %c0_121 = arith.constant 0 : index
    %191 = vector.load %arg11[%c64_120, %c0_121] : memref<288x256xbf16, #tpu.memory_space<vmem>>, vector<32x256xbf16>
    tpu.vector_store %arg11[%c64_120, %c0_121], %190 {strides = array<i32>} : memref<288x256xbf16, #tpu.memory_space<vmem>>, vector<32x256xbf16>,
    %c0_122 = arith.constant 0 : index
    %c127_123 = arith.constant 127 : index
    %192 = vector.load %arg10[%c0_122, %c127_123] : memref<32x512xf32, #tpu.memory_space<vmem>>, vector<32x256xf32>
    %cst_124 = arith.constant 0.000000e+00 : f32
    %193 = vector.shape_cast %23 : vector<1x256xi1> to vector<1x256xi1>
    %194 = vector.broadcast %193 : vector<1x256xi1> to vector<32x256xi1>
    %195 = vector.broadcast %cst_124 : f32 to vector<32x256xf32>
    %196 = arith.select %194, %192, %195 : vector<32x256xi1>, vector<32x256xf32>
    %197 = arith.truncf %196 : vector<32x256xf32> to vector<32x256xbf16>
    %c96_125 = arith.constant 96 : index
    %c0_126 = arith.constant 0 : index
    %198 = vector.load %arg11[%c96_125, %c0_126] : memref<288x256xbf16, #tpu.memory_space<vmem>>, vector<32x256xbf16>
    tpu.vector_store %arg11[%c96_125, %c0_126], %197 {strides = array<i32>} : memref<288x256xbf16, #tpu.memory_space<vmem>>, vector<32x256xbf16>,
    %c0_127 = arith.constant 0 : index
    %c128_128 = arith.constant 128 : index
    %199 = vector.load %arg10[%c0_127, %c128_128] : memref<32x512xf32, #tpu.memory_space<vmem>>, vector<32x256xf32>
    %200 = arith.truncf %199 : vector<32x256xf32> to vector<32x256xbf16>
    %c128_129 = arith.constant 128 : index
    %c0_130 = arith.constant 0 : index
    %201 = vector.load %arg11[%c128_129, %c0_130] : memref<288x256xbf16, #tpu.memory_space<vmem>>, vector<32x256xbf16>
    tpu.vector_store %arg11[%c128_129, %c0_130], %200 {strides = array<i32>} : memref<288x256xbf16, #tpu.memory_space<vmem>>, vector<32x256xbf16>,
    %c0_131 = arith.constant 0 : index
    %c129_132 = arith.constant 129 : index
    %202 = vector.load %arg10[%c0_131, %c129_132] : memref<32x512xf32, #tpu.memory_space<vmem>>, vector<32x256xf32>
    %cst_133 = arith.constant 0.000000e+00 : f32
    %203 = vector.shape_cast %25 : vector<1x256xi1> to vector<1x256xi1>
    %204 = vector.broadcast %203 : vector<1x256xi1> to vector<32x256xi1>
    %205 = vector.broadcast %cst_133 : f32 to vector<32x256xf32>
    %206 = arith.select %204, %202, %205 : vector<32x256xi1>, vector<32x256xf32>
    %207 = arith.truncf %206 : vector<32x256xf32> to vector<32x256xbf16>
    %c160_134 = arith.constant 160 : index
    %c0_135 = arith.constant 0 : index
    %208 = vector.load %arg11[%c160_134, %c0_135] : memref<288x256xbf16, #tpu.memory_space<vmem>>, vector<32x256xbf16>
    tpu.vector_store %arg11[%c160_134, %c0_135], %207 {strides = array<i32>} : memref<288x256xbf16, #tpu.memory_space<vmem>>, vector<32x256xbf16>,
    %c0_136 = arith.constant 0 : index
    %c143_137 = arith.constant 143 : index
    %209 = vector.load %arg10[%c0_136, %c143_137] : memref<32x512xf32, #tpu.memory_space<vmem>>, vector<32x256xf32>
    %cst_138 = arith.constant 0.000000e+00 : f32
    %210 = vector.shape_cast %23 : vector<1x256xi1> to vector<1x256xi1>
    %211 = vector.broadcast %210 : vector<1x256xi1> to vector<32x256xi1>
    %212 = vector.broadcast %cst_138 : f32 to vector<32x256xf32>
    %213 = arith.select %211, %209, %212 : vector<32x256xi1>, vector<32x256xf32>
    %214 = arith.truncf %213 : vector<32x256xf32> to vector<32x256xbf16>
    %c192_139 = arith.constant 192 : index
    %c0_140 = arith.constant 0 : index
    %215 = vector.load %arg11[%c192_139, %c0_140] : memref<288x256xbf16, #tpu.memory_space<vmem>>, vector<32x256xbf16>
    tpu.vector_store %arg11[%c192_139, %c0_140], %214 {strides = array<i32>} : memref<288x256xbf16, #tpu.memory_space<vmem>>, vector<32x256xbf16>,
    %c0_141 = arith.constant 0 : index
    %c144_142 = arith.constant 144 : index
    %216 = vector.load %arg10[%c0_141, %c144_142] : memref<32x512xf32, #tpu.memory_space<vmem>>, vector<32x256xf32>
    %217 = arith.truncf %216 : vector<32x256xf32> to vector<32x256xbf16>
    %c224_143 = arith.constant 224 : index
    %c0_144 = arith.constant 0 : index
    %218 = vector.load %arg11[%c224_143, %c0_144] : memref<288x256xbf16, #tpu.memory_space<vmem>>, vector<32x256xbf16>
    tpu.vector_store %arg11[%c224_143, %c0_144], %217 {strides = array<i32>} : memref<288x256xbf16, #tpu.memory_space<vmem>>, vector<32x256xbf16>,
    %c0_145 = arith.constant 0 : index
    %c145_146 = arith.constant 145 : index
    %219 = vector.load %arg10[%c0_145, %c145_146] : memref<32x512xf32, #tpu.memory_space<vmem>>, vector<32x256xf32>
    %cst_147 = arith.constant 0.000000e+00 : f32
    %220 = vector.shape_cast %25 : vector<1x256xi1> to vector<1x256xi1>
    %221 = vector.broadcast %220 : vector<1x256xi1> to vector<32x256xi1>
    %222 = vector.broadcast %cst_147 : f32 to vector<32x256xf32>
    %223 = arith.select %221, %219, %222 : vector<32x256xi1>, vector<32x256xf32>
    %224 = arith.truncf %223 : vector<32x256xf32> to vector<32x256xbf16>
    %c256_148 = arith.constant 256 : index
    %c0_149 = arith.constant 0 : index
    %225 = vector.load %arg11[%c256_148, %c0_149] : memref<288x256xbf16, #tpu.memory_space<vmem>>, vector<32x256xbf16>
    tpu.vector_store %arg11[%c256_148, %c0_149], %224 {strides = array<i32>} : memref<288x256xbf16, #tpu.memory_space<vmem>>, vector<32x256xbf16>,
    %c0_150 = arith.constant 0 : index
    %c0_151 = arith.constant 0 : index
    %226 = vector.load %arg11[%c0_150, %c0_151] : memref<288x256xbf16, #tpu.memory_space<vmem>>, vector<288x256xbf16>
    %cst_152 = arith.constant dense<0.000000e+00> : vector<32x256xf32>
    %227 = tpu.matmul %172, %226, %cst_152 {dimension_numbers = #tpu.dot_dimension_numbers<[1], [0], [0], [1], [0, 0, 1, 1], [], []>} : vector<32x288xbf16>, vector<288x256xbf16>, vector<32x256xf32> -> vector<32x256xf32>
    %228 = vector.broadcast %174 : vector<32x1xf32> to vector<32x256xf32>
    %229 = arith.addf %227, %228 : vector<32x256xf32>
    %c0_153 = arith.constant 0 : index
    %c128_154 = arith.constant 128 : index
    %230 = vector.load %arg9[%c0_153, %c128_154] : memref<32x512xf32, #tpu.memory_space<vmem>>, vector<32x256xf32>
    %231 = arith.addf %230, %229 : vector<32x256xf32>
    %c0_155 = arith.constant 0 : index
    %c128_156 = arith.constant 128 : index
    %232 = vector.load %arg9[%c0_155, %c128_156] : memref<32x512xf32, #tpu.memory_space<vmem>>, vector<32x256xf32>
    tpu.vector_store %arg9[%c0_155, %c128_156], %231 {strides = array<i32>} : memref<32x512xf32, #tpu.memory_space<vmem>>, vector<32x256xf32>,
    %c2 = arith.constant 2 : index
    %c0_157 = arith.constant 0 : index
    %c0_158 = arith.constant 0 : index
    %233 = vector.load %arg4[%c2, %c0_157, %c0_158] : memref<8x32x288xbf16, #tpu.memory_space<vmem>>, vector<1x32x288xbf16>
    %234 = vector.shape_cast %233 : vector<1x32x288xbf16> to vector<32x288xbf16>
    %c2_159 = arith.constant 2 : index
    %c0_160 = arith.constant 0 : index
    %c0_161 = arith.constant 0 : index
    %235 = vector.load %arg5[%c2_159, %c0_160, %c0_161] : memref<8x32x1xf32, #tpu.memory_space<vmem>>, vector<1x32x1xf32>
    %236 = vector.shape_cast %235 : vector<1x32x1xf32> to vector<32x1xf32>
    %c0_162 = arith.constant 0 : index
    %c111_163 = arith.constant 111 : index
    %237 = vector.load %arg9[%c0_162, %c111_163] : memref<32x512xf32, #tpu.memory_space<vmem>>, vector<32x256xf32>
    %cst_164 = arith.constant 0.000000e+00 : f32
    %238 = vector.shape_cast %23 : vector<1x256xi1> to vector<1x256xi1>
    %239 = vector.broadcast %238 : vector<1x256xi1> to vector<32x256xi1>
    %240 = vector.broadcast %cst_164 : f32 to vector<32x256xf32>
    %241 = arith.select %239, %237, %240 : vector<32x256xi1>, vector<32x256xf32>
    %242 = arith.truncf %241 : vector<32x256xf32> to vector<32x256xbf16>
    %c0_165 = arith.constant 0 : index
    %c0_166 = arith.constant 0 : index
    %243 = vector.load %arg11[%c0_165, %c0_166] : memref<288x256xbf16, #tpu.memory_space<vmem>>, vector<32x256xbf16>
    tpu.vector_store %arg11[%c0_165, %c0_166], %242 {strides = array<i32>} : memref<288x256xbf16, #tpu.memory_space<vmem>>, vector<32x256xbf16>,
    %c0_167 = arith.constant 0 : index
    %c112_168 = arith.constant 112 : index
    %244 = vector.load %arg9[%c0_167, %c112_168] : memref<32x512xf32, #tpu.memory_space<vmem>>, vector<32x256xf32>
    %245 = arith.truncf %244 : vector<32x256xf32> to vector<32x256xbf16>
    %c32_169 = arith.constant 32 : index
    %c0_170 = arith.constant 0 : index
    %246 = vector.load %arg11[%c32_169, %c0_170] : memref<288x256xbf16, #tpu.memory_space<vmem>>, vector<32x256xbf16>
    tpu.vector_store %arg11[%c32_169, %c0_170], %245 {strides = array<i32>} : memref<288x256xbf16, #tpu.memory_space<vmem>>, vector<32x256xbf16>,
    %c0_171 = arith.constant 0 : index
    %c113_172 = arith.constant 113 : index
    %247 = vector.load %arg9[%c0_171, %c113_172] : memref<32x512xf32, #tpu.memory_space<vmem>>, vector<32x256xf32>
    %cst_173 = arith.constant 0.000000e+00 : f32
    %248 = vector.shape_cast %25 : vector<1x256xi1> to vector<1x256xi1>
    %249 = vector.broadcast %248 : vector<1x256xi1> to vector<32x256xi1>
    %250 = vector.broadcast %cst_173 : f32 to vector<32x256xf32>
    %251 = arith.select %249, %247, %250 : vector<32x256xi1>, vector<32x256xf32>
    %252 = arith.truncf %251 : vector<32x256xf32> to vector<32x256xbf16>
    %c64_174 = arith.constant 64 : index
    %c0_175 = arith.constant 0 : index
    %253 = vector.load %arg11[%c64_174, %c0_175] : memref<288x256xbf16, #tpu.memory_space<vmem>>, vector<32x256xbf16>
    tpu.vector_store %arg11[%c64_174, %c0_175], %252 {strides = array<i32>} : memref<288x256xbf16, #tpu.memory_space<vmem>>, vector<32x256xbf16>,
    %c0_176 = arith.constant 0 : index
    %c127_177 = arith.constant 127 : index
    %254 = vector.load %arg9[%c0_176, %c127_177] : memref<32x512xf32, #tpu.memory_space<vmem>>, vector<32x256xf32>
    %cst_178 = arith.constant 0.000000e+00 : f32
    %255 = vector.shape_cast %23 : vector<1x256xi1> to vector<1x256xi1>
    %256 = vector.broadcast %255 : vector<1x256xi1> to vector<32x256xi1>
    %257 = vector.broadcast %cst_178 : f32 to vector<32x256xf32>
    %258 = arith.select %256, %254, %257 : vector<32x256xi1>, vector<32x256xf32>
    %259 = arith.truncf %258 : vector<32x256xf32> to vector<32x256xbf16>
    %c96_179 = arith.constant 96 : index
    %c0_180 = arith.constant 0 : index
    %260 = vector.load %arg11[%c96_179, %c0_180] : memref<288x256xbf16, #tpu.memory_space<vmem>>, vector<32x256xbf16>
    tpu.vector_store %arg11[%c96_179, %c0_180], %259 {strides = array<i32>} : memref<288x256xbf16, #tpu.memory_space<vmem>>, vector<32x256xbf16>,
    %c0_181 = arith.constant 0 : index
    %c128_182 = arith.constant 128 : index
    %261 = vector.load %arg9[%c0_181, %c128_182] : memref<32x512xf32, #tpu.memory_space<vmem>>, vector<32x256xf32>
    %262 = arith.truncf %261 : vector<32x256xf32> to vector<32x256xbf16>
    %c128_183 = arith.constant 128 : index
    %c0_184 = arith.constant 0 : index
    %263 = vector.load %arg11[%c128_183, %c0_184] : memref<288x256xbf16, #tpu.memory_space<vmem>>, vector<32x256xbf16>
    tpu.vector_store %arg11[%c128_183, %c0_184], %262 {strides = array<i32>} : memref<288x256xbf16, #tpu.memory_space<vmem>>, vector<32x256xbf16>,
    %c0_185 = arith.constant 0 : index
    %c129_186 = arith.constant 129 : index
    %264 = vector.load %arg9[%c0_185, %c129_186] : memref<32x512xf32, #tpu.memory_space<vmem>>, vector<32x256xf32>
    %cst_187 = arith.constant 0.000000e+00 : f32
    %265 = vector.shape_cast %25 : vector<1x256xi1> to vector<1x256xi1>
    %266 = vector.broadcast %265 : vector<1x256xi1> to vector<32x256xi1>
    %267 = vector.broadcast %cst_187 : f32 to vector<32x256xf32>
    %268 = arith.select %266, %264, %267 : vector<32x256xi1>, vector<32x256xf32>
    %269 = arith.truncf %268 : vector<32x256xf32> to vector<32x256xbf16>
    %c160_188 = arith.constant 160 : index
    %c0_189 = arith.constant 0 : index
    %270 = vector.load %arg11[%c160_188, %c0_189] : memref<288x256xbf16, #tpu.memory_space<vmem>>, vector<32x256xbf16>
    tpu.vector_store %arg11[%c160_188, %c0_189], %269 {strides = array<i32>} : memref<288x256xbf16, #tpu.memory_space<vmem>>, vector<32x256xbf16>,
    %c0_190 = arith.constant 0 : index
    %c143_191 = arith.constant 143 : index
    %271 = vector.load %arg9[%c0_190, %c143_191] : memref<32x512xf32, #tpu.memory_space<vmem>>, vector<32x256xf32>
    %cst_192 = arith.constant 0.000000e+00 : f32
    %272 = vector.shape_cast %23 : vector<1x256xi1> to vector<1x256xi1>
    %273 = vector.broadcast %272 : vector<1x256xi1> to vector<32x256xi1>
    %274 = vector.broadcast %cst_192 : f32 to vector<32x256xf32>
    %275 = arith.select %273, %271, %274 : vector<32x256xi1>, vector<32x256xf32>
    %276 = arith.truncf %275 : vector<32x256xf32> to vector<32x256xbf16>
    %c192_193 = arith.constant 192 : index
    %c0_194 = arith.constant 0 : index
    %277 = vector.load %arg11[%c192_193, %c0_194] : memref<288x256xbf16, #tpu.memory_space<vmem>>, vector<32x256xbf16>
    tpu.vector_store %arg11[%c192_193, %c0_194], %276 {strides = array<i32>} : memref<288x256xbf16, #tpu.memory_space<vmem>>, vector<32x256xbf16>,
    %c0_195 = arith.constant 0 : index
    %c144_196 = arith.constant 144 : index
    %278 = vector.load %arg9[%c0_195, %c144_196] : memref<32x512xf32, #tpu.memory_space<vmem>>, vector<32x256xf32>
    %279 = arith.truncf %278 : vector<32x256xf32> to vector<32x256xbf16>
    %c224_197 = arith.constant 224 : index
    %c0_198 = arith.constant 0 : index
    %280 = vector.load %arg11[%c224_197, %c0_198] : memref<288x256xbf16, #tpu.memory_space<vmem>>, vector<32x256xbf16>
    tpu.vector_store %arg11[%c224_197, %c0_198], %279 {strides = array<i32>} : memref<288x256xbf16, #tpu.memory_space<vmem>>, vector<32x256xbf16>,
    %c0_199 = arith.constant 0 : index
    %c145_200 = arith.constant 145 : index
    %281 = vector.load %arg9[%c0_199, %c145_200] : memref<32x512xf32, #tpu.memory_space<vmem>>, vector<32x256xf32>
    %cst_201 = arith.constant 0.000000e+00 : f32
    %282 = vector.shape_cast %25 : vector<1x256xi1> to vector<1x256xi1>
    %283 = vector.broadcast %282 : vector<1x256xi1> to vector<32x256xi1>
    %284 = vector.broadcast %cst_201 : f32 to vector<32x256xf32>
    %285 = arith.select %283, %281, %284 : vector<32x256xi1>, vector<32x256xf32>
    %286 = arith.truncf %285 : vector<32x256xf32> to vector<32x256xbf16>
    %c256_202 = arith.constant 256 : index
    %c0_203 = arith.constant 0 : index
    %287 = vector.load %arg11[%c256_202, %c0_203] : memref<288x256xbf16, #tpu.memory_space<vmem>>, vector<32x256xbf16>
    tpu.vector_store %arg11[%c256_202, %c0_203], %286 {strides = array<i32>} : memref<288x256xbf16, #tpu.memory_space<vmem>>, vector<32x256xbf16>,
    %c0_204 = arith.constant 0 : index
    %c0_205 = arith.constant 0 : index
    %288 = vector.load %arg11[%c0_204, %c0_205] : memref<288x256xbf16, #tpu.memory_space<vmem>>, vector<288x256xbf16>
    %cst_206 = arith.constant dense<0.000000e+00> : vector<32x256xf32>
    %289 = tpu.matmul %234, %288, %cst_206 {dimension_numbers = #tpu.dot_dimension_numbers<[1], [0], [0], [1], [0, 0, 1, 1], [], []>} : vector<32x288xbf16>, vector<288x256xbf16>, vector<32x256xf32> -> vector<32x256xf32>
    %290 = vector.broadcast %236 : vector<32x1xf32> to vector<32x256xf32>
    %291 = arith.addf %289, %290 : vector<32x256xf32>
    %cst_207 = arith.constant 0.000000e+00 : f32
    %292 = vector.broadcast %cst_207 : f32 to vector<32x256xf32>
    %293 = arith.maximumf %291, %292 : vector<32x256xf32>
    %c0_208 = arith.constant 0 : index
    %c128_209 = arith.constant 128 : index
    %294 = vector.load %arg10[%c0_208, %c128_209] : memref<32x512xf32, #tpu.memory_space<vmem>>, vector<32x256xf32>
    tpu.vector_store %arg10[%c0_208, %c128_209], %293 {strides = array<i32>} : memref<32x512xf32, #tpu.memory_space<vmem>>, vector<32x256xf32>,
    %c3 = arith.constant 3 : index
    %c0_210 = arith.constant 0 : index
    %c0_211 = arith.constant 0 : index
    %295 = vector.load %arg4[%c3, %c0_210, %c0_211] : memref<8x32x288xbf16, #tpu.memory_space<vmem>>, vector<1x32x288xbf16>
    %296 = vector.shape_cast %295 : vector<1x32x288xbf16> to vector<32x288xbf16>
    %c3_212 = arith.constant 3 : index
    %c0_213 = arith.constant 0 : index
    %c0_214 = arith.constant 0 : index
    %297 = vector.load %arg5[%c3_212, %c0_213, %c0_214] : memref<8x32x1xf32, #tpu.memory_space<vmem>>, vector<1x32x1xf32>
    %298 = vector.shape_cast %297 : vector<1x32x1xf32> to vector<32x1xf32>
    %c0_215 = arith.constant 0 : index
    %c111_216 = arith.constant 111 : index
    %299 = vector.load %arg10[%c0_215, %c111_216] : memref<32x512xf32, #tpu.memory_space<vmem>>, vector<32x256xf32>
    %cst_217 = arith.constant 0.000000e+00 : f32
    %300 = vector.shape_cast %23 : vector<1x256xi1> to vector<1x256xi1>
    %301 = vector.broadcast %300 : vector<1x256xi1> to vector<32x256xi1>
    %302 = vector.broadcast %cst_217 : f32 to vector<32x256xf32>
    %303 = arith.select %301, %299, %302 : vector<32x256xi1>, vector<32x256xf32>
    %304 = arith.truncf %303 : vector<32x256xf32> to vector<32x256xbf16>
    %c0_218 = arith.constant 0 : index
    %c0_219 = arith.constant 0 : index
    %305 = vector.load %arg11[%c0_218, %c0_219] : memref<288x256xbf16, #tpu.memory_space<vmem>>, vector<32x256xbf16>
    tpu.vector_store %arg11[%c0_218, %c0_219], %304 {strides = array<i32>} : memref<288x256xbf16, #tpu.memory_space<vmem>>, vector<32x256xbf16>,
    %c0_220 = arith.constant 0 : index
    %c112_221 = arith.constant 112 : index
    %306 = vector.load %arg10[%c0_220, %c112_221] : memref<32x512xf32, #tpu.memory_space<vmem>>, vector<32x256xf32>
    %307 = arith.truncf %306 : vector<32x256xf32> to vector<32x256xbf16>
    %c32_222 = arith.constant 32 : index
    %c0_223 = arith.constant 0 : index
    %308 = vector.load %arg11[%c32_222, %c0_223] : memref<288x256xbf16, #tpu.memory_space<vmem>>, vector<32x256xbf16>
    tpu.vector_store %arg11[%c32_222, %c0_223], %307 {strides = array<i32>} : memref<288x256xbf16, #tpu.memory_space<vmem>>, vector<32x256xbf16>,
    %c0_224 = arith.constant 0 : index
    %c113_225 = arith.constant 113 : index
    %309 = vector.load %arg10[%c0_224, %c113_225] : memref<32x512xf32, #tpu.memory_space<vmem>>, vector<32x256xf32>
    %cst_226 = arith.constant 0.000000e+00 : f32
    %310 = vector.shape_cast %25 : vector<1x256xi1> to vector<1x256xi1>
    %311 = vector.broadcast %310 : vector<1x256xi1> to vector<32x256xi1>
    %312 = vector.broadcast %cst_226 : f32 to vector<32x256xf32>
    %313 = arith.select %311, %309, %312 : vector<32x256xi1>, vector<32x256xf32>
    %314 = arith.truncf %313 : vector<32x256xf32> to vector<32x256xbf16>
    %c64_227 = arith.constant 64 : index
    %c0_228 = arith.constant 0 : index
    %315 = vector.load %arg11[%c64_227, %c0_228] : memref<288x256xbf16, #tpu.memory_space<vmem>>, vector<32x256xbf16>
    tpu.vector_store %arg11[%c64_227, %c0_228], %314 {strides = array<i32>} : memref<288x256xbf16, #tpu.memory_space<vmem>>, vector<32x256xbf16>,
    %c0_229 = arith.constant 0 : index
    %c127_230 = arith.constant 127 : index
    %316 = vector.load %arg10[%c0_229, %c127_230] : memref<32x512xf32, #tpu.memory_space<vmem>>, vector<32x256xf32>
    %cst_231 = arith.constant 0.000000e+00 : f32
    %317 = vector.shape_cast %23 : vector<1x256xi1> to vector<1x256xi1>
    %318 = vector.broadcast %317 : vector<1x256xi1> to vector<32x256xi1>
    %319 = vector.broadcast %cst_231 : f32 to vector<32x256xf32>
    %320 = arith.select %318, %316, %319 : vector<32x256xi1>, vector<32x256xf32>
    %321 = arith.truncf %320 : vector<32x256xf32> to vector<32x256xbf16>
    %c96_232 = arith.constant 96 : index
    %c0_233 = arith.constant 0 : index
    %322 = vector.load %arg11[%c96_232, %c0_233] : memref<288x256xbf16, #tpu.memory_space<vmem>>, vector<32x256xbf16>
    tpu.vector_store %arg11[%c96_232, %c0_233], %321 {strides = array<i32>} : memref<288x256xbf16, #tpu.memory_space<vmem>>, vector<32x256xbf16>,
    %c0_234 = arith.constant 0 : index
    %c128_235 = arith.constant 128 : index
    %323 = vector.load %arg10[%c0_234, %c128_235] : memref<32x512xf32, #tpu.memory_space<vmem>>, vector<32x256xf32>
    %324 = arith.truncf %323 : vector<32x256xf32> to vector<32x256xbf16>
    %c128_236 = arith.constant 128 : index
    %c0_237 = arith.constant 0 : index
    %325 = vector.load %arg11[%c128_236, %c0_237] : memref<288x256xbf16, #tpu.memory_space<vmem>>, vector<32x256xbf16>
    tpu.vector_store %arg11[%c128_236, %c0_237], %324 {strides = array<i32>} : memref<288x256xbf16, #tpu.memory_space<vmem>>, vector<32x256xbf16>,
    %c0_238 = arith.constant 0 : index
    %c129_239 = arith.constant 129 : index
    %326 = vector.load %arg10[%c0_238, %c129_239] : memref<32x512xf32, #tpu.memory_space<vmem>>, vector<32x256xf32>
    %cst_240 = arith.constant 0.000000e+00 : f32
    %327 = vector.shape_cast %25 : vector<1x256xi1> to vector<1x256xi1>
    %328 = vector.broadcast %327 : vector<1x256xi1> to vector<32x256xi1>
    %329 = vector.broadcast %cst_240 : f32 to vector<32x256xf32>
    %330 = arith.select %328, %326, %329 : vector<32x256xi1>, vector<32x256xf32>
    %331 = arith.truncf %330 : vector<32x256xf32> to vector<32x256xbf16>
    %c160_241 = arith.constant 160 : index
    %c0_242 = arith.constant 0 : index
    %332 = vector.load %arg11[%c160_241, %c0_242] : memref<288x256xbf16, #tpu.memory_space<vmem>>, vector<32x256xbf16>
    tpu.vector_store %arg11[%c160_241, %c0_242], %331 {strides = array<i32>} : memref<288x256xbf16, #tpu.memory_space<vmem>>, vector<32x256xbf16>,
    %c0_243 = arith.constant 0 : index
    %c143_244 = arith.constant 143 : index
    %333 = vector.load %arg10[%c0_243, %c143_244] : memref<32x512xf32, #tpu.memory_space<vmem>>, vector<32x256xf32>
    %cst_245 = arith.constant 0.000000e+00 : f32
    %334 = vector.shape_cast %23 : vector<1x256xi1> to vector<1x256xi1>
    %335 = vector.broadcast %334 : vector<1x256xi1> to vector<32x256xi1>
    %336 = vector.broadcast %cst_245 : f32 to vector<32x256xf32>
    %337 = arith.select %335, %333, %336 : vector<32x256xi1>, vector<32x256xf32>
    %338 = arith.truncf %337 : vector<32x256xf32> to vector<32x256xbf16>
    %c192_246 = arith.constant 192 : index
    %c0_247 = arith.constant 0 : index
    %339 = vector.load %arg11[%c192_246, %c0_247] : memref<288x256xbf16, #tpu.memory_space<vmem>>, vector<32x256xbf16>
    tpu.vector_store %arg11[%c192_246, %c0_247], %338 {strides = array<i32>} : memref<288x256xbf16, #tpu.memory_space<vmem>>, vector<32x256xbf16>,
    %c0_248 = arith.constant 0 : index
    %c144_249 = arith.constant 144 : index
    %340 = vector.load %arg10[%c0_248, %c144_249] : memref<32x512xf32, #tpu.memory_space<vmem>>, vector<32x256xf32>
    %341 = arith.truncf %340 : vector<32x256xf32> to vector<32x256xbf16>
    %c224_250 = arith.constant 224 : index
    %c0_251 = arith.constant 0 : index
    %342 = vector.load %arg11[%c224_250, %c0_251] : memref<288x256xbf16, #tpu.memory_space<vmem>>, vector<32x256xbf16>
    tpu.vector_store %arg11[%c224_250, %c0_251], %341 {strides = array<i32>} : memref<288x256xbf16, #tpu.memory_space<vmem>>, vector<32x256xbf16>,
    %c0_252 = arith.constant 0 : index
    %c145_253 = arith.constant 145 : index
    %343 = vector.load %arg10[%c0_252, %c145_253] : memref<32x512xf32, #tpu.memory_space<vmem>>, vector<32x256xf32>
    %cst_254 = arith.constant 0.000000e+00 : f32
    %344 = vector.shape_cast %25 : vector<1x256xi1> to vector<1x256xi1>
    %345 = vector.broadcast %344 : vector<1x256xi1> to vector<32x256xi1>
    %346 = vector.broadcast %cst_254 : f32 to vector<32x256xf32>
    %347 = arith.select %345, %343, %346 : vector<32x256xi1>, vector<32x256xf32>
    %348 = arith.truncf %347 : vector<32x256xf32> to vector<32x256xbf16>
    %c256_255 = arith.constant 256 : index
    %c0_256 = arith.constant 0 : index
    %349 = vector.load %arg11[%c256_255, %c0_256] : memref<288x256xbf16, #tpu.memory_space<vmem>>, vector<32x256xbf16>
    tpu.vector_store %arg11[%c256_255, %c0_256], %348 {strides = array<i32>} : memref<288x256xbf16, #tpu.memory_space<vmem>>, vector<32x256xbf16>,
    %c0_257 = arith.constant 0 : index
    %c0_258 = arith.constant 0 : index
    %350 = vector.load %arg11[%c0_257, %c0_258] : memref<288x256xbf16, #tpu.memory_space<vmem>>, vector<288x256xbf16>
    %cst_259 = arith.constant dense<0.000000e+00> : vector<32x256xf32>
    %351 = tpu.matmul %296, %350, %cst_259 {dimension_numbers = #tpu.dot_dimension_numbers<[1], [0], [0], [1], [0, 0, 1, 1], [], []>} : vector<32x288xbf16>, vector<288x256xbf16>, vector<32x256xf32> -> vector<32x256xf32>
    %352 = vector.broadcast %298 : vector<32x1xf32> to vector<32x256xf32>
    %353 = arith.addf %351, %352 : vector<32x256xf32>
    %c0_260 = arith.constant 0 : index
    %c128_261 = arith.constant 128 : index
    %354 = vector.load %arg9[%c0_260, %c128_261] : memref<32x512xf32, #tpu.memory_space<vmem>>, vector<32x256xf32>
    %355 = arith.addf %354, %353 : vector<32x256xf32>
    %c0_262 = arith.constant 0 : index
    %c128_263 = arith.constant 128 : index
    %356 = vector.load %arg9[%c0_262, %c128_263] : memref<32x512xf32, #tpu.memory_space<vmem>>, vector<32x256xf32>
    tpu.vector_store %arg9[%c0_262, %c128_263], %355 {strides = array<i32>} : memref<32x512xf32, #tpu.memory_space<vmem>>, vector<32x256xf32>,
    %c4_264 = arith.constant 4 : index
    %c0_265 = arith.constant 0 : index
    %c0_266 = arith.constant 0 : index
    %357 = vector.load %arg4[%c4_264, %c0_265, %c0_266] : memref<8x32x288xbf16, #tpu.memory_space<vmem>>, vector<1x32x288xbf16>
    %358 = vector.shape_cast %357 : vector<1x32x288xbf16> to vector<32x288xbf16>
    %c4_267 = arith.constant 4 : index
    %c0_268 = arith.constant 0 : index
    %c0_269 = arith.constant 0 : index
    %359 = vector.load %arg5[%c4_267, %c0_268, %c0_269] : memref<8x32x1xf32, #tpu.memory_space<vmem>>, vector<1x32x1xf32>
    %360 = vector.shape_cast %359 : vector<1x32x1xf32> to vector<32x1xf32>
    %c0_270 = arith.constant 0 : index
    %c111_271 = arith.constant 111 : index
    %361 = vector.load %arg9[%c0_270, %c111_271] : memref<32x512xf32, #tpu.memory_space<vmem>>, vector<32x256xf32>
    %cst_272 = arith.constant 0.000000e+00 : f32
    %362 = vector.shape_cast %23 : vector<1x256xi1> to vector<1x256xi1>
    %363 = vector.broadcast %362 : vector<1x256xi1> to vector<32x256xi1>
    %364 = vector.broadcast %cst_272 : f32 to vector<32x256xf32>
    %365 = arith.select %363, %361, %364 : vector<32x256xi1>, vector<32x256xf32>
    %366 = arith.truncf %365 : vector<32x256xf32> to vector<32x256xbf16>
    %c0_273 = arith.constant 0 : index
    %c0_274 = arith.constant 0 : index
    %367 = vector.load %arg11[%c0_273, %c0_274] : memref<288x256xbf16, #tpu.memory_space<vmem>>, vector<32x256xbf16>
    tpu.vector_store %arg11[%c0_273, %c0_274], %366 {strides = array<i32>} : memref<288x256xbf16, #tpu.memory_space<vmem>>, vector<32x256xbf16>,
    %c0_275 = arith.constant 0 : index
    %c112_276 = arith.constant 112 : index
    %368 = vector.load %arg9[%c0_275, %c112_276] : memref<32x512xf32, #tpu.memory_space<vmem>>, vector<32x256xf32>
    %369 = arith.truncf %368 : vector<32x256xf32> to vector<32x256xbf16>
    %c32_277 = arith.constant 32 : index
    %c0_278 = arith.constant 0 : index
    %370 = vector.load %arg11[%c32_277, %c0_278] : memref<288x256xbf16, #tpu.memory_space<vmem>>, vector<32x256xbf16>
    tpu.vector_store %arg11[%c32_277, %c0_278], %369 {strides = array<i32>} : memref<288x256xbf16, #tpu.memory_space<vmem>>, vector<32x256xbf16>,
    %c0_279 = arith.constant 0 : index
    %c113_280 = arith.constant 113 : index
    %371 = vector.load %arg9[%c0_279, %c113_280] : memref<32x512xf32, #tpu.memory_space<vmem>>, vector<32x256xf32>
    %cst_281 = arith.constant 0.000000e+00 : f32
    %372 = vector.shape_cast %25 : vector<1x256xi1> to vector<1x256xi1>
    %373 = vector.broadcast %372 : vector<1x256xi1> to vector<32x256xi1>
    %374 = vector.broadcast %cst_281 : f32 to vector<32x256xf32>
    %375 = arith.select %373, %371, %374 : vector<32x256xi1>, vector<32x256xf32>
    %376 = arith.truncf %375 : vector<32x256xf32> to vector<32x256xbf16>
    %c64_282 = arith.constant 64 : index
    %c0_283 = arith.constant 0 : index
    %377 = vector.load %arg11[%c64_282, %c0_283] : memref<288x256xbf16, #tpu.memory_space<vmem>>, vector<32x256xbf16>
    tpu.vector_store %arg11[%c64_282, %c0_283], %376 {strides = array<i32>} : memref<288x256xbf16, #tpu.memory_space<vmem>>, vector<32x256xbf16>,
    %c0_284 = arith.constant 0 : index
    %c127_285 = arith.constant 127 : index
    %378 = vector.load %arg9[%c0_284, %c127_285] : memref<32x512xf32, #tpu.memory_space<vmem>>, vector<32x256xf32>
    %cst_286 = arith.constant 0.000000e+00 : f32
    %379 = vector.shape_cast %23 : vector<1x256xi1> to vector<1x256xi1>
    %380 = vector.broadcast %379 : vector<1x256xi1> to vector<32x256xi1>
    %381 = vector.broadcast %cst_286 : f32 to vector<32x256xf32>
    %382 = arith.select %380, %378, %381 : vector<32x256xi1>, vector<32x256xf32>
    %383 = arith.truncf %382 : vector<32x256xf32> to vector<32x256xbf16>
    %c96_287 = arith.constant 96 : index
    %c0_288 = arith.constant 0 : index
    %384 = vector.load %arg11[%c96_287, %c0_288] : memref<288x256xbf16, #tpu.memory_space<vmem>>, vector<32x256xbf16>
    tpu.vector_store %arg11[%c96_287, %c0_288], %383 {strides = array<i32>} : memref<288x256xbf16, #tpu.memory_space<vmem>>, vector<32x256xbf16>,
    %c0_289 = arith.constant 0 : index
    %c128_290 = arith.constant 128 : index
    %385 = vector.load %arg9[%c0_289, %c128_290] : memref<32x512xf32, #tpu.memory_space<vmem>>, vector<32x256xf32>
    %386 = arith.truncf %385 : vector<32x256xf32> to vector<32x256xbf16>
    %c128_291 = arith.constant 128 : index
    %c0_292 = arith.constant 0 : index
    %387 = vector.load %arg11[%c128_291, %c0_292] : memref<288x256xbf16, #tpu.memory_space<vmem>>, vector<32x256xbf16>
    tpu.vector_store %arg11[%c128_291, %c0_292], %386 {strides = array<i32>} : memref<288x256xbf16, #tpu.memory_space<vmem>>, vector<32x256xbf16>,
    %c0_293 = arith.constant 0 : index
    %c129_294 = arith.constant 129 : index
    %388 = vector.load %arg9[%c0_293, %c129_294] : memref<32x512xf32, #tpu.memory_space<vmem>>, vector<32x256xf32>
    %cst_295 = arith.constant 0.000000e+00 : f32
    %389 = vector.shape_cast %25 : vector<1x256xi1> to vector<1x256xi1>
    %390 = vector.broadcast %389 : vector<1x256xi1> to vector<32x256xi1>
    %391 = vector.broadcast %cst_295 : f32 to vector<32x256xf32>
    %392 = arith.select %390, %388, %391 : vector<32x256xi1>, vector<32x256xf32>
    %393 = arith.truncf %392 : vector<32x256xf32> to vector<32x256xbf16>
    %c160_296 = arith.constant 160 : index
    %c0_297 = arith.constant 0 : index
    %394 = vector.load %arg11[%c160_296, %c0_297] : memref<288x256xbf16, #tpu.memory_space<vmem>>, vector<32x256xbf16>
    tpu.vector_store %arg11[%c160_296, %c0_297], %393 {strides = array<i32>} : memref<288x256xbf16, #tpu.memory_space<vmem>>, vector<32x256xbf16>,
    %c0_298 = arith.constant 0 : index
    %c143_299 = arith.constant 143 : index
    %395 = vector.load %arg9[%c0_298, %c143_299] : memref<32x512xf32, #tpu.memory_space<vmem>>, vector<32x256xf32>
    %cst_300 = arith.constant 0.000000e+00 : f32
    %396 = vector.shape_cast %23 : vector<1x256xi1> to vector<1x256xi1>
    %397 = vector.broadcast %396 : vector<1x256xi1> to vector<32x256xi1>
    %398 = vector.broadcast %cst_300 : f32 to vector<32x256xf32>
    %399 = arith.select %397, %395, %398 : vector<32x256xi1>, vector<32x256xf32>
    %400 = arith.truncf %399 : vector<32x256xf32> to vector<32x256xbf16>
    %c192_301 = arith.constant 192 : index
    %c0_302 = arith.constant 0 : index
    %401 = vector.load %arg11[%c192_301, %c0_302] : memref<288x256xbf16, #tpu.memory_space<vmem>>, vector<32x256xbf16>
    tpu.vector_store %arg11[%c192_301, %c0_302], %400 {strides = array<i32>} : memref<288x256xbf16, #tpu.memory_space<vmem>>, vector<32x256xbf16>,
    %c0_303 = arith.constant 0 : index
    %c144_304 = arith.constant 144 : index
    %402 = vector.load %arg9[%c0_303, %c144_304] : memref<32x512xf32, #tpu.memory_space<vmem>>, vector<32x256xf32>
    %403 = arith.truncf %402 : vector<32x256xf32> to vector<32x256xbf16>
    %c224_305 = arith.constant 224 : index
    %c0_306 = arith.constant 0 : index
    %404 = vector.load %arg11[%c224_305, %c0_306] : memref<288x256xbf16, #tpu.memory_space<vmem>>, vector<32x256xbf16>
    tpu.vector_store %arg11[%c224_305, %c0_306], %403 {strides = array<i32>} : memref<288x256xbf16, #tpu.memory_space<vmem>>, vector<32x256xbf16>,
    %c0_307 = arith.constant 0 : index
    %c145_308 = arith.constant 145 : index
    %405 = vector.load %arg9[%c0_307, %c145_308] : memref<32x512xf32, #tpu.memory_space<vmem>>, vector<32x256xf32>
    %cst_309 = arith.constant 0.000000e+00 : f32
    %406 = vector.shape_cast %25 : vector<1x256xi1> to vector<1x256xi1>
    %407 = vector.broadcast %406 : vector<1x256xi1> to vector<32x256xi1>
    %408 = vector.broadcast %cst_309 : f32 to vector<32x256xf32>
    %409 = arith.select %407, %405, %408 : vector<32x256xi1>, vector<32x256xf32>
    %410 = arith.truncf %409 : vector<32x256xf32> to vector<32x256xbf16>
    %c256_310 = arith.constant 256 : index
    %c0_311 = arith.constant 0 : index
    %411 = vector.load %arg11[%c256_310, %c0_311] : memref<288x256xbf16, #tpu.memory_space<vmem>>, vector<32x256xbf16>
    tpu.vector_store %arg11[%c256_310, %c0_311], %410 {strides = array<i32>} : memref<288x256xbf16, #tpu.memory_space<vmem>>, vector<32x256xbf16>,
    %c0_312 = arith.constant 0 : index
    %c0_313 = arith.constant 0 : index
    %412 = vector.load %arg11[%c0_312, %c0_313] : memref<288x256xbf16, #tpu.memory_space<vmem>>, vector<288x256xbf16>
    %cst_314 = arith.constant dense<0.000000e+00> : vector<32x256xf32>
    %413 = tpu.matmul %358, %412, %cst_314 {dimension_numbers = #tpu.dot_dimension_numbers<[1], [0], [0], [1], [0, 0, 1, 1], [], []>} : vector<32x288xbf16>, vector<288x256xbf16>, vector<32x256xf32> -> vector<32x256xf32>
    %414 = vector.broadcast %360 : vector<32x1xf32> to vector<32x256xf32>
    %415 = arith.addf %413, %414 : vector<32x256xf32>
    %cst_315 = arith.constant 0.000000e+00 : f32
    %416 = vector.broadcast %cst_315 : f32 to vector<32x256xf32>
    %417 = arith.maximumf %415, %416 : vector<32x256xf32>
    %c0_316 = arith.constant 0 : index
    %c128_317 = arith.constant 128 : index
    %418 = vector.load %arg10[%c0_316, %c128_317] : memref<32x512xf32, #tpu.memory_space<vmem>>, vector<32x256xf32>
    tpu.vector_store %arg10[%c0_316, %c128_317], %417 {strides = array<i32>} : memref<32x512xf32, #tpu.memory_space<vmem>>, vector<32x256xf32>,
    %c5 = arith.constant 5 : index
    %c0_318 = arith.constant 0 : index
    %c0_319 = arith.constant 0 : index
    %419 = vector.load %arg4[%c5, %c0_318, %c0_319] : memref<8x32x288xbf16, #tpu.memory_space<vmem>>, vector<1x32x288xbf16>
    %420 = vector.shape_cast %419 : vector<1x32x288xbf16> to vector<32x288xbf16>
    %c5_320 = arith.constant 5 : index
    %c0_321 = arith.constant 0 : index
    %c0_322 = arith.constant 0 : index
    %421 = vector.load %arg5[%c5_320, %c0_321, %c0_322] : memref<8x32x1xf32, #tpu.memory_space<vmem>>, vector<1x32x1xf32>
    %422 = vector.shape_cast %421 : vector<1x32x1xf32> to vector<32x1xf32>
    %c0_323 = arith.constant 0 : index
    %c111_324 = arith.constant 111 : index
    %423 = vector.load %arg10[%c0_323, %c111_324] : memref<32x512xf32, #tpu.memory_space<vmem>>, vector<32x256xf32>
    %cst_325 = arith.constant 0.000000e+00 : f32
    %424 = vector.shape_cast %23 : vector<1x256xi1> to vector<1x256xi1>
    %425 = vector.broadcast %424 : vector<1x256xi1> to vector<32x256xi1>
    %426 = vector.broadcast %cst_325 : f32 to vector<32x256xf32>
    %427 = arith.select %425, %423, %426 : vector<32x256xi1>, vector<32x256xf32>
    %428 = arith.truncf %427 : vector<32x256xf32> to vector<32x256xbf16>
    %c0_326 = arith.constant 0 : index
    %c0_327 = arith.constant 0 : index
    %429 = vector.load %arg11[%c0_326, %c0_327] : memref<288x256xbf16, #tpu.memory_space<vmem>>, vector<32x256xbf16>
    tpu.vector_store %arg11[%c0_326, %c0_327], %428 {strides = array<i32>} : memref<288x256xbf16, #tpu.memory_space<vmem>>, vector<32x256xbf16>,
    %c0_328 = arith.constant 0 : index
    %c112_329 = arith.constant 112 : index
    %430 = vector.load %arg10[%c0_328, %c112_329] : memref<32x512xf32, #tpu.memory_space<vmem>>, vector<32x256xf32>
    %431 = arith.truncf %430 : vector<32x256xf32> to vector<32x256xbf16>
    %c32_330 = arith.constant 32 : index
    %c0_331 = arith.constant 0 : index
    %432 = vector.load %arg11[%c32_330, %c0_331] : memref<288x256xbf16, #tpu.memory_space<vmem>>, vector<32x256xbf16>
    tpu.vector_store %arg11[%c32_330, %c0_331], %431 {strides = array<i32>} : memref<288x256xbf16, #tpu.memory_space<vmem>>, vector<32x256xbf16>,
    %c0_332 = arith.constant 0 : index
    %c113_333 = arith.constant 113 : index
    %433 = vector.load %arg10[%c0_332, %c113_333] : memref<32x512xf32, #tpu.memory_space<vmem>>, vector<32x256xf32>
    %cst_334 = arith.constant 0.000000e+00 : f32
    %434 = vector.shape_cast %25 : vector<1x256xi1> to vector<1x256xi1>
    %435 = vector.broadcast %434 : vector<1x256xi1> to vector<32x256xi1>
    %436 = vector.broadcast %cst_334 : f32 to vector<32x256xf32>
    %437 = arith.select %435, %433, %436 : vector<32x256xi1>, vector<32x256xf32>
    %438 = arith.truncf %437 : vector<32x256xf32> to vector<32x256xbf16>
    %c64_335 = arith.constant 64 : index
    %c0_336 = arith.constant 0 : index
    %439 = vector.load %arg11[%c64_335, %c0_336] : memref<288x256xbf16, #tpu.memory_space<vmem>>, vector<32x256xbf16>
    tpu.vector_store %arg11[%c64_335, %c0_336], %438 {strides = array<i32>} : memref<288x256xbf16, #tpu.memory_space<vmem>>, vector<32x256xbf16>,
    %c0_337 = arith.constant 0 : index
    %c127_338 = arith.constant 127 : index
    %440 = vector.load %arg10[%c0_337, %c127_338] : memref<32x512xf32, #tpu.memory_space<vmem>>, vector<32x256xf32>
    %cst_339 = arith.constant 0.000000e+00 : f32
    %441 = vector.shape_cast %23 : vector<1x256xi1> to vector<1x256xi1>
    %442 = vector.broadcast %441 : vector<1x256xi1> to vector<32x256xi1>
    %443 = vector.broadcast %cst_339 : f32 to vector<32x256xf32>
    %444 = arith.select %442, %440, %443 : vector<32x256xi1>, vector<32x256xf32>
    %445 = arith.truncf %444 : vector<32x256xf32> to vector<32x256xbf16>
    %c96_340 = arith.constant 96 : index
    %c0_341 = arith.constant 0 : index
    %446 = vector.load %arg11[%c96_340, %c0_341] : memref<288x256xbf16, #tpu.memory_space<vmem>>, vector<32x256xbf16>
    tpu.vector_store %arg11[%c96_340, %c0_341], %445 {strides = array<i32>} : memref<288x256xbf16, #tpu.memory_space<vmem>>, vector<32x256xbf16>,
    %c0_342 = arith.constant 0 : index
    %c128_343 = arith.constant 128 : index
    %447 = vector.load %arg10[%c0_342, %c128_343] : memref<32x512xf32, #tpu.memory_space<vmem>>, vector<32x256xf32>
    %448 = arith.truncf %447 : vector<32x256xf32> to vector<32x256xbf16>
    %c128_344 = arith.constant 128 : index
    %c0_345 = arith.constant 0 : index
    %449 = vector.load %arg11[%c128_344, %c0_345] : memref<288x256xbf16, #tpu.memory_space<vmem>>, vector<32x256xbf16>
    tpu.vector_store %arg11[%c128_344, %c0_345], %448 {strides = array<i32>} : memref<288x256xbf16, #tpu.memory_space<vmem>>, vector<32x256xbf16>,
    %c0_346 = arith.constant 0 : index
    %c129_347 = arith.constant 129 : index
    %450 = vector.load %arg10[%c0_346, %c129_347] : memref<32x512xf32, #tpu.memory_space<vmem>>, vector<32x256xf32>
    %cst_348 = arith.constant 0.000000e+00 : f32
    %451 = vector.shape_cast %25 : vector<1x256xi1> to vector<1x256xi1>
    %452 = vector.broadcast %451 : vector<1x256xi1> to vector<32x256xi1>
    %453 = vector.broadcast %cst_348 : f32 to vector<32x256xf32>
    %454 = arith.select %452, %450, %453 : vector<32x256xi1>, vector<32x256xf32>
    %455 = arith.truncf %454 : vector<32x256xf32> to vector<32x256xbf16>
    %c160_349 = arith.constant 160 : index
    %c0_350 = arith.constant 0 : index
    %456 = vector.load %arg11[%c160_349, %c0_350] : memref<288x256xbf16, #tpu.memory_space<vmem>>, vector<32x256xbf16>
    tpu.vector_store %arg11[%c160_349, %c0_350], %455 {strides = array<i32>} : memref<288x256xbf16, #tpu.memory_space<vmem>>, vector<32x256xbf16>,
    %c0_351 = arith.constant 0 : index
    %c143_352 = arith.constant 143 : index
    %457 = vector.load %arg10[%c0_351, %c143_352] : memref<32x512xf32, #tpu.memory_space<vmem>>, vector<32x256xf32>
    %cst_353 = arith.constant 0.000000e+00 : f32
    %458 = vector.shape_cast %23 : vector<1x256xi1> to vector<1x256xi1>
    %459 = vector.broadcast %458 : vector<1x256xi1> to vector<32x256xi1>
    %460 = vector.broadcast %cst_353 : f32 to vector<32x256xf32>
    %461 = arith.select %459, %457, %460 : vector<32x256xi1>, vector<32x256xf32>
    %462 = arith.truncf %461 : vector<32x256xf32> to vector<32x256xbf16>
    %c192_354 = arith.constant 192 : index
    %c0_355 = arith.constant 0 : index
    %463 = vector.load %arg11[%c192_354, %c0_355] : memref<288x256xbf16, #tpu.memory_space<vmem>>, vector<32x256xbf16>
    tpu.vector_store %arg11[%c192_354, %c0_355], %462 {strides = array<i32>} : memref<288x256xbf16, #tpu.memory_space<vmem>>, vector<32x256xbf16>,
    %c0_356 = arith.constant 0 : index
    %c144_357 = arith.constant 144 : index
    %464 = vector.load %arg10[%c0_356, %c144_357] : memref<32x512xf32, #tpu.memory_space<vmem>>, vector<32x256xf32>
    %465 = arith.truncf %464 : vector<32x256xf32> to vector<32x256xbf16>
    %c224_358 = arith.constant 224 : index
    %c0_359 = arith.constant 0 : index
    %466 = vector.load %arg11[%c224_358, %c0_359] : memref<288x256xbf16, #tpu.memory_space<vmem>>, vector<32x256xbf16>
    tpu.vector_store %arg11[%c224_358, %c0_359], %465 {strides = array<i32>} : memref<288x256xbf16, #tpu.memory_space<vmem>>, vector<32x256xbf16>,
    %c0_360 = arith.constant 0 : index
    %c145_361 = arith.constant 145 : index
    %467 = vector.load %arg10[%c0_360, %c145_361] : memref<32x512xf32, #tpu.memory_space<vmem>>, vector<32x256xf32>
    %cst_362 = arith.constant 0.000000e+00 : f32
    %468 = vector.shape_cast %25 : vector<1x256xi1> to vector<1x256xi1>
    %469 = vector.broadcast %468 : vector<1x256xi1> to vector<32x256xi1>
    %470 = vector.broadcast %cst_362 : f32 to vector<32x256xf32>
    %471 = arith.select %469, %467, %470 : vector<32x256xi1>, vector<32x256xf32>
    %472 = arith.truncf %471 : vector<32x256xf32> to vector<32x256xbf16>
    %c256_363 = arith.constant 256 : index
    %c0_364 = arith.constant 0 : index
    %473 = vector.load %arg11[%c256_363, %c0_364] : memref<288x256xbf16, #tpu.memory_space<vmem>>, vector<32x256xbf16>
    tpu.vector_store %arg11[%c256_363, %c0_364], %472 {strides = array<i32>} : memref<288x256xbf16, #tpu.memory_space<vmem>>, vector<32x256xbf16>,
    %c0_365 = arith.constant 0 : index
    %c0_366 = arith.constant 0 : index
    %474 = vector.load %arg11[%c0_365, %c0_366] : memref<288x256xbf16, #tpu.memory_space<vmem>>, vector<288x256xbf16>
    %cst_367 = arith.constant dense<0.000000e+00> : vector<32x256xf32>
    %475 = tpu.matmul %420, %474, %cst_367 {dimension_numbers = #tpu.dot_dimension_numbers<[1], [0], [0], [1], [0, 0, 1, 1], [], []>} : vector<32x288xbf16>, vector<288x256xbf16>, vector<32x256xf32> -> vector<32x256xf32>
    %476 = vector.broadcast %422 : vector<32x1xf32> to vector<32x256xf32>
    %477 = arith.addf %475, %476 : vector<32x256xf32>
    %c0_368 = arith.constant 0 : index
    %c128_369 = arith.constant 128 : index
    %478 = vector.load %arg9[%c0_368, %c128_369] : memref<32x512xf32, #tpu.memory_space<vmem>>, vector<32x256xf32>
    %479 = arith.addf %478, %477 : vector<32x256xf32>
    %c0_370 = arith.constant 0 : index
    %c128_371 = arith.constant 128 : index
    %480 = vector.load %arg9[%c0_370, %c128_371] : memref<32x512xf32, #tpu.memory_space<vmem>>, vector<32x256xf32>
    tpu.vector_store %arg9[%c0_370, %c128_371], %479 {strides = array<i32>} : memref<32x512xf32, #tpu.memory_space<vmem>>, vector<32x256xf32>,
    %c6 = arith.constant 6 : index
    %c0_372 = arith.constant 0 : index
    %c0_373 = arith.constant 0 : index
    %481 = vector.load %arg4[%c6, %c0_372, %c0_373] : memref<8x32x288xbf16, #tpu.memory_space<vmem>>, vector<1x32x288xbf16>
    %482 = vector.shape_cast %481 : vector<1x32x288xbf16> to vector<32x288xbf16>
    %c6_374 = arith.constant 6 : index
    %c0_375 = arith.constant 0 : index
    %c0_376 = arith.constant 0 : index
    %483 = vector.load %arg5[%c6_374, %c0_375, %c0_376] : memref<8x32x1xf32, #tpu.memory_space<vmem>>, vector<1x32x1xf32>
    %484 = vector.shape_cast %483 : vector<1x32x1xf32> to vector<32x1xf32>
    %c0_377 = arith.constant 0 : index
    %c111_378 = arith.constant 111 : index
    %485 = vector.load %arg9[%c0_377, %c111_378] : memref<32x512xf32, #tpu.memory_space<vmem>>, vector<32x256xf32>
    %cst_379 = arith.constant 0.000000e+00 : f32
    %486 = vector.shape_cast %23 : vector<1x256xi1> to vector<1x256xi1>
    %487 = vector.broadcast %486 : vector<1x256xi1> to vector<32x256xi1>
    %488 = vector.broadcast %cst_379 : f32 to vector<32x256xf32>
    %489 = arith.select %487, %485, %488 : vector<32x256xi1>, vector<32x256xf32>
    %490 = arith.truncf %489 : vector<32x256xf32> to vector<32x256xbf16>
    %c0_380 = arith.constant 0 : index
    %c0_381 = arith.constant 0 : index
    %491 = vector.load %arg11[%c0_380, %c0_381] : memref<288x256xbf16, #tpu.memory_space<vmem>>, vector<32x256xbf16>
    tpu.vector_store %arg11[%c0_380, %c0_381], %490 {strides = array<i32>} : memref<288x256xbf16, #tpu.memory_space<vmem>>, vector<32x256xbf16>,
    %c0_382 = arith.constant 0 : index
    %c112_383 = arith.constant 112 : index
    %492 = vector.load %arg9[%c0_382, %c112_383] : memref<32x512xf32, #tpu.memory_space<vmem>>, vector<32x256xf32>
    %493 = arith.truncf %492 : vector<32x256xf32> to vector<32x256xbf16>
    %c32_384 = arith.constant 32 : index
    %c0_385 = arith.constant 0 : index
    %494 = vector.load %arg11[%c32_384, %c0_385] : memref<288x256xbf16, #tpu.memory_space<vmem>>, vector<32x256xbf16>
    tpu.vector_store %arg11[%c32_384, %c0_385], %493 {strides = array<i32>} : memref<288x256xbf16, #tpu.memory_space<vmem>>, vector<32x256xbf16>,
    %c0_386 = arith.constant 0 : index
    %c113_387 = arith.constant 113 : index
    %495 = vector.load %arg9[%c0_386, %c113_387] : memref<32x512xf32, #tpu.memory_space<vmem>>, vector<32x256xf32>
    %cst_388 = arith.constant 0.000000e+00 : f32
    %496 = vector.shape_cast %25 : vector<1x256xi1> to vector<1x256xi1>
    %497 = vector.broadcast %496 : vector<1x256xi1> to vector<32x256xi1>
    %498 = vector.broadcast %cst_388 : f32 to vector<32x256xf32>
    %499 = arith.select %497, %495, %498 : vector<32x256xi1>, vector<32x256xf32>
    %500 = arith.truncf %499 : vector<32x256xf32> to vector<32x256xbf16>
    %c64_389 = arith.constant 64 : index
    %c0_390 = arith.constant 0 : index
    %501 = vector.load %arg11[%c64_389, %c0_390] : memref<288x256xbf16, #tpu.memory_space<vmem>>, vector<32x256xbf16>
    tpu.vector_store %arg11[%c64_389, %c0_390], %500 {strides = array<i32>} : memref<288x256xbf16, #tpu.memory_space<vmem>>, vector<32x256xbf16>,
    %c0_391 = arith.constant 0 : index
    %c127_392 = arith.constant 127 : index
    %502 = vector.load %arg9[%c0_391, %c127_392] : memref<32x512xf32, #tpu.memory_space<vmem>>, vector<32x256xf32>
    %cst_393 = arith.constant 0.000000e+00 : f32
    %503 = vector.shape_cast %23 : vector<1x256xi1> to vector<1x256xi1>
    %504 = vector.broadcast %503 : vector<1x256xi1> to vector<32x256xi1>
    %505 = vector.broadcast %cst_393 : f32 to vector<32x256xf32>
    %506 = arith.select %504, %502, %505 : vector<32x256xi1>, vector<32x256xf32>
    %507 = arith.truncf %506 : vector<32x256xf32> to vector<32x256xbf16>
    %c96_394 = arith.constant 96 : index
    %c0_395 = arith.constant 0 : index
    %508 = vector.load %arg11[%c96_394, %c0_395] : memref<288x256xbf16, #tpu.memory_space<vmem>>, vector<32x256xbf16>
    tpu.vector_store %arg11[%c96_394, %c0_395], %507 {strides = array<i32>} : memref<288x256xbf16, #tpu.memory_space<vmem>>, vector<32x256xbf16>,
    %c0_396 = arith.constant 0 : index
    %c128_397 = arith.constant 128 : index
    %509 = vector.load %arg9[%c0_396, %c128_397] : memref<32x512xf32, #tpu.memory_space<vmem>>, vector<32x256xf32>
    %510 = arith.truncf %509 : vector<32x256xf32> to vector<32x256xbf16>
    %c128_398 = arith.constant 128 : index
    %c0_399 = arith.constant 0 : index
    %511 = vector.load %arg11[%c128_398, %c0_399] : memref<288x256xbf16, #tpu.memory_space<vmem>>, vector<32x256xbf16>
    tpu.vector_store %arg11[%c128_398, %c0_399], %510 {strides = array<i32>} : memref<288x256xbf16, #tpu.memory_space<vmem>>, vector<32x256xbf16>,
    %c0_400 = arith.constant 0 : index
    %c129_401 = arith.constant 129 : index
    %512 = vector.load %arg9[%c0_400, %c129_401] : memref<32x512xf32, #tpu.memory_space<vmem>>, vector<32x256xf32>
    %cst_402 = arith.constant 0.000000e+00 : f32
    %513 = vector.shape_cast %25 : vector<1x256xi1> to vector<1x256xi1>
    %514 = vector.broadcast %513 : vector<1x256xi1> to vector<32x256xi1>
    %515 = vector.broadcast %cst_402 : f32 to vector<32x256xf32>
    %516 = arith.select %514, %512, %515 : vector<32x256xi1>, vector<32x256xf32>
    %517 = arith.truncf %516 : vector<32x256xf32> to vector<32x256xbf16>
    %c160_403 = arith.constant 160 : index
    %c0_404 = arith.constant 0 : index
    %518 = vector.load %arg11[%c160_403, %c0_404] : memref<288x256xbf16, #tpu.memory_space<vmem>>, vector<32x256xbf16>
    tpu.vector_store %arg11[%c160_403, %c0_404], %517 {strides = array<i32>} : memref<288x256xbf16, #tpu.memory_space<vmem>>, vector<32x256xbf16>,
    %c0_405 = arith.constant 0 : index
    %c143_406 = arith.constant 143 : index
    %519 = vector.load %arg9[%c0_405, %c143_406] : memref<32x512xf32, #tpu.memory_space<vmem>>, vector<32x256xf32>
    %cst_407 = arith.constant 0.000000e+00 : f32
    %520 = vector.shape_cast %23 : vector<1x256xi1> to vector<1x256xi1>
    %521 = vector.broadcast %520 : vector<1x256xi1> to vector<32x256xi1>
    %522 = vector.broadcast %cst_407 : f32 to vector<32x256xf32>
    %523 = arith.select %521, %519, %522 : vector<32x256xi1>, vector<32x256xf32>
    %524 = arith.truncf %523 : vector<32x256xf32> to vector<32x256xbf16>
    %c192_408 = arith.constant 192 : index
    %c0_409 = arith.constant 0 : index
    %525 = vector.load %arg11[%c192_408, %c0_409] : memref<288x256xbf16, #tpu.memory_space<vmem>>, vector<32x256xbf16>
    tpu.vector_store %arg11[%c192_408, %c0_409], %524 {strides = array<i32>} : memref<288x256xbf16, #tpu.memory_space<vmem>>, vector<32x256xbf16>,
    %c0_410 = arith.constant 0 : index
    %c144_411 = arith.constant 144 : index
    %526 = vector.load %arg9[%c0_410, %c144_411] : memref<32x512xf32, #tpu.memory_space<vmem>>, vector<32x256xf32>
    %527 = arith.truncf %526 : vector<32x256xf32> to vector<32x256xbf16>
    %c224_412 = arith.constant 224 : index
    %c0_413 = arith.constant 0 : index
    %528 = vector.load %arg11[%c224_412, %c0_413] : memref<288x256xbf16, #tpu.memory_space<vmem>>, vector<32x256xbf16>
    tpu.vector_store %arg11[%c224_412, %c0_413], %527 {strides = array<i32>} : memref<288x256xbf16, #tpu.memory_space<vmem>>, vector<32x256xbf16>,
    %c0_414 = arith.constant 0 : index
    %c145_415 = arith.constant 145 : index
    %529 = vector.load %arg9[%c0_414, %c145_415] : memref<32x512xf32, #tpu.memory_space<vmem>>, vector<32x256xf32>
    %cst_416 = arith.constant 0.000000e+00 : f32
    %530 = vector.shape_cast %25 : vector<1x256xi1> to vector<1x256xi1>
    %531 = vector.broadcast %530 : vector<1x256xi1> to vector<32x256xi1>
    %532 = vector.broadcast %cst_416 : f32 to vector<32x256xf32>
    %533 = arith.select %531, %529, %532 : vector<32x256xi1>, vector<32x256xf32>
    %534 = arith.truncf %533 : vector<32x256xf32> to vector<32x256xbf16>
    %c256_417 = arith.constant 256 : index
    %c0_418 = arith.constant 0 : index
    %535 = vector.load %arg11[%c256_417, %c0_418] : memref<288x256xbf16, #tpu.memory_space<vmem>>, vector<32x256xbf16>
    tpu.vector_store %arg11[%c256_417, %c0_418], %534 {strides = array<i32>} : memref<288x256xbf16, #tpu.memory_space<vmem>>, vector<32x256xbf16>,
    %c0_419 = arith.constant 0 : index
    %c0_420 = arith.constant 0 : index
    %536 = vector.load %arg11[%c0_419, %c0_420] : memref<288x256xbf16, #tpu.memory_space<vmem>>, vector<288x256xbf16>
    %cst_421 = arith.constant dense<0.000000e+00> : vector<32x256xf32>
    %537 = tpu.matmul %482, %536, %cst_421 {dimension_numbers = #tpu.dot_dimension_numbers<[1], [0], [0], [1], [0, 0, 1, 1], [], []>} : vector<32x288xbf16>, vector<288x256xbf16>, vector<32x256xf32> -> vector<32x256xf32>
    %538 = vector.broadcast %484 : vector<32x1xf32> to vector<32x256xf32>
    %539 = arith.addf %537, %538 : vector<32x256xf32>
    %cst_422 = arith.constant 0.000000e+00 : f32
    %540 = vector.broadcast %cst_422 : f32 to vector<32x256xf32>
    %541 = arith.maximumf %539, %540 : vector<32x256xf32>
    %c0_423 = arith.constant 0 : index
    %c128_424 = arith.constant 128 : index
    %542 = vector.load %arg10[%c0_423, %c128_424] : memref<32x512xf32, #tpu.memory_space<vmem>>, vector<32x256xf32>
    tpu.vector_store %arg10[%c0_423, %c128_424], %541 {strides = array<i32>} : memref<32x512xf32, #tpu.memory_space<vmem>>, vector<32x256xf32>,
    %c7 = arith.constant 7 : index
    %c0_425 = arith.constant 0 : index
    %c0_426 = arith.constant 0 : index
    %543 = vector.load %arg4[%c7, %c0_425, %c0_426] : memref<8x32x288xbf16, #tpu.memory_space<vmem>>, vector<1x32x288xbf16>
    %544 = vector.shape_cast %543 : vector<1x32x288xbf16> to vector<32x288xbf16>
    %c7_427 = arith.constant 7 : index
    %c0_428 = arith.constant 0 : index
    %c0_429 = arith.constant 0 : index
    %545 = vector.load %arg5[%c7_427, %c0_428, %c0_429] : memref<8x32x1xf32, #tpu.memory_space<vmem>>, vector<1x32x1xf32>
    %546 = vector.shape_cast %545 : vector<1x32x1xf32> to vector<32x1xf32>
    %c0_430 = arith.constant 0 : index
    %c111_431 = arith.constant 111 : index
    %547 = vector.load %arg10[%c0_430, %c111_431] : memref<32x512xf32, #tpu.memory_space<vmem>>, vector<32x256xf32>
    %cst_432 = arith.constant 0.000000e+00 : f32
    %548 = vector.shape_cast %23 : vector<1x256xi1> to vector<1x256xi1>
    %549 = vector.broadcast %548 : vector<1x256xi1> to vector<32x256xi1>
    %550 = vector.broadcast %cst_432 : f32 to vector<32x256xf32>
    %551 = arith.select %549, %547, %550 : vector<32x256xi1>, vector<32x256xf32>
    %552 = arith.truncf %551 : vector<32x256xf32> to vector<32x256xbf16>
    %c0_433 = arith.constant 0 : index
    %c0_434 = arith.constant 0 : index
    %553 = vector.load %arg11[%c0_433, %c0_434] : memref<288x256xbf16, #tpu.memory_space<vmem>>, vector<32x256xbf16>
    tpu.vector_store %arg11[%c0_433, %c0_434], %552 {strides = array<i32>} : memref<288x256xbf16, #tpu.memory_space<vmem>>, vector<32x256xbf16>,
    %c0_435 = arith.constant 0 : index
    %c112_436 = arith.constant 112 : index
    %554 = vector.load %arg10[%c0_435, %c112_436] : memref<32x512xf32, #tpu.memory_space<vmem>>, vector<32x256xf32>
    %555 = arith.truncf %554 : vector<32x256xf32> to vector<32x256xbf16>
    %c32_437 = arith.constant 32 : index
    %c0_438 = arith.constant 0 : index
    %556 = vector.load %arg11[%c32_437, %c0_438] : memref<288x256xbf16, #tpu.memory_space<vmem>>, vector<32x256xbf16>
    tpu.vector_store %arg11[%c32_437, %c0_438], %555 {strides = array<i32>} : memref<288x256xbf16, #tpu.memory_space<vmem>>, vector<32x256xbf16>,
    %c0_439 = arith.constant 0 : index
    %c113_440 = arith.constant 113 : index
    %557 = vector.load %arg10[%c0_439, %c113_440] : memref<32x512xf32, #tpu.memory_space<vmem>>, vector<32x256xf32>
    %cst_441 = arith.constant 0.000000e+00 : f32
    %558 = vector.shape_cast %25 : vector<1x256xi1> to vector<1x256xi1>
    %559 = vector.broadcast %558 : vector<1x256xi1> to vector<32x256xi1>
    %560 = vector.broadcast %cst_441 : f32 to vector<32x256xf32>
    %561 = arith.select %559, %557, %560 : vector<32x256xi1>, vector<32x256xf32>
    %562 = arith.truncf %561 : vector<32x256xf32> to vector<32x256xbf16>
    %c64_442 = arith.constant 64 : index
    %c0_443 = arith.constant 0 : index
    %563 = vector.load %arg11[%c64_442, %c0_443] : memref<288x256xbf16, #tpu.memory_space<vmem>>, vector<32x256xbf16>
    tpu.vector_store %arg11[%c64_442, %c0_443], %562 {strides = array<i32>} : memref<288x256xbf16, #tpu.memory_space<vmem>>, vector<32x256xbf16>,
    %c0_444 = arith.constant 0 : index
    %c127_445 = arith.constant 127 : index
    %564 = vector.load %arg10[%c0_444, %c127_445] : memref<32x512xf32, #tpu.memory_space<vmem>>, vector<32x256xf32>
    %cst_446 = arith.constant 0.000000e+00 : f32
    %565 = vector.shape_cast %23 : vector<1x256xi1> to vector<1x256xi1>
    %566 = vector.broadcast %565 : vector<1x256xi1> to vector<32x256xi1>
    %567 = vector.broadcast %cst_446 : f32 to vector<32x256xf32>
    %568 = arith.select %566, %564, %567 : vector<32x256xi1>, vector<32x256xf32>
    %569 = arith.truncf %568 : vector<32x256xf32> to vector<32x256xbf16>
    %c96_447 = arith.constant 96 : index
    %c0_448 = arith.constant 0 : index
    %570 = vector.load %arg11[%c96_447, %c0_448] : memref<288x256xbf16, #tpu.memory_space<vmem>>, vector<32x256xbf16>
    tpu.vector_store %arg11[%c96_447, %c0_448], %569 {strides = array<i32>} : memref<288x256xbf16, #tpu.memory_space<vmem>>, vector<32x256xbf16>,
    %c0_449 = arith.constant 0 : index
    %c128_450 = arith.constant 128 : index
    %571 = vector.load %arg10[%c0_449, %c128_450] : memref<32x512xf32, #tpu.memory_space<vmem>>, vector<32x256xf32>
    %572 = arith.truncf %571 : vector<32x256xf32> to vector<32x256xbf16>
    %c128_451 = arith.constant 128 : index
    %c0_452 = arith.constant 0 : index
    %573 = vector.load %arg11[%c128_451, %c0_452] : memref<288x256xbf16, #tpu.memory_space<vmem>>, vector<32x256xbf16>
    tpu.vector_store %arg11[%c128_451, %c0_452], %572 {strides = array<i32>} : memref<288x256xbf16, #tpu.memory_space<vmem>>, vector<32x256xbf16>,
    %c0_453 = arith.constant 0 : index
    %c129_454 = arith.constant 129 : index
    %574 = vector.load %arg10[%c0_453, %c129_454] : memref<32x512xf32, #tpu.memory_space<vmem>>, vector<32x256xf32>
    %cst_455 = arith.constant 0.000000e+00 : f32
    %575 = vector.shape_cast %25 : vector<1x256xi1> to vector<1x256xi1>
    %576 = vector.broadcast %575 : vector<1x256xi1> to vector<32x256xi1>
    %577 = vector.broadcast %cst_455 : f32 to vector<32x256xf32>
    %578 = arith.select %576, %574, %577 : vector<32x256xi1>, vector<32x256xf32>
    %579 = arith.truncf %578 : vector<32x256xf32> to vector<32x256xbf16>
    %c160_456 = arith.constant 160 : index
    %c0_457 = arith.constant 0 : index
    %580 = vector.load %arg11[%c160_456, %c0_457] : memref<288x256xbf16, #tpu.memory_space<vmem>>, vector<32x256xbf16>
    tpu.vector_store %arg11[%c160_456, %c0_457], %579 {strides = array<i32>} : memref<288x256xbf16, #tpu.memory_space<vmem>>, vector<32x256xbf16>,
    %c0_458 = arith.constant 0 : index
    %c143_459 = arith.constant 143 : index
    %581 = vector.load %arg10[%c0_458, %c143_459] : memref<32x512xf32, #tpu.memory_space<vmem>>, vector<32x256xf32>
    %cst_460 = arith.constant 0.000000e+00 : f32
    %582 = vector.shape_cast %23 : vector<1x256xi1> to vector<1x256xi1>
    %583 = vector.broadcast %582 : vector<1x256xi1> to vector<32x256xi1>
    %584 = vector.broadcast %cst_460 : f32 to vector<32x256xf32>
    %585 = arith.select %583, %581, %584 : vector<32x256xi1>, vector<32x256xf32>
    %586 = arith.truncf %585 : vector<32x256xf32> to vector<32x256xbf16>
    %c192_461 = arith.constant 192 : index
    %c0_462 = arith.constant 0 : index
    %587 = vector.load %arg11[%c192_461, %c0_462] : memref<288x256xbf16, #tpu.memory_space<vmem>>, vector<32x256xbf16>
    tpu.vector_store %arg11[%c192_461, %c0_462], %586 {strides = array<i32>} : memref<288x256xbf16, #tpu.memory_space<vmem>>, vector<32x256xbf16>,
    %c0_463 = arith.constant 0 : index
    %c144_464 = arith.constant 144 : index
    %588 = vector.load %arg10[%c0_463, %c144_464] : memref<32x512xf32, #tpu.memory_space<vmem>>, vector<32x256xf32>
    %589 = arith.truncf %588 : vector<32x256xf32> to vector<32x256xbf16>
    %c224_465 = arith.constant 224 : index
    %c0_466 = arith.constant 0 : index
    %590 = vector.load %arg11[%c224_465, %c0_466] : memref<288x256xbf16, #tpu.memory_space<vmem>>, vector<32x256xbf16>
    tpu.vector_store %arg11[%c224_465, %c0_466], %589 {strides = array<i32>} : memref<288x256xbf16, #tpu.memory_space<vmem>>, vector<32x256xbf16>,
    %c0_467 = arith.constant 0 : index
    %c145_468 = arith.constant 145 : index
    %591 = vector.load %arg10[%c0_467, %c145_468] : memref<32x512xf32, #tpu.memory_space<vmem>>, vector<32x256xf32>
    %cst_469 = arith.constant 0.000000e+00 : f32
    %592 = vector.shape_cast %25 : vector<1x256xi1> to vector<1x256xi1>
    %593 = vector.broadcast %592 : vector<1x256xi1> to vector<32x256xi1>
    %594 = vector.broadcast %cst_469 : f32 to vector<32x256xf32>
    %595 = arith.select %593, %591, %594 : vector<32x256xi1>, vector<32x256xf32>
    %596 = arith.truncf %595 : vector<32x256xf32> to vector<32x256xbf16>
    %c256_470 = arith.constant 256 : index
    %c0_471 = arith.constant 0 : index
    %597 = vector.load %arg11[%c256_470, %c0_471] : memref<288x256xbf16, #tpu.memory_space<vmem>>, vector<32x256xbf16>
    tpu.vector_store %arg11[%c256_470, %c0_471], %596 {strides = array<i32>} : memref<288x256xbf16, #tpu.memory_space<vmem>>, vector<32x256xbf16>,
    %c0_472 = arith.constant 0 : index
    %c0_473 = arith.constant 0 : index
    %598 = vector.load %arg11[%c0_472, %c0_473] : memref<288x256xbf16, #tpu.memory_space<vmem>>, vector<288x256xbf16>
    %cst_474 = arith.constant dense<0.000000e+00> : vector<32x256xf32>
    %599 = tpu.matmul %544, %598, %cst_474 {dimension_numbers = #tpu.dot_dimension_numbers<[1], [0], [0], [1], [0, 0, 1, 1], [], []>} : vector<32x288xbf16>, vector<288x256xbf16>, vector<32x256xf32> -> vector<32x256xf32>
    %600 = vector.broadcast %546 : vector<32x1xf32> to vector<32x256xf32>
    %601 = arith.addf %599, %600 : vector<32x256xf32>
    %c0_475 = arith.constant 0 : index
    %c128_476 = arith.constant 128 : index
    %602 = vector.load %arg9[%c0_475, %c128_476] : memref<32x512xf32, #tpu.memory_space<vmem>>, vector<32x256xf32>
    %603 = arith.addf %602, %601 : vector<32x256xf32>
    %c0_477 = arith.constant 0 : index
    %c128_478 = arith.constant 128 : index
    %604 = vector.load %arg9[%c0_477, %c128_478] : memref<32x512xf32, #tpu.memory_space<vmem>>, vector<32x256xf32>
    tpu.vector_store %arg9[%c0_477, %c128_478], %603 {strides = array<i32>} : memref<32x512xf32, #tpu.memory_space<vmem>>, vector<32x256xf32>,
    %c0_479 = arith.constant 0 : index
    %c0_480 = arith.constant 0 : index
    %605 = vector.load %arg6[%c0_479, %c0_480] : memref<4x288xbf16, #tpu.memory_space<vmem>>, vector<4x288xbf16>
    %c0_481 = arith.constant 0 : index
    %c0_482 = arith.constant 0 : index
    %606 = vector.load %arg7[%c0_481, %c0_482] : memref<4x1xf32, #tpu.memory_space<vmem>>, vector<4x1xf32>
    %c0_483 = arith.constant 0 : index
    %c111_484 = arith.constant 111 : index
    %607 = vector.load %arg9[%c0_483, %c111_484] : memref<32x512xf32, #tpu.memory_space<vmem>>, vector<32x256xf32>
    %cst_485 = arith.constant 0.000000e+00 : f32
    %608 = vector.shape_cast %23 : vector<1x256xi1> to vector<1x256xi1>
    %609 = vector.broadcast %608 : vector<1x256xi1> to vector<32x256xi1>
    %610 = vector.broadcast %cst_485 : f32 to vector<32x256xf32>
    %611 = arith.select %609, %607, %610 : vector<32x256xi1>, vector<32x256xf32>
    %612 = arith.truncf %611 : vector<32x256xf32> to vector<32x256xbf16>
    %c0_486 = arith.constant 0 : index
    %c0_487 = arith.constant 0 : index
    %613 = vector.load %arg11[%c0_486, %c0_487] : memref<288x256xbf16, #tpu.memory_space<vmem>>, vector<32x256xbf16>
    tpu.vector_store %arg11[%c0_486, %c0_487], %612 {strides = array<i32>} : memref<288x256xbf16, #tpu.memory_space<vmem>>, vector<32x256xbf16>,
    %c0_488 = arith.constant 0 : index
    %c112_489 = arith.constant 112 : index
    %614 = vector.load %arg9[%c0_488, %c112_489] : memref<32x512xf32, #tpu.memory_space<vmem>>, vector<32x256xf32>
    %615 = arith.truncf %614 : vector<32x256xf32> to vector<32x256xbf16>
    %c32_490 = arith.constant 32 : index
    %c0_491 = arith.constant 0 : index
    %616 = vector.load %arg11[%c32_490, %c0_491] : memref<288x256xbf16, #tpu.memory_space<vmem>>, vector<32x256xbf16>
    tpu.vector_store %arg11[%c32_490, %c0_491], %615 {strides = array<i32>} : memref<288x256xbf16, #tpu.memory_space<vmem>>, vector<32x256xbf16>,
    %c0_492 = arith.constant 0 : index
    %c113_493 = arith.constant 113 : index
    %617 = vector.load %arg9[%c0_492, %c113_493] : memref<32x512xf32, #tpu.memory_space<vmem>>, vector<32x256xf32>
    %cst_494 = arith.constant 0.000000e+00 : f32
    %618 = vector.shape_cast %25 : vector<1x256xi1> to vector<1x256xi1>
    %619 = vector.broadcast %618 : vector<1x256xi1> to vector<32x256xi1>
    %620 = vector.broadcast %cst_494 : f32 to vector<32x256xf32>
    %621 = arith.select %619, %617, %620 : vector<32x256xi1>, vector<32x256xf32>
    %622 = arith.truncf %621 : vector<32x256xf32> to vector<32x256xbf16>
    %c64_495 = arith.constant 64 : index
    %c0_496 = arith.constant 0 : index
    %623 = vector.load %arg11[%c64_495, %c0_496] : memref<288x256xbf16, #tpu.memory_space<vmem>>, vector<32x256xbf16>
    tpu.vector_store %arg11[%c64_495, %c0_496], %622 {strides = array<i32>} : memref<288x256xbf16, #tpu.memory_space<vmem>>, vector<32x256xbf16>,
    %c0_497 = arith.constant 0 : index
    %c127_498 = arith.constant 127 : index
    %624 = vector.load %arg9[%c0_497, %c127_498] : memref<32x512xf32, #tpu.memory_space<vmem>>, vector<32x256xf32>
    %cst_499 = arith.constant 0.000000e+00 : f32
    %625 = vector.shape_cast %23 : vector<1x256xi1> to vector<1x256xi1>
    %626 = vector.broadcast %625 : vector<1x256xi1> to vector<32x256xi1>
    %627 = vector.broadcast %cst_499 : f32 to vector<32x256xf32>
    %628 = arith.select %626, %624, %627 : vector<32x256xi1>, vector<32x256xf32>
    %629 = arith.truncf %628 : vector<32x256xf32> to vector<32x256xbf16>
    %c96_500 = arith.constant 96 : index
    %c0_501 = arith.constant 0 : index
    %630 = vector.load %arg11[%c96_500, %c0_501] : memref<288x256xbf16, #tpu.memory_space<vmem>>, vector<32x256xbf16>
    tpu.vector_store %arg11[%c96_500, %c0_501], %629 {strides = array<i32>} : memref<288x256xbf16, #tpu.memory_space<vmem>>, vector<32x256xbf16>,
    %c0_502 = arith.constant 0 : index
    %c128_503 = arith.constant 128 : index
    %631 = vector.load %arg9[%c0_502, %c128_503] : memref<32x512xf32, #tpu.memory_space<vmem>>, vector<32x256xf32>
    %632 = arith.truncf %631 : vector<32x256xf32> to vector<32x256xbf16>
    %c128_504 = arith.constant 128 : index
    %c0_505 = arith.constant 0 : index
    %633 = vector.load %arg11[%c128_504, %c0_505] : memref<288x256xbf16, #tpu.memory_space<vmem>>, vector<32x256xbf16>
    tpu.vector_store %arg11[%c128_504, %c0_505], %632 {strides = array<i32>} : memref<288x256xbf16, #tpu.memory_space<vmem>>, vector<32x256xbf16>,
    %c0_506 = arith.constant 0 : index
    %c129_507 = arith.constant 129 : index
    %634 = vector.load %arg9[%c0_506, %c129_507] : memref<32x512xf32, #tpu.memory_space<vmem>>, vector<32x256xf32>
    %cst_508 = arith.constant 0.000000e+00 : f32
    %635 = vector.shape_cast %25 : vector<1x256xi1> to vector<1x256xi1>
    %636 = vector.broadcast %635 : vector<1x256xi1> to vector<32x256xi1>
    %637 = vector.broadcast %cst_508 : f32 to vector<32x256xf32>
    %638 = arith.select %636, %634, %637 : vector<32x256xi1>, vector<32x256xf32>
    %639 = arith.truncf %638 : vector<32x256xf32> to vector<32x256xbf16>
    %c160_509 = arith.constant 160 : index
    %c0_510 = arith.constant 0 : index
    %640 = vector.load %arg11[%c160_509, %c0_510] : memref<288x256xbf16, #tpu.memory_space<vmem>>, vector<32x256xbf16>
    tpu.vector_store %arg11[%c160_509, %c0_510], %639 {strides = array<i32>} : memref<288x256xbf16, #tpu.memory_space<vmem>>, vector<32x256xbf16>,
    %c0_511 = arith.constant 0 : index
    %c143_512 = arith.constant 143 : index
    %641 = vector.load %arg9[%c0_511, %c143_512] : memref<32x512xf32, #tpu.memory_space<vmem>>, vector<32x256xf32>
    %cst_513 = arith.constant 0.000000e+00 : f32
    %642 = vector.shape_cast %23 : vector<1x256xi1> to vector<1x256xi1>
    %643 = vector.broadcast %642 : vector<1x256xi1> to vector<32x256xi1>
    %644 = vector.broadcast %cst_513 : f32 to vector<32x256xf32>
    %645 = arith.select %643, %641, %644 : vector<32x256xi1>, vector<32x256xf32>
    %646 = arith.truncf %645 : vector<32x256xf32> to vector<32x256xbf16>
    %c192_514 = arith.constant 192 : index
    %c0_515 = arith.constant 0 : index
    %647 = vector.load %arg11[%c192_514, %c0_515] : memref<288x256xbf16, #tpu.memory_space<vmem>>, vector<32x256xbf16>
    tpu.vector_store %arg11[%c192_514, %c0_515], %646 {strides = array<i32>} : memref<288x256xbf16, #tpu.memory_space<vmem>>, vector<32x256xbf16>,
    %c0_516 = arith.constant 0 : index
    %c144_517 = arith.constant 144 : index
    %648 = vector.load %arg9[%c0_516, %c144_517] : memref<32x512xf32, #tpu.memory_space<vmem>>, vector<32x256xf32>
    %649 = arith.truncf %648 : vector<32x256xf32> to vector<32x256xbf16>
    %c224_518 = arith.constant 224 : index
    %c0_519 = arith.constant 0 : index
    %650 = vector.load %arg11[%c224_518, %c0_519] : memref<288x256xbf16, #tpu.memory_space<vmem>>, vector<32x256xbf16>
    tpu.vector_store %arg11[%c224_518, %c0_519], %649 {strides = array<i32>} : memref<288x256xbf16, #tpu.memory_space<vmem>>, vector<32x256xbf16>,
    %c0_520 = arith.constant 0 : index
    %c145_521 = arith.constant 145 : index
    %651 = vector.load %arg9[%c0_520, %c145_521] : memref<32x512xf32, #tpu.memory_space<vmem>>, vector<32x256xf32>
    %cst_522 = arith.constant 0.000000e+00 : f32
    %652 = vector.shape_cast %25 : vector<1x256xi1> to vector<1x256xi1>
    %653 = vector.broadcast %652 : vector<1x256xi1> to vector<32x256xi1>
    %654 = vector.broadcast %cst_522 : f32 to vector<32x256xf32>
    %655 = arith.select %653, %651, %654 : vector<32x256xi1>, vector<32x256xf32>
    %656 = arith.truncf %655 : vector<32x256xf32> to vector<32x256xbf16>
    %c256_523 = arith.constant 256 : index
    %c0_524 = arith.constant 0 : index
    %657 = vector.load %arg11[%c256_523, %c0_524] : memref<288x256xbf16, #tpu.memory_space<vmem>>, vector<32x256xbf16>
    tpu.vector_store %arg11[%c256_523, %c0_524], %656 {strides = array<i32>} : memref<288x256xbf16, #tpu.memory_space<vmem>>, vector<32x256xbf16>,
    %c0_525 = arith.constant 0 : index
    %c0_526 = arith.constant 0 : index
    %658 = vector.load %arg11[%c0_525, %c0_526] : memref<288x256xbf16, #tpu.memory_space<vmem>>, vector<288x256xbf16>
    %cst_527 = arith.constant dense<0.000000e+00> : vector<4x256xf32>
    %659 = tpu.matmul %605, %658, %cst_527 {dimension_numbers = #tpu.dot_dimension_numbers<[1], [0], [0], [1], [0, 0, 1, 1], [], []>} : vector<4x288xbf16>, vector<288x256xbf16>, vector<4x256xf32> -> vector<4x256xf32>
    %660 = vector.broadcast %606 : vector<4x1xf32> to vector<4x256xf32>
    %661 = arith.addf %659, %660 : vector<4x256xf32>
    %662 = arith.addf %28, %661 : vector<4x256xf32>
    %c0_528 = arith.constant 0 : index
    %c0_529 = arith.constant 0 : index
    %c0_530 = arith.constant 0 : index
    %663 = vector.load %arg8[%c0_528, %c0_529, %c0_530] : memref<1x4x256xf32, #tpu.memory_space<vmem>>, vector<1x4x256xf32>
    %664 = vector.shape_cast %663 : vector<1x4x256xf32> to vector<4x256xf32>
    %665 = vector.shape_cast %662 : vector<4x256xf32> to vector<1x4x256xf32>
    tpu.vector_store %arg8[%c0_528, %c0_529, %c0_530], %665 {strides = array<i32>} : memref<1x4x256xf32, #tpu.memory_space<vmem>>, vector<1x4x256xf32>,
    return
  }
  func.func @transform_0(%arg0: i32) -> (i32, i32, i32) {
    %c0_i32 = arith.constant 0 : i32
    %c0_i32_0 = arith.constant 0 : i32
    %c0_i32_1 = arith.constant 0 : i32
    return %arg0, %c0_i32, %c0_i32_0 : i32, i32, i32
  }
  func.func @transform_1(%arg0: i32) -> (i32, i32) {
    %c0_i32 = arith.constant 0 : i32
    %c0_i32_0 = arith.constant 0 : i32
    %c0_i32_1 = arith.constant 0 : i32
    return %c0_i32, %c0_i32_0 : i32, i32
  }
  func.func @transform_2(%arg0: i32) -> (i32, i32) {
    %c0_i32 = arith.constant 0 : i32
    %c0_i32_0 = arith.constant 0 : i32
    %c0_i32_1 = arith.constant 0 : i32
    return %c0_i32, %c0_i32_0 : i32, i32
  }
  func.func @transform_3(%arg0: i32) -> (i32, i32, i32) {
    %c0_i32 = arith.constant 0 : i32
    %c0_i32_0 = arith.constant 0 : i32
    %c0_i32_1 = arith.constant 0 : i32
    %c0_i32_2 = arith.constant 0 : i32
    return %c0_i32, %c0_i32_0, %c0_i32_1 : i32, i32, i32
  }
  func.func @transform_4(%arg0: i32) -> (i32, i32, i32) {
    %c0_i32 = arith.constant 0 : i32
    %c0_i32_0 = arith.constant 0 : i32
    %c0_i32_1 = arith.constant 0 : i32
    %c0_i32_2 = arith.constant 0 : i32
    return %c0_i32, %c0_i32_0, %c0_i32_1 : i32, i32, i32
  }
  func.func @transform_5(%arg0: i32) -> (i32, i32) {
    %c0_i32 = arith.constant 0 : i32
    %c0_i32_0 = arith.constant 0 : i32
    %c0_i32_1 = arith.constant 0 : i32
    return %c0_i32, %c0_i32_0 : i32, i32
  }
  func.func @transform_6(%arg0: i32) -> (i32, i32) {
    %c0_i32 = arith.constant 0 : i32
    %c0_i32_0 = arith.constant 0 : i32
    %c0_i32_1 = arith.constant 0 : i32
    return %c0_i32, %c0_i32_0 : i32, i32
  }
  func.func @transform_7(%arg0: i32) -> (i32, i32, i32) {
    %c0_i32 = arith.constant 0 : i32
    %c0_i32_0 = arith.constant 0 : i32
    %c0_i32_1 = arith.constant 0 : i32
    return %arg0, %c0_i32, %c0_i32_0 : i32, i32, i32
  }
}

</mosaic_0001>

<bundles_post_ra>
// kernel: fusionnet_forward.1
= control target key start
LH: loop header
LB: loop body
LE: loop exit
PB: predicated region body
PF: predicated region fallthrough
CT: control target
= control target key end

     0   :  { %s11460_s24 = smov 0   ;;  %s13856_s0 = inlined_call_operand.vmem [shape: f32[2,5,256], index: 0, kind: input, shape index: {}]   ;;  %s13857_s1 = inlined_call_operand.vmem [shape: bf16[32,36], index: 1, kind: input, shape index: {}]   ;;  %s13858_s2 = inlined_call_operand.vmem [shape: f32[32,1], index: 2, kind: input, shape index: {}]   ;;  %s13859_s3 = inlined_call_operand.vmem [shape: bf16[8,32,288], index: 3, kind: input, shape index: {}]   ;;  %s13860_s4 = inlined_call_operand.vmem [shape: f32[8,32,1], index: 4, kind: input, shape index: {}]   ;;  %s13861_s5 = inlined_call_operand.vmem [shape: bf16[4,288], index: 5, kind: input, shape index: {}]   ;;  %s13862_s6 = inlined_call_operand.vmem [shape: f32[4,1], index: 6, kind: input, shape index: {}]   ;;  %s13863_s7 = inlined_call_operand.vmem [shape: f32[2,4,256], index: 7, kind: output, shape index: {}]  }
   0x1 LB: > { %s8610_s25 = sadd.s32 4294967295, %s11399_s24   ;;  %p8614_p0 = scmp.ge.s32.totalorder %s11399_s24, 1  ;;  %s11399_s24 = sphi %s11460_s24, %s17_s24  }
   0x2   : > { %p237_p1 = scmp.lt.s32.totalorder %s11399_s24, 3 }
   0x4   : > { %p238_p2 = pnand %p8614_p0, %p237_p1 }
   0x5   : > { %p269_p3 = scmp.lt.s32.totalorder (!%p238_p2), %s8610_s25, 1  ;;  %v296_v0 = vlaneseq (!%p238_p2)  ;;  %v11401_v1 = vmov (!%p238_p2), 0.0   ;;  %v11402_v12 = vmov (!%p238_p2), 0   ;;  %s11403_s30 = smov (!%p238_p2), 17   ;;  %v11493_v15 = vld [vmem:[%s13857_s1] sm:$0xff] (!%p238_p2)   ;;  %v11498_v16 = vld [vmem:[%s13857_s1 + $0x8] sm:$0xff] (!%p238_p2)  }
   0x6   : > { %241 = sbr.rel (%p238_p2) target bundleno = 4348 (0x10fc), region = 48  ;;  %280 = vst [vmem:[#allocation2] sm:$0xff] (!%p238_p2), %v11401_v1  ;;  %284 = vst [vmem:[#allocation2 + $0x18] sm:$0xff] (!%p238_p2), %v11401_v1  ;;  %510 = vmatprep.mubr.bf16.mxu0 (!%p238_p2), %v11402_v12  ;;  %445 = vmatprep.mubr.bf16.mxu1 (!%p238_p2), %v11402_v12  ;;  %s11404_s8 = smov (!%p238_p2), 15   ;;  %vm357_vm0 = vcmask (!%p238_p2), 138240   ;;  %vm541_vm2 = vcmask (!%p238_p2), 121856  }
   0x7   : > { %v11473_v2 = vshrl.u32 (!%p238_p2), %v296_v0, 7  ;;  %9698 = vset.pattern.permute.xlu0 (!%p238_p2), %v11402_v12  ;;  %9699 = vset.pattern.permute.xlu1 (!%p238_p2), %v11402_v12  ;;  %s11405_s13 = smov (!%p238_p2), 120   ;;  %s11406_s14 = smov (!%p238_p2), 1   ;;  %v297_v27 = vand.u32 (!%p238_p2), 127, %v296_v0  ;;  %v1170_v50 = vld [vmem:[%s13858_s2] sm:$0xff] (!%p238_p2)  ;;  %v1171_v51 = vld [vmem:[%s13858_s2 + $0x8] sm:$0xff] (!%p238_p2) }
   0x8   : > { %s11407_s15 = smov (!%p238_p2), 116   ;;  %s11408_s16 = smov (!%p238_p2), 112   ;;  %vm406_vm6 = vcmask (!%p238_p2), 1041408   ;;  %v1173_v57 = vld [vmem:[%s13858_s2 + $0x18] sm:$0xff] (!%p238_p2)  ;;  %v1172_v60 = vld [vmem:[%s13858_s2 + $0x10] sm:$0xff] (!%p238_p2)  ;;  %vm399_vm7 = vcmask (!%p238_p2), 31744  }
   0x9   : > { %v331_v3 = vsub.s32 (!%p238_p2), 4, %v11473_v2  ;;  %s11409_s17 = smov (!%p238_p2), 127   ;;  %s11410_s18 = smov (!%p238_p2), 108   ;;  %v298_v28 = vadd.s32 (!%p238_p2), 128, %v297_v27  ;;  %v303_v29 = vand.u32 (!%p238_p2), 15, %v297_v27  ;;  %vm633_vm8 = vcmask (!%p238_p2), 7168  }
   0xa   : > { %s11411_s19 = smov (!%p238_p2), 113   ;;  %s11412_s20 = smov (!%p238_p2), 104   ;;  %vm808_vm9 = vcmask (!%p238_p2), 1039360   ;;  %vm900_vm10 = vcmask (!%p238_p2), 924672   ;;  %vm396_vm11 = vcmask (!%p238_p2), 130048   ;;  %vm1002_vm12 = vcmask (!%p238_p2), 916480  }
   0xb   : > { %s11413_s21 = smov (!%p238_p2), 100   ;;  %s11414_s22 = smov (!%p238_p2), 111   ;;  %v310_v30 = vand.u32 (!%p238_p2), 15, %v298_v28  ;;  %vm11541_vm1 = vcmp.ne.s32.totalorder (!%p238_p2), %v303_v29, 0  ;;  %vm11545_vm3 = vcmp.ne.s32.totalorder (!%p238_p2), %v303_v29, 15  ;;  %vm1084_vm13 = vcmask (!%p238_p2), 908288  }
   0xc   : > { %s11415_s23 = smov (!%p238_p2), 16   ;;  %s11417_s27 = smov (!%p238_p2), 96   ;;  %vm11804_vm15 = vmpackc.low (!%p238_p2), %vm11541_vm1, %vm11541_vm1 }
   0xd   : > { %s13881_s25 = smov (!%p269_p3, %s8610_s25), 1  ;;  %v341_v10 = vld [vmem:[#allocation2] sm:$0xf]  ;;  %v798_v20 = vld [vmem:[#allocation2 + $0x18] sm:$0xf]  ;;  %vm11549_vm4 = vcmp.ne.s32.totalorder %v310_v30, 0 }
   0xe   : > { %s8799_s26 = sshll.u32 %s13881_s25, 4  ;;  %v988_v23 = vpack.c.bf16 %v798_v20, %v798_v20  ;;  %v370_v24 = vpack.c.bf16 %v341_v10, %v341_v10  ;;  %vm11554_vm5 = vcmp.ne.s32.totalorder %v310_v30, 15  ;;  %vm11793_vm14 = vmpackc.low %vm11549_vm4, %vm11549_vm4 }
   0xf   : > { %s11480_s29 = scalar_lea.vmem %s13856_s0, %s8799_s26  ;;  %s11416_s26 = smov 124  }
  0x10   : > { %v327_v4 = vld [vmem:[%s11480_s29] sm:$0x1f]  ;;  %v328_v5 = vld [vmem:[%s11480_s29 + $0x8] sm:$0x1f] }
  0x11   : > { %v332_v6 = vrot.slane %v327_v4, %v331_v3  ;;  %v336_v7 = vrot.slane %v328_v5, %v331_v3  ;;  %v11391_v41 = vld [vmem:[%s11480_s29] sm:$0x1f] }
  0x13   : > { %v337_v8 = vsub.f32 %v332_v6, %v327_v4  ;;  %v338_v9 = vsub.f32 %v336_v7, %v328_v5 }
  0x15   : > { %339 = vst [vmem:[#allocation2 + $0x8] sm:$0xf] %v337_v8  ;;  %340 = vst [vmem:[#allocation2 + $0x10] sm:$0xf] %v338_v9 }
  0x1c   : > { %v342_v11 = vld [vmem:[#allocation2 + $0x8] sm:$0xf]  ;;  %v343_v14 = vld [vmem:[#allocation2 + $0x10] sm:$0xf] }
  0x1d   : > { %v9668_v13 = vpack.i.bf16 %v342_v11, %v341_v10  ;;  %v796_v17 = vld [vmem:[#allocation2 + $0x8] sm:$0xf]  ;;  %v797_v18 = vld [vmem:[#allocation2 + $0x10] sm:$0xf]  ;;  %v11528_v25 = vpack.c.bf16 %v343_v14, %v343_v14  ;;  %v11530_v26 = vpack.c.bf16 %v342_v11, %v342_v11 }
  0x1e   : > { %v9683_v19 = vpack.i.bf16 %v797_v18, %v796_v17  ;;  %v986_v21 = vpack.c.bf16 %v796_v17, %v796_v17  ;;  %v987_v22 = vpack.c.bf16 %v797_v18, %v797_v18 }
  0x1f   : > { %9669 = vrot.lane.b32.xlu0 %v9668_v13, %s11403_s30  ;;  %9674 = vrot.lane.b32.xlu1 %v9668_v13, %s11404_s8 }
  0x23   : > { %355 = vrot.lane.b32.xlu0 %v343_v14, %s11403_s30  ;;  %539 = vrot.lane.b32.xlu1 %v343_v14, %s11404_s8 }
  0x27   : > { %550 = vrot.lane.b32.xlu0 %v11493_v15, %s11405_s13  ;;  %552 = vrot.lane.b32.xlu1 %v11498_v16, %s11405_s13 }
  0x2b   : > { %9679 = vrot.lane.b32.xlu0 %v9668_v13, %s11406_s14  ;;  %631 = vrot.lane.b32.xlu1 %v343_v14, %s11406_s14 }
  0x2f   : > { %642 = vrot.lane.b32.xlu0 %v11493_v15, %s11407_s15  ;;  %644 = vrot.lane.b32.xlu1 %v11498_v16, %s11407_s15 }
  0x33   : > { %719 = vrot.lane.b32.xlu0 %v11493_v15, %s11408_s16  ;;  %721 = vrot.lane.b32.xlu1 %v11498_v16, %s11408_s16 }
  0x37   : > { %9684 = vrot.lane.b32.xlu0 %v9683_v19, %s11409_s17  ;;  %806 = vrot.lane.b32.xlu1 %v798_v20, %s11409_s17 }
  0x3b   : > { %817 = vrot.lane.b32.xlu0 %v11493_v15, %s11410_s18  ;;  %819 = vrot.lane.b32.xlu1 %v11498_v16, %s11410_s18 }
  0x3f   : > { %9689 = vrot.lane.b32.xlu0 %v9683_v19, %s11411_s19  ;;  %898 = vrot.lane.b32.xlu1 %v798_v20, %s11411_s19 }
  0x43   : > { %909 = vrot.lane.b32.xlu0 %v11493_v15, %s11412_s20  ;;  %911 = vrot.lane.b32.xlu1 %v11498_v16, %s11412_s20 }
  0x47   : > { %996 = vrot.lane.b32.xlu0 %v986_v21, %s11408_s16  ;;  %998 = vrot.lane.b32.xlu1 %v987_v22, %s11408_s16 }
  0x4b   : > { %1000 = vrot.lane.b32.xlu0 %v988_v23, %s11408_s16  ;;  %989 = vrot.lane.b32.xlu1 %v11493_v15, %s11413_s21 }
  0x4f   : > { %991 = vrot.lane.b32.xlu0 %v11498_v16, %s11413_s21  ;;  %9694 = vrot.lane.b32.xlu1 %v9683_v19, %s11414_s22 }
  0x53   : > { %1082 = vrot.lane.b32.xlu0 %v798_v20, %s11414_s22  ;;  %390 = vrot.lane.b32.xlu1 %v370_v24, %s11415_s23 }
  0x57   : > { %394 = vrot.lane.b32.xlu1 %v11528_v25, %s11415_s23  ;;  %392 = vrot.lane.b32.xlu0 %v11530_v26, %s11415_s23 }
  0x5b   : > { %383 = vrot.lane.b32.xlu0 %v11493_v15, %s11416_s26  ;;  %1093 = vrot.lane.b32.xlu1 %v11493_v15, %s11417_s27 }
  0x5f   : > { %385 = vrot.lane.b32.xlu0 %v11498_v16, %s11416_s26  ;;  %1095 = vrot.lane.b32.xlu1 %v11498_v16, %s11417_s27 }
  0x63   : > { %1176 = vperm.xlu0 %9698, %v1170_v50   ;;  %1181 = vperm.xlu1 %9699, %v1171_v51  }
  0x67   : > { %1191 = vperm.xlu0 %9698, %v1173_v57   ;;  %1186 = vperm.xlu1 %9699, %v1172_v60  }
  0x6b   : > { %9701 = vrot.lane.b32.xlu1 %v11401_v1, %s11403_s30  ;;  %9706 = vrot.lane.b32.xlu0 %v11401_v1, %s11403_s30 }
  0x91   : > { %v9670_v31 = vpop.permute.xlu0 %9669  ;;  %v9675_v32 = vpop.permute.xlu1 %9674 }
  0x92   : > { %v9672_v35 = vunpack.i.h.bf16 %v9670_v31  ;;  %v9671_v36 = vunpack.i.l.bf16 %v9670_v31  ;;  %v9677_v37 = vunpack.i.h.bf16 %v9675_v32  ;;  %v9676_v38 = vunpack.i.l.bf16 %v9675_v32 }
  0x94   : > { %v358_v40 = vsel %vm357_vm0, %v9671_v36, %v9672_v35  ;;  %v542_v42 = vsel %vm541_vm2, %v9676_v38, %v9677_v37 }
  0x95   : > { %v356_v43 = vpop.permute.xlu0 %355  ;;  %v362_v44 = vsel %vm11541_vm1, %v358_v40, 0.0  ;;  %v540_v45 = vpop.permute.xlu1 %539  ;;  %v546_v46 = vsel %vm11545_vm3, %v542_v42, 0.0 }
  0x96   : > { %v359_v47 = vsel %vm357_vm0, %v9672_v35, %v356_v43  ;;  %v364_v48 = vpack.c.bf16 %v362_v44, %v362_v44  ;;  %v543_v49 = vsel %vm541_vm2, %v9677_v37, %v540_v45  ;;  %v548_v56 = vpack.c.bf16 %v546_v46, %v546_v46 }
  0x97   : > { %v363_v52 = vsel %vm11549_vm4, %v359_v47, 0.0  ;;  %v547_v53 = vsel %vm11554_vm5, %v543_v49, 0.0 }
  0x98   : > { %v365_v54 = vpack.c.bf16 %v363_v52, %v363_v52  ;;  %v549_v55 = vpack.c.bf16 %v547_v53, %v547_v53  ;;  %v473_v61 = vsel %vm406_vm6, %v364_v48, 0  ;;  %v561_v62 = vsel %vm406_vm6, %v548_v56, 0 }
  0x99   : > { %v551_v58 = vpop.permute.xlu0 %550  ;;  %v553_v59 = vpop.permute.xlu1 %552 }
  0x9a   : > { %8624 = vmatprep.subr.msk.bf16.mxu0 %vm406_vm6, %v365_v54 }
  0x9b   : > { %479 = vmatpush1.bf16.msra.mxu0 %v473_v61 }
  0x9c   : > { %8627 = vmatprep.subr.msk.bf16.mxu0 %vm406_vm6, %v549_v55 }
  0x9d   : > { %v9680_v63 = vpop.permute.xlu0 %9679  ;;  %v632_v0 = vpop.permute.xlu1 %631 }
  0x9e   : > { %8625 = vmatmul.mubr.msk.bf16.vlgmr.msra.gmra.mrb[0].mxu0 %vm399_vm7, %v11493_v15  ;;  %v9682_v3 = vunpack.i.h.bf16 %v9680_v63  ;;  %v9681_v4 = vunpack.i.l.bf16 %v9680_v63 }
  0x9f   : > { %567 = vmatpush1.bf16.msra.mxu0 %v561_v62  ;;  %520 = vmatprep.mubr.bf16.mxu0 %v11402_v12 }
  0xa0   : > { %v635_v5 = vsel %vm633_vm8, %v9682_v3, %v632_v0  ;;  %v634_v10 = vsel %vm633_vm8, %v9681_v4, %v9682_v3 }
  0xa1   : > { %v639_v6 = vsel %vm11549_vm4, %v635_v5, 0.0  ;;  %v643_v7 = vpop.permute.xlu0 %642  ;;  %v645_v8 = vpop.permute.xlu1 %644  ;;  %v638_v11 = vsel %vm11541_vm1, %v634_v10, 0.0 }
  0xa2   : > { %v641_v9 = vpack.c.bf16 %v639_v6, %v639_v6  ;;  %v640_v15 = vpack.c.bf16 %v638_v11, %v638_v11 }
  0xa4   : > { %8630 = vmatprep.subr.msk.bf16.mxu0 %vm406_vm6, %v641_v9  ;;  %v653_v19 = vsel %vm406_vm6, %v640_v15, 0 }
  0xa5   : > { %v720_v13 = vpop.permute.xlu0 %719  ;;  %v11595_v14 = vpop.permute.xlu1 %721 }
  0xa6   : > { %8626 = vmatmul.mubr.msk.bf16.gmra.mrb[4].mxu0 %vm399_vm7, %v11498_v16 }
  0xa7   : > { %598 = vmatprep.mubr.bf16.mxu0 %v11402_v12 }
  0xa9   : > { %v9685_v17 = vpop.permute.xlu0 %9684  ;;  %v807_v18 = vpop.permute.xlu1 %806 }
  0xaa   : > { %v9687_v23 = vunpack.i.h.bf16 %v9685_v17  ;;  %v9686_v37 = vunpack.i.l.bf16 %v9685_v17  ;;  %v11418_v17 = vmov 0.0|0.0  }
  0xab   : > { %1334 = vrot.lane.b32.xlu1 %v11418_v17, %s11415_s23  ;;  %1340 = vrot.lane.b32.xlu0 %v11418_v17, %s11415_s23 }
  0xac   : > { %v810_v28 = vsel %vm808_vm9, %v9687_v23, %v807_v18  ;;  %v809_v42 = vsel %vm808_vm9, %v9686_v37, %v9687_v23 }
  0xad   : > { %v11601_v20 = vpop.permute.xlu0 %817  ;;  %v11603_v21 = vpop.permute.xlu1 %819  ;;  %v814_v29 = vsel %vm11554_vm5, %v810_v28, 0.0 }
  0xae   : > { %8628 = vmatmul.mubr.msk.bf16.vlgmr.msra.gmra.mrb[0].mxu0 %vm399_vm7, %v551_v58  ;;  %v816_v32 = vpack.c.bf16 %v814_v29, %v814_v29 }
  0xaf   : > { %659 = vmatpush1.bf16.msra.mxu0 %v653_v19  ;;  %608 = vmatprep.mubr.bf16.mxu0 %v11402_v12 }
  0xb0   : > { %8633 = vmatprep.subr.msk.bf16.mxu0 %vm406_vm6, %v11528_v25  ;;  %v730_v25 = vsel %vm406_vm6, %v11530_v26, 0  ;;  %v813_v26 = vsel %vm11545_vm3, %v809_v42, 0.0 }
  0xb1   : > { %v9690_v16 = vpop.permute.xlu0 %9689  ;;  %v899_v22 = vpop.permute.xlu1 %898  ;;  %v815_v47 = vpack.c.bf16 %v813_v26, %v813_v26 }
  0xb2   : > { %v9692_v43 = vunpack.i.h.bf16 %v9690_v16  ;;  %v9691_v57 = vunpack.i.l.bf16 %v9690_v16 }
  0xb3   : > { %v828_v54 = vsel %vm406_vm6, %v815_v47, 0 }
  0xb4   : > { %v902_v46 = vsel %vm900_vm10, %v9692_v43, %v899_v22  ;;  %v901_v58 = vsel %vm900_vm10, %v9691_v57, %v9692_v43 }
  0xb5   : > { %v11609_v24 = vpop.permute.xlu0 %909  ;;  %v11611_v27 = vpop.permute.xlu1 %911  ;;  %v906_v48 = vsel %vm11549_vm4, %v902_v46, 0.0  ;;  %vm11840_vm4 = vmpackc.low %vm11545_vm3, %vm11545_vm3 }
  0xb6   : > { %8629 = vmatmul.mubr.msk.bf16.gmra.mrb[4].mxu0 %vm399_vm7, %v553_v59  ;;  %v908_v55 = vpack.c.bf16 %v906_v48, %v906_v48  ;;  %v905_v59 = vsel %vm11541_vm1, %v901_v58, 0.0  ;;  %vm11828_vm1 = vmpackc.low %vm11554_vm5, %vm11554_vm5 }
  0xb7   : > { %690 = vmatprep.mubr.bf16.mxu0 %v11402_v12  ;;  %v907_v61 = vpack.c.bf16 %v905_v59, %v905_v59 }
  0xb9   : > { %v997_v30 = vpop.permute.xlu0 %996  ;;  %v999_v31 = vpop.permute.xlu1 %998  ;;  %v920_v62 = vsel %vm406_vm6, %v907_v61, 0 }
  0xba   : > { %v1003_v4 = vsel %vm1002_vm12, %v997_v30, %v999_v31 }
  0xbb   : > { %v1012_v6 = vsel %vm406_vm6, %v1003_v4, 0 }
  0xbd   : > { %v1001_v35 = vpop.permute.xlu0 %1000  ;;  %v11620_v36 = vpop.permute.xlu1 %989 }
  0xbe   : > { %8631 = vmatmul.mubr.msk.bf16.vlgmr.msra.gmra.mrb[0].mxu0 %vm399_vm7, %v643_v7  ;;  %v1004_v63 = vsel %vm1002_vm12, %v999_v31, %v1001_v35 }
  0xbf   : > { %736 = vmatpush1.bf16.msra.mxu0 %v730_v25  ;;  %700 = vmatprep.mubr.bf16.mxu0 %v11402_v12 }
  0xc0   : > { %8636 = vmatprep.subr.msk.bf16.mxu0 %vm406_vm6, %v816_v32 }
  0xc1   : > { %v11625_v38 = vpop.permute.xlu0 %991  ;;  %v9695_v40 = vpop.permute.xlu1 %9694 }
  0xc2   : > { %v9697_v0 = vunpack.i.h.bf16 %v9695_v40 }
  0xc5   : > { %v1083_v44 = vpop.permute.xlu0 %1082  ;;  %v391_v45 = vpop.permute.xlu1 %390 }
  0xc6   : > { %8632 = vmatmul.mubr.msk.bf16.gmra.mrb[4].mxu0 %vm399_vm7, %v645_v8  ;;  %v1086_v3 = vsel %vm1084_vm13, %v9697_v0, %v1083_v44  ;;  %v9696_v8 = vunpack.i.l.bf16 %v9695_v40 }
  0xc7   : > { %767 = vmatprep.mubr.bf16.mxu0 %v11402_v12  ;;  %v1090_v5 = vsel %vm11554_vm5, %v1086_v3, 0.0 }
  0xc8   : > { %v1092_v7 = vpack.c.bf16 %v1090_v5, %v1090_v5  ;;  %v1085_v9 = vsel %vm1084_vm13, %v9696_v8, %v9697_v0 }
  0xc9   : > { %v395_v49 = vpop.permute.xlu1 %394  ;;  %v393_v50 = vpop.permute.xlu0 %392  ;;  %v1089_v10 = vsel %vm11545_vm3, %v1085_v9, 0.0  ;;  %vm1908_vm3 = vcmask 261120  }
  0xca   : > { %v398_v51 = vsel %vm396_vm11, %v393_v50, %v395_v49  ;;  %v397_v52 = vsel %vm396_vm11, %v391_v45, %v393_v50  ;;  %v1091_v11 = vpack.c.bf16 %v1089_v10, %v1089_v10 }
  0xcb   : > { %8621 = vmatprep.subr.msk.bf16.mxu1 %vm406_vm6, %v398_v51  ;;  %v408_v53 = vsel %vm406_vm6, %v397_v52, 0 }
  0xcc   : > { %414 = vmatpush1.bf16.msra.mxu1 %v408_v53 }
  0xcd   : > { %v384_v56 = vpop.permute.xlu0 %383 }
  0xce   : > { %8634 = vmatmul.mubr.msk.bf16.vlgmr.msra.gmra.mrb[0].mxu0 %vm399_vm7, %v720_v13  ;;  %v1104_v13 = vsel %vm406_vm6, %v1091_v11, 0 }
  0xcf   : > { %834 = vmatpush1.bf16.msra.mxu0 %v828_v54  ;;  %777 = vmatprep.mubr.bf16.mxu0 %v11402_v12 }
  0xd0   : > { %8639 = vmatprep.subr.msk.bf16.mxu0 %vm406_vm6, %v908_v55  ;;  %8622 = vmatmul.mubr.msk.bf16.vlgmr.msra.gmra.mrb[0].mxu1 %vm399_vm7, %v384_v56 }
  0xd1   : > { %455 = vmatprep.mubr.bf16.mxu1 %v11402_v12  ;;  %v386_v60 = vpop.permute.xlu0 %385 }
  0xd6   : > { %8635 = vmatmul.mubr.msk.bf16.gmra.mrb[4].mxu0 %vm399_vm7, %v11595_v14  ;;  %v1094_v14 = vpop.permute.xlu1 %1093 }
  0xd7   : > { %865 = vmatprep.mubr.bf16.mxu0 %v11402_v12 }
  0xd8   : > { %8623 = vmatmul.mubr.msk.bf16.gmra.mrb[4].mxu1 %vm399_vm7, %v386_v60 }
  0xda   : > { %v1096_v15 = vpop.permute.xlu1 %1095 }
  0xde   : > { %8637 = vmatmul.mubr.msk.bf16.vlgmr.msra.gmra.mrb[0].mxu0 %vm399_vm7, %v11601_v20 }
  0xdf   : > { %926 = vmatpush1.bf16.msra.mxu0 %v920_v62  ;;  %875 = vmatprep.mubr.bf16.mxu0 %v11402_v12 }
  0xe0   : > { %8642 = vmatprep.subr.msk.bf16.mxu0 %vm406_vm6, %v1004_v63 }
  0xe2   : > { %v1182_v37 = vpop.permute.xlu1 %1181 }
  0xe6   : > { %8638 = vmatmul.mubr.msk.bf16.gmra.mrb[4].mxu0 %vm399_vm7, %v11603_v21  ;;  %v1187_v53 = vpop.permute.xlu1 %1186 }
  0xe7   : > { %957 = vmatprep.mubr.bf16.mxu0 %v11402_v12 }
  0xee   : > { %8640 = vmatmul.mubr.msk.bf16.vlgmr.msra.gmra.mrb[0].mxu0 %vm399_vm7, %v11609_v24 }
  0xef   : > { %1018 = vmatpush1.bf16.msra.mxu0 %v1012_v6  ;;  %967 = vmatprep.mubr.bf16.mxu0 %v11402_v12 }
  0xf0   : > { %8645 = vmatprep.subr.msk.bf16.mxu0 %vm406_vm6, %v1092_v7 }
  0xf6   : > { %8641 = vmatmul.mubr.msk.bf16.gmra.mrb[4].mxu0 %vm399_vm7, %v11611_v27  ;;  %v1177_v27 = vpop.permute.xlu0 %1176 }
  0xf7   : > { %1049 = vmatprep.mubr.bf16.mxu0 %v11402_v12 }
  0xfa   : > { %v1192_v61 = vpop.permute.xlu0 %1191 }
  0xfe   : > { %8643 = vmatmul.mubr.msk.bf16.vlgmr.msra.gmra.mrb[0].mxu0 %vm399_vm7, %v11620_v36 }
  0xff   : > { %1110 = vmatpush1.bf16.msra.mxu0 %v1104_v13  ;;  %1059 = vmatprep.mubr.bf16.mxu0 %v11402_v12 }
 0x106   : > { %8644 = vmatmul.mubr.msk.bf16.gmra.mrb[4].mxu0 %vm399_vm7, %v11625_v38 }
 0x107   : > { %1141 = vmatprep.mubr.bf16.mxu0 %v11402_v12 }
 0x10e   : > { %8646 = vmatmul.mubr.msk.bf16.vlgmr.msra.gmra.mrb[0].mxu0 %vm399_vm7, %v1094_v14 }
 0x10f   : > { %1151 = vmatprep.mubr.bf16.mxu0 %v11402_v12 }
 0x116   : > { %8647 = vmatmul.mubr.msk.bf16.gmra.mrb[4].mxu0 %vm399_vm7, %v1096_v15 }
 0x1a3   : > { %v447_v18 = vpop.f32.mrb[0].mxu1 }
 0x1a4   : > { %v449_v19 = vpop.f32.mrb[1].mxu1 }
 0x1a5   : > { %v451_v20 = vpop.f32.mrb[2].mxu1 }
 0x1a6   : > { %v453_v21 = vpop.f32.mrb[3].mxu1 }
 0x1ab   : > { %v457_v16 = vpop.f32.mrb[4].mxu1 }
 0x1ac   : > { %v459_v22 = vpop.f32.mrb[5].mxu1 }
 0x1ad   : > { %v461_v23 = vpop.f32.mrb[6].mxu1 }
 0x1ae   : > { %v463_v24 = vpop.f32.mrb[7].mxu1 }
 0x1e1   : > { %v1143_v28 = vpop.f32.mrb[0].mxu0 }
 0x1e2   : > { %v9449_v29 = vadd.f32 %v1143_v28, %v447_v18  ;;  %v1145_v30 = vpop.f32.mrb[1].mxu0 }
 0x1e3   : > { %v9450_v31 = vadd.f32 %v1145_v30, %v449_v19  ;;  %v1147_v25 = vpop.f32.mrb[2].mxu0 }
 0x1e4   : > { %v1194_v32 = vadd.f32 %v9449_v29, %v1177_v27  ;;  %v9451_v35 = vadd.f32 %v1147_v25, %v451_v20  ;;  %v1149_v36 = vpop.f32.mrb[3].mxu0  ;;  %v11324_v20 = vld [vmem:[%s13859_s3 + $0x4] ss:$12 sps:$4 sm:$0xff]  }
 0x1e5   : > { %v1195_v38 = vadd.f32 %v9450_v31, %v1177_v27  ;;  %v9452_v40 = vadd.f32 %v1149_v36, %v453_v21  ;;  %1947 = vmatprep.mubr.bf16.mxu1 %v11324_v20  ;;  %v1226_v21 = vld [vmem:[%s13860_s4] sm:$0xff]  ;;  %v9707_v27 = vpop.permute.xlu0 %9706 }
 0x1e6   : > { %v1202_v42 = vmax.f32 %v1194_v32, 0.0  ;;  %v1196_v43 = vadd.f32 %v9451_v35, %v1182_v37 }
 0x1e7   : > { %v1203_v26 = vmax.f32 %v1195_v38, 0.0  ;;  %v1197_v44 = vadd.f32 %v9452_v40, %v1182_v37 }
 0x1e8   : > { %1210 = vst [vmem:[#allocation2 + $0x8] sm:$0xff] %v1202_v42  ;;  %v1204_v45 = vmax.f32 %v1196_v43, 0.0 }
 0x1e9   : > { %1211 = vst [vmem:[#allocation2 + $0x10] sm:$0xff] %v1203_v26  ;;  %v1205_v46 = vmax.f32 %v1197_v44, 0.0  ;;  %v1153_v47 = vpop.f32.mrb[4].mxu0  ;;  %v9710_v48 = vpack.i.bf16 %v1203_v26, %v1202_v42  ;;  %v9790_v14 = vpack.i.bf16 %v11401_v1, %v1203_v26  ;;  %v11788_v29 = vpop.permute.xlu0 %1340 }
 0x1ea   : > { %1212 = vst [vmem:[#allocation2 + $0x28] sm:$0xff] %v1204_v45  ;;  %v9453_v49 = vadd.f32 %v1153_v47, %v457_v16  ;;  %v1155_v50 = vpop.f32.mrb[5].mxu0  ;;  %v11694_v51 = vpack.c.bf16 %v1204_v45, %v1202_v42  ;;  %v11696_v52 = vpack.i.bf16 %v1204_v45, %v1202_v42  ;;  %v1227_v16 = vld [vmem:[%s13860_s4 + $0x8] sm:$0xff] }
 0x1eb   : > { %1213 = vst [vmem:[#allocation2 + $0x30] sm:$0xff] %v1205_v46  ;;  %v9454_v54 = vadd.f32 %v1155_v50, %v459_v22  ;;  %v1157_v55 = vpop.f32.mrb[6].mxu0  ;;  %9711 = vrot.lane.b32.xlu1 %v9710_v48, %s11403_s30  ;;  %v9720_v56 = vpack.i.bf16 %v1205_v46, %v1204_v45  ;;  %v11699_v57 = vpack.c.bf16 %v1205_v46, %v1203_v26  ;;  %v1228_v22 = vld [vmem:[%s13860_s4 + $0x10] sm:$0xff] }
 0x1ec   : > { %v1198_v58 = vadd.f32 %v9453_v49, %v1187_v53  ;;  %v9455_v59 = vadd.f32 %v1157_v55, %v461_v23  ;;  %v1159_v60 = vpop.f32.mrb[7].mxu0  ;;  %v9795_v15 = vpack.i.bf16 %v11401_v1, %v1205_v46  ;;  %v1229_v23 = vld [vmem:[%s13860_s4 + $0x18] sm:$0xff]  ;;  %v9708_v55 = vunpack.i.l.bf16 %v9707_v27 }
 0x1ed   : > { %v1199_v62 = vadd.f32 %v9454_v54, %v1187_v53  ;;  %v9456_v63 = vadd.f32 %v1159_v60, %v463_v24  ;;  %9721 = vrot.lane.b32.xlu0 %v9720_v56, %s11403_s30  ;;  %v9702_v24 = vpop.permute.xlu1 %9701  ;;  %v9709_v54 = vunpack.i.h.bf16 %v9707_v27 }
 0x1ee   : > { %v1206_v0 = vmax.f32 %v1198_v58, 0.0  ;;  %v1200_v3 = vadd.f32 %v9455_v59, %v1192_v61  ;;  %v9704_v35 = vunpack.i.h.bf16 %v9702_v24  ;;  %v9703_v36 = vunpack.i.l.bf16 %v9702_v24 }
 0x1ef   : > { %v1207_v4 = vmax.f32 %v1199_v62, 0.0  ;;  %v1201_v5 = vadd.f32 %v9456_v63, %v1192_v61  ;;  %9716 = vrot.lane.b32.xlu1 %v9710_v48, %s11404_s8 }
 0x1f0   : > { %1214 = vst [vmem:[#allocation2 + $0x48] sm:$0xff] %v1206_v0  ;;  %v1208_v6 = vmax.f32 %v1200_v3, 0.0 }
 0x1f1   : > { %1215 = vst [vmem:[#allocation2 + $0x50] sm:$0xff] %v1207_v4  ;;  %v1209_v7 = vmax.f32 %v1201_v5, 0.0  ;;  %9726 = vrot.lane.b32.xlu0 %v9720_v56, %s11404_s8  ;;  %v9730_v8 = vpack.i.bf16 %v1207_v4, %v1206_v0  ;;  %v9805_v18 = vpack.i.bf16 %v11401_v1, %v1207_v4  ;;  %v1335_v28 = vpop.permute.xlu1 %1334 }
 0x1f2   : > { %1216 = vst [vmem:[#allocation2 + $0x68] sm:$0xff] %v1208_v6  ;;  %v11704_v9 = vpack.c.bf16 %v1208_v6, %v1206_v0  ;;  %v9815_v10 = vpack.i.bf16 %v1208_v6, %v1206_v0 }
 0x1f3   : > { %1217 = vst [vmem:[#allocation2 + $0x70] sm:$0xff] %v1209_v7  ;;  %1336 = vrot.lane.b32.xlu1 %v11694_v51, %s11415_s23  ;;  %v9735_v11 = vpack.i.bf16 %v1209_v7, %v1208_v6  ;;  %v11708_v13 = vpack.c.bf16 %v1209_v7, %v1207_v4  ;;  %v9810_v19 = vpack.i.bf16 %v11401_v1, %v1209_v7 }
 0x1f5   : > { %1338 = vrot.lane.b32.xlu0 %v11699_v57, %s11415_s23 }
 0x1f7   : > { %9736 = vrot.lane.b32.xlu1 %v9735_v11, %s11403_s30 }
 0x1f9   : > { %9731 = vrot.lane.b32.xlu0 %v9730_v8, %s11403_s30 }
 0x1fb   : > { %9741 = vrot.lane.b32.xlu1 %v11401_v1, %s11404_s8 }
 0x1fd   : > { %9746 = vrot.lane.b32.xlu0 %v9730_v8, %s11404_s8 }
 0x1ff   : > { %9751 = vrot.lane.b32.xlu1 %v9735_v11, %s11404_s8 }
 0x201   : > { %1342 = vrot.lane.b32.xlu0 %v11704_v9, %s11415_s23 }
 0x203   : > { %1344 = vrot.lane.b32.xlu1 %v11708_v13, %s11415_s23 }
 0x205   : > { %9756 = vrot.lane.b32.xlu0 %v11401_v1, %s11404_s8 }
 0x207   : > { %9761 = vrot.lane.b32.xlu1 %v9710_v48, %s11406_s14 }
 0x209   : > { %9766 = vrot.lane.b32.xlu0 %v9720_v56, %s11406_s14 }
 0x20b   : > { %9771 = vrot.lane.b32.xlu1 %v11401_v1, %s11406_s14 }
 0x20d   : > { %9776 = vrot.lane.b32.xlu0 %v9730_v8, %s11406_s14 }
 0x20f   : > { %9781 = vrot.lane.b32.xlu1 %v9735_v11, %s11406_s14 }
 0x211   : > { %9786 = vrot.lane.b32.xlu0 %v11401_v1, %s11406_s14 }
 0x213   : > { %9791 = vrot.lane.b32.xlu1 %v9790_v14, %s11409_s17 }
 0x215   : > { %9796 = vrot.lane.b32.xlu0 %v9795_v15, %s11409_s17 }
 0x217   : > { %9801 = vrot.lane.b32.xlu1 %v11696_v52, %s11409_s17 }
 0x219   : > { %9806 = vrot.lane.b32.xlu0 %v9805_v18, %s11409_s17 }
 0x21b   : > { %9811 = vrot.lane.b32.xlu1 %v9810_v19, %s11409_s17 }
 0x21d   : > { %9816 = vrot.lane.b32.xlu0 %v9815_v10, %s11409_s17 }
 0x21f   : > { %9821 = vrot.lane.b32.xlu1 %v9790_v14, %s11411_s19 }
 0x221   : > { %9826 = vrot.lane.b32.xlu0 %v9795_v15, %s11411_s19 }
 0x223   : > { %9831 = vrot.lane.b32.xlu1 %v11696_v52, %s11411_s19 }
 0x225   : > { %9836 = vrot.lane.b32.xlu0 %v9805_v18, %s11411_s19 }
 0x227   : > { %9841 = vrot.lane.b32.xlu1 %v9810_v19, %s11411_s19 }
 0x229   : > { %9846 = vrot.lane.b32.xlu0 %v9815_v10, %s11411_s19 }
 0x22b   : > { %1720 = vrot.lane.b32.xlu1 %v11699_v57, %s11408_s16 }
 0x22d   : > { %1722 = vrot.lane.b32.xlu0 %v11418_v17, %s11408_s16 }
 0x22f   : > { %1718 = vrot.lane.b32.xlu1 %v11694_v51, %s11408_s16 }
 0x231   : > { %1726 = vrot.lane.b32.xlu0 %v11708_v13, %s11408_s16 }
 0x233   : > { %1728 = vrot.lane.b32.xlu1 %v11418_v17, %s11408_s16 }
 0x235   : > { %1724 = vrot.lane.b32.xlu0 %v11704_v9, %s11408_s16 }
 0x237   : > { %9851 = vrot.lane.b32.xlu1 %v9790_v14, %s11414_s22 }
 0x239   : > { %9856 = vrot.lane.b32.xlu0 %v9795_v15, %s11414_s22 }
 0x23b   : > { %9861 = vrot.lane.b32.xlu1 %v11696_v52, %s11414_s22 }
 0x23d   : > { %9866 = vrot.lane.b32.xlu0 %v9805_v18, %s11414_s22 }
 0x23f   : > { %9871 = vrot.lane.b32.xlu1 %v9810_v19, %s11414_s22 }
 0x241   : > { %9876 = vrot.lane.b32.xlu0 %v9815_v10, %s11414_s22 }
 0x243   : > { %1860 = vperm.xlu1 %9699, %v1226_v21  }
 0x245   : > { %1865 = vperm.xlu0 %9698, %v1227_v16  }
 0x247   : > { %1870 = vperm.xlu1 %9699, %v1228_v22  }
 0x249   : > { %1875 = vperm.xlu0 %9698, %v1229_v23  }
 0x24b   : > { %9881 = vrot.lane.b32.xlu1 %v11401_v1, %s11403_s30 }
 0x24d   : > { %9886 = vrot.lane.b32.xlu0 %v11401_v1, %s11403_s30 }
 0x24f   : > { %2155 = vrot.lane.b32.xlu1 %v11418_v17, %s11415_s23 }
 0x251   : > { %2161 = vrot.lane.b32.xlu0 %v11418_v17, %s11415_s23 }
 0x25d   : > { %v9712_v30 = vpop.permute.xlu1 %9711 }
 0x25e   : > { %v9714_v31 = vunpack.i.h.bf16 %v9712_v30  ;;  %v9713_v25 = vunpack.i.l.bf16 %v9712_v30 }
 0x25f   : > { %v9722_v32 = vpop.permute.xlu0 %9721 }
 0x260   : > { %v9724_v37 = vunpack.i.h.bf16 %v9722_v32  ;;  %v9723_v38 = vunpack.i.l.bf16 %v9722_v32  ;;  %v1278_v1 = vsel %vm357_vm0, %v9703_v36, %v9713_v25  ;;  %v1279_v43 = vsel %vm357_vm0, %v9713_v25, %v9714_v31 }
 0x261   : > { %v9717_v40 = vpop.permute.xlu1 %9716 }
 0x262   : > { %v1280_v26 = vsel %vm357_vm0, %v9704_v35, %v9723_v38  ;;  %v1281_v44 = vsel %vm357_vm0, %v9723_v38, %v9724_v37  ;;  %v9719_v10 = vunpack.i.h.bf16 %v9717_v40  ;;  %v9718_v11 = vunpack.i.l.bf16 %v9717_v40 }
 0x263   : > { %v8805_v39 = vpack.c.bf16 %v1280_v26, %v1278_v1  ;;  %v9727_v46 = vpop.permute.xlu0 %9726  ;;  %v8802_v47 = vpack.c.bf16 %v1281_v44, %v1279_v43 }
 0x264   : > { %v9729_v6 = vunpack.i.h.bf16 %v9727_v46  ;;  %v9728_v7 = vunpack.i.l.bf16 %v9727_v46  ;;  %v1407_v24 = vsel %vm541_vm2, %v9718_v11, %v9719_v10 }
 0x265   : > { %v1337_v48 = vpop.permute.xlu1 %1336  ;;  %8803 = vmatprep.subr.msk.bf16.mxu1 %vm11793_vm14, %v8802_v47 }
 0x266   : > { %8806 = vmatpush1.bf16.msk.msra.mxu1 %vm11804_vm15, %v8805_v39  ;;  %v1346_v20 = vsel %vm396_vm11, %v1335_v28, %v1337_v48  ;;  %v1409_v21 = vsel %vm541_vm2, %v9728_v7, %v9729_v6 }
 0x267   : > { %v1339_v49 = vpop.permute.xlu0 %1338  ;;  %v8814_v40 = vpack.c.bf16 %v1409_v21, %v1407_v24 }
 0x268   : > { %v1347_v8 = vsel %vm396_vm11, %v1337_v48, %v1339_v49 }
 0x269   : > { %v9737_v50 = vpop.permute.xlu1 %9736 }
 0x26a   : > { %v9739_v52 = vunpack.i.h.bf16 %v9737_v50  ;;  %v9738_v53 = vunpack.i.l.bf16 %v9737_v50 }
 0x26b   : > { %v9732_v33 = vpop.permute.xlu0 %9731 }
 0x26c   : > { %v9734_v56 = vunpack.i.h.bf16 %v9732_v33  ;;  %v9733_v58 = vunpack.i.l.bf16 %v9732_v33  ;;  %v1284_v60 = vsel %vm357_vm0, %v9709_v54, %v9738_v53  ;;  %v1285_v61 = vsel %vm357_vm0, %v9738_v53, %v9739_v52 }
 0x26d   : > { %v9742_v59 = vpop.permute.xlu1 %9741 }
 0x26e   : > { %v1282_v62 = vsel %vm357_vm0, %v9708_v55, %v9733_v58  ;;  %v1283_v63 = vsel %vm357_vm0, %v9733_v58, %v9734_v56  ;;  %v9744_v15 = vunpack.i.h.bf16 %v9742_v59  ;;  %v9743_v18 = vunpack.i.l.bf16 %v9742_v59 }
 0x26f   : > { %v8811_v0 = vpack.c.bf16 %v1284_v60, %v1282_v62  ;;  %v9747_v3 = vpop.permute.xlu0 %9746  ;;  %v8808_v4 = vpack.c.bf16 %v1285_v61, %v1283_v63 }
 0x270   : > { %v9749_v27 = vunpack.i.h.bf16 %v9747_v3  ;;  %v9748_v30 = vunpack.i.l.bf16 %v9747_v3  ;;  %v1408_v28 = vsel %vm541_vm2, %v9744_v15, %v9728_v7  ;;  %v1406_v32 = vsel %vm541_vm2, %v9743_v18, %v9718_v11 }
 0x271   : > { %v9752_v5 = vpop.permute.xlu1 %9751  ;;  %8809 = vmatprep.subr.msk.bf16.mxu1 %vm11793_vm14, %v8808_v4  ;;  %v8817_v43 = vpack.c.bf16 %v1408_v28, %v1406_v32 }
 0x272   : > { %8812 = vmatpush1.bf16.msk.msra.mxu1 %vm11804_vm15, %v8811_v0  ;;  %v9754_v16 = vunpack.i.h.bf16 %v9752_v5  ;;  %v9753_v22 = vunpack.i.l.bf16 %v9752_v5  ;;  %v1411_v26 = vsel %vm541_vm2, %v9748_v30, %v9749_v27 }
 0x273   : > { %v1343_v14 = vpop.permute.xlu0 %1342  ;;  %1919 = vmatprep.subr.bf16.mxu1 %v1347_v8 }
 0x274   : > { %v1348_v38 = vsel %vm396_vm11, %v11788_v29, %v1343_v14  ;;  %v1413_v1 = vsel %vm541_vm2, %v9753_v22, %v9754_v16 }
 0x275   : > { %v1345_v19 = vpop.permute.xlu1 %1344  ;;  %v8820_v50 = vpack.c.bf16 %v1413_v1, %v1411_v26 }
 0x276   : > { %1920 = vmatpush1.bf16.msra.mxu1 %v1346_v20  ;;  %v1349_v23 = vsel %vm396_vm11, %v1343_v14, %v1345_v19 }
 0x277   : > { %v9757_v31 = vpop.permute.xlu0 %9756  ;;  %1921 = vmatprep.subr.bf16.mxu1 %v1349_v23 }
 0x278   : > { %v9759_v35 = vunpack.i.h.bf16 %v9757_v31  ;;  %v9758_v36 = vunpack.i.l.bf16 %v9757_v31 }
 0x279   : > { %v9762_v37 = vpop.permute.xlu1 %9761 }
 0x27a   : > { %1922 = vmatpush1.bf16.msra.mxu1 %v1348_v38  ;;  %v9764_v44 = vunpack.i.h.bf16 %v9762_v37  ;;  %v9763_v39 = vunpack.i.l.bf16 %v9762_v37  ;;  %v1410_v29 = vsel %vm541_vm2, %v9758_v36, %v9748_v30  ;;  %v1412_v47 = vsel %vm541_vm2, %v9759_v35, %v9753_v22 }
 0x27b   : > { %v9767_v46 = vpop.permute.xlu0 %9766  ;;  %8815 = vmatprep.subr.msk.bf16.mxu1 %vm11828_vm1, %v8814_v40  ;;  %v8823_v54 = vpack.c.bf16 %v1412_v47, %v1410_v29 }
 0x27c   : > { %v9769_v48 = vunpack.i.h.bf16 %v9767_v46  ;;  %v9768_v34 = vunpack.i.l.bf16 %v9767_v46  ;;  %v1487_v55 = vsel %vm633_vm8, %v9763_v39, %v9764_v44 }
 0x27d   : > { %v9772_v49 = vpop.permute.xlu1 %9771 }
 0x27e   : > { %v1489_v52 = vsel %vm633_vm8, %v9768_v34, %v9769_v48  ;;  %v9774_v53 = vunpack.i.h.bf16 %v9772_v49  ;;  %v9773_v33 = vunpack.i.l.bf16 %v9772_v49  ;;  %8818 = vmatpush1.bf16.msk.msra.mxu1 %vm11840_vm4, %v8817_v43 }
 0x27f   : > { %v9777_v56 = vpop.permute.xlu0 %9776  ;;  %8821 = vmatprep.subr.msk.bf16.mxu1 %vm11828_vm1, %v8820_v50  ;;  %v8826_v63 = vpack.c.bf16 %v1489_v52, %v1487_v55 }
 0x280   : > { %v1488_v58 = vsel %vm633_vm8, %v9774_v53, %v9768_v34  ;;  %v1486_v59 = vsel %vm633_vm8, %v9773_v33, %v9763_v39  ;;  %v9779_v60 = vunpack.i.h.bf16 %v9777_v56  ;;  %v9778_v61 = vunpack.i.l.bf16 %v9777_v56 }
 0x281   : > { %v9782_v62 = vpop.permute.xlu1 %9781  ;;  %v8829_v4 = vpack.c.bf16 %v1488_v58, %v1486_v59 }
 0x282   : > { %v9784_v0 = vunpack.i.h.bf16 %v9782_v62  ;;  %v9783_v3 = vunpack.i.l.bf16 %v9782_v62  ;;  %8824 = vmatpush1.bf16.msk.msra.mxu1 %vm11840_vm4, %v8823_v54  ;;  %v1491_v6 = vsel %vm633_vm8, %v9778_v61, %v9779_v60 }
 0x283   : > { %v9787_v5 = vpop.permute.xlu0 %9786  ;;  %8827 = vmatprep.subr.msk.bf16.mxu1 %vm11793_vm14, %v8826_v63 }
 0x284   : > { %v1493_v7 = vsel %vm633_vm8, %v9783_v3, %v9784_v0  ;;  %v9789_v8 = vunpack.i.h.bf16 %v9787_v5  ;;  %v9788_v10 = vunpack.i.l.bf16 %v9787_v5 }
 0x285   : > { %v9792_v11 = vpop.permute.xlu1 %9791  ;;  %v8832_v14 = vpack.c.bf16 %v1493_v7, %v1491_v6 }
 0x286   : > { %v1490_v15 = vsel %vm633_vm8, %v9788_v10, %v9778_v61  ;;  %v1492_v18 = vsel %vm633_vm8, %v9789_v8, %v9783_v3  ;;  %8830 = vmatpush1.bf16.msk.msra.mxu1 %vm11804_vm15, %v8829_v4  ;;  %v9794_v23 = vunpack.i.h.bf16 %v9792_v11  ;;  %v9793_v24 = vunpack.i.l.bf16 %v9792_v11 }
 0x287   : > { %v8835_v19 = vpack.c.bf16 %v1492_v18, %v1490_v15  ;;  %v9797_v20 = vpop.permute.xlu0 %9796  ;;  %8833 = vmatprep.subr.msk.bf16.mxu1 %vm11793_vm14, %v8832_v14 }
 0x288   : > { %v9799_v16 = vunpack.i.h.bf16 %v9797_v20  ;;  %v9798_v22 = vunpack.i.l.bf16 %v9797_v20  ;;  %v1583_v37 = vsel %vm808_vm9, %v9793_v24, %v9794_v23 }
 0x289   : > { %v9802_v21 = vpop.permute.xlu1 %9801 }
 0x28a   : > { %8836 = vmatpush1.bf16.msk.msra.mxu1 %vm11804_vm15, %v8835_v19  ;;  %v9804_v30 = vunpack.i.h.bf16 %v9802_v21  ;;  %v9803_v31 = vunpack.i.l.bf16 %v9802_v21  ;;  %v1585_v32 = vsel %vm808_vm9, %v9798_v22, %v9799_v16 }
 0x28b   : > { %v9807_v27 = vpop.permute.xlu0 %9806  ;;  %1931 = vmatprep.subr.bf16.mxu1 %v11699_v57  ;;  %v8838_v46 = vpack.c.bf16 %v1585_v32, %v1583_v37  ;;  %v11322_v37 = vld [vmem:[%s13859_s3] ss:$12 sps:$4 sm:$0xff]  }
 0x28c   : > { %v9809_v38 = vunpack.i.h.bf16 %v9807_v27  ;;  %v9808_v40 = vunpack.i.l.bf16 %v9807_v27  ;;  %v1584_v43 = vsel %vm808_vm9, %v9804_v30, %v9798_v22  ;;  %v1582_v57 = vsel %vm808_vm9, %v9803_v31, %v9793_v24 }
 0x28d   : > { %v9812_v28 = vpop.permute.xlu1 %9811 }
 0x28e   : > { %v9814_v35 = vunpack.i.h.bf16 %v9812_v28  ;;  %v9813_v36 = vunpack.i.l.bf16 %v9812_v28  ;;  %1932 = vmatpush1.bf16.msra.mxu1 %v11694_v51  ;;  %v8841_v51 = vpack.c.bf16 %v1584_v43, %v1582_v57  ;;  %v1587_v47 = vsel %vm808_vm9, %v9808_v40, %v9809_v38 }
 0x28f   : > { %v9817_v1 = vpop.permute.xlu0 %9816  ;;  %1933 = vmatprep.subr.bf16.mxu1 %v11708_v13 }
 0x290   : > { %v9819_v26 = vunpack.i.h.bf16 %v9817_v1  ;;  %v9818_v44 = vunpack.i.l.bf16 %v9817_v1  ;;  %v1589_v29 = vsel %vm808_vm9, %v9813_v36, %v9814_v35  ;;  %v11325_v1 = vld [vmem:[%s13859_s3 + $0x1c] ss:$12 sps:$4 sm:$0xff]  }
 0x291   : > { %v9822_v39 = vpop.permute.xlu1 %9821  ;;  %v8844_v54 = vpack.c.bf16 %v1589_v29, %v1587_v47 }
 0x292   : > { %1934 = vmatpush1.bf16.msra.mxu1 %v11704_v9  ;;  %v9824_v48 = vunpack.i.h.bf16 %v9822_v39  ;;  %v9823_v34 = vunpack.i.l.bf16 %v9822_v39  ;;  %v1586_v13 = vsel %vm808_vm9, %v9818_v44, %v9808_v40  ;;  %v1588_v50 = vsel %vm808_vm9, %v9819_v26, %v9813_v36 }
 0x293   : > { %v9827_v49 = vpop.permute.xlu0 %9826  ;;  %8839 = vmatprep.subr.msk.bf16.mxu1 %vm11828_vm1, %v8838_v46  ;;  %v8847_v58 = vpack.c.bf16 %v1588_v50, %v1586_v13 }
 0x294   : > { %v9829_v52 = vunpack.i.h.bf16 %v9827_v49  ;;  %v9828_v53 = vunpack.i.l.bf16 %v9827_v49  ;;  %v1663_v59 = vsel %vm900_vm10, %v9823_v34, %v9824_v48 }
 0x295   : > { %v9832_v33 = vpop.permute.xlu1 %9831 }
 0x296   : > { %v1665_v55 = vsel %vm900_vm10, %v9828_v53, %v9829_v52  ;;  %v9834_v9 = vunpack.i.h.bf16 %v9832_v33  ;;  %v9833_v56 = vunpack.i.l.bf16 %v9832_v33  ;;  %8842 = vmatpush1.bf16.msk.msra.mxu1 %vm11840_vm4, %v8841_v51  ;;  %v11327_v33 = vld [vmem:[%s13859_s3 + $0x18] ss:$12 sps:$4 sm:$0xff]  }
 0x297   : > { %v9837_v60 = vpop.permute.xlu0 %9836  ;;  %8845 = vmatprep.subr.msk.bf16.mxu1 %vm11828_vm1, %v8844_v54  ;;  %v8850_v4 = vpack.c.bf16 %v1665_v55, %v1663_v59 }
 0x298   : > { %v1664_v61 = vsel %vm900_vm10, %v9834_v9, %v9828_v53  ;;  %v1662_v62 = vsel %vm900_vm10, %v9833_v56, %v9823_v34  ;;  %v9839_v63 = vunpack.i.h.bf16 %v9837_v60  ;;  %v9838_v0 = vunpack.i.l.bf16 %v9837_v60 }
 0x299   : > { %v9842_v3 = vpop.permute.xlu1 %9841  ;;  %v8853_v7 = vpack.c.bf16 %v1664_v61, %v1662_v62 }
 0x29a   : > { %v9844_v5 = vunpack.i.h.bf16 %v9842_v3  ;;  %v9843_v6 = vunpack.i.l.bf16 %v9842_v3  ;;  %8848 = vmatpush1.bf16.msk.msra.mxu1 %vm11840_vm4, %v8847_v58  ;;  %v1667_v10 = vsel %vm900_vm10, %v9838_v0, %v9839_v63  ;;  %v11328_v3 = vld [vmem:[%s13859_s3 + $0x8] ss:$12 sps:$4 sm:$0xff]  }
 0x29b   : > { %v9847_v8 = vpop.permute.xlu0 %9846  ;;  %8851 = vmatprep.subr.msk.bf16.mxu1 %vm11793_vm14, %v8850_v4  ;;  %v11329_v4 = vld [vmem:[%s13859_s3 + $0x20] ss:$12 sps:$4 sm:$0xff]  }
 0x29c   : > { %v1669_v11 = vsel %vm900_vm10, %v9843_v6, %v9844_v5  ;;  %v9849_v14 = vunpack.i.h.bf16 %v9847_v8  ;;  %v9848_v15 = vunpack.i.l.bf16 %v9847_v8 }
 0x29d   : > { %v1721_v18 = vpop.permute.xlu1 %1720  ;;  %v8856_v19 = vpack.c.bf16 %v1669_v11, %v1667_v10 }
 0x29e   : > { %v1666_v20 = vsel %vm900_vm10, %v9848_v15, %v9838_v0  ;;  %v1668_v21 = vsel %vm900_vm10, %v9849_v14, %v9843_v6  ;;  %8854 = vmatpush1.bf16.msk.msra.mxu1 %vm11804_vm15, %v8853_v7 }
 0x29f   : > { %v8859_v16 = vpack.c.bf16 %v1668_v21, %v1666_v20  ;;  %v1723_v22 = vpop.permute.xlu0 %1722  ;;  %8857 = vmatprep.subr.msk.bf16.mxu1 %vm11793_vm14, %v8856_v19 }
 0x2a0   : > { %v1731_v24 = vsel %vm1002_vm12, %v1721_v18, %v1723_v22 }
 0x2a1   : > { %v1719_v23 = vpop.permute.xlu1 %1718 }
 0x2a2   : > { %8860 = vmatpush1.bf16.msk.msra.mxu1 %vm11804_vm15, %v8859_v16  ;;  %v1730_v30 = vsel %vm1002_vm12, %v1719_v23, %v1721_v18 }
 0x2a3   : > { %v1727_v27 = vpop.permute.xlu0 %1726  ;;  %1943 = vmatprep.subr.bf16.mxu1 %v1731_v24 }
 0x2a5   : > { %v1729_v31 = vpop.permute.xlu1 %1728 }
 0x2a6   : > { %1944 = vmatpush1.bf16.msra.mxu1 %v1730_v30  ;;  %v1733_v28 = vsel %vm1002_vm12, %v1727_v27, %v1729_v31 }
 0x2a7   : > { %v1725_v32 = vpop.permute.xlu0 %1724  ;;  %1945 = vmatprep.subr.bf16.mxu1 %v1733_v28 }
 0x2a8   : > { %v1732_v35 = vsel %vm1002_vm12, %v1725_v32, %v1727_v27 }
 0x2a9   : > { %v9852_v36 = vpop.permute.xlu1 %9851 }
 0x2aa   : > { %v9854_v38 = vunpack.i.h.bf16 %v9852_v36  ;;  %v9853_v40 = vunpack.i.l.bf16 %v9852_v36  ;;  %1946 = vmatpush1.bf16.msra.mxu1 %v1732_v35 }
 0x2ab   : > { %v9857_v43 = vpop.permute.xlu0 %9856 }
 0x2ac   : > { %v9859_v57 = vunpack.i.h.bf16 %v9857_v43  ;;  %v9858_v26 = vunpack.i.l.bf16 %v9857_v43  ;;  %v1791_v39 = vsel %vm1084_vm13, %v9853_v40, %v9854_v38 }
 0x2ad   : > { %v9862_v44 = vpop.permute.xlu1 %9861  ;;  %1948 = vmatmul.mubr.bf16.vlgmr.msra.gmra.mrb[8].mxu1 %v11322_v37 }
 0x2ae   : > { %v1793_v46 = vsel %vm1084_vm13, %v9858_v26, %v9859_v57  ;;  %v9864_v29 = vunpack.i.h.bf16 %v9862_v44  ;;  %v9863_v51 = vunpack.i.l.bf16 %v9862_v44  ;;  %1957 = vmatprep.mubr.bf16.mxu1 %v11325_v1 }
 0x2af   : > { %v9867_v47 = vpop.permute.xlu0 %9866  ;;  %v8862_v48 = vpack.c.bf16 %v1793_v46, %v1791_v39 }
 0x2b0   : > { %v1792_v34 = vsel %vm1084_vm13, %v9864_v29, %v9858_v26  ;;  %v1790_v49 = vsel %vm1084_vm13, %v9863_v51, %v9853_v40  ;;  %v9869_v13 = vunpack.i.h.bf16 %v9867_v47  ;;  %v9868_v50 = vunpack.i.l.bf16 %v9867_v47 }
 0x2b1   : > { %v8865_v52 = vpack.c.bf16 %v1792_v34, %v1790_v49  ;;  %v9872_v53 = vpop.permute.xlu1 %9871  ;;  %8863 = vmatprep.subr.msk.bf16.mxu1 %vm11828_vm1, %v8862_v48  ;;  %v11969_v49 = vld [vmem:[#allocation2] sm:$0xff] }
 0x2b2   : > { %v9874_v54 = vunpack.i.h.bf16 %v9872_v53  ;;  %v9873_v55 = vunpack.i.l.bf16 %v9872_v53  ;;  %v1795_v56 = vsel %vm1084_vm13, %v9868_v50, %v9869_v13  ;;  %v11973_v13 = vpack.i.bf16 %v11969_v49, %v11969_v49 }
 0x2b3   : > { %v9877_v9 = vpop.permute.xlu0 %9876  ;;  %8866 = vmatpush1.bf16.msk.msra.mxu1 %vm11840_vm4, %v8865_v52 }
 0x2b4   : > { %v1797_v58 = vsel %vm1084_vm13, %v9873_v55, %v9874_v54  ;;  %v9879_v59 = vunpack.i.h.bf16 %v9877_v9  ;;  %v9878_v60 = vunpack.i.l.bf16 %v9877_v9  ;;  %v11332_v54 = vld [vmem:[%s13859_s3 + $0x34] ss:$12 sps:$4 sm:$0xff]   ;;  %v8665_v9 = vld [vmem:[%s13860_s4 + $0x28] sm:$0xff] }
 0x2b5   : > { %1958 = vmatmul.mubr.bf16.gmra.mrb[12].mxu1 %v11327_v33  ;;  %v8868_v61 = vpack.c.bf16 %v1797_v58, %v1795_v56  ;;  %v8666_v56 = vld [vmem:[%s13860_s4 + $0x30] sm:$0xff]  ;;  %v8667_v58 = vld [vmem:[%s13860_s4 + $0x38] sm:$0xff] }
 0x2b6   : > { %v1794_v62 = vsel %vm1084_vm13, %v9878_v60, %v9868_v50  ;;  %v1796_v63 = vsel %vm1084_vm13, %v9879_v59, %v9873_v55  ;;  %2000 = vmatprep.mubr.bf16.mxu1 %v11402_v12  ;;  %v8664_v55 = vld [vmem:[%s13860_s4 + $0x20] sm:$0xff] }
 0x2b7   : > { %v8871_v0 = vpack.c.bf16 %v1796_v63, %v1794_v62  ;;  %8869 = vmatprep.subr.msk.bf16.mxu1 %vm11828_vm1, %v8868_v61 }
 0x2b9   : > { %8872 = vmatpush1.bf16.msk.msra.mxu1 %vm11840_vm4, %v8871_v0 }
 0x2bd   : > { %8654 = vmatmul.mubr.msk.bf16.vlgmr.msra.gmra.mrb[8].mxu1 %vm1908_vm3, %v11328_v3 }
 0x2be   : > { %2010 = vmatprep.mubr.bf16.mxu1 %v11402_v12 }
 0x2c2   : > { %v1861_v5 = vpop.permute.xlu1 %1860 }
 0x2c4   : > { %v1866_v10 = vpop.permute.xlu0 %1865 }
 0x2c5   : > { %8655 = vmatmul.mubr.msk.bf16.gmra.mrb[12].mxu1 %vm1908_vm3, %v11329_v4 }
 0x2c6   : > { %v1871_v30 = vpop.permute.xlu1 %1870  ;;  %2767 = vmatprep.mubr.bf16.mxu1 %v11332_v54 }
 0x2c8   : > { %v1876_v37 = vpop.permute.xlu0 %1875 }
 0x2ca   : > { %v9882_v59 = vpop.permute.xlu1 %9881 }
 0x2cc   : > { %v9887_v60 = vpop.permute.xlu0 %9886 }
 0x2ce   : > { %v2156_v61 = vpop.permute.xlu1 %2155 }
 0x2d0   : > { %v12050_v62 = vpop.permute.xlu0 %2161 }
 0x390   : > { %v2002_v6 = vpop.f32.mrb[8].mxu1 }
 0x391   : > { %v9457_v7 = vadd.f32 %v2002_v6, %v1861_v5  ;;  %v2004_v8 = vpop.f32.mrb[9].mxu1  ;;  %v9883_v6 = vunpack.i.l.bf16 %v9882_v59 }
 0x392   : > { %v9458_v11 = vadd.f32 %v2004_v8, %v1861_v5  ;;  %v2006_v14 = vpop.f32.mrb[10].mxu1  ;;  %v9884_v5 = vunpack.i.h.bf16 %v9882_v59 }
 0x393   : > { %v2021_v15 = vmax.f32 %v9457_v7, 0.0  ;;  %v9459_v18 = vadd.f32 %v2006_v14, %v1866_v10  ;;  %v2008_v19 = vpop.f32.mrb[11].mxu1 }
 0x394   : > { %v2022_v20 = vmax.f32 %v9458_v11, 0.0  ;;  %v9460_v21 = vadd.f32 %v2008_v19, %v1866_v10 }
 0x395   : > { %v2023_v16 = vmax.f32 %v9459_v18, 0.0 }
 0x396   : > { %v2024_v22 = vmax.f32 %v9460_v21, 0.0  ;;  %v9890_v23 = vpack.i.bf16 %v2022_v20, %v2021_v15  ;;  %v9970_v50 = vpack.i.bf16 %v11969_v49, %v2022_v20 }
 0x397   : > { %v11950_v24 = vpack.c.bf16 %v2023_v16, %v2021_v15  ;;  %v11952_v27 = vpack.i.bf16 %v2023_v16, %v2021_v15 }
 0x398   : > { %v2012_v31 = vpop.f32.mrb[12].mxu1  ;;  %9891 = vrot.lane.b32.xlu1 %v9890_v23, %s11403_s30  ;;  %v9900_v28 = vpack.i.bf16 %v2024_v22, %v2023_v16  ;;  %v11955_v32 = vpack.c.bf16 %v2024_v22, %v2022_v20  ;;  %v9975_v52 = vpack.i.bf16 %v11969_v49, %v2024_v22 }
 0x399   : > { %v9461_v35 = vadd.f32 %v2012_v31, %v1871_v30  ;;  %v2014_v36 = vpop.f32.mrb[13].mxu1 }
 0x39a   : > { %v9462_v38 = vadd.f32 %v2014_v36, %v1871_v30  ;;  %v2016_v40 = vpop.f32.mrb[14].mxu1  ;;  %9901 = vrot.lane.b32.xlu0 %v9900_v28, %s11403_s30 }
 0x39b   : > { %v2025_v1 = vmax.f32 %v9461_v35, 0.0  ;;  %v9463_v43 = vadd.f32 %v2016_v40, %v1876_v37  ;;  %v2018_v57 = vpop.f32.mrb[15].mxu1  ;;  %v9888_v35 = vunpack.i.l.bf16 %v9887_v60 }
 0x39c   : > { %v2026_v26 = vmax.f32 %v9462_v38, 0.0  ;;  %v9464_v44 = vadd.f32 %v2018_v57, %v1876_v37  ;;  %9896 = vrot.lane.b32.xlu1 %v9890_v23, %s11404_s8 }
 0x39d   : > { %v2027_v39 = vmax.f32 %v9463_v43, 0.0 }
 0x39e   : > { %v2028_v46 = vmax.f32 %v9464_v44, 0.0  ;;  %9906 = vrot.lane.b32.xlu0 %v9900_v28, %s11404_s8  ;;  %v9910_v29 = vpack.i.bf16 %v2026_v26, %v2025_v1  ;;  %v9985_v53 = vpack.i.bf16 %v11969_v49, %v2026_v26 }
 0x39f   : > { %v11960_v51 = vpack.c.bf16 %v2027_v39, %v2025_v1  ;;  %v9995_v47 = vpack.i.bf16 %v2027_v39, %v2025_v1 }
 0x3a0   : > { %2157 = vrot.lane.b32.xlu1 %v11950_v24, %s11415_s23  ;;  %v9915_v48 = vpack.i.bf16 %v2028_v46, %v2027_v39  ;;  %v11964_v34 = vpack.c.bf16 %v2028_v46, %v2026_v26  ;;  %v9990_v33 = vpack.i.bf16 %v11969_v49, %v2028_v46 }
 0x3a2   : > { %2159 = vrot.lane.b32.xlu0 %v11955_v32, %s11415_s23 }
 0x3a4   : > { %9916 = vrot.lane.b32.xlu1 %v9915_v48, %s11403_s30 }
 0x3a6   : > { %9911 = vrot.lane.b32.xlu0 %v9910_v29, %s11403_s30 }
 0x3a8   : > { %9921 = vrot.lane.b32.xlu1 %v11973_v13, %s11404_s8 }
 0x3aa   : > { %9926 = vrot.lane.b32.xlu0 %v9910_v29, %s11404_s8 }
 0x3ac   : > { %9931 = vrot.lane.b32.xlu1 %v9915_v48, %s11404_s8 }
 0x3ae   : > { %2163 = vrot.lane.b32.xlu0 %v11960_v51, %s11415_s23 }
 0x3b0   : > { %2165 = vrot.lane.b32.xlu1 %v11964_v34, %s11415_s23 }
 0x3b2   : > { %9936 = vrot.lane.b32.xlu0 %v11973_v13, %s11404_s8 }
 0x3b4   : > { %9941 = vrot.lane.b32.xlu1 %v9890_v23, %s11406_s14 }
 0x3b6   : > { %9946 = vrot.lane.b32.xlu0 %v9900_v28, %s11406_s14  ;;  %v9889_v28 = vunpack.i.h.bf16 %v9887_v60 }
 0x3b8   : > { %9951 = vrot.lane.b32.xlu1 %v11973_v13, %s11406_s14 }
 0x3ba   : > { %9956 = vrot.lane.b32.xlu0 %v9910_v29, %s11406_s14 }
 0x3bc   : > { %9961 = vrot.lane.b32.xlu1 %v9915_v48, %s11406_s14 }
 0x3be   : > { %9966 = vrot.lane.b32.xlu0 %v11973_v13, %s11406_s14 }
 0x3c0   : > { %9971 = vrot.lane.b32.xlu1 %v9970_v50, %s11409_s17 }
 0x3c2   : > { %9976 = vrot.lane.b32.xlu0 %v9975_v52, %s11409_s17 }
 0x3c4   : > { %9981 = vrot.lane.b32.xlu1 %v11952_v27, %s11409_s17 }
 0x3c6   : > { %9986 = vrot.lane.b32.xlu0 %v9985_v53, %s11409_s17 }
 0x3c8   : > { %9991 = vrot.lane.b32.xlu1 %v9990_v33, %s11409_s17 }
 0x3ca   : > { %9996 = vrot.lane.b32.xlu0 %v9995_v47, %s11409_s17 }
 0x3cc   : > { %10001 = vrot.lane.b32.xlu1 %v9970_v50, %s11411_s19 }
 0x3ce   : > { %10006 = vrot.lane.b32.xlu0 %v9975_v52, %s11411_s19 }
 0x3d0   : > { %10011 = vrot.lane.b32.xlu1 %v11952_v27, %s11411_s19 }
 0x3d2   : > { %10016 = vrot.lane.b32.xlu0 %v9985_v53, %s11411_s19 }
 0x3d4   : > { %10021 = vrot.lane.b32.xlu1 %v9990_v33, %s11411_s19 }
 0x3d6   : > { %10026 = vrot.lane.b32.xlu0 %v9995_v47, %s11411_s19 }
 0x3d8   : > { %2541 = vrot.lane.b32.xlu1 %v11955_v32, %s11408_s16 }
 0x3da   : > { %2543 = vrot.lane.b32.xlu0 %v11418_v17, %s11408_s16 }
 0x3dc   : > { %2539 = vrot.lane.b32.xlu1 %v11950_v24, %s11408_s16 }
 0x3de   : > { %2547 = vrot.lane.b32.xlu0 %v11964_v34, %s11408_s16 }
 0x3e0   : > { %2549 = vrot.lane.b32.xlu1 %v11418_v17, %s11408_s16 }
 0x3e2   : > { %2545 = vrot.lane.b32.xlu0 %v11960_v51, %s11408_s16 }
 0x3e4   : > { %10031 = vrot.lane.b32.xlu1 %v9970_v50, %s11414_s22 }
 0x3e6   : > { %10036 = vrot.lane.b32.xlu0 %v9975_v52, %s11414_s22 }
 0x3e8   : > { %10041 = vrot.lane.b32.xlu1 %v11952_v27, %s11414_s22 }
 0x3ea   : > { %10046 = vrot.lane.b32.xlu0 %v9985_v53, %s11414_s22 }
 0x3ec   : > { %10051 = vrot.lane.b32.xlu1 %v9990_v33, %s11414_s22 }
 0x3ee   : > { %10056 = vrot.lane.b32.xlu0 %v9995_v47, %s11414_s22 }
 0x3f0   : > { %2681 = vperm.xlu1 %9699, %v8664_v55  }
 0x3f2   : > { %2686 = vperm.xlu0 %9698, %v8665_v9  }
 0x3f4   : > { %2691 = vperm.xlu1 %9699, %v8666_v56  }
 0x3f6   : > { %2696 = vperm.xlu0 %9698, %v8667_v58  }
 0x3f8   : > { %10061 = vrot.lane.b32.xlu1 %v11973_v13, %s11403_s30 }
 0x3fa   : > { %10066 = vrot.lane.b32.xlu0 %v11973_v13, %s11403_s30 }
 0x40a   : > { %v9892_v63 = vpop.permute.xlu1 %9891 }
 0x40b   : > { %v9894_v0 = vunpack.i.h.bf16 %v9892_v63  ;;  %v9893_v3 = vunpack.i.l.bf16 %v9892_v63 }
 0x40c   : > { %v9902_v4 = vpop.permute.xlu0 %9901 }
 0x40d   : > { %v9904_v7 = vunpack.i.h.bf16 %v9902_v4  ;;  %v9903_v8 = vunpack.i.l.bf16 %v9902_v4  ;;  %v2099_v11 = vsel %vm357_vm0, %v9883_v6, %v9893_v3  ;;  %v2100_v14 = vsel %vm357_vm0, %v9893_v3, %v9894_v0 }
 0x40e   : > { %v9897_v10 = vpop.permute.xlu1 %9896 }
 0x40f   : > { %v2101_v15 = vsel %vm357_vm0, %v9884_v5, %v9903_v8  ;;  %v2102_v18 = vsel %vm357_vm0, %v9903_v8, %v9904_v7  ;;  %v9899_v50 = vunpack.i.h.bf16 %v9897_v10  ;;  %v9898_v52 = vunpack.i.l.bf16 %v9897_v10 }
 0x410   : > { %v8877_v19 = vpack.c.bf16 %v2101_v15, %v2099_v11  ;;  %v9907_v20 = vpop.permute.xlu0 %9906  ;;  %v8874_v21 = vpack.c.bf16 %v2102_v18, %v2100_v14 }
 0x411   : > { %v9909_v29 = vunpack.i.h.bf16 %v9907_v20  ;;  %v9908_v47 = vunpack.i.l.bf16 %v9907_v20  ;;  %v2228_v63 = vsel %vm541_vm2, %v9898_v52, %v9899_v50 }
 0x412   : > { %8875 = vmatprep.subr.msk.bf16.mxu1 %vm11793_vm14, %v8874_v21  ;;  %v2158_v16 = vpop.permute.xlu1 %2157 }
 0x413   : > { %8878 = vmatpush1.bf16.msk.msra.mxu1 %vm11804_vm15, %v8877_v19  ;;  %v2167_v9 = vsel %vm396_vm11, %v2156_v61, %v2158_v16  ;;  %v2230_v56 = vsel %vm541_vm2, %v9908_v47, %v9909_v29 }
 0x414   : > { %v2160_v22 = vpop.permute.xlu0 %2159  ;;  %v8886_v11 = vpack.c.bf16 %v2230_v56, %v2228_v63 }
 0x415   : > { %v2168_v48 = vsel %vm396_vm11, %v2158_v16, %v2160_v22 }
 0x416   : > { %v9917_v23 = vpop.permute.xlu1 %9916 }
 0x417   : > { %v9919_v27 = vunpack.i.h.bf16 %v9917_v23  ;;  %v9918_v30 = vunpack.i.l.bf16 %v9917_v23 }
 0x418   : > { %v9912_v31 = vpop.permute.xlu0 %9911 }
 0x419   : > { %v9914_v36 = vunpack.i.h.bf16 %v9912_v31  ;;  %v9913_v37 = vunpack.i.l.bf16 %v9912_v31  ;;  %v2105_v40 = vsel %vm357_vm0, %v9889_v28, %v9918_v30  ;;  %v2106_v1 = vsel %vm357_vm0, %v9918_v30, %v9919_v27 }
 0x41a   : > { %v9922_v38 = vpop.permute.xlu1 %9921 }
 0x41b   : > { %v2103_v43 = vsel %vm357_vm0, %v9888_v35, %v9913_v37  ;;  %v2104_v57 = vsel %vm357_vm0, %v9913_v37, %v9914_v36  ;;  %v9924_v33 = vunpack.i.h.bf16 %v9922_v38  ;;  %v9923_v54 = vunpack.i.l.bf16 %v9922_v38 }
 0x41c   : > { %v8883_v26 = vpack.c.bf16 %v2105_v40, %v2103_v43  ;;  %v9927_v44 = vpop.permute.xlu0 %9926  ;;  %v8880_v39 = vpack.c.bf16 %v2106_v1, %v2104_v57 }
 0x41d   : > { %v9929_v0 = vunpack.i.h.bf16 %v9927_v44  ;;  %v9928_v3 = vunpack.i.l.bf16 %v9927_v44  ;;  %v2229_v5 = vsel %vm541_vm2, %v9924_v33, %v9908_v47  ;;  %v2227_v6 = vsel %vm541_vm2, %v9923_v54, %v9898_v52 }
 0x41e   : > { %v9932_v46 = vpop.permute.xlu1 %9931  ;;  %8881 = vmatprep.subr.msk.bf16.mxu1 %vm11793_vm14, %v8880_v39  ;;  %v8889_v15 = vpack.c.bf16 %v2229_v5, %v2227_v6 }
 0x41f   : > { %8884 = vmatpush1.bf16.msk.msra.mxu1 %vm11804_vm15, %v8883_v26  ;;  %v9934_v58 = vunpack.i.h.bf16 %v9932_v46  ;;  %v9933_v59 = vunpack.i.l.bf16 %v9932_v46  ;;  %v2232_v18 = vsel %vm541_vm2, %v9928_v3, %v9929_v0 }
 0x420   : > { %v2164_v53 = vpop.permute.xlu0 %2163  ;;  %2739 = vmatprep.subr.bf16.mxu1 %v2168_v48 }
 0x421   : > { %v2169_v10 = vsel %vm396_vm11, %v12050_v62, %v2164_v53  ;;  %v2234_v14 = vsel %vm541_vm2, %v9933_v59, %v9934_v58 }
 0x422   : > { %v2166_v55 = vpop.permute.xlu1 %2165  ;;  %v8892_v30 = vpack.c.bf16 %v2234_v14, %v2232_v18 }
 0x423   : > { %2740 = vmatpush1.bf16.msra.mxu1 %v2167_v9  ;;  %v2170_v60 = vsel %vm396_vm11, %v2164_v53, %v2166_v55 }
 0x424   : > { %v9937_v4 = vpop.permute.xlu0 %9936  ;;  %2741 = vmatprep.subr.bf16.mxu1 %v2170_v60 }
 0x425   : > { %v9939_v7 = vunpack.i.h.bf16 %v9937_v4  ;;  %v9938_v8 = vunpack.i.l.bf16 %v9937_v4 }
 0x426   : > { %v9942_v61 = vpop.permute.xlu1 %9941 }
 0x427   : > { %2742 = vmatpush1.bf16.msra.mxu1 %v2169_v10  ;;  %v9944_v19 = vunpack.i.h.bf16 %v9942_v61  ;;  %v9943_v20 = vunpack.i.l.bf16 %v9942_v61  ;;  %v2231_v16 = vsel %vm541_vm2, %v9938_v8, %v9928_v3  ;;  %v2233_v22 = vsel %vm541_vm2, %v9939_v7, %v9933_v59 }
 0x428   : > { %v9947_v21 = vpop.permute.xlu0 %9946  ;;  %8887 = vmatprep.subr.msk.bf16.mxu1 %vm11828_vm1, %v8886_v11  ;;  %v8895_v36 = vpack.c.bf16 %v2233_v22, %v2231_v16 }
 0x429   : > { %v9949_v23 = vunpack.i.h.bf16 %v9947_v21  ;;  %v9948_v27 = vunpack.i.l.bf16 %v9947_v21  ;;  %v2308_v37 = vsel %vm633_vm8, %v9943_v20, %v9944_v19 }
 0x42a   : > { %v9952_v62 = vpop.permute.xlu1 %9951 }
 0x42b   : > { %v2310_v31 = vsel %vm633_vm8, %v9948_v27, %v9949_v23  ;;  %v9954_v28 = vunpack.i.h.bf16 %v9952_v62  ;;  %v9953_v35 = vunpack.i.l.bf16 %v9952_v62  ;;  %8890 = vmatpush1.bf16.msk.msra.mxu1 %vm11840_vm4, %v8889_v15 }
 0x42c   : > { %v9957_v38 = vpop.permute.xlu0 %9956  ;;  %8893 = vmatprep.subr.msk.bf16.mxu1 %vm11828_vm1, %v8892_v30  ;;  %v8898_v44 = vpack.c.bf16 %v2310_v31, %v2308_v37 }
 0x42d   : > { %v2309_v40 = vsel %vm633_vm8, %v9954_v28, %v9948_v27  ;;  %v2307_v1 = vsel %vm633_vm8, %v9953_v35, %v9943_v20  ;;  %v9959_v43 = vunpack.i.h.bf16 %v9957_v38  ;;  %v9958_v57 = vunpack.i.l.bf16 %v9957_v38 }
 0x42e   : > { %v9962_v26 = vpop.permute.xlu1 %9961  ;;  %v8901_v29 = vpack.c.bf16 %v2309_v40, %v2307_v1 }
 0x42f   : > { %v9964_v39 = vunpack.i.h.bf16 %v9962_v26  ;;  %v9963_v46 = vunpack.i.l.bf16 %v9962_v26  ;;  %8896 = vmatpush1.bf16.msk.msra.mxu1 %vm11840_vm4, %v8895_v36  ;;  %v2312_v48 = vsel %vm633_vm8, %v9958_v57, %v9959_v43 }
 0x430   : > { %v9967_v47 = vpop.permute.xlu0 %9966  ;;  %8899 = vmatprep.subr.msk.bf16.mxu1 %vm11793_vm14, %v8898_v44 }
 0x431   : > { %v2314_v50 = vsel %vm633_vm8, %v9963_v46, %v9964_v39  ;;  %v9969_v52 = vunpack.i.h.bf16 %v9967_v47  ;;  %v9968_v53 = vunpack.i.l.bf16 %v9967_v47 }
 0x432   : > { %v9972_v33 = vpop.permute.xlu1 %9971  ;;  %v8904_v54 = vpack.c.bf16 %v2314_v50, %v2312_v48 }
 0x433   : > { %v2311_v55 = vsel %vm633_vm8, %v9968_v53, %v9958_v57  ;;  %v2313_v9 = vsel %vm633_vm8, %v9969_v52, %v9963_v46  ;;  %8902 = vmatpush1.bf16.msk.msra.mxu1 %vm11804_vm15, %v8901_v29  ;;  %v9974_v0 = vunpack.i.h.bf16 %v9972_v33  ;;  %v9973_v3 = vunpack.i.l.bf16 %v9972_v33 }
 0x434   : > { %v8907_v56 = vpack.c.bf16 %v2313_v9, %v2311_v55  ;;  %v9977_v58 = vpop.permute.xlu0 %9976  ;;  %8905 = vmatprep.subr.msk.bf16.mxu1 %vm11793_vm14, %v8904_v54 }
 0x435   : > { %v9979_v60 = vunpack.i.h.bf16 %v9977_v58  ;;  %v9978_v63 = vunpack.i.l.bf16 %v9977_v58  ;;  %v2404_v11 = vsel %vm808_vm9, %v9973_v3, %v9974_v0 }
 0x436   : > { %v9982_v59 = vpop.permute.xlu1 %9981 }
 0x437   : > { %8908 = vmatpush1.bf16.msk.msra.mxu1 %vm11804_vm15, %v8907_v56  ;;  %v9984_v5 = vunpack.i.h.bf16 %v9982_v59  ;;  %v9983_v6 = vunpack.i.l.bf16 %v9982_v59  ;;  %v2406_v8 = vsel %vm808_vm9, %v9978_v63, %v9979_v60 }
 0x438   : > { %v9987_v4 = vpop.permute.xlu0 %9986  ;;  %2751 = vmatprep.subr.bf16.mxu1 %v11955_v32  ;;  %v8910_v22 = vpack.c.bf16 %v2406_v8, %v2404_v11 }
 0x439   : > { %v9989_v14 = vunpack.i.h.bf16 %v9987_v4  ;;  %v9988_v15 = vunpack.i.l.bf16 %v9987_v4  ;;  %v2405_v19 = vsel %vm808_vm9, %v9984_v5, %v9978_v63  ;;  %v2403_v32 = vsel %vm808_vm9, %v9983_v6, %v9973_v3 }
 0x43a   : > { %v9992_v7 = vpop.permute.xlu1 %9991 }
 0x43b   : > { %v9994_v61 = vunpack.i.h.bf16 %v9992_v7  ;;  %v9993_v10 = vunpack.i.l.bf16 %v9992_v7  ;;  %2752 = vmatpush1.bf16.msra.mxu1 %v11950_v24  ;;  %v8913_v24 = vpack.c.bf16 %v2405_v19, %v2403_v32  ;;  %v2408_v27 = vsel %vm808_vm9, %v9988_v15, %v9989_v14  ;;  %v11333_v32 = vld [vmem:[%s13859_s3 + $0x4c] ss:$12 sps:$4 sm:$0xff]  }
 0x43c   : > { %v9997_v18 = vpop.permute.xlu0 %9996  ;;  %2753 = vmatprep.subr.bf16.mxu1 %v11964_v34 }
 0x43d   : > { %v9999_v20 = vunpack.i.h.bf16 %v9997_v18  ;;  %v9998_v21 = vunpack.i.l.bf16 %v9997_v18  ;;  %v2410_v23 = vsel %vm808_vm9, %v9993_v10, %v9994_v61 }
 0x43e   : > { %v10002_v16 = vpop.permute.xlu1 %10001  ;;  %v8916_v38 = vpack.c.bf16 %v2410_v23, %v2408_v27 }
 0x43f   : > { %2754 = vmatpush1.bf16.msra.mxu1 %v11960_v51  ;;  %v10004_v62 = vunpack.i.h.bf16 %v10002_v16  ;;  %v10003_v30 = vunpack.i.l.bf16 %v10002_v16  ;;  %v2407_v34 = vsel %vm808_vm9, %v9998_v21, %v9988_v15  ;;  %v2409_v28 = vsel %vm808_vm9, %v9999_v20, %v9993_v10  ;;  %v11330_v15 = vld [vmem:[%s13859_s3 + $0x30] ss:$12 sps:$4 sm:$0xff]  }
 0x440   : > { %v10007_v31 = vpop.permute.xlu0 %10006  ;;  %8911 = vmatprep.subr.msk.bf16.mxu1 %vm11828_vm1, %v8910_v22  ;;  %v8919_v43 = vpack.c.bf16 %v2409_v28, %v2407_v34 }
 0x441   : > { %v10009_v35 = vunpack.i.h.bf16 %v10007_v31  ;;  %v10008_v36 = vunpack.i.l.bf16 %v10007_v31  ;;  %v2484_v57 = vsel %vm900_vm10, %v10003_v30, %v10004_v62 }
 0x442   : > { %v10012_v37 = vpop.permute.xlu1 %10011 }
 0x443   : > { %v2486_v40 = vsel %vm900_vm10, %v10008_v36, %v10009_v35  ;;  %v10014_v51 = vunpack.i.h.bf16 %v10012_v37  ;;  %v10013_v1 = vunpack.i.l.bf16 %v10012_v37  ;;  %8914 = vmatpush1.bf16.msk.msra.mxu1 %vm11840_vm4, %v8913_v24 }
 0x444   : > { %v10017_v26 = vpop.permute.xlu0 %10016  ;;  %8917 = vmatprep.subr.msk.bf16.mxu1 %vm11828_vm1, %v8916_v38  ;;  %v8922_v48 = vpack.c.bf16 %v2486_v40, %v2484_v57  ;;  %v11335_v40 = vld [vmem:[%s13859_s3 + $0x48] ss:$12 sps:$4 sm:$0xff]  }
 0x445   : > { %v2485_v44 = vsel %vm900_vm10, %v10014_v51, %v10008_v36  ;;  %v2483_v39 = vsel %vm900_vm10, %v10013_v1, %v10003_v30  ;;  %v10019_v46 = vunpack.i.h.bf16 %v10017_v26  ;;  %v10018_v29 = vunpack.i.l.bf16 %v10017_v26 }
 0x446   : > { %v10022_v47 = vpop.permute.xlu1 %10021  ;;  %v8925_v53 = vpack.c.bf16 %v2485_v44, %v2483_v39 }
 0x447   : > { %v10024_v50 = vunpack.i.h.bf16 %v10022_v47  ;;  %v10023_v52 = vunpack.i.l.bf16 %v10022_v47  ;;  %8920 = vmatpush1.bf16.msk.msra.mxu1 %vm11840_vm4, %v8919_v43  ;;  %v2488_v54 = vsel %vm900_vm10, %v10018_v29, %v10019_v46 }
 0x448   : > { %v10027_v33 = vpop.permute.xlu0 %10026  ;;  %8923 = vmatprep.subr.msk.bf16.mxu1 %vm11793_vm14, %v8922_v48 }
 0x449   : > { %v2490_v55 = vsel %vm900_vm10, %v10023_v52, %v10024_v50  ;;  %v10029_v9 = vunpack.i.h.bf16 %v10027_v33  ;;  %v10028_v56 = vunpack.i.l.bf16 %v10027_v33  ;;  %v11336_v50 = vld [vmem:[%s13859_s3 + $0x38] ss:$12 sps:$4 sm:$0xff]  }
 0x44a   : > { %v2542_v58 = vpop.permute.xlu1 %2541  ;;  %v8928_v59 = vpack.c.bf16 %v2490_v55, %v2488_v54 }
 0x44b   : > { %v2487_v60 = vsel %vm900_vm10, %v10028_v56, %v10018_v29  ;;  %v2489_v63 = vsel %vm900_vm10, %v10029_v9, %v10023_v52  ;;  %8926 = vmatpush1.bf16.msk.msra.mxu1 %vm11804_vm15, %v8925_v53  ;;  %v11337_v52 = vld [vmem:[%s13859_s3 + $0x50] ss:$12 sps:$4 sm:$0xff]   ;;  %v12182_v53 = vpack.c.bf16 %v11969_v49, %v11969_v49 }
 0x44c   : > { %v8931_v0 = vpack.c.bf16 %v2489_v63, %v2487_v60  ;;  %v2544_v3 = vpop.permute.xlu0 %2543  ;;  %8929 = vmatprep.subr.msk.bf16.mxu1 %vm11793_vm14, %v8928_v59 }
 0x44d   : > { %v2552_v5 = vsel %vm1002_vm12, %v2542_v58, %v2544_v3  ;;  %2983 = vrot.lane.b32.xlu1 %v12182_v53, %s11415_s23  ;;  %2989 = vrot.lane.b32.xlu0 %v12182_v53, %s11415_s23 }
 0x44e   : > { %v2540_v4 = vpop.permute.xlu1 %2539 }
 0x44f   : > { %8932 = vmatpush1.bf16.msk.msra.mxu1 %vm11804_vm15, %v8931_v0  ;;  %v2551_v7 = vsel %vm1002_vm12, %v2540_v4, %v2542_v58  ;;  %v2841_v58 = vld [vmem:[#allocation2 + $0x8] sm:$0xff]  ;;  %v2842_v0 = vld [vmem:[#allocation2 + $0x10] sm:$0xff] }
 0x450   : > { %v2548_v6 = vpop.permute.xlu0 %2547  ;;  %2763 = vmatprep.subr.bf16.mxu1 %v2552_v5 }
 0x452   : > { %v2550_v8 = vpop.permute.xlu1 %2549 }
 0x453   : > { %2764 = vmatpush1.bf16.msra.mxu1 %v2551_v7  ;;  %v2554_v61 = vsel %vm1002_vm12, %v2548_v6, %v2550_v8 }
 0x454   : > { %v2546_v10 = vpop.permute.xlu0 %2545  ;;  %2765 = vmatprep.subr.bf16.mxu1 %v2554_v61  ;;  %v2844_v61 = vld [vmem:[#allocation2 + $0x30] sm:$0xff] }
 0x455   : > { %v2553_v11 = vsel %vm1002_vm12, %v2546_v10, %v2548_v6  ;;  %v2843_v6 = vld [vmem:[#allocation2 + $0x28] sm:$0xff] }
 0x456   : > { %v10032_v14 = vpop.permute.xlu1 %10031 }
 0x457   : > { %v10034_v18 = vunpack.i.h.bf16 %v10032_v14  ;;  %v10033_v19 = vunpack.i.l.bf16 %v10032_v14  ;;  %2766 = vmatpush1.bf16.msra.mxu1 %v2553_v11 }
 0x458   : > { %v10037_v20 = vpop.permute.xlu0 %10036 }
 0x459   : > { %v10039_v21 = vunpack.i.h.bf16 %v10037_v20  ;;  %v10038_v16 = vunpack.i.l.bf16 %v10037_v20  ;;  %v2612_v23 = vsel %vm1084_vm13, %v10033_v19, %v10034_v18 }
 0x45a   : > { %v10042_v22 = vpop.permute.xlu1 %10041  ;;  %2768 = vmatmul.mubr.bf16.vlgmr.msra.gmra.mrb[16].mxu1 %v11330_v15 }
 0x45b   : > { %v2614_v24 = vsel %vm1084_vm13, %v10038_v16, %v10039_v21  ;;  %v10044_v27 = vunpack.i.h.bf16 %v10042_v22  ;;  %v10043_v62 = vunpack.i.l.bf16 %v10042_v22  ;;  %2777 = vmatprep.mubr.bf16.mxu1 %v11333_v32 }
 0x45c   : > { %v10047_v30 = vpop.permute.xlu0 %10046  ;;  %v8934_v31 = vpack.c.bf16 %v2614_v24, %v2612_v23  ;;  %v2845_v23 = vld [vmem:[#allocation2 + $0x48] sm:$0xff] }
 0x45d   : > { %v2613_v34 = vsel %vm1084_vm13, %v10044_v27, %v10038_v16  ;;  %v2611_v28 = vsel %vm1084_vm13, %v10043_v62, %v10033_v19  ;;  %v10049_v35 = vunpack.i.h.bf16 %v10047_v30  ;;  %v10048_v36 = vunpack.i.l.bf16 %v10047_v30  ;;  %v2846_v30 = vld [vmem:[#allocation2 + $0x50] sm:$0xff] }
 0x45e   : > { %v8937_v37 = vpack.c.bf16 %v2613_v34, %v2611_v28  ;;  %v10052_v38 = vpop.permute.xlu1 %10051  ;;  %8935 = vmatprep.subr.msk.bf16.mxu1 %vm11828_vm1, %v8934_v31 }
 0x45f   : > { %v10054_v51 = vunpack.i.h.bf16 %v10052_v38  ;;  %v10053_v1 = vunpack.i.l.bf16 %v10052_v38  ;;  %v2616_v57 = vsel %vm1084_vm13, %v10048_v36, %v10049_v35  ;;  %v2847_v35 = vld [vmem:[#allocation2 + $0x68] sm:$0xff]  ;;  %v2848_v38 = vld [vmem:[#allocation2 + $0x70] sm:$0xff] }
 0x460   : > { %v10057_v43 = vpop.permute.xlu0 %10056  ;;  %8938 = vmatpush1.bf16.msk.msra.mxu1 %vm11840_vm4, %v8937_v37 }
 0x461   : > { %v2618_v26 = vsel %vm1084_vm13, %v10053_v1, %v10054_v51  ;;  %v10059_v44 = vunpack.i.h.bf16 %v10057_v43  ;;  %v10058_v39 = vunpack.i.l.bf16 %v10057_v43 }
 0x462   : > { %2778 = vmatmul.mubr.bf16.gmra.mrb[20].mxu1 %v11335_v40  ;;  %v8940_v46 = vpack.c.bf16 %v2618_v26, %v2616_v57 }
 0x463   : > { %v2615_v29 = vsel %vm1084_vm13, %v10058_v39, %v10048_v36  ;;  %v2617_v47 = vsel %vm1084_vm13, %v10059_v44, %v10053_v1  ;;  %2820 = vmatprep.mubr.bf16.mxu1 %v11402_v12 }
 0x464   : > { %v8943_v48 = vpack.c.bf16 %v2617_v47, %v2615_v29  ;;  %8941 = vmatprep.subr.msk.bf16.mxu1 %vm11828_vm1, %v8940_v46  ;;  %v8684_v47 = vld [vmem:[%s13860_s4 + $0x40] sm:$0xff] }
 0x466   : > { %8944 = vmatpush1.bf16.msk.msra.mxu1 %vm11840_vm4, %v8943_v48  ;;  %v8685_v48 = vld [vmem:[%s13860_s4 + $0x48] sm:$0xff] }
 0x46a   : > { %8674 = vmatmul.mubr.msk.bf16.vlgmr.msra.gmra.mrb[16].mxu1 %vm1908_vm3, %v11336_v50  ;;  %v8686_v50 = vld [vmem:[%s13860_s4 + $0x50] sm:$0xff] }
 0x46b   : > { %2830 = vmatprep.mubr.bf16.mxu1 %v11402_v12 }
 0x46f   : > { %v2682_v33 = vpop.permute.xlu1 %2681 }
 0x471   : > { %v2687_v56 = vpop.permute.xlu0 %2686 }
 0x472   : > { %8675 = vmatmul.mubr.msk.bf16.gmra.mrb[20].mxu1 %vm1908_vm3, %v11337_v52  ;;  %v8687_v52 = vld [vmem:[%s13860_s4 + $0x58] sm:$0xff] }
 0x473   : > { %v2692_v18 = vpop.permute.xlu1 %2691 }
 0x475   : > { %v2697_v22 = vpop.permute.xlu0 %2696 }
 0x53d   : > { %v2822_v54 = vpop.f32.mrb[16].mxu1 }
 0x53e   : > { %v9465_v55 = vadd.f32 %v2822_v54, %v2682_v33  ;;  %v2824_v9 = vpop.f32.mrb[17].mxu1 }
 0x53f   : > { %v9466_v59 = vadd.f32 %v2824_v9, %v2682_v33  ;;  %v2826_v60 = vpop.f32.mrb[18].mxu1  ;;  %v10067_v33 = vpop.permute.xlu0 %10066 }
 0x540   : > { %v2849_v63 = vadd.f32 %v9465_v55, %v2841_v58  ;;  %v9467_v3 = vadd.f32 %v2826_v60, %v2687_v56  ;;  %v2828_v4 = vpop.f32.mrb[19].mxu1 }
 0x541   : > { %v2850_v5 = vadd.f32 %v9466_v59, %v2842_v0  ;;  %v9468_v7 = vadd.f32 %v2828_v4, %v2687_v56 }
 0x542   : > { %2857 = vst [vmem:[#allocation2 + $0x8] sm:$0xff] %v2849_v63  ;;  %v2851_v8 = vadd.f32 %v9467_v3, %v2843_v6 }
 0x543   : > { %2858 = vst [vmem:[#allocation2 + $0x10] sm:$0xff] %v2850_v5  ;;  %v2852_v10 = vadd.f32 %v9468_v7, %v2844_v61  ;;  %v10070_v11 = vpack.i.bf16 %v2850_v5, %v2849_v63  ;;  %v10150_v44 = vpack.i.bf16 %v11969_v49, %v2850_v5  ;;  %v12286_v55 = vpop.permute.xlu0 %2989 }
 0x544   : > { %2859 = vst [vmem:[#allocation2 + $0x28] sm:$0xff] %v2851_v8  ;;  %v12188_v14 = vpack.c.bf16 %v2851_v8, %v2849_v63  ;;  %v12190_v15 = vpack.i.bf16 %v2851_v8, %v2849_v63 }
 0x545   : > { %2860 = vst [vmem:[#allocation2 + $0x30] sm:$0xff] %v2852_v10  ;;  %v2832_v19 = vpop.f32.mrb[20].mxu1  ;;  %10071 = vrot.lane.b32.xlu1 %v10070_v11, %s11403_s30  ;;  %v10080_v32 = vpack.i.bf16 %v2852_v10, %v2851_v8  ;;  %v12193_v20 = vpack.c.bf16 %v2852_v10, %v2850_v5  ;;  %v10155_v39 = vpack.i.bf16 %v11969_v49, %v2852_v10 }
 0x546   : > { %v9469_v21 = vadd.f32 %v2832_v19, %v2692_v18  ;;  %v2834_v16 = vpop.f32.mrb[21].mxu1 }
 0x547   : > { %v9470_v24 = vadd.f32 %v2834_v16, %v2692_v18  ;;  %v2836_v27 = vpop.f32.mrb[22].mxu1  ;;  %10081 = vrot.lane.b32.xlu0 %v10080_v32, %s11403_s30 }
 0x548   : > { %v2853_v62 = vadd.f32 %v9469_v21, %v2845_v23  ;;  %v9471_v31 = vadd.f32 %v2836_v27, %v2697_v22  ;;  %v2838_v34 = vpop.f32.mrb[23].mxu1  ;;  %v10068_v23 = vunpack.i.l.bf16 %v10067_v33 }
 0x549   : > { %v2854_v28 = vadd.f32 %v9470_v24, %v2846_v30  ;;  %v9472_v36 = vadd.f32 %v2838_v34, %v2697_v22  ;;  %10076 = vrot.lane.b32.xlu1 %v10070_v11, %s11404_s8  ;;  %v10069_v22 = vunpack.i.h.bf16 %v10067_v33 }
 0x54a   : > { %2861 = vst [vmem:[#allocation2 + $0x48] sm:$0xff] %v2853_v62  ;;  %v2855_v37 = vadd.f32 %v9471_v31, %v2847_v35 }
 0x54b   : > { %2862 = vst [vmem:[#allocation2 + $0x50] sm:$0xff] %v2854_v28  ;;  %v2856_v40 = vadd.f32 %v9472_v36, %v2848_v38  ;;  %10086 = vrot.lane.b32.xlu0 %v10080_v32, %s11404_s8  ;;  %v10090_v51 = vpack.i.bf16 %v2854_v28, %v2853_v62  ;;  %v10165_v46 = vpack.i.bf16 %v11969_v49, %v2854_v28 }
 0x54c   : > { %2863 = vst [vmem:[#allocation2 + $0x68] sm:$0xff] %v2855_v37  ;;  %v12198_v1 = vpack.c.bf16 %v2855_v37, %v2853_v62  ;;  %v10175_v43 = vpack.i.bf16 %v2855_v37, %v2853_v62 }
 0x54d   : > { %2864 = vst [vmem:[#allocation2 + $0x70] sm:$0xff] %v2856_v40  ;;  %2985 = vrot.lane.b32.xlu1 %v12188_v14, %s11415_s23  ;;  %v10095_v57 = vpack.i.bf16 %v2856_v40, %v2855_v37  ;;  %v12202_v26 = vpack.c.bf16 %v2856_v40, %v2854_v28  ;;  %v10170_v29 = vpack.i.bf16 %v11969_v49, %v2856_v40  ;;  %v11340_v49 = vld [vmem:[%s13859_s3 + $0x64] ss:$12 sps:$4 sm:$0xff]  }
 0x54e   : > { %3595 = vmatprep.mubr.bf16.mxu0 %v11340_v49 }
 0x54f   : > { %2987 = vrot.lane.b32.xlu0 %v12193_v20, %s11415_s23 }
 0x551   : > { %10096 = vrot.lane.b32.xlu1 %v10095_v57, %s11403_s30 }
 0x553   : > { %10091 = vrot.lane.b32.xlu0 %v10090_v51, %s11403_s30 }
 0x555   : > { %10101 = vrot.lane.b32.xlu1 %v11973_v13, %s11404_s8 }
 0x557   : > { %10106 = vrot.lane.b32.xlu0 %v10090_v51, %s11404_s8 }
 0x559   : > { %10111 = vrot.lane.b32.xlu1 %v10095_v57, %s11404_s8 }
 0x55b   : > { %2991 = vrot.lane.b32.xlu0 %v12198_v1, %s11415_s23 }
 0x55d   : > { %2993 = vrot.lane.b32.xlu1 %v12202_v26, %s11415_s23 }
 0x55f   : > { %10116 = vrot.lane.b32.xlu0 %v11973_v13, %s11404_s8 }
 0x561   : > { %10121 = vrot.lane.b32.xlu1 %v10070_v11, %s11406_s14 }
 0x563   : > { %10126 = vrot.lane.b32.xlu0 %v10080_v32, %s11406_s14 }
 0x565   : > { %10131 = vrot.lane.b32.xlu1 %v11973_v13, %s11406_s14 }
 0x567   : > { %10136 = vrot.lane.b32.xlu0 %v10090_v51, %s11406_s14 }
 0x569   : > { %10141 = vrot.lane.b32.xlu1 %v10095_v57, %s11406_s14 }
 0x56b   : > { %10146 = vrot.lane.b32.xlu0 %v11973_v13, %s11406_s14 }
 0x56d   : > { %10151 = vrot.lane.b32.xlu1 %v10150_v44, %s11409_s17 }
 0x56f   : > { %10156 = vrot.lane.b32.xlu0 %v10155_v39, %s11409_s17 }
 0x571   : > { %10161 = vrot.lane.b32.xlu1 %v12190_v15, %s11409_s17 }
 0x573   : > { %10166 = vrot.lane.b32.xlu0 %v10165_v46, %s11409_s17 }
 0x575   : > { %10171 = vrot.lane.b32.xlu1 %v10170_v29, %s11409_s17 }
 0x577   : > { %10176 = vrot.lane.b32.xlu0 %v10175_v43, %s11409_s17 }
 0x579   : > { %10181 = vrot.lane.b32.xlu1 %v10150_v44, %s11411_s19 }
 0x57b   : > { %10186 = vrot.lane.b32.xlu0 %v10155_v39, %s11411_s19 }
 0x57d   : > { %10191 = vrot.lane.b32.xlu1 %v12190_v15, %s11411_s19 }
 0x57f   : > { %10196 = vrot.lane.b32.xlu0 %v10165_v46, %s11411_s19 }
 0x581   : > { %10201 = vrot.lane.b32.xlu1 %v10170_v29, %s11411_s19 }
 0x583   : > { %10206 = vrot.lane.b32.xlu0 %v10175_v43, %s11411_s19 }
 0x585   : > { %3369 = vrot.lane.b32.xlu1 %v12193_v20, %s11408_s16 }
 0x587   : > { %3371 = vrot.lane.b32.xlu0 %v12182_v53, %s11408_s16 }
 0x589   : > { %3367 = vrot.lane.b32.xlu1 %v12188_v14, %s11408_s16 }
 0x58b   : > { %3375 = vrot.lane.b32.xlu0 %v12202_v26, %s11408_s16 }
 0x58d   : > { %3377 = vrot.lane.b32.xlu1 %v12182_v53, %s11408_s16  ;;  %v10062_v53 = vpop.permute.xlu1 %10061 }
 0x58e   : > { %v10064_v60 = vunpack.i.h.bf16 %v10062_v53  ;;  %v10063_v63 = vunpack.i.l.bf16 %v10062_v53 }
 0x58f   : > { %3373 = vrot.lane.b32.xlu0 %v12198_v1, %s11408_s16 }
 0x591   : > { %10211 = vrot.lane.b32.xlu1 %v10150_v44, %s11414_s22  ;;  %v2984_v54 = vpop.permute.xlu1 %2983 }
 0x593   : > { %10216 = vrot.lane.b32.xlu0 %v10155_v39, %s11414_s22 }
 0x595   : > { %10221 = vrot.lane.b32.xlu1 %v12190_v15, %s11414_s22 }
 0x597   : > { %10226 = vrot.lane.b32.xlu0 %v10165_v46, %s11414_s22 }
 0x599   : > { %10231 = vrot.lane.b32.xlu1 %v10170_v29, %s11414_s22 }
 0x59b   : > { %10236 = vrot.lane.b32.xlu0 %v10175_v43, %s11414_s22 }
 0x59d   : > { %3509 = vperm.xlu1 %9699, %v8684_v47  }
 0x59f   : > { %3514 = vperm.xlu0 %9698, %v8685_v48  }
 0x5a1   : > { %3519 = vperm.xlu1 %9699, %v8686_v50  }
 0x5a3   : > { %3524 = vperm.xlu0 %9698, %v8687_v52  }
 0x5a5   : > { %10241 = vrot.lane.b32.xlu1 %v11973_v13, %s11403_s30 }
 0x5a7   : > { %10246 = vrot.lane.b32.xlu0 %v11973_v13, %s11403_s30 }
 0x5a9   : > { %3803 = vrot.lane.b32.xlu1 %v11418_v17, %s11415_s23 }
 0x5ab   : > { %3809 = vrot.lane.b32.xlu0 %v11418_v17, %s11415_s23 }
 0x5b7   : > { %v10072_v9 = vpop.permute.xlu1 %10071 }
 0x5b8   : > { %v10074_v56 = vunpack.i.h.bf16 %v10072_v9  ;;  %v10073_v58 = vunpack.i.l.bf16 %v10072_v9 }
 0x5b9   : > { %v10082_v59 = vpop.permute.xlu0 %10081 }
 0x5ba   : > { %v10084_v0 = vunpack.i.h.bf16 %v10082_v59  ;;  %v10083_v3 = vunpack.i.l.bf16 %v10082_v59  ;;  %v2927_v5 = vsel %vm357_vm0, %v10063_v63, %v10073_v58  ;;  %v2928_v6 = vsel %vm357_vm0, %v10073_v58, %v10074_v56 }
 0x5bb   : > { %v10077_v4 = vpop.permute.xlu1 %10076 }
 0x5bc   : > { %v2929_v7 = vsel %vm357_vm0, %v10064_v60, %v10083_v3  ;;  %v2930_v8 = vsel %vm357_vm0, %v10083_v3, %v10084_v0  ;;  %v10079_v57 = vunpack.i.h.bf16 %v10077_v4  ;;  %v10078_v44 = vunpack.i.l.bf16 %v10077_v4 }
 0x5bd   : > { %v8949_v61 = vpack.c.bf16 %v2929_v7, %v2927_v5  ;;  %v10087_v10 = vpop.permute.xlu0 %10086  ;;  %v8946_v11 = vpack.c.bf16 %v2930_v8, %v2928_v6 }
 0x5be   : > { %v10089_v40 = vunpack.i.h.bf16 %v10087_v10  ;;  %v10088_v51 = vunpack.i.l.bf16 %v10087_v10  ;;  %v3056_v33 = vsel %vm541_vm2, %v10078_v44, %v10079_v57 }
 0x5bf   : > { %v2986_v15 = vpop.permute.xlu1 %2985  ;;  %8947 = vmatprep.subr.msk.bf16.mxu0 %vm11793_vm14, %v8946_v11 }
 0x5c0   : > { %8950 = vmatpush1.bf16.msk.msra.mxu0 %vm11804_vm15, %v8949_v61  ;;  %v2995_v47 = vsel %vm396_vm11, %v2984_v54, %v2986_v15  ;;  %v3058_v48 = vsel %vm541_vm2, %v10088_v51, %v10089_v40 }
 0x5c1   : > { %v2988_v18 = vpop.permute.xlu0 %2987  ;;  %v8958_v4 = vpack.c.bf16 %v3058_v48, %v3056_v33 }
 0x5c2   : > { %v2996_v43 = vsel %vm396_vm11, %v2986_v15, %v2988_v18 }
 0x5c3   : > { %v10097_v19 = vpop.permute.xlu1 %10096 }
 0x5c4   : > { %v10099_v32 = vunpack.i.h.bf16 %v10097_v19  ;;  %v10098_v21 = vunpack.i.l.bf16 %v10097_v19 }
 0x5c5   : > { %v10092_v16 = vpop.permute.xlu0 %10091 }
 0x5c6   : > { %v10094_v24 = vunpack.i.h.bf16 %v10092_v16  ;;  %v10093_v27 = vunpack.i.l.bf16 %v10092_v16  ;;  %v2933_v30 = vsel %vm357_vm0, %v10069_v22, %v10098_v21  ;;  %v2934_v31 = vsel %vm357_vm0, %v10098_v21, %v10099_v32 }
 0x5c7   : > { %v10102_v62 = vpop.permute.xlu1 %10101 }
 0x5c8   : > { %v2931_v34 = vsel %vm357_vm0, %v10068_v23, %v10093_v27  ;;  %v2932_v28 = vsel %vm357_vm0, %v10093_v27, %v10094_v24  ;;  %v10104_v46 = vunpack.i.h.bf16 %v10102_v62  ;;  %v10103_v29 = vunpack.i.l.bf16 %v10102_v62 }
 0x5c9   : > { %v8955_v35 = vpack.c.bf16 %v2933_v30, %v2931_v34  ;;  %v10107_v36 = vpop.permute.xlu0 %10106  ;;  %v8952_v37 = vpack.c.bf16 %v2934_v31, %v2932_v28 }
 0x5ca   : > { %v10109_v9 = vunpack.i.h.bf16 %v10107_v36  ;;  %v10108_v56 = vunpack.i.l.bf16 %v10107_v36  ;;  %v3057_v59 = vsel %vm541_vm2, %v10104_v46, %v10088_v51  ;;  %v3055_v60 = vsel %vm541_vm2, %v10103_v29, %v10078_v44 }
 0x5cb   : > { %v10112_v38 = vpop.permute.xlu1 %10111  ;;  %8953 = vmatprep.subr.msk.bf16.mxu0 %vm11793_vm14, %v8952_v37  ;;  %v8961_v6 = vpack.c.bf16 %v3057_v59, %v3055_v60 }
 0x5cc   : > { %8956 = vmatpush1.bf16.msk.msra.mxu0 %vm11804_vm15, %v8955_v35  ;;  %v10114_v50 = vunpack.i.h.bf16 %v10112_v38  ;;  %v10113_v52 = vunpack.i.l.bf16 %v10112_v38  ;;  %v3060_v7 = vsel %vm541_vm2, %v10108_v56, %v10109_v9 }
 0x5cd   : > { %v2992_v39 = vpop.permute.xlu0 %2991  ;;  %3567 = vmatprep.subr.bf16.mxu0 %v2996_v43 }
 0x5ce   : > { %v2997_v3 = vsel %vm396_vm11, %v12286_v55, %v2992_v39  ;;  %v3062_v5 = vsel %vm541_vm2, %v10113_v52, %v10114_v50 }
 0x5cf   : > { %v2994_v49 = vpop.permute.xlu1 %2993  ;;  %v8964_v32 = vpack.c.bf16 %v3062_v5, %v3060_v7 }
 0x5d0   : > { %3568 = vmatpush1.bf16.msra.mxu0 %v2995_v47  ;;  %v2998_v53 = vsel %vm396_vm11, %v2992_v39, %v2994_v49 }
 0x5d1   : > { %v10117_v58 = vpop.permute.xlu0 %10116  ;;  %3569 = vmatprep.subr.bf16.mxu0 %v2998_v53 }
 0x5d2   : > { %v10119_v63 = vunpack.i.h.bf16 %v10117_v58  ;;  %v10118_v0 = vunpack.i.l.bf16 %v10117_v58 }
 0x5d3   : > { %v10122_v54 = vpop.permute.xlu1 %10121 }
 0x5d4   : > { %3570 = vmatpush1.bf16.msra.mxu0 %v2997_v3  ;;  %v10124_v8 = vunpack.i.h.bf16 %v10122_v54  ;;  %v10123_v61 = vunpack.i.l.bf16 %v10122_v54  ;;  %v3059_v11 = vsel %vm541_vm2, %v10118_v0, %v10108_v56  ;;  %v3061_v15 = vsel %vm541_vm2, %v10119_v63, %v10113_v52 }
 0x5d5   : > { %v10127_v10 = vpop.permute.xlu0 %10126  ;;  %8959 = vmatprep.subr.msk.bf16.mxu0 %vm11828_vm1, %v8958_v4  ;;  %v8967_v23 = vpack.c.bf16 %v3061_v15, %v3059_v11 }
 0x5d6   : > { %v10129_v18 = vunpack.i.h.bf16 %v10127_v10  ;;  %v10128_v19 = vunpack.i.l.bf16 %v10127_v10  ;;  %v3136_v24 = vsel %vm633_vm8, %v10123_v61, %v10124_v8 }
 0x5d7   : > { %v10132_v55 = vpop.permute.xlu1 %10131 }
 0x5d8   : > { %v3138_v21 = vsel %vm633_vm8, %v10128_v19, %v10129_v18  ;;  %v10134_v16 = vunpack.i.h.bf16 %v10132_v55  ;;  %v10133_v22 = vunpack.i.l.bf16 %v10132_v55  ;;  %8962 = vmatpush1.bf16.msk.msra.mxu0 %vm11840_vm4, %v8961_v6 }
 0x5d9   : > { %v10137_v27 = vpop.permute.xlu0 %10136  ;;  %8965 = vmatprep.subr.msk.bf16.mxu0 %vm11828_vm1, %v8964_v32  ;;  %v8970_v35 = vpack.c.bf16 %v3138_v21, %v3136_v24 }
 0x5da   : > { %v3137_v62 = vsel %vm633_vm8, %v10134_v16, %v10128_v19  ;;  %v3135_v30 = vsel %vm633_vm8, %v10133_v22, %v10123_v61  ;;  %v10139_v31 = vunpack.i.h.bf16 %v10137_v27  ;;  %v10138_v34 = vunpack.i.l.bf16 %v10137_v27 }
 0x5db   : > { %v10142_v28 = vpop.permute.xlu1 %10141  ;;  %v8973_v38 = vpack.c.bf16 %v3137_v62, %v3135_v30 }
 0x5dc   : > { %v10144_v36 = vunpack.i.h.bf16 %v10142_v28  ;;  %v10143_v37 = vunpack.i.l.bf16 %v10142_v28  ;;  %8968 = vmatpush1.bf16.msk.msra.mxu0 %vm11840_vm4, %v8967_v23  ;;  %v3140_v51 = vsel %vm633_vm8, %v10138_v34, %v10139_v31 }
 0x5dd   : > { %v10147_v40 = vpop.permute.xlu0 %10146  ;;  %8971 = vmatprep.subr.msk.bf16.mxu0 %vm11793_vm14, %v8970_v35 }
 0x5de   : > { %v3142_v43 = vsel %vm633_vm8, %v10143_v37, %v10144_v36  ;;  %v10149_v57 = vunpack.i.h.bf16 %v10147_v40  ;;  %v10148_v44 = vunpack.i.l.bf16 %v10147_v40 }
 0x5df   : > { %v10152_v39 = vpop.permute.xlu1 %10151  ;;  %v8976_v46 = vpack.c.bf16 %v3142_v43, %v3140_v51 }
 0x5e0   : > { %v3139_v29 = vsel %vm633_vm8, %v10148_v44, %v10138_v34  ;;  %v3141_v49 = vsel %vm633_vm8, %v10149_v57, %v10143_v37  ;;  %8974 = vmatpush1.bf16.msk.msra.mxu0 %vm11804_vm15, %v8973_v38  ;;  %v10154_v33 = vunpack.i.h.bf16 %v10152_v39  ;;  %v10153_v9 = vunpack.i.l.bf16 %v10152_v39 }
 0x5e1   : > { %v8979_v47 = vpack.c.bf16 %v3141_v49, %v3139_v29  ;;  %v10157_v48 = vpop.permute.xlu0 %10156  ;;  %8977 = vmatprep.subr.msk.bf16.mxu0 %vm11793_vm14, %v8976_v46 }
 0x5e2   : > { %v10159_v52 = vunpack.i.h.bf16 %v10157_v48  ;;  %v10158_v53 = vunpack.i.l.bf16 %v10157_v48  ;;  %v3232_v3 = vsel %vm808_vm9, %v10153_v9, %v10154_v33 }
 0x5e3   : > { %v10162_v50 = vpop.permute.xlu1 %10161 }
 0x5e4   : > { %8980 = vmatpush1.bf16.msk.msra.mxu0 %vm11804_vm15, %v8979_v47  ;;  %v10164_v58 = vunpack.i.h.bf16 %v10162_v50  ;;  %v10163_v59 = vunpack.i.l.bf16 %v10162_v50  ;;  %v3234_v63 = vsel %vm808_vm9, %v10158_v53, %v10159_v52 }
 0x5e5   : > { %v10167_v56 = vpop.permute.xlu0 %10166  ;;  %3579 = vmatprep.subr.bf16.mxu0 %v12193_v20  ;;  %v8982_v11 = vpack.c.bf16 %v3234_v63, %v3232_v3 }
 0x5e6   : > { %v10169_v4 = vunpack.i.h.bf16 %v10167_v56  ;;  %v10168_v5 = vunpack.i.l.bf16 %v10167_v56  ;;  %v3233_v7 = vsel %vm808_vm9, %v10164_v58, %v10158_v53  ;;  %v3231_v20 = vsel %vm808_vm9, %v10163_v59, %v10153_v9 }
 0x5e7   : > { %v10172_v60 = vpop.permute.xlu1 %10171 }
 0x5e8   : > { %v10174_v0 = vunpack.i.h.bf16 %v10172_v60  ;;  %v10173_v54 = vunpack.i.l.bf16 %v10172_v60  ;;  %3580 = vmatpush1.bf16.msra.mxu0 %v12188_v14  ;;  %v8985_v14 = vpack.c.bf16 %v3233_v7, %v3231_v20  ;;  %v3236_v18 = vsel %vm808_vm9, %v10168_v5, %v10169_v4  ;;  %v11338_v4 = vld [vmem:[%s13859_s3 + $0x60] ss:$12 sps:$4 sm:$0xff]   ;;  %v11341_v7 = vld [vmem:[%s13859_s3 + $0x7c] ss:$12 sps:$4 sm:$0xff]  }
 0x5e9   : > { %v10177_v6 = vpop.permute.xlu0 %10176  ;;  %3581 = vmatprep.subr.bf16.mxu0 %v12202_v26 }
 0x5ea   : > { %v10179_v8 = vunpack.i.h.bf16 %v10177_v6  ;;  %v10178_v61 = vunpack.i.l.bf16 %v10177_v6  ;;  %v3238_v15 = vsel %vm808_vm9, %v10173_v54, %v10174_v0 }
 0x5eb   : > { %v10182_v10 = vpop.permute.xlu1 %10181  ;;  %v8988_v24 = vpack.c.bf16 %v3238_v15, %v3236_v18 }
 0x5ec   : > { %3582 = vmatpush1.bf16.msra.mxu0 %v12198_v1  ;;  %v10184_v19 = vunpack.i.h.bf16 %v10182_v10  ;;  %v10183_v55 = vunpack.i.l.bf16 %v10182_v10  ;;  %v3235_v26 = vsel %vm808_vm9, %v10178_v61, %v10168_v5  ;;  %v3237_v21 = vsel %vm808_vm9, %v10179_v8, %v10173_v54 }
 0x5ed   : > { %v10187_v32 = vpop.permute.xlu0 %10186  ;;  %8983 = vmatprep.subr.msk.bf16.mxu0 %vm11828_vm1, %v8982_v11  ;;  %v8991_v30 = vpack.c.bf16 %v3237_v21, %v3235_v26 }
 0x5ee   : > { %v10189_v16 = vunpack.i.h.bf16 %v10187_v32  ;;  %v10188_v22 = vunpack.i.l.bf16 %v10187_v32  ;;  %v3312_v31 = vsel %vm900_vm10, %v10183_v55, %v10184_v19 }
 0x5ef   : > { %v10192_v23 = vpop.permute.xlu1 %10191 }
 0x5f0   : > { %v3314_v27 = vsel %vm900_vm10, %v10188_v22, %v10189_v16  ;;  %v10194_v1 = vunpack.i.h.bf16 %v10192_v23  ;;  %v10193_v62 = vunpack.i.l.bf16 %v10192_v23  ;;  %8986 = vmatpush1.bf16.msk.msra.mxu0 %vm11840_vm4, %v8985_v14 }
 0x5f1   : > { %v10197_v34 = vpop.permute.xlu0 %10196  ;;  %8989 = vmatprep.subr.msk.bf16.mxu0 %vm11828_vm1, %v8988_v24  ;;  %v8994_v40 = vpack.c.bf16 %v3314_v27, %v3312_v31  ;;  %v11343_v24 = vld [vmem:[%s13859_s3 + $0x78] ss:$12 sps:$4 sm:$0xff]  }
 0x5f2   : > { %v3313_v28 = vsel %vm900_vm10, %v10194_v1, %v10188_v22  ;;  %v3311_v35 = vsel %vm900_vm10, %v10193_v62, %v10183_v55  ;;  %v10199_v36 = vunpack.i.h.bf16 %v10197_v34  ;;  %v10198_v37 = vunpack.i.l.bf16 %v10197_v34 }
 0x5f3   : > { %v10202_v38 = vpop.permute.xlu1 %10201  ;;  %v8997_v57 = vpack.c.bf16 %v3313_v28, %v3311_v35 }
 0x5f4   : > { %v10204_v51 = vunpack.i.h.bf16 %v10202_v38  ;;  %v10203_v43 = vunpack.i.l.bf16 %v10202_v38  ;;  %8992 = vmatpush1.bf16.msk.msra.mxu0 %vm11840_vm4, %v8991_v30  ;;  %v3316_v39 = vsel %vm900_vm10, %v10198_v37, %v10199_v36 }
 0x5f5   : > { %v10207_v44 = vpop.permute.xlu0 %10206  ;;  %8995 = vmatprep.subr.msk.bf16.mxu0 %vm11793_vm14, %v8994_v40  ;;  %v11344_v40 = vld [vmem:[%s13859_s3 + $0x68] ss:$12 sps:$4 sm:$0xff]  }
 0x5f6   : > { %v3318_v46 = vsel %vm900_vm10, %v10203_v43, %v10204_v51  ;;  %v10209_v29 = vunpack.i.h.bf16 %v10207_v44  ;;  %v10208_v49 = vunpack.i.l.bf16 %v10207_v44  ;;  %v11345_v51 = vld [vmem:[%s13859_s3 + $0x80] ss:$12 sps:$4 sm:$0xff]  }
 0x5f7   : > { %v3370_v47 = vpop.permute.xlu1 %3369  ;;  %v9000_v48 = vpack.c.bf16 %v3318_v46, %v3316_v39 }
 0x5f8   : > { %v3315_v50 = vsel %vm900_vm10, %v10208_v49, %v10198_v37  ;;  %v3317_v52 = vsel %vm900_vm10, %v10209_v29, %v10203_v43  ;;  %8998 = vmatpush1.bf16.msk.msra.mxu0 %vm11804_vm15, %v8997_v57 }
 0x5f9   : > { %v9003_v53 = vpack.c.bf16 %v3317_v52, %v3315_v50  ;;  %v3372_v33 = vpop.permute.xlu0 %3371  ;;  %9001 = vmatprep.subr.msk.bf16.mxu0 %vm11793_vm14, %v9000_v48 }
 0x5fa   : > { %v3380_v56 = vsel %vm1002_vm12, %v3370_v47, %v3372_v33 }
 0x5fb   : > { %v3368_v9 = vpop.permute.xlu1 %3367 }
 0x5fc   : > { %9004 = vmatpush1.bf16.msk.msra.mxu0 %vm11804_vm15, %v9003_v53  ;;  %v3379_v59 = vsel %vm1002_vm12, %v3368_v9, %v3370_v47 }
 0x5fd   : > { %v3376_v58 = vpop.permute.xlu0 %3375  ;;  %3591 = vmatprep.subr.bf16.mxu0 %v3380_v56 }
 0x5ff   : > { %v3378_v60 = vpop.permute.xlu1 %3377 }
 0x600   : > { %3592 = vmatpush1.bf16.msra.mxu0 %v3379_v59  ;;  %v3382_v63 = vsel %vm1002_vm12, %v3376_v58, %v3378_v60 }
 0x601   : > { %v3374_v0 = vpop.permute.xlu0 %3373  ;;  %3593 = vmatprep.subr.bf16.mxu0 %v3382_v63 }
 0x602   : > { %v3381_v54 = vsel %vm1002_vm12, %v3374_v0, %v3376_v58 }
 0x603   : > { %v10212_v3 = vpop.permute.xlu1 %10211 }
 0x604   : > { %v10214_v5 = vunpack.i.h.bf16 %v10212_v3  ;;  %v10213_v6 = vunpack.i.l.bf16 %v10212_v3  ;;  %3594 = vmatpush1.bf16.msra.mxu0 %v3381_v54 }
 0x605   : > { %v10217_v20 = vpop.permute.xlu0 %10216 }
 0x606   : > { %v10219_v8 = vunpack.i.h.bf16 %v10217_v20  ;;  %v10218_v61 = vunpack.i.l.bf16 %v10217_v20  ;;  %v3440_v11 = vsel %vm1084_vm13, %v10213_v6, %v10214_v5 }
 0x607   : > { %v10222_v10 = vpop.permute.xlu1 %10221  ;;  %3596 = vmatmul.mubr.bf16.vlgmr.msra.gmra.mrb[8].mxu0 %v11338_v4 }
 0x608   : > { %v3442_v15 = vsel %vm1084_vm13, %v10218_v61, %v10219_v8  ;;  %v10224_v14 = vunpack.i.h.bf16 %v10222_v10  ;;  %v10223_v18 = vunpack.i.l.bf16 %v10222_v10  ;;  %3605 = vmatprep.mubr.bf16.mxu0 %v11341_v7 }
 0x609   : > { %v10227_v19 = vpop.permute.xlu0 %10226  ;;  %v9006_v55 = vpack.c.bf16 %v3442_v15, %v3440_v11 }
 0x60a   : > { %v3441_v32 = vsel %vm1084_vm13, %v10224_v14, %v10218_v61  ;;  %v3439_v26 = vsel %vm1084_vm13, %v10223_v18, %v10213_v6  ;;  %v10229_v21 = vunpack.i.h.bf16 %v10227_v19  ;;  %v10228_v16 = vunpack.i.l.bf16 %v10227_v19 }
 0x60b   : > { %v9009_v22 = vpack.c.bf16 %v3441_v32, %v3439_v26  ;;  %v10232_v23 = vpop.permute.xlu1 %10231  ;;  %9007 = vmatprep.subr.msk.bf16.mxu0 %vm11828_vm1, %v9006_v55 }
 0x60c   : > { %v10234_v27 = vunpack.i.h.bf16 %v10232_v23  ;;  %v10233_v1 = vunpack.i.l.bf16 %v10232_v23  ;;  %v3444_v30 = vsel %vm1084_vm13, %v10228_v16, %v10229_v21  ;;  %v12454_v21 = vld [vmem:[#allocation2] sm:$0xff] }
 0x60d   : > { %v10237_v62 = vpop.permute.xlu0 %10236  ;;  %9010 = vmatpush1.bf16.msk.msra.mxu0 %vm11840_vm4, %v9009_v22 }
 0x60e   : > { %v3446_v31 = vsel %vm1084_vm13, %v10233_v1, %v10234_v27  ;;  %v10239_v34 = vunpack.i.h.bf16 %v10237_v62  ;;  %v10238_v28 = vunpack.i.l.bf16 %v10237_v62  ;;  %v11348_v27 = vld [vmem:[%s13859_s3 + $0x94] ss:$12 sps:$4 sm:$0xff]   ;;  %v8705_v62 = vld [vmem:[%s13860_s4 + $0x68] sm:$0xff] }
 0x60f   : > { %3606 = vmatmul.mubr.bf16.gmra.mrb[12].mxu0 %v11343_v24  ;;  %v9012_v35 = vpack.c.bf16 %v3446_v31, %v3444_v30  ;;  %4415 = vmatprep.mubr.bf16.mxu1 %v11348_v27  ;;  %v8706_v30 = vld [vmem:[%s13860_s4 + $0x70] sm:$0xff]  ;;  %v8707_v31 = vld [vmem:[%s13860_s4 + $0x78] sm:$0xff] }
 0x610   : > { %v3443_v36 = vsel %vm1084_vm13, %v10238_v28, %v10228_v16  ;;  %v3445_v37 = vsel %vm1084_vm13, %v10239_v34, %v10233_v1  ;;  %3648 = vmatprep.mubr.bf16.mxu0 %v11402_v12  ;;  %v8704_v1 = vld [vmem:[%s13860_s4 + $0x60] sm:$0xff] }
 0x611   : > { %v9015_v38 = vpack.c.bf16 %v3445_v37, %v3443_v36  ;;  %9013 = vmatprep.subr.msk.bf16.mxu0 %vm11828_vm1, %v9012_v35 }
 0x613   : > { %9016 = vmatpush1.bf16.msk.msra.mxu0 %vm11840_vm4, %v9015_v38 }
 0x617   : > { %8694 = vmatmul.mubr.msk.bf16.vlgmr.msra.gmra.mrb[8].mxu0 %vm1908_vm3, %v11344_v40 }
 0x618   : > { %3658 = vmatprep.mubr.bf16.mxu0 %v11402_v12 }
 0x61c   : > { %v3510_v43 = vpop.permute.xlu1 %3509 }
 0x61e   : > { %v3515_v46 = vpop.permute.xlu0 %3514 }
 0x61f   : > { %8695 = vmatmul.mubr.msk.bf16.gmra.mrb[12].mxu0 %vm1908_vm3, %v11345_v51 }
 0x620   : > { %v3520_v60 = vpop.permute.xlu1 %3519 }
 0x622   : > { %v3525_v5 = vpop.permute.xlu0 %3524 }
 0x624   : > { %v10242_v34 = vpop.permute.xlu1 %10241 }
 0x626   : > { %v10247_v28 = vpop.permute.xlu0 %10246 }
 0x628   : > { %v3804_v35 = vpop.permute.xlu1 %3803 }
 0x62a   : > { %v12512_v36 = vpop.permute.xlu0 %3809 }
 0x6ea   : > { %v3650_v57 = vpop.f32.mrb[8].mxu0 }
 0x6eb   : > { %v9473_v44 = vadd.f32 %v3650_v57, %v3510_v43  ;;  %v3652_v39 = vpop.f32.mrb[9].mxu0  ;;  %v10243_v57 = vunpack.i.l.bf16 %v10242_v34 }
 0x6ec   : > { %v9474_v29 = vadd.f32 %v3652_v39, %v3510_v43  ;;  %v3654_v49 = vpop.f32.mrb[10].mxu0  ;;  %v10244_v43 = vunpack.i.h.bf16 %v10242_v34 }
 0x6ed   : > { %v3669_v47 = vmax.f32 %v9473_v44, 0.0  ;;  %v9475_v48 = vadd.f32 %v3654_v49, %v3515_v46  ;;  %v3656_v50 = vpop.f32.mrb[11].mxu0 }
 0x6ee   : > { %v3670_v52 = vmax.f32 %v9474_v29, 0.0  ;;  %v9476_v53 = vadd.f32 %v3656_v50, %v3515_v46 }
 0x6ef   : > { %v3671_v33 = vmax.f32 %v9475_v48, 0.0 }
 0x6f0   : > { %v3672_v9 = vmax.f32 %v9476_v53, 0.0  ;;  %v10250_v56 = vpack.i.bf16 %v3670_v52, %v3669_v47  ;;  %v10330_v16 = vpack.i.bf16 %v12454_v21, %v3670_v52 }
 0x6f1   : > { %v12416_v58 = vpack.c.bf16 %v3671_v33, %v3669_v47  ;;  %v12418_v59 = vpack.i.bf16 %v3671_v33, %v3669_v47 }
 0x6f2   : > { %v3660_v63 = vpop.f32.mrb[12].mxu0  ;;  %10251 = vrot.lane.b32.xlu1 %v10250_v56, %s11403_s30  ;;  %v10260_v0 = vpack.i.bf16 %v3672_v9, %v3671_v33  ;;  %v12421_v54 = vpack.c.bf16 %v3672_v9, %v3670_v52  ;;  %v10335_v22 = vpack.i.bf16 %v12454_v21, %v3672_v9 }
 0x6f3   : > { %v9477_v3 = vadd.f32 %v3660_v63, %v3520_v60  ;;  %v3662_v4 = vpop.f32.mrb[13].mxu0 }
 0x6f4   : > { %v9478_v6 = vadd.f32 %v3662_v4, %v3520_v60  ;;  %v3664_v7 = vpop.f32.mrb[14].mxu0  ;;  %10261 = vrot.lane.b32.xlu0 %v10260_v0, %s11403_s30 }
 0x6f5   : > { %v3673_v20 = vmax.f32 %v9477_v3, 0.0  ;;  %v9479_v8 = vadd.f32 %v3664_v7, %v3525_v5  ;;  %v3666_v61 = vpop.f32.mrb[15].mxu0  ;;  %v10248_v3 = vunpack.i.l.bf16 %v10247_v28 }
 0x6f6   : > { %v3674_v10 = vmax.f32 %v9478_v6, 0.0  ;;  %v9480_v11 = vadd.f32 %v3666_v61, %v3525_v5  ;;  %10256 = vrot.lane.b32.xlu1 %v10250_v56, %s11404_s8 }
 0x6f7   : > { %v3675_v15 = vmax.f32 %v9479_v8, 0.0 }
 0x6f8   : > { %v3676_v14 = vmax.f32 %v9480_v11, 0.0  ;;  %10266 = vrot.lane.b32.xlu0 %v10260_v0, %s11404_s8  ;;  %v10270_v18 = vpack.i.bf16 %v3674_v10, %v3673_v20  ;;  %v10345_v23 = vpack.i.bf16 %v12454_v21, %v3674_v10 }
 0x6f9   : > { %v12426_v19 = vpack.c.bf16 %v3675_v15, %v3673_v20  ;;  %v10355_v55 = vpack.i.bf16 %v3675_v15, %v3673_v20 }
 0x6fa   : > { %3805 = vrot.lane.b32.xlu1 %v12416_v58, %s11415_s23  ;;  %v10275_v32 = vpack.i.bf16 %v3676_v14, %v3675_v15  ;;  %v12430_v26 = vpack.c.bf16 %v3676_v14, %v3674_v10  ;;  %v10350_v24 = vpack.i.bf16 %v12454_v21, %v3676_v14 }
 0x6fc   : > { %3807 = vrot.lane.b32.xlu0 %v12421_v54, %s11415_s23 }
 0x6fe   : > { %10276 = vrot.lane.b32.xlu1 %v10275_v32, %s11403_s30 }
 0x700   : > { %10271 = vrot.lane.b32.xlu0 %v10270_v18, %s11403_s30 }
 0x702   : > { %10281 = vrot.lane.b32.xlu1 %v11973_v13, %s11404_s8 }
 0x704   : > { %10286 = vrot.lane.b32.xlu0 %v10270_v18, %s11404_s8 }
 0x706   : > { %10291 = vrot.lane.b32.xlu1 %v10275_v32, %s11404_s8 }
 0x708   : > { %3811 = vrot.lane.b32.xlu0 %v12426_v19, %s11415_s23 }
 0x70a   : > { %3813 = vrot.lane.b32.xlu1 %v12430_v26, %s11415_s23 }
 0x70c   : > { %10296 = vrot.lane.b32.xlu0 %v11973_v13, %s11404_s8 }
 0x70e   : > { %10301 = vrot.lane.b32.xlu1 %v10250_v56, %s11406_s14 }
 0x710   : > { %10306 = vrot.lane.b32.xlu0 %v10260_v0, %s11406_s14  ;;  %v10249_v0 = vunpack.i.h.bf16 %v10247_v28 }
 0x712   : > { %10311 = vrot.lane.b32.xlu1 %v11973_v13, %s11406_s14 }
 0x714   : > { %10316 = vrot.lane.b32.xlu0 %v10270_v18, %s11406_s14 }
 0x716   : > { %10321 = vrot.lane.b32.xlu1 %v10275_v32, %s11406_s14 }
 0x718   : > { %10326 = vrot.lane.b32.xlu0 %v11973_v13, %s11406_s14 }
 0x71a   : > { %10331 = vrot.lane.b32.xlu1 %v10330_v16, %s11409_s17 }
 0x71c   : > { %10336 = vrot.lane.b32.xlu0 %v10335_v22, %s11409_s17 }
 0x71e   : > { %10341 = vrot.lane.b32.xlu1 %v12418_v59, %s11409_s17 }
 0x720   : > { %10346 = vrot.lane.b32.xlu0 %v10345_v23, %s11409_s17 }
 0x722   : > { %10351 = vrot.lane.b32.xlu1 %v10350_v24, %s11409_s17 }
 0x724   : > { %10356 = vrot.lane.b32.xlu0 %v10355_v55, %s11409_s17 }
 0x726   : > { %10361 = vrot.lane.b32.xlu1 %v10330_v16, %s11411_s19 }
 0x728   : > { %10366 = vrot.lane.b32.xlu0 %v10335_v22, %s11411_s19 }
 0x72a   : > { %10371 = vrot.lane.b32.xlu1 %v12418_v59, %s11411_s19 }
 0x72c   : > { %10376 = vrot.lane.b32.xlu0 %v10345_v23, %s11411_s19 }
 0x72e   : > { %10381 = vrot.lane.b32.xlu1 %v10350_v24, %s11411_s19 }
 0x730   : > { %10386 = vrot.lane.b32.xlu0 %v10355_v55, %s11411_s19 }
 0x732   : > { %4189 = vrot.lane.b32.xlu1 %v12421_v54, %s11408_s16 }
 0x734   : > { %4191 = vrot.lane.b32.xlu0 %v11418_v17, %s11408_s16 }
 0x736   : > { %4187 = vrot.lane.b32.xlu1 %v12416_v58, %s11408_s16 }
 0x738   : > { %4195 = vrot.lane.b32.xlu0 %v12430_v26, %s11408_s16 }
 0x73a   : > { %4197 = vrot.lane.b32.xlu1 %v11418_v17, %s11408_s16 }
 0x73c   : > { %4193 = vrot.lane.b32.xlu0 %v12426_v19, %s11408_s16 }
 0x73e   : > { %10391 = vrot.lane.b32.xlu1 %v10330_v16, %s11414_s22 }
 0x740   : > { %10396 = vrot.lane.b32.xlu0 %v10335_v22, %s11414_s22 }
 0x742   : > { %10401 = vrot.lane.b32.xlu1 %v12418_v59, %s11414_s22 }
 0x744   : > { %10406 = vrot.lane.b32.xlu0 %v10345_v23, %s11414_s22 }
 0x746   : > { %10411 = vrot.lane.b32.xlu1 %v10350_v24, %s11414_s22 }
 0x748   : > { %10416 = vrot.lane.b32.xlu0 %v10355_v55, %s11414_s22 }
 0x74a   : > { %4329 = vperm.xlu1 %9699, %v8704_v1  }
 0x74c   : > { %4334 = vperm.xlu0 %9698, %v8705_v62  }
 0x74e   : > { %4339 = vperm.xlu1 %9699, %v8706_v30  }
 0x750   : > { %4344 = vperm.xlu0 %9698, %v8707_v31  }
 0x752   : > { %10421 = vrot.lane.b32.xlu1 %v11973_v13, %s11403_s30 }
 0x754   : > { %10426 = vrot.lane.b32.xlu0 %v11973_v13, %s11403_s30 }
 0x764   : > { %v10252_v37 = vpop.permute.xlu1 %10251 }
 0x765   : > { %v10254_v38 = vunpack.i.h.bf16 %v10252_v37  ;;  %v10253_v40 = vunpack.i.l.bf16 %v10252_v37 }
 0x766   : > { %v10262_v51 = vpop.permute.xlu0 %10261 }
 0x767   : > { %v10264_v44 = vunpack.i.h.bf16 %v10262_v51  ;;  %v10263_v39 = vunpack.i.l.bf16 %v10262_v51  ;;  %v3747_v29 = vsel %vm357_vm0, %v10243_v57, %v10253_v40  ;;  %v3748_v49 = vsel %vm357_vm0, %v10253_v40, %v10254_v38 }
 0x768   : > { %v10257_v46 = vpop.permute.xlu1 %10256 }
 0x769   : > { %v3749_v47 = vsel %vm357_vm0, %v10244_v43, %v10263_v39  ;;  %v3750_v48 = vsel %vm357_vm0, %v10263_v39, %v10264_v44  ;;  %v10259_v16 = vunpack.i.h.bf16 %v10257_v46  ;;  %v10258_v22 = vunpack.i.l.bf16 %v10257_v46 }
 0x76a   : > { %v9021_v50 = vpack.c.bf16 %v3749_v47, %v3747_v29  ;;  %v10267_v52 = vpop.permute.xlu0 %10266  ;;  %v9018_v53 = vpack.c.bf16 %v3750_v48, %v3748_v49 }
 0x76b   : > { %v10269_v18 = vunpack.i.h.bf16 %v10267_v52  ;;  %v10268_v55 = vunpack.i.l.bf16 %v10267_v52  ;;  %v3876_v37 = vsel %vm541_vm2, %v10258_v22, %v10259_v16 }
 0x76c   : > { %9019 = vmatprep.subr.msk.bf16.mxu1 %vm11793_vm14, %v9018_v53  ;;  %v3806_v33 = vpop.permute.xlu1 %3805 }
 0x76d   : > { %9022 = vmatpush1.bf16.msk.msra.mxu1 %vm11804_vm15, %v9021_v50  ;;  %v3815_v62 = vsel %vm396_vm11, %v3804_v35, %v3806_v33  ;;  %v3878_v30 = vsel %vm541_vm2, %v10268_v55, %v10269_v18 }
 0x76e   : > { %v3808_v9 = vpop.permute.xlu0 %3807  ;;  %v9030_v29 = vpack.c.bf16 %v3878_v30, %v3876_v37 }
 0x76f   : > { %v3816_v32 = vsel %vm396_vm11, %v3806_v33, %v3808_v9 }
 0x770   : > { %v10277_v56 = vpop.permute.xlu1 %10276 }
 0x771   : > { %v10279_v59 = vunpack.i.h.bf16 %v10277_v56  ;;  %v10278_v60 = vunpack.i.l.bf16 %v10277_v56 }
 0x772   : > { %v10272_v63 = vpop.permute.xlu0 %10271 }
 0x773   : > { %v10274_v4 = vunpack.i.h.bf16 %v10272_v63  ;;  %v10273_v5 = vunpack.i.l.bf16 %v10272_v63  ;;  %v3753_v7 = vsel %vm357_vm0, %v10249_v0, %v10278_v60  ;;  %v3754_v20 = vsel %vm357_vm0, %v10278_v60, %v10279_v59 }
 0x774   : > { %v10282_v6 = vpop.permute.xlu1 %10281 }
 0x775   : > { %v3751_v8 = vsel %vm357_vm0, %v10248_v3, %v10273_v5  ;;  %v3752_v61 = vsel %vm357_vm0, %v10273_v5, %v10274_v4  ;;  %v10284_v24 = vunpack.i.h.bf16 %v10282_v6  ;;  %v10283_v27 = vunpack.i.l.bf16 %v10282_v6 }
 0x776   : > { %v9027_v10 = vpack.c.bf16 %v3753_v7, %v3751_v8  ;;  %v10287_v11 = vpop.permute.xlu0 %10286  ;;  %v9024_v15 = vpack.c.bf16 %v3754_v20, %v3752_v61 }
 0x777   : > { %v10289_v38 = vunpack.i.h.bf16 %v10287_v11  ;;  %v10288_v40 = vunpack.i.l.bf16 %v10287_v11  ;;  %v3877_v43 = vsel %vm541_vm2, %v10284_v24, %v10268_v55  ;;  %v3875_v57 = vsel %vm541_vm2, %v10283_v27, %v10258_v22 }
 0x778   : > { %v10292_v14 = vpop.permute.xlu1 %10291  ;;  %9025 = vmatprep.subr.msk.bf16.mxu1 %vm11793_vm14, %v9024_v15  ;;  %v9033_v47 = vpack.c.bf16 %v3877_v43, %v3875_v57 }
 0x779   : > { %9028 = vmatpush1.bf16.msk.msra.mxu1 %vm11804_vm15, %v9027_v10  ;;  %v10294_v31 = vunpack.i.h.bf16 %v10292_v14  ;;  %v10293_v34 = vunpack.i.l.bf16 %v10292_v14  ;;  %v3880_v48 = vsel %vm541_vm2, %v10288_v40, %v10289_v38 }
 0x77a   : > { %v3812_v23 = vpop.permute.xlu0 %3811  ;;  %4387 = vmatprep.subr.bf16.mxu1 %v3816_v32 }
 0x77b   : > { %v3817_v46 = vsel %vm396_vm11, %v12512_v36, %v3812_v23  ;;  %v3882_v49 = vsel %vm541_vm2, %v10293_v34, %v10294_v31 }
 0x77c   : > { %v3814_v1 = vpop.permute.xlu1 %3813  ;;  %v9036_v60 = vpack.c.bf16 %v3882_v49, %v3880_v48 }
 0x77d   : > { %4388 = vmatpush1.bf16.msra.mxu1 %v3815_v62  ;;  %v3818_v28 = vsel %vm396_vm11, %v3812_v23, %v3814_v1 }
 0x77e   : > { %v10297_v51 = vpop.permute.xlu0 %10296  ;;  %4389 = vmatprep.subr.bf16.mxu1 %v3818_v28 }
 0x77f   : > { %v10299_v44 = vunpack.i.h.bf16 %v10297_v51  ;;  %v10298_v39 = vunpack.i.l.bf16 %v10297_v51 }
 0x780   : > { %v10302_v35 = vpop.permute.xlu1 %10301 }
 0x781   : > { %4390 = vmatpush1.bf16.msra.mxu1 %v3817_v46  ;;  %v10304_v50 = vunpack.i.h.bf16 %v10302_v35  ;;  %v10303_v52 = vunpack.i.l.bf16 %v10302_v35  ;;  %v3879_v33 = vsel %vm541_vm2, %v10298_v39, %v10288_v40  ;;  %v3881_v9 = vsel %vm541_vm2, %v10299_v44, %v10293_v34 }
 0x782   : > { %v10307_v53 = vpop.permute.xlu0 %10306  ;;  %9031 = vmatprep.subr.msk.bf16.mxu1 %vm11828_vm1, %v9030_v29  ;;  %v9039_v4 = vpack.c.bf16 %v3881_v9, %v3879_v33 }
 0x783   : > { %v10309_v56 = vunpack.i.h.bf16 %v10307_v53  ;;  %v10308_v59 = vunpack.i.l.bf16 %v10307_v53  ;;  %v3956_v5 = vsel %vm633_vm8, %v10303_v52, %v10304_v50 }
 0x784   : > { %v10312_v36 = vpop.permute.xlu1 %10311 }
 0x785   : > { %v3958_v63 = vsel %vm633_vm8, %v10308_v59, %v10309_v56  ;;  %v10314_v0 = vunpack.i.h.bf16 %v10312_v36  ;;  %v10313_v3 = vunpack.i.l.bf16 %v10312_v36  ;;  %9034 = vmatpush1.bf16.msk.msra.mxu1 %vm11840_vm4, %v9033_v47 }
 0x786   : > { %v10317_v6 = vpop.permute.xlu0 %10316  ;;  %9037 = vmatprep.subr.msk.bf16.mxu1 %vm11828_vm1, %v9036_v60  ;;  %v9042_v11 = vpack.c.bf16 %v3958_v63, %v3956_v5 }
 0x787   : > { %v3957_v7 = vsel %vm633_vm8, %v10314_v0, %v10308_v59  ;;  %v3955_v20 = vsel %vm633_vm8, %v10313_v3, %v10303_v52  ;;  %v10319_v8 = vunpack.i.h.bf16 %v10317_v6  ;;  %v10318_v61 = vunpack.i.l.bf16 %v10317_v6 }
 0x788   : > { %v10322_v10 = vpop.permute.xlu1 %10321  ;;  %v9045_v18 = vpack.c.bf16 %v3957_v7, %v3955_v20 }
 0x789   : > { %v10324_v15 = vunpack.i.h.bf16 %v10322_v10  ;;  %v10323_v14 = vunpack.i.l.bf16 %v10322_v10  ;;  %9040 = vmatpush1.bf16.msk.msra.mxu1 %vm11840_vm4, %v9039_v4  ;;  %v3960_v32 = vsel %vm633_vm8, %v10318_v61, %v10319_v8 }
 0x78a   : > { %v10327_v55 = vpop.permute.xlu0 %10326  ;;  %9043 = vmatprep.subr.msk.bf16.mxu1 %vm11793_vm14, %v9042_v11 }
 0x78b   : > { %v3962_v16 = vsel %vm633_vm8, %v10323_v14, %v10324_v15  ;;  %v10329_v22 = vunpack.i.h.bf16 %v10327_v55  ;;  %v10328_v23 = vunpack.i.l.bf16 %v10327_v55 }
 0x78c   : > { %v10332_v24 = vpop.permute.xlu1 %10331  ;;  %v9048_v27 = vpack.c.bf16 %v3962_v16, %v3960_v32 }
 0x78d   : > { %v3959_v1 = vsel %vm633_vm8, %v10328_v23, %v10318_v61  ;;  %v3961_v62 = vsel %vm633_vm8, %v10329_v22, %v10323_v14  ;;  %9046 = vmatpush1.bf16.msk.msra.mxu1 %vm11804_vm15, %v9045_v18  ;;  %v10334_v38 = vunpack.i.h.bf16 %v10332_v24  ;;  %v10333_v40 = vunpack.i.l.bf16 %v10332_v24 }
 0x78e   : > { %v9051_v30 = vpack.c.bf16 %v3961_v62, %v3959_v1  ;;  %v10337_v31 = vpop.permute.xlu0 %10336  ;;  %9049 = vmatprep.subr.msk.bf16.mxu1 %vm11793_vm14, %v9048_v27 }
 0x78f   : > { %v10339_v28 = vunpack.i.h.bf16 %v10337_v31  ;;  %v10338_v37 = vunpack.i.l.bf16 %v10337_v31  ;;  %v4052_v29 = vsel %vm808_vm9, %v10333_v40, %v10334_v38 }
 0x790   : > { %v10342_v34 = vpop.permute.xlu1 %10341 }
 0x791   : > { %9052 = vmatpush1.bf16.msk.msra.mxu1 %vm11804_vm15, %v9051_v30  ;;  %v10344_v43 = vunpack.i.h.bf16 %v10342_v34  ;;  %v10343_v57 = vunpack.i.l.bf16 %v10342_v34  ;;  %v4054_v39 = vsel %vm808_vm9, %v10338_v37, %v10339_v28 }
 0x792   : > { %v10347_v51 = vpop.permute.xlu0 %10346  ;;  %4399 = vmatprep.subr.bf16.mxu1 %v12421_v54  ;;  %v9054_v9 = vpack.c.bf16 %v4054_v39, %v4052_v29 }
 0x793   : > { %v10349_v49 = vunpack.i.h.bf16 %v10347_v51  ;;  %v10348_v47 = vunpack.i.l.bf16 %v10347_v51  ;;  %v4053_v50 = vsel %vm808_vm9, %v10344_v43, %v10338_v37  ;;  %v4051_v54 = vsel %vm808_vm9, %v10343_v57, %v10333_v40 }
 0x794   : > { %v10352_v44 = vpop.permute.xlu1 %10351 }
 0x795   : > { %v10354_v35 = vunpack.i.h.bf16 %v10352_v44  ;;  %v10353_v46 = vunpack.i.l.bf16 %v10352_v44  ;;  %4400 = vmatpush1.bf16.msra.mxu1 %v12416_v58  ;;  %v9057_v58 = vpack.c.bf16 %v4053_v50, %v4051_v54  ;;  %v4056_v59 = vsel %vm808_vm9, %v10348_v47, %v10349_v49  ;;  %v11349_v54 = vld [vmem:[%s13859_s3 + $0xac] ss:$12 sps:$4 sm:$0xff]  }
 0x796   : > { %v10357_v48 = vpop.permute.xlu0 %10356  ;;  %4401 = vmatprep.subr.bf16.mxu1 %v12430_v26 }
 0x797   : > { %v10359_v52 = vunpack.i.h.bf16 %v10357_v48  ;;  %v10358_v53 = vunpack.i.l.bf16 %v10357_v48  ;;  %v4058_v56 = vsel %vm808_vm9, %v10353_v46, %v10354_v35 }
 0x798   : > { %v10362_v33 = vpop.permute.xlu1 %10361  ;;  %v9060_v6 = vpack.c.bf16 %v4058_v56, %v4056_v59 }
 0x799   : > { %4402 = vmatpush1.bf16.msra.mxu1 %v12426_v19  ;;  %v10364_v36 = vunpack.i.h.bf16 %v10362_v33  ;;  %v10363_v60 = vunpack.i.l.bf16 %v10362_v33  ;;  %v4055_v26 = vsel %vm808_vm9, %v10358_v53, %v10348_v47  ;;  %v4057_v0 = vsel %vm808_vm9, %v10359_v52, %v10353_v46  ;;  %v11346_v47 = vld [vmem:[%s13859_s3 + $0x90] ss:$12 sps:$4 sm:$0xff]  }
 0x79a   : > { %v10367_v63 = vpop.permute.xlu0 %10366  ;;  %9055 = vmatprep.subr.msk.bf16.mxu1 %vm11828_vm1, %v9054_v9  ;;  %v9063_v8 = vpack.c.bf16 %v4057_v0, %v4055_v26 }
 0x79b   : > { %v10369_v3 = vunpack.i.h.bf16 %v10367_v63  ;;  %v10368_v4 = vunpack.i.l.bf16 %v10367_v63  ;;  %v4132_v61 = vsel %vm900_vm10, %v10363_v60, %v10364_v36 }
 0x79c   : > { %v10372_v5 = vpop.permute.xlu1 %10371 }
 0x79d   : > { %v4134_v7 = vsel %vm900_vm10, %v10368_v4, %v10369_v3  ;;  %v10374_v19 = vunpack.i.h.bf16 %v10372_v5  ;;  %v10373_v20 = vunpack.i.l.bf16 %v10372_v5  ;;  %9058 = vmatpush1.bf16.msk.msra.mxu1 %vm11840_vm4, %v9057_v58 }
 0x79e   : > { %v10377_v10 = vpop.permute.xlu0 %10376  ;;  %9061 = vmatprep.subr.msk.bf16.mxu1 %vm11828_vm1, %v9060_v6  ;;  %v9066_v32 = vpack.c.bf16 %v4134_v7, %v4132_v61  ;;  %v11351_v7 = vld [vmem:[%s13859_s3 + $0xa8] ss:$12 sps:$4 sm:$0xff]  }
 0x79f   : > { %v4133_v11 = vsel %vm900_vm10, %v10374_v19, %v10368_v4  ;;  %v4131_v15 = vsel %vm900_vm10, %v10373_v20, %v10363_v60  ;;  %v10379_v14 = vunpack.i.h.bf16 %v10377_v10  ;;  %v10378_v18 = vunpack.i.l.bf16 %v10377_v10 }
 0x7a0   : > { %v10382_v55 = vpop.permute.xlu1 %10381  ;;  %v9069_v23 = vpack.c.bf16 %v4133_v11, %v4131_v15 }
 0x7a1   : > { %v10384_v16 = vunpack.i.h.bf16 %v10382_v55  ;;  %v10383_v22 = vunpack.i.l.bf16 %v10382_v55  ;;  %9064 = vmatpush1.bf16.msk.msra.mxu1 %vm11840_vm4, %v9063_v8  ;;  %v4136_v27 = vsel %vm900_vm10, %v10378_v18, %v10379_v14 }
 0x7a2   : > { %v10387_v24 = vpop.permute.xlu0 %10386  ;;  %9067 = vmatprep.subr.msk.bf16.mxu1 %vm11793_vm14, %v9066_v32 }
 0x7a3   : > { %v4138_v1 = vsel %vm900_vm10, %v10383_v22, %v10384_v16  ;;  %v10389_v62 = vunpack.i.h.bf16 %v10387_v24  ;;  %v10388_v30 = vunpack.i.l.bf16 %v10387_v24  ;;  %v11352_v16 = vld [vmem:[%s13859_s3 + $0x98] ss:$12 sps:$4 sm:$0xff]  }
 0x7a4   : > { %v4190_v31 = vpop.permute.xlu1 %4189  ;;  %v9072_v34 = vpack.c.bf16 %v4138_v1, %v4136_v27 }
 0x7a5   : > { %v4135_v28 = vsel %vm900_vm10, %v10388_v30, %v10378_v18  ;;  %v4137_v37 = vsel %vm900_vm10, %v10389_v62, %v10383_v22  ;;  %9070 = vmatpush1.bf16.msk.msra.mxu1 %vm11804_vm15, %v9069_v23  ;;  %v11353_v22 = vld [vmem:[%s13859_s3 + $0xb0] ss:$12 sps:$4 sm:$0xff]   ;;  %v12644_v23 = vpack.c.bf16 %v12454_v21, %v12454_v21 }
 0x7a6   : > { %v9075_v38 = vpack.c.bf16 %v4137_v37, %v4135_v28  ;;  %v4192_v40 = vpop.permute.xlu0 %4191  ;;  %9073 = vmatprep.subr.msk.bf16.mxu1 %vm11793_vm14, %v9072_v34 }
 0x7a7   : > { %v4200_v43 = vsel %vm1002_vm12, %v4190_v31, %v4192_v40  ;;  %4631 = vrot.lane.b32.xlu1 %v12644_v23, %s11415_s23  ;;  %4637 = vrot.lane.b32.xlu0 %v12644_v23, %s11415_s23 }
 0x7a8   : > { %v4188_v51 = vpop.permute.xlu1 %4187 }
 0x7a9   : > { %9076 = vmatpush1.bf16.msk.msra.mxu1 %vm11804_vm15, %v9075_v38  ;;  %v4199_v44 = vsel %vm1002_vm12, %v4188_v51, %v4190_v31  ;;  %v4489_v31 = vld [vmem:[#allocation2 + $0x8] sm:$0xff]  ;;  %v4490_v38 = vld [vmem:[#allocation2 + $0x10] sm:$0xff] }
 0x7aa   : > { %v4196_v57 = vpop.permute.xlu0 %4195  ;;  %4411 = vmatprep.subr.bf16.mxu1 %v4200_v43 }
 0x7ac   : > { %v4198_v39 = vpop.permute.xlu1 %4197 }
 0x7ad   : > { %4412 = vmatpush1.bf16.msra.mxu1 %v4199_v44  ;;  %v4202_v35 = vsel %vm1002_vm12, %v4196_v57, %v4198_v39 }
 0x7ae   : > { %v4194_v46 = vpop.permute.xlu0 %4193  ;;  %4413 = vmatprep.subr.bf16.mxu1 %v4202_v35  ;;  %v4492_v35 = vld [vmem:[#allocation2 + $0x30] sm:$0xff] }
 0x7af   : > { %v4201_v29 = vsel %vm1002_vm12, %v4194_v46, %v4196_v57  ;;  %v4491_v57 = vld [vmem:[#allocation2 + $0x28] sm:$0xff] }
 0x7b0   : > { %v10392_v49 = vpop.permute.xlu1 %10391 }
 0x7b1   : > { %v10394_v48 = vunpack.i.h.bf16 %v10392_v49  ;;  %v10393_v50 = vunpack.i.l.bf16 %v10392_v49  ;;  %4414 = vmatpush1.bf16.msra.mxu1 %v4201_v29 }
 0x7b2   : > { %v10397_v52 = vpop.permute.xlu0 %10396 }
 0x7b3   : > { %v10399_v53 = vunpack.i.h.bf16 %v10397_v52  ;;  %v10398_v33 = vunpack.i.l.bf16 %v10397_v52  ;;  %v4260_v56 = vsel %vm1084_vm13, %v10393_v50, %v10394_v48 }
 0x7b4   : > { %v10402_v9 = vpop.permute.xlu1 %10401  ;;  %4416 = vmatmul.mubr.bf16.vlgmr.msra.gmra.mrb[24].mxu1 %v11346_v47 }
 0x7b5   : > { %v4262_v58 = vsel %vm1084_vm13, %v10398_v33, %v10399_v53  ;;  %v10404_v59 = vunpack.i.h.bf16 %v10402_v9  ;;  %v10403_v36 = vunpack.i.l.bf16 %v10402_v9  ;;  %4425 = vmatprep.mubr.bf16.mxu1 %v11349_v54 }
 0x7b6   : > { %v10407_v60 = vpop.permute.xlu0 %10406  ;;  %v9078_v63 = vpack.c.bf16 %v4262_v58, %v4260_v56  ;;  %v4493_v56 = vld [vmem:[#allocation2 + $0x48] sm:$0xff] }
 0x7b7   : > { %v4261_v26 = vsel %vm1084_vm13, %v10404_v59, %v10398_v33  ;;  %v4259_v0 = vsel %vm1084_vm13, %v10403_v36, %v10393_v50  ;;  %v10409_v3 = vunpack.i.h.bf16 %v10407_v60  ;;  %v10408_v4 = vunpack.i.l.bf16 %v10407_v60  ;;  %v4494_v60 = vld [vmem:[#allocation2 + $0x50] sm:$0xff] }
 0x7b8   : > { %v9081_v5 = vpack.c.bf16 %v4261_v26, %v4259_v0  ;;  %v10412_v6 = vpop.permute.xlu1 %10411  ;;  %9079 = vmatprep.subr.msk.bf16.mxu1 %vm11828_vm1, %v9078_v63 }
 0x7b9   : > { %v10414_v19 = vunpack.i.h.bf16 %v10412_v6  ;;  %v10413_v20 = vunpack.i.l.bf16 %v10412_v6  ;;  %v4264_v61 = vsel %vm1084_vm13, %v10408_v4, %v10409_v3  ;;  %v4495_v3 = vld [vmem:[#allocation2 + $0x68] sm:$0xff]  ;;  %v4496_v6 = vld [vmem:[#allocation2 + $0x70] sm:$0xff] }
 0x7ba   : > { %v10417_v8 = vpop.permute.xlu0 %10416  ;;  %9082 = vmatpush1.bf16.msk.msra.mxu1 %vm11840_vm4, %v9081_v5 }
 0x7bb   : > { %v4266_v10 = vsel %vm1084_vm13, %v10413_v20, %v10414_v19  ;;  %v10419_v11 = vunpack.i.h.bf16 %v10417_v8  ;;  %v10418_v15 = vunpack.i.l.bf16 %v10417_v8 }
 0x7bc   : > { %4426 = vmatmul.mubr.bf16.gmra.mrb[28].mxu1 %v11351_v7  ;;  %v9084_v14 = vpack.c.bf16 %v4266_v10, %v4264_v61 }
 0x7bd   : > { %v4263_v18 = vsel %vm1084_vm13, %v10418_v15, %v10408_v4  ;;  %v4265_v55 = vsel %vm1084_vm13, %v10419_v11, %v10413_v20  ;;  %4468 = vmatprep.mubr.bf16.mxu1 %v11402_v12  ;;  %v12692_v11 = vpack.i.bf16 %v12454_v21, %v12454_v21 }
 0x7be   : > { %v9087_v32 = vpack.c.bf16 %v4265_v55, %v4263_v18  ;;  %9085 = vmatprep.subr.msk.bf16.mxu1 %vm11828_vm1, %v9084_v14  ;;  %v8724_v55 = vld [vmem:[%s13860_s4 + $0x80] sm:$0xff] }
 0x7c0   : > { %9088 = vmatpush1.bf16.msk.msra.mxu1 %vm11840_vm4, %v9087_v32  ;;  %v8725_v32 = vld [vmem:[%s13860_s4 + $0x88] sm:$0xff] }
 0x7c4   : > { %8714 = vmatmul.mubr.msk.bf16.vlgmr.msra.gmra.mrb[24].mxu1 %vm1908_vm3, %v11352_v16  ;;  %v8726_v16 = vld [vmem:[%s13860_s4 + $0x90] sm:$0xff] }
 0x7c5   : > { %4478 = vmatprep.mubr.bf16.mxu1 %v11402_v12 }
 0x7c9   : > { %v4330_v24 = vpop.permute.xlu1 %4329 }
 0x7cb   : > { %v4335_v30 = vpop.permute.xlu0 %4334 }
 0x7cc   : > { %8715 = vmatmul.mubr.msk.bf16.gmra.mrb[28].mxu1 %vm1908_vm3, %v11353_v22  ;;  %v8727_v22 = vld [vmem:[%s13860_s4 + $0x98] sm:$0xff] }
 0x7cd   : > { %v4340_v48 = vpop.permute.xlu1 %4339 }
 0x7cf   : > { %v4345_v9 = vpop.permute.xlu0 %4344 }
 0x897   : > { %v4470_v27 = vpop.f32.mrb[24].mxu1 }
 0x898   : > { %v9481_v1 = vadd.f32 %v4470_v27, %v4330_v24  ;;  %v4472_v62 = vpop.f32.mrb[25].mxu1 }
 0x899   : > { %v9482_v34 = vadd.f32 %v4472_v62, %v4330_v24  ;;  %v4474_v28 = vpop.f32.mrb[26].mxu1  ;;  %v10427_v24 = vpop.permute.xlu0 %10426 }
 0x89a   : > { %v4497_v37 = vadd.f32 %v9481_v1, %v4489_v31  ;;  %v9483_v40 = vadd.f32 %v4474_v28, %v4335_v30  ;;  %v4476_v51 = vpop.f32.mrb[27].mxu1 }
 0x89b   : > { %v12650_v43 = vadd.f32 %v9482_v34, %v4490_v38  ;;  %v9484_v44 = vadd.f32 %v4476_v51, %v4335_v30 }
 0x89c   : > { %4505 = vst [vmem:[#allocation2 + $0x8] sm:$0xff] %v4497_v37  ;;  %v4499_v39 = vadd.f32 %v9483_v40, %v4491_v57 }
 0x89d   : > { %4506 = vst [vmem:[#allocation2 + $0x10] sm:$0xff] %v12650_v43  ;;  %v4500_v46 = vadd.f32 %v9484_v44, %v4492_v35  ;;  %v10430_v29 = vpack.i.bf16 %v12650_v43, %v4497_v37  ;;  %v10510_v15 = vpack.i.bf16 %v12454_v21, %v12650_v43  ;;  %v12758_v1 = vpop.permute.xlu0 %4637 }
 0x89e   : > { %4507 = vst [vmem:[#allocation2 + $0x28] sm:$0xff] %v4499_v39  ;;  %v12654_v49 = vpack.c.bf16 %v4499_v39, %v4497_v37  ;;  %v12656_v47 = vpack.i.bf16 %v4499_v39, %v4497_v37 }
 0x89f   : > { %4508 = vst [vmem:[#allocation2 + $0x30] sm:$0xff] %v4500_v46  ;;  %v4480_v50 = vpop.f32.mrb[28].mxu1  ;;  %10431 = vrot.lane.b32.xlu1 %v10430_v29, %s11403_s30  ;;  %v10440_v54 = vpack.i.bf16 %v4500_v46, %v4499_v39  ;;  %v12660_v52 = vpack.c.bf16 %v4500_v46, %v12650_v43  ;;  %v10515_v14 = vpack.i.bf16 %v12454_v21, %v4500_v46 }
 0x8a0   : > { %v9485_v53 = vadd.f32 %v4480_v50, %v4340_v48  ;;  %v4482_v33 = vpop.f32.mrb[29].mxu1 }
 0x8a1   : > { %v9486_v58 = vadd.f32 %v4482_v33, %v4340_v48  ;;  %v4484_v59 = vpop.f32.mrb[30].mxu1  ;;  %10441 = vrot.lane.b32.xlu0 %v10440_v54, %s11403_s30 }
 0x8a2   : > { %v4501_v36 = vadd.f32 %v9485_v53, %v4493_v56  ;;  %v9487_v63 = vadd.f32 %v4484_v59, %v4345_v9  ;;  %v4486_v26 = vpop.f32.mrb[31].mxu1  ;;  %v10428_v56 = vunpack.i.l.bf16 %v10427_v24 }
 0x8a3   : > { %v4502_v0 = vadd.f32 %v9486_v58, %v4494_v60  ;;  %v9488_v4 = vadd.f32 %v4486_v26, %v4345_v9  ;;  %10436 = vrot.lane.b32.xlu1 %v10430_v29, %s11404_s8  ;;  %v10429_v9 = vunpack.i.h.bf16 %v10427_v24 }
 0x8a4   : > { %4509 = vst [vmem:[#allocation2 + $0x48] sm:$0xff] %v4501_v36  ;;  %v4503_v5 = vadd.f32 %v9487_v63, %v4495_v3 }
 0x8a5   : > { %4510 = vst [vmem:[#allocation2 + $0x50] sm:$0xff] %v4502_v0  ;;  %v4504_v7 = vadd.f32 %v9488_v4, %v4496_v6  ;;  %10446 = vrot.lane.b32.xlu0 %v10440_v54, %s11404_s8  ;;  %v10450_v19 = vpack.i.bf16 %v4502_v0, %v4501_v36 }
 0x8a6   : > { %4511 = vst [vmem:[#allocation2 + $0x68] sm:$0xff] %v4503_v5  ;;  %v12665_v20 = vpack.c.bf16 %v4503_v5, %v4501_v36  ;;  %v10535_v8 = vpack.i.bf16 %v4503_v5, %v4501_v36 }
 0x8a7   : > { %4512 = vst [vmem:[#allocation2 + $0x70] sm:$0xff] %v4504_v7  ;;  %4633 = vrot.lane.b32.xlu1 %v12654_v49, %s11415_s23  ;;  %v10455_v61 = vpack.i.bf16 %v4504_v7, %v4503_v5  ;;  %v12669_v10 = vpack.c.bf16 %v4504_v7, %v4502_v0  ;;  %v10530_v18 = vpack.i.bf16 %v12454_v21, %v4504_v7 }
 0x8a9   : > { %4635 = vrot.lane.b32.xlu0 %v12660_v52, %s11415_s23 }
 0x8ab   : > { %10456 = vrot.lane.b32.xlu1 %v10455_v61, %s11403_s30 }
 0x8ad   : > { %10451 = vrot.lane.b32.xlu0 %v10450_v19, %s11403_s30 }
 0x8af   : > { %10461 = vrot.lane.b32.xlu1 %v11973_v13, %s11404_s8 }
 0x8b1   : > { %10466 = vrot.lane.b32.xlu0 %v10450_v19, %s11404_s8 }
 0x8b3   : > { %10471 = vrot.lane.b32.xlu1 %v10455_v61, %s11404_s8 }
 0x8b5   : > { %4639 = vrot.lane.b32.xlu0 %v12665_v20, %s11415_s23 }
 0x8b7   : > { %4641 = vrot.lane.b32.xlu1 %v12669_v10, %s11415_s23 }
 0x8b9   : > { %10476 = vrot.lane.b32.xlu0 %v11973_v13, %s11404_s8 }
 0x8bb   : > { %10481 = vrot.lane.b32.xlu1 %v10430_v29, %s11406_s14 }
 0x8bd   : > { %10486 = vrot.lane.b32.xlu0 %v10440_v54, %s11406_s14 }
 0x8bf   : > { %10491 = vrot.lane.b32.xlu1 %v11973_v13, %s11406_s14  ;;  %v10525_v13 = vpack.i.bf16 %v12454_v21, %v4502_v0  ;;  %v11356_v21 = vld [vmem:[%s13859_s3 + $0xc4] ss:$12 sps:$4 sm:$0xff]  }
 0x8c0   : > { %5243 = vmatprep.mubr.bf16.mxu0 %v11356_v21 }
 0x8c1   : > { %10496 = vrot.lane.b32.xlu0 %v10450_v19, %s11406_s14 }
 0x8c3   : > { %10501 = vrot.lane.b32.xlu1 %v10455_v61, %s11406_s14 }
 0x8c5   : > { %10506 = vrot.lane.b32.xlu0 %v12692_v11, %s11406_s14 }
 0x8c7   : > { %10511 = vrot.lane.b32.xlu1 %v10510_v15, %s11409_s17 }
 0x8c9   : > { %10516 = vrot.lane.b32.xlu0 %v10515_v14, %s11409_s17 }
 0x8cb   : > { %10521 = vrot.lane.b32.xlu1 %v12656_v47, %s11409_s17 }
 0x8cd   : > { %10526 = vrot.lane.b32.xlu0 %v10525_v13, %s11409_s17 }
 0x8cf   : > { %10531 = vrot.lane.b32.xlu1 %v10530_v18, %s11409_s17 }
 0x8d1   : > { %10536 = vrot.lane.b32.xlu0 %v10535_v8, %s11409_s17 }
 0x8d3   : > { %10541 = vrot.lane.b32.xlu1 %v10510_v15, %s11411_s19 }
 0x8d5   : > { %10546 = vrot.lane.b32.xlu0 %v10515_v14, %s11411_s19 }
 0x8d7   : > { %10551 = vrot.lane.b32.xlu1 %v12656_v47, %s11411_s19 }
 0x8d9   : > { %10556 = vrot.lane.b32.xlu0 %v10525_v13, %s11411_s19 }
 0x8db   : > { %10561 = vrot.lane.b32.xlu1 %v10530_v18, %s11411_s19 }
 0x8dd   : > { %10566 = vrot.lane.b32.xlu0 %v10535_v8, %s11411_s19 }
 0x8df   : > { %5017 = vrot.lane.b32.xlu1 %v12660_v52, %s11408_s16 }
 0x8e1   : > { %5019 = vrot.lane.b32.xlu0 %v12644_v23, %s11408_s16 }
 0x8e3   : > { %5015 = vrot.lane.b32.xlu1 %v12654_v49, %s11408_s16 }
 0x8e5   : > { %5023 = vrot.lane.b32.xlu0 %v12669_v10, %s11408_s16 }
 0x8e7   : > { %5025 = vrot.lane.b32.xlu1 %v12644_v23, %s11408_s16  ;;  %v10422_v23 = vpop.permute.xlu1 %10421 }
 0x8e8   : > { %v10424_v28 = vunpack.i.h.bf16 %v10422_v23  ;;  %v10423_v37 = vunpack.i.l.bf16 %v10422_v23 }
 0x8e9   : > { %5021 = vrot.lane.b32.xlu0 %v12665_v20, %s11408_s16 }
 0x8eb   : > { %10571 = vrot.lane.b32.xlu1 %v10510_v15, %s11414_s22  ;;  %v4632_v27 = vpop.permute.xlu1 %4631 }
 0x8ed   : > { %10576 = vrot.lane.b32.xlu0 %v10515_v14, %s11414_s22 }
 0x8ef   : > { %10581 = vrot.lane.b32.xlu1 %v12656_v47, %s11414_s22 }
 0x8f1   : > { %10586 = vrot.lane.b32.xlu0 %v10525_v13, %s11414_s22 }
 0x8f3   : > { %10591 = vrot.lane.b32.xlu1 %v10530_v18, %s11414_s22 }
 0x8f5   : > { %10596 = vrot.lane.b32.xlu0 %v10535_v8, %s11414_s22 }
 0x8f7   : > { %5157 = vperm.xlu1 %9699, %v8724_v55  }
 0x8f9   : > { %5162 = vperm.xlu0 %9698, %v8725_v32  }
 0x8fb   : > { %5167 = vperm.xlu1 %9699, %v8726_v16  }
 0x8fd   : > { %5172 = vperm.xlu0 %9698, %v8727_v22  }
 0x8ff   : > { %10601 = vrot.lane.b32.xlu1 %v12692_v11, %s11403_s30 }
 0x901   : > { %10606 = vrot.lane.b32.xlu0 %v12692_v11, %s11403_s30 }
 0x903   : > { %5451 = vrot.lane.b32.xlu1 %v11418_v17, %s11415_s23 }
 0x905   : > { %5457 = vrot.lane.b32.xlu0 %v11418_v17, %s11415_s23 }
 0x911   : > { %v10432_v62 = vpop.permute.xlu1 %10431 }
 0x912   : > { %v10434_v30 = vunpack.i.h.bf16 %v10432_v62  ;;  %v10433_v31 = vunpack.i.l.bf16 %v10432_v62 }
 0x913   : > { %v10442_v34 = vpop.permute.xlu0 %10441 }
 0x914   : > { %v10444_v38 = vunpack.i.h.bf16 %v10442_v34  ;;  %v10443_v40 = vunpack.i.l.bf16 %v10442_v34  ;;  %v4575_v43 = vsel %vm357_vm0, %v10423_v37, %v10433_v31  ;;  %v4576_v57 = vsel %vm357_vm0, %v10433_v31, %v10434_v30 }
 0x915   : > { %v10437_v51 = vpop.permute.xlu1 %10436 }
 0x916   : > { %v4577_v44 = vsel %vm357_vm0, %v10424_v28, %v10443_v40  ;;  %v4578_v39 = vsel %vm357_vm0, %v10443_v40, %v10444_v38  ;;  %v10439_v61 = vunpack.i.h.bf16 %v10437_v51  ;;  %v10438_v15 = vunpack.i.l.bf16 %v10437_v51 }
 0x917   : > { %v9093_v35 = vpack.c.bf16 %v4577_v44, %v4575_v43  ;;  %v10447_v46 = vpop.permute.xlu0 %10446  ;;  %v9090_v29 = vpack.c.bf16 %v4578_v39, %v4576_v57 }
 0x918   : > { %v10449_v7 = vunpack.i.h.bf16 %v10447_v46  ;;  %v10448_v19 = vunpack.i.l.bf16 %v10447_v46  ;;  %v4704_v24 = vsel %vm541_vm2, %v10438_v15, %v10439_v61 }
 0x919   : > { %v4634_v47 = vpop.permute.xlu1 %4633  ;;  %9091 = vmatprep.subr.msk.bf16.mxu0 %vm11793_vm14, %v9090_v29 }
 0x91a   : > { %9094 = vmatpush1.bf16.msk.msra.mxu0 %vm11804_vm15, %v9093_v35  ;;  %v4643_v55 = vsel %vm396_vm11, %v4632_v27, %v4634_v47  ;;  %v4706_v32 = vsel %vm541_vm2, %v10448_v19, %v10449_v7 }
 0x91b   : > { %v4636_v48 = vpop.permute.xlu0 %4635  ;;  %v9102_v51 = vpack.c.bf16 %v4706_v32, %v4704_v24 }
 0x91c   : > { %v4644_v8 = vsel %vm396_vm11, %v4634_v47, %v4636_v48 }
 0x91d   : > { %v10457_v50 = vpop.permute.xlu1 %10456 }
 0x91e   : > { %v10459_v54 = vunpack.i.h.bf16 %v10457_v50  ;;  %v10458_v53 = vunpack.i.l.bf16 %v10457_v50 }
 0x91f   : > { %v10452_v33 = vpop.permute.xlu0 %10451 }
 0x920   : > { %v10454_v58 = vunpack.i.h.bf16 %v10452_v33  ;;  %v10453_v59 = vunpack.i.l.bf16 %v10452_v33  ;;  %v4581_v60 = vsel %vm357_vm0, %v10429_v9, %v10458_v53  ;;  %v4582_v63 = vsel %vm357_vm0, %v10458_v53, %v10459_v54 }
 0x921   : > { %v10462_v36 = vpop.permute.xlu1 %10461 }
 0x922   : > { %v4579_v26 = vsel %vm357_vm0, %v10428_v56, %v10453_v59  ;;  %v4580_v0 = vsel %vm357_vm0, %v10453_v59, %v10454_v58  ;;  %v10464_v13 = vunpack.i.h.bf16 %v10462_v36  ;;  %v10463_v18 = vunpack.i.l.bf16 %v10462_v36 }
 0x923   : > { %v9099_v3 = vpack.c.bf16 %v4581_v60, %v4579_v26  ;;  %v10467_v4 = vpop.permute.xlu0 %10466  ;;  %v9096_v5 = vpack.c.bf16 %v4582_v63, %v4580_v0 }
 0x924   : > { %v10469_v62 = vunpack.i.h.bf16 %v10467_v4  ;;  %v10468_v30 = vunpack.i.l.bf16 %v10467_v4  ;;  %v4705_v34 = vsel %vm541_vm2, %v10464_v13, %v10448_v19  ;;  %v4703_v28 = vsel %vm541_vm2, %v10463_v18, %v10438_v15 }
 0x925   : > { %v10472_v6 = vpop.permute.xlu1 %10471  ;;  %9097 = vmatprep.subr.msk.bf16.mxu0 %vm11793_vm14, %v9096_v5  ;;  %v9105_v57 = vpack.c.bf16 %v4705_v34, %v4703_v28 }
 0x926   : > { %9100 = vmatpush1.bf16.msk.msra.mxu0 %vm11804_vm15, %v9099_v3  ;;  %v10474_v16 = vunpack.i.h.bf16 %v10472_v6  ;;  %v10473_v22 = vunpack.i.l.bf16 %v10472_v6  ;;  %v4708_v44 = vsel %vm541_vm2, %v10468_v30, %v10469_v62 }
 0x927   : > { %v4640_v14 = vpop.permute.xlu0 %4639  ;;  %5215 = vmatprep.subr.bf16.mxu0 %v4644_v8 }
 0x928   : > { %v4645_v40 = vsel %vm396_vm11, %v12758_v1, %v4640_v14  ;;  %v4710_v43 = vsel %vm541_vm2, %v10473_v22, %v10474_v16 }
 0x929   : > { %v4642_v21 = vpop.permute.xlu1 %4641  ;;  %v9108_v54 = vpack.c.bf16 %v4710_v43, %v4708_v44 }
 0x92a   : > { %5216 = vmatpush1.bf16.msra.mxu0 %v4643_v55  ;;  %v4646_v23 = vsel %vm396_vm11, %v4640_v14, %v4642_v21 }
 0x92b   : > { %v10477_v31 = vpop.permute.xlu0 %10476  ;;  %5217 = vmatprep.subr.bf16.mxu0 %v4646_v23 }
 0x92c   : > { %v10479_v37 = vunpack.i.h.bf16 %v10477_v31  ;;  %v10478_v38 = vunpack.i.l.bf16 %v10477_v31 }
 0x92d   : > { %v10482_v27 = vpop.permute.xlu1 %10481 }
 0x92e   : > { %5218 = vmatpush1.bf16.msra.mxu0 %v4645_v40  ;;  %v10484_v39 = vunpack.i.h.bf16 %v10482_v27  ;;  %v10483_v35 = vunpack.i.l.bf16 %v10482_v27  ;;  %v4707_v29 = vsel %vm541_vm2, %v10478_v38, %v10468_v30  ;;  %v4709_v47 = vsel %vm541_vm2, %v10479_v37, %v10473_v22 }
 0x92f   : > { %v10487_v46 = vpop.permute.xlu0 %10486  ;;  %9103 = vmatprep.subr.msk.bf16.mxu0 %vm11828_vm1, %v9102_v51  ;;  %v9111_v56 = vpack.c.bf16 %v4709_v47, %v4707_v29 }
 0x930   : > { %v10489_v48 = vunpack.i.h.bf16 %v10487_v46  ;;  %v10488_v50 = vunpack.i.l.bf16 %v10487_v46  ;;  %v4784_v58 = vsel %vm633_vm8, %v10483_v35, %v10484_v39 }
 0x931   : > { %v10492_v1 = vpop.permute.xlu1 %10491 }
 0x932   : > { %v4786_v53 = vsel %vm633_vm8, %v10488_v50, %v10489_v48  ;;  %v10494_v33 = vunpack.i.h.bf16 %v10492_v1  ;;  %v10493_v9 = vunpack.i.l.bf16 %v10492_v1  ;;  %9106 = vmatpush1.bf16.msk.msra.mxu0 %vm11840_vm4, %v9105_v57 }
 0x933   : > { %v10497_v59 = vpop.permute.xlu0 %10496  ;;  %9109 = vmatprep.subr.msk.bf16.mxu0 %vm11828_vm1, %v9108_v54  ;;  %v9114_v3 = vpack.c.bf16 %v4786_v53, %v4784_v58 }
 0x934   : > { %v4785_v36 = vsel %vm633_vm8, %v10494_v33, %v10488_v50  ;;  %v4783_v60 = vsel %vm633_vm8, %v10493_v9, %v10483_v35  ;;  %v10499_v63 = vunpack.i.h.bf16 %v10497_v59  ;;  %v10498_v26 = vunpack.i.l.bf16 %v10497_v59 }
 0x935   : > { %v10502_v0 = vpop.permute.xlu1 %10501  ;;  %v9117_v6 = vpack.c.bf16 %v4785_v36, %v4783_v60 }
 0x936   : > { %v10504_v4 = vunpack.i.h.bf16 %v10502_v0  ;;  %v10503_v5 = vunpack.i.l.bf16 %v10502_v0  ;;  %9112 = vmatpush1.bf16.msk.msra.mxu0 %vm11840_vm4, %v9111_v56  ;;  %v4788_v19 = vsel %vm633_vm8, %v10498_v26, %v10499_v63 }
 0x937   : > { %v10507_v7 = vpop.permute.xlu0 %10506  ;;  %9115 = vmatprep.subr.msk.bf16.mxu0 %vm11793_vm14, %v9114_v3 }
 0x938   : > { %v4790_v8 = vsel %vm633_vm8, %v10503_v5, %v10504_v4  ;;  %v10509_v61 = vunpack.i.h.bf16 %v10507_v7  ;;  %v10508_v15 = vunpack.i.l.bf16 %v10507_v7 }
 0x939   : > { %v10512_v14 = vpop.permute.xlu1 %10511  ;;  %v9120_v13 = vpack.c.bf16 %v4790_v8, %v4788_v19 }
 0x93a   : > { %v4787_v18 = vsel %vm633_vm8, %v10508_v15, %v10498_v26  ;;  %v4789_v21 = vsel %vm633_vm8, %v10509_v61, %v10503_v5  ;;  %9118 = vmatpush1.bf16.msk.msra.mxu0 %vm11804_vm15, %v9117_v6  ;;  %v10514_v24 = vunpack.i.h.bf16 %v10512_v14  ;;  %v10513_v62 = vunpack.i.l.bf16 %v10512_v14 }
 0x93b   : > { %v9123_v55 = vpack.c.bf16 %v4789_v21, %v4787_v18  ;;  %v10517_v32 = vpop.permute.xlu0 %10516  ;;  %9121 = vmatprep.subr.msk.bf16.mxu0 %vm11793_vm14, %v9120_v13 }
 0x93c   : > { %v10519_v22 = vunpack.i.h.bf16 %v10517_v32  ;;  %v10518_v23 = vunpack.i.l.bf16 %v10517_v32  ;;  %v4880_v40 = vsel %vm808_vm9, %v10513_v62, %v10514_v24 }
 0x93d   : > { %v10522_v16 = vpop.permute.xlu1 %10521 }
 0x93e   : > { %9124 = vmatpush1.bf16.msk.msra.mxu0 %vm11804_vm15, %v9123_v55  ;;  %v10524_v31 = vunpack.i.h.bf16 %v10522_v16  ;;  %v10523_v34 = vunpack.i.l.bf16 %v10522_v16  ;;  %v4882_v37 = vsel %vm808_vm9, %v10518_v23, %v10519_v22 }
 0x93f   : > { %v10527_v30 = vpop.permute.xlu0 %10526  ;;  %5227 = vmatprep.subr.bf16.mxu0 %v12660_v52  ;;  %v9126_v29 = vpack.c.bf16 %v4882_v37, %v4880_v40 }
 0x940   : > { %v10529_v51 = vunpack.i.h.bf16 %v10527_v30  ;;  %v10528_v43 = vunpack.i.l.bf16 %v10527_v30  ;;  %v4881_v44 = vsel %vm808_vm9, %v10524_v31, %v10518_v23  ;;  %v4879_v52 = vsel %vm808_vm9, %v10523_v34, %v10513_v62 }
 0x941   : > { %v10532_v28 = vpop.permute.xlu1 %10531 }
 0x942   : > { %v10534_v38 = vunpack.i.h.bf16 %v10532_v28  ;;  %v10533_v27 = vunpack.i.l.bf16 %v10532_v28  ;;  %5228 = vmatpush1.bf16.msra.mxu0 %v12654_v49  ;;  %v9129_v49 = vpack.c.bf16 %v4881_v44, %v4879_v52  ;;  %v4884_v48 = vsel %vm808_vm9, %v10528_v43, %v10529_v51  ;;  %v11354_v51 = vld [vmem:[%s13859_s3 + $0xc0] ss:$12 sps:$4 sm:$0xff]   ;;  %v11357_v44 = vld [vmem:[%s13859_s3 + $0xdc] ss:$12 sps:$4 sm:$0xff]  }
 0x943   : > { %v10537_v57 = vpop.permute.xlu0 %10536  ;;  %5229 = vmatprep.subr.bf16.mxu0 %v12669_v10 }
 0x944   : > { %v10539_v39 = vunpack.i.h.bf16 %v10537_v57  ;;  %v10538_v35 = vunpack.i.l.bf16 %v10537_v57  ;;  %v4886_v47 = vsel %vm808_vm9, %v10533_v27, %v10534_v38 }
 0x945   : > { %v10542_v46 = vpop.permute.xlu1 %10541  ;;  %v9132_v58 = vpack.c.bf16 %v4886_v47, %v4884_v48 }
 0x946   : > { %5230 = vmatpush1.bf16.msra.mxu0 %v12665_v20  ;;  %v10544_v50 = vunpack.i.h.bf16 %v10542_v46  ;;  %v10543_v1 = vunpack.i.l.bf16 %v10542_v46  ;;  %v4883_v10 = vsel %vm808_vm9, %v10538_v35, %v10528_v43  ;;  %v4885_v53 = vsel %vm808_vm9, %v10539_v39, %v10533_v27 }
 0x947   : > { %v10547_v54 = vpop.permute.xlu0 %10546  ;;  %9127 = vmatprep.subr.msk.bf16.mxu0 %vm11828_vm1, %v9126_v29  ;;  %v9135_v60 = vpack.c.bf16 %v4885_v53, %v4883_v10 }
 0x948   : > { %v10549_v33 = vunpack.i.h.bf16 %v10547_v54  ;;  %v10548_v9 = vunpack.i.l.bf16 %v10547_v54  ;;  %v4960_v63 = vsel %vm900_vm10, %v10543_v1, %v10544_v50 }
 0x949   : > { %v10552_v56 = vpop.permute.xlu1 %10551 }
 0x94a   : > { %v4962_v59 = vsel %vm900_vm10, %v10548_v9, %v10549_v33  ;;  %v10554_v20 = vunpack.i.h.bf16 %v10552_v56  ;;  %v10553_v36 = vunpack.i.l.bf16 %v10552_v56  ;;  %9130 = vmatpush1.bf16.msk.msra.mxu0 %vm11840_vm4, %v9129_v49 }
 0x94b   : > { %v10557_v26 = vpop.permute.xlu0 %10556  ;;  %9133 = vmatprep.subr.msk.bf16.mxu0 %vm11828_vm1, %v9132_v58  ;;  %v9138_v7 = vpack.c.bf16 %v4962_v59, %v4960_v63  ;;  %v11359_v58 = vld [vmem:[%s13859_s3 + $0xd8] ss:$12 sps:$4 sm:$0xff]  }
 0x94c   : > { %v4961_v0 = vsel %vm900_vm10, %v10554_v20, %v10548_v9  ;;  %v4959_v3 = vsel %vm900_vm10, %v10553_v36, %v10543_v1  ;;  %v10559_v4 = vunpack.i.h.bf16 %v10557_v26  ;;  %v10558_v5 = vunpack.i.l.bf16 %v10557_v26 }
 0x94d   : > { %v10562_v6 = vpop.permute.xlu1 %10561  ;;  %v9141_v61 = vpack.c.bf16 %v4961_v0, %v4959_v3 }
 0x94e   : > { %v10564_v19 = vunpack.i.h.bf16 %v10562_v6  ;;  %v10563_v8 = vunpack.i.l.bf16 %v10562_v6  ;;  %9136 = vmatpush1.bf16.msk.msra.mxu0 %vm11840_vm4, %v9135_v60  ;;  %v4964_v14 = vsel %vm900_vm10, %v10558_v5, %v10559_v4 }
 0x94f   : > { %v10567_v15 = vpop.permute.xlu0 %10566  ;;  %9139 = vmatprep.subr.msk.bf16.mxu0 %vm11793_vm14, %v9138_v7  ;;  %v11360_v7 = vld [vmem:[%s13859_s3 + $0xc8] ss:$12 sps:$4 sm:$0xff]  }
 0x950   : > { %v4966_v13 = vsel %vm900_vm10, %v10563_v8, %v10564_v19  ;;  %v10569_v18 = vunpack.i.h.bf16 %v10567_v15  ;;  %v10568_v21 = vunpack.i.l.bf16 %v10567_v15  ;;  %v11361_v19 = vld [vmem:[%s13859_s3 + $0xe0] ss:$12 sps:$4 sm:$0xff]  }
 0x951   : > { %v5018_v55 = vpop.permute.xlu1 %5017  ;;  %v9144_v32 = vpack.c.bf16 %v4966_v13, %v4964_v14 }
 0x952   : > { %v4963_v16 = vsel %vm900_vm10, %v10568_v21, %v10558_v5  ;;  %v4965_v22 = vsel %vm900_vm10, %v10569_v18, %v10563_v8  ;;  %9142 = vmatpush1.bf16.msk.msra.mxu0 %vm11804_vm15, %v9141_v61 }
 0x953   : > { %v9147_v23 = vpack.c.bf16 %v4965_v22, %v4963_v16  ;;  %v5020_v24 = vpop.permute.xlu0 %5019  ;;  %9145 = vmatprep.subr.msk.bf16.mxu0 %vm11793_vm14, %v9144_v32 }
 0x954   : > { %v5028_v30 = vsel %vm1002_vm12, %v5018_v55, %v5020_v24 }
 0x955   : > { %v5016_v62 = vpop.permute.xlu1 %5015 }
 0x956   : > { %9148 = vmatpush1.bf16.msk.msra.mxu0 %vm11804_vm15, %v9147_v23  ;;  %v5027_v34 = vsel %vm1002_vm12, %v5016_v62, %v5018_v55 }
 0x957   : > { %v5024_v31 = vpop.permute.xlu0 %5023  ;;  %5239 = vmatprep.subr.bf16.mxu0 %v5028_v30 }
 0x959   : > { %v5026_v28 = vpop.permute.xlu1 %5025 }
 0x95a   : > { %5240 = vmatpush1.bf16.msra.mxu0 %v5027_v34  ;;  %v5030_v37 = vsel %vm1002_vm12, %v5024_v31, %v5026_v28 }
 0x95b   : > { %v5022_v38 = vpop.permute.xlu0 %5021  ;;  %5241 = vmatprep.subr.bf16.mxu0 %v5030_v37 }
 0x95c   : > { %v5029_v27 = vsel %vm1002_vm12, %v5022_v38, %v5024_v31 }
 0x95d   : > { %v10572_v40 = vpop.permute.xlu1 %10571 }
 0x95e   : > { %v10574_v43 = vunpack.i.h.bf16 %v10572_v40  ;;  %v10573_v57 = vunpack.i.l.bf16 %v10572_v40  ;;  %5242 = vmatpush1.bf16.msra.mxu0 %v5029_v27 }
 0x95f   : > { %v10577_v52 = vpop.permute.xlu0 %10576 }
 0x960   : > { %v10579_v39 = vunpack.i.h.bf16 %v10577_v52  ;;  %v10578_v35 = vunpack.i.l.bf16 %v10577_v52  ;;  %v5088_v29 = vsel %vm1084_vm13, %v10573_v57, %v10574_v43 }
 0x961   : > { %v10582_v46 = vpop.permute.xlu1 %10581  ;;  %5244 = vmatmul.mubr.bf16.vlgmr.msra.gmra.mrb[16].mxu0 %v11354_v51 }
 0x962   : > { %v5090_v47 = vsel %vm1084_vm13, %v10578_v35, %v10579_v39  ;;  %v10584_v49 = vunpack.i.h.bf16 %v10582_v46  ;;  %v10583_v48 = vunpack.i.l.bf16 %v10582_v46  ;;  %5253 = vmatprep.mubr.bf16.mxu0 %v11357_v44 }
 0x963   : > { %v10587_v50 = vpop.permute.xlu0 %10586  ;;  %v9150_v1 = vpack.c.bf16 %v5090_v47, %v5088_v29 }
 0x964   : > { %v5089_v54 = vsel %vm1084_vm13, %v10584_v49, %v10578_v35  ;;  %v5087_v10 = vsel %vm1084_vm13, %v10583_v48, %v10573_v57  ;;  %v10589_v53 = vunpack.i.h.bf16 %v10587_v50  ;;  %v10588_v33 = vunpack.i.l.bf16 %v10587_v50 }
 0x965   : > { %v9153_v9 = vpack.c.bf16 %v5089_v54, %v5087_v10  ;;  %v10592_v56 = vpop.permute.xlu1 %10591  ;;  %9151 = vmatprep.subr.msk.bf16.mxu0 %vm11828_vm1, %v9150_v1 }
 0x966   : > { %v10594_v59 = vunpack.i.h.bf16 %v10592_v56  ;;  %v10593_v20 = vunpack.i.l.bf16 %v10592_v56  ;;  %v5092_v60 = vsel %vm1084_vm13, %v10588_v33, %v10589_v53  ;;  %v12926_v53 = vld [vmem:[#allocation2] sm:$0xff] }
 0x967   : > { %v10597_v36 = vpop.permute.xlu0 %10596  ;;  %9154 = vmatpush1.bf16.msk.msra.mxu0 %vm11840_vm4, %v9153_v9 }
 0x968   : > { %v5094_v63 = vsel %vm1084_vm13, %v10593_v20, %v10594_v59  ;;  %v10599_v26 = vunpack.i.h.bf16 %v10597_v36  ;;  %v10598_v0 = vunpack.i.l.bf16 %v10597_v36  ;;  %v8744_v59 = vld [vmem:[%s13860_s4 + $0xa0] sm:$0xff]  ;;  %v8746_v36 = vld [vmem:[%s13860_s4 + $0xb0] sm:$0xff] }
 0x969   : > { %5254 = vmatmul.mubr.bf16.gmra.mrb[20].mxu0 %v11359_v58  ;;  %v9156_v3 = vpack.c.bf16 %v5094_v63, %v5092_v60  ;;  %v8747_v60 = vld [vmem:[%s13860_s4 + $0xb8] sm:$0xff] }
 0x96a   : > { %v5091_v4 = vsel %vm1084_vm13, %v10598_v0, %v10588_v33  ;;  %v5093_v5 = vsel %vm1084_vm13, %v10599_v26, %v10593_v20  ;;  %5296 = vmatprep.mubr.bf16.mxu0 %v11402_v12  ;;  %v8745_v20 = vld [vmem:[%s13860_s4 + $0xa8] sm:$0xff] }
 0x96b   : > { %v9159_v6 = vpack.c.bf16 %v5093_v5, %v5091_v4  ;;  %9157 = vmatprep.subr.msk.bf16.mxu0 %vm11828_vm1, %v9156_v3 }
 0x96d   : > { %9160 = vmatpush1.bf16.msk.msra.mxu0 %vm11840_vm4, %v9159_v6 }
 0x971   : > { %8734 = vmatmul.mubr.msk.bf16.vlgmr.msra.gmra.mrb[16].mxu0 %vm1908_vm3, %v11360_v7 }
 0x972   : > { %5306 = vmatprep.mubr.bf16.mxu0 %v11402_v12 }
 0x976   : > { %v5158_v8 = vpop.permute.xlu1 %5157 }
 0x978   : > { %v5163_v13 = vpop.permute.xlu0 %5162 }
 0x979   : > { %8735 = vmatmul.mubr.msk.bf16.gmra.mrb[20].mxu0 %vm1908_vm3, %v11361_v19 }
 0x97a   : > { %v5168_v28 = vpop.permute.xlu1 %5167 }
 0x97c   : > { %v5173_v43 = vpop.permute.xlu0 %5172 }
 0x97e   : > { %v10602_v63 = vpop.permute.xlu1 %10601 }
 0x97f   : > { %v10604_v19 = vunpack.i.h.bf16 %v10602_v63 }
 0x980   : > { %v10607_v26 = vpop.permute.xlu0 %10606 }
 0x982   : > { %v5452_v0 = vpop.permute.xlu1 %5451 }
 0x984   : > { %v12980_v3 = vpop.permute.xlu0 %5457 }
 0xa44   : > { %v5298_v61 = vpop.f32.mrb[16].mxu0 }
 0xa45   : > { %v9489_v15 = vadd.f32 %v5298_v61, %v5158_v8  ;;  %v5300_v14 = vpop.f32.mrb[17].mxu0 }
 0xa46   : > { %v9490_v18 = vadd.f32 %v5300_v14, %v5158_v8  ;;  %v5302_v21 = vpop.f32.mrb[18].mxu0  ;;  %v10603_v8 = vunpack.i.l.bf16 %v10602_v63 }
 0xa47   : > { %v5317_v55 = vmax.f32 %v9489_v15, 0.0  ;;  %v9491_v32 = vadd.f32 %v5302_v21, %v5163_v13  ;;  %v5304_v16 = vpop.f32.mrb[19].mxu0 }
 0xa48   : > { %v5318_v22 = vmax.f32 %v9490_v18, 0.0  ;;  %v9492_v23 = vadd.f32 %v5304_v16, %v5163_v13 }
 0xa49   : > { %v5319_v24 = vmax.f32 %v9491_v32, 0.0 }
 0xa4a   : > { %v5320_v62 = vmax.f32 %v9492_v23, 0.0  ;;  %v10610_v30 = vpack.i.bf16 %v5318_v22, %v5317_v55  ;;  %v10690_v33 = vpack.i.bf16 %v12926_v53, %v5318_v22 }
 0xa4b   : > { %v12888_v31 = vpack.c.bf16 %v5319_v24, %v5317_v55  ;;  %v12890_v34 = vpack.i.bf16 %v5319_v24, %v5317_v55 }
 0xa4c   : > { %v5308_v37 = vpop.f32.mrb[20].mxu0  ;;  %10611 = vrot.lane.b32.xlu1 %v10610_v30, %s11403_s30  ;;  %v10620_v38 = vpack.i.bf16 %v5320_v62, %v5319_v24  ;;  %v12893_v27 = vpack.c.bf16 %v5320_v62, %v5318_v22  ;;  %v10695_v9 = vpack.i.bf16 %v12926_v53, %v5320_v62 }
 0xa4d   : > { %v9493_v40 = vadd.f32 %v5308_v37, %v5168_v28  ;;  %v5310_v51 = vpop.f32.mrb[21].mxu0  ;;  %v10609_v37 = vunpack.i.h.bf16 %v10607_v26 }
 0xa4e   : > { %v9494_v57 = vadd.f32 %v5310_v51, %v5168_v28  ;;  %v5312_v44 = vpop.f32.mrb[22].mxu0  ;;  %10621 = vrot.lane.b32.xlu0 %v10620_v38, %s11403_s30 }
 0xa4f   : > { %v5321_v52 = vmax.f32 %v9493_v40, 0.0  ;;  %v9495_v39 = vadd.f32 %v5312_v44, %v5173_v43  ;;  %v5314_v35 = vpop.f32.mrb[23].mxu0 }
 0xa50   : > { %v5322_v46 = vmax.f32 %v9494_v57, 0.0  ;;  %v9496_v29 = vadd.f32 %v5314_v35, %v5173_v43  ;;  %10616 = vrot.lane.b32.xlu1 %v10610_v30, %s11404_s8 }
 0xa51   : > { %v5323_v47 = vmax.f32 %v9495_v39, 0.0 }
 0xa52   : > { %v5324_v49 = vmax.f32 %v9496_v29, 0.0  ;;  %10626 = vrot.lane.b32.xlu0 %v10620_v38, %s11404_s8  ;;  %v10630_v48 = vpack.i.bf16 %v5322_v46, %v5321_v52  ;;  %v10705_v56 = vpack.i.bf16 %v12926_v53, %v5322_v46 }
 0xa53   : > { %v12898_v50 = vpack.c.bf16 %v5323_v47, %v5321_v52  ;;  %v10715_v1 = vpack.i.bf16 %v5323_v47, %v5321_v52 }
 0xa54   : > { %5453 = vrot.lane.b32.xlu1 %v12888_v31, %s11415_s23  ;;  %v10635_v54 = vpack.i.bf16 %v5324_v49, %v5323_v47  ;;  %v12902_v10 = vpack.c.bf16 %v5324_v49, %v5322_v46  ;;  %v10710_v58 = vpack.i.bf16 %v12926_v53, %v5324_v49 }
 0xa56   : > { %5455 = vrot.lane.b32.xlu0 %v12893_v27, %s11415_s23 }
 0xa58   : > { %10636 = vrot.lane.b32.xlu1 %v10635_v54, %s11403_s30 }
 0xa5a   : > { %10631 = vrot.lane.b32.xlu0 %v10630_v48, %s11403_s30 }
 0xa5c   : > { %10641 = vrot.lane.b32.xlu1 %v12692_v11, %s11404_s8 }
 0xa5e   : > { %10646 = vrot.lane.b32.xlu0 %v10630_v48, %s11404_s8 }
 0xa60   : > { %10651 = vrot.lane.b32.xlu1 %v10635_v54, %s11404_s8 }
 0xa62   : > { %5459 = vrot.lane.b32.xlu0 %v12898_v50, %s11415_s23 }
 0xa64   : > { %5461 = vrot.lane.b32.xlu1 %v12902_v10, %s11415_s23 }
 0xa66   : > { %10656 = vrot.lane.b32.xlu0 %v12692_v11, %s11404_s8 }
 0xa68   : > { %10661 = vrot.lane.b32.xlu1 %v10610_v30, %s11406_s14 }
 0xa6a   : > { %10666 = vrot.lane.b32.xlu0 %v10620_v38, %s11406_s14  ;;  %v10608_v38 = vunpack.i.l.bf16 %v10607_v26 }
 0xa6c   : > { %10671 = vrot.lane.b32.xlu1 %v12692_v11, %s11406_s14 }
 0xa6e   : > { %10676 = vrot.lane.b32.xlu0 %v10630_v48, %s11406_s14 }
 0xa70   : > { %10681 = vrot.lane.b32.xlu1 %v10635_v54, %s11406_s14 }
 0xa72   : > { %10686 = vrot.lane.b32.xlu0 %v12692_v11, %s11406_s14  ;;  %v11364_v11 = vld [vmem:[%s13859_s3 + $0xf4] ss:$12 sps:$4 sm:$0xff]  }
 0xa73   : > { %6063 = vmatprep.mubr.bf16.mxu1 %v11364_v11 }
 0xa74   : > { %10691 = vrot.lane.b32.xlu1 %v10690_v33, %s11409_s17 }
 0xa76   : > { %10696 = vrot.lane.b32.xlu0 %v10695_v9, %s11409_s17 }
 0xa78   : > { %10701 = vrot.lane.b32.xlu1 %v12890_v34, %s11409_s17 }
 0xa7a   : > { %10706 = vrot.lane.b32.xlu0 %v10705_v56, %s11409_s17 }
 0xa7c   : > { %10711 = vrot.lane.b32.xlu1 %v10710_v58, %s11409_s17 }
 0xa7e   : > { %10716 = vrot.lane.b32.xlu0 %v10715_v1, %s11409_s17 }
 0xa80   : > { %10721 = vrot.lane.b32.xlu1 %v10690_v33, %s11411_s19 }
 0xa82   : > { %10726 = vrot.lane.b32.xlu0 %v10695_v9, %s11411_s19 }
 0xa84   : > { %10731 = vrot.lane.b32.xlu1 %v12890_v34, %s11411_s19 }
 0xa86   : > { %10736 = vrot.lane.b32.xlu0 %v10705_v56, %s11411_s19 }
 0xa88   : > { %10741 = vrot.lane.b32.xlu1 %v10710_v58, %s11411_s19 }
 0xa8a   : > { %10746 = vrot.lane.b32.xlu0 %v10715_v1, %s11411_s19 }
 0xa8c   : > { %5837 = vrot.lane.b32.xlu1 %v12893_v27, %s11408_s16 }
 0xa8e   : > { %5839 = vrot.lane.b32.xlu0 %v11418_v17, %s11408_s16 }
 0xa90   : > { %5835 = vrot.lane.b32.xlu1 %v12888_v31, %s11408_s16 }
 0xa92   : > { %5843 = vrot.lane.b32.xlu0 %v12902_v10, %s11408_s16 }
 0xa94   : > { %5845 = vrot.lane.b32.xlu1 %v11418_v17, %s11408_s16 }
 0xa96   : > { %5841 = vrot.lane.b32.xlu0 %v12898_v50, %s11408_s16 }
 0xa98   : > { %10751 = vrot.lane.b32.xlu1 %v10690_v33, %s11414_s22 }
 0xa9a   : > { %10756 = vrot.lane.b32.xlu0 %v10695_v9, %s11414_s22 }
 0xa9c   : > { %10761 = vrot.lane.b32.xlu1 %v12890_v34, %s11414_s22 }
 0xa9e   : > { %10766 = vrot.lane.b32.xlu0 %v10705_v56, %s11414_s22 }
 0xaa0   : > { %10771 = vrot.lane.b32.xlu1 %v10710_v58, %s11414_s22 }
 0xaa2   : > { %10776 = vrot.lane.b32.xlu0 %v10715_v1, %s11414_s22 }
 0xaa4   : > { %5977 = vperm.xlu1 %9699, %v8744_v59  }
 0xaa6   : > { %5982 = vperm.xlu0 %9698, %v8745_v20  }
 0xaa8   : > { %5987 = vperm.xlu1 %9699, %v8746_v36  }
 0xaaa   : > { %5992 = vperm.xlu0 %9698, %v8747_v60  }
 0xabe   : > { %v10612_v4 = vpop.permute.xlu1 %10611 }
 0xabf   : > { %v10614_v5 = vunpack.i.h.bf16 %v10612_v4  ;;  %v10613_v6 = vunpack.i.l.bf16 %v10612_v4 }
 0xac0   : > { %v10622_v7 = vpop.permute.xlu0 %10621 }
 0xac1   : > { %v10624_v61 = vunpack.i.h.bf16 %v10622_v7  ;;  %v10623_v15 = vunpack.i.l.bf16 %v10622_v7  ;;  %v5395_v13 = vsel %vm357_vm0, %v10603_v8, %v10613_v6  ;;  %v5396_v18 = vsel %vm357_vm0, %v10613_v6, %v10614_v5 }
 0xac2   : > { %v10617_v14 = vpop.permute.xlu1 %10616 }
 0xac3   : > { %v5397_v21 = vsel %vm357_vm0, %v10604_v19, %v10623_v15  ;;  %v5398_v55 = vsel %vm357_vm0, %v10623_v15, %v10624_v61  ;;  %v10619_v54 = vunpack.i.h.bf16 %v10617_v14  ;;  %v10618_v33 = vunpack.i.l.bf16 %v10617_v14 }
 0xac4   : > { %v9165_v32 = vpack.c.bf16 %v5397_v21, %v5395_v13  ;;  %v10627_v16 = vpop.permute.xlu0 %10626  ;;  %v9162_v22 = vpack.c.bf16 %v5398_v55, %v5396_v18 }
 0xac5   : > { %v10629_v49 = vunpack.i.h.bf16 %v10627_v16  ;;  %v10628_v48 = vunpack.i.l.bf16 %v10627_v16  ;;  %v5524_v26 = vsel %vm541_vm2, %v10618_v33, %v10619_v54 }
 0xac6   : > { %9163 = vmatprep.subr.msk.bf16.mxu1 %vm11793_vm14, %v9162_v22  ;;  %v5454_v23 = vpop.permute.xlu1 %5453 }
 0xac7   : > { %9166 = vmatpush1.bf16.msk.msra.mxu1 %vm11804_vm15, %v9165_v32  ;;  %v5463_v59 = vsel %vm396_vm11, %v5452_v0, %v5454_v23  ;;  %v5526_v20 = vsel %vm541_vm2, %v10628_v48, %v10629_v49 }
 0xac8   : > { %v5456_v24 = vpop.permute.xlu0 %5455  ;;  %v9174_v14 = vpack.c.bf16 %v5526_v20, %v5524_v26 }
 0xac9   : > { %v5464_v1 = vsel %vm396_vm11, %v5454_v23, %v5456_v24 }
 0xaca   : > { %v10637_v62 = vpop.permute.xlu1 %10636 }
 0xacb   : > { %v10639_v30 = vunpack.i.h.bf16 %v10637_v62  ;;  %v10638_v34 = vunpack.i.l.bf16 %v10637_v62 }
 0xacc   : > { %v10632_v28 = vpop.permute.xlu0 %10631 }
 0xacd   : > { %v10634_v40 = vunpack.i.h.bf16 %v10632_v28  ;;  %v10633_v51 = vunpack.i.l.bf16 %v10632_v28  ;;  %v5401_v57 = vsel %vm357_vm0, %v10609_v37, %v10638_v34  ;;  %v5402_v44 = vsel %vm357_vm0, %v10638_v34, %v10639_v30 }
 0xace   : > { %v10642_v43 = vpop.permute.xlu1 %10641 }
 0xacf   : > { %v5399_v52 = vsel %vm357_vm0, %v10608_v38, %v10633_v51  ;;  %v5400_v39 = vsel %vm357_vm0, %v10633_v51, %v10634_v40  ;;  %v10644_v56 = vunpack.i.h.bf16 %v10642_v43  ;;  %v10643_v58 = vunpack.i.l.bf16 %v10642_v43 }
 0xad0   : > { %v9171_v35 = vpack.c.bf16 %v5401_v57, %v5399_v52  ;;  %v10647_v46 = vpop.permute.xlu0 %10646  ;;  %v9168_v29 = vpack.c.bf16 %v5402_v44, %v5400_v39 }
 0xad1   : > { %v10649_v4 = vunpack.i.h.bf16 %v10647_v46  ;;  %v10648_v5 = vunpack.i.l.bf16 %v10647_v46  ;;  %v5525_v7 = vsel %vm541_vm2, %v10644_v56, %v10628_v48  ;;  %v5523_v19 = vsel %vm541_vm2, %v10643_v58, %v10618_v33 }
 0xad2   : > { %v10652_v47 = vpop.permute.xlu1 %10651  ;;  %9169 = vmatprep.subr.msk.bf16.mxu1 %vm11793_vm14, %v9168_v29  ;;  %v9177_v18 = vpack.c.bf16 %v5525_v7, %v5523_v19 }
 0xad3   : > { %9172 = vmatpush1.bf16.msk.msra.mxu1 %vm11804_vm15, %v9171_v35  ;;  %v10654_v36 = vunpack.i.h.bf16 %v10652_v47  ;;  %v10653_v60 = vunpack.i.l.bf16 %v10652_v47  ;;  %v5528_v21 = vsel %vm541_vm2, %v10648_v5, %v10649_v4 }
 0xad4   : > { %v5460_v9 = vpop.permute.xlu0 %5459  ;;  %6035 = vmatprep.subr.bf16.mxu1 %v5464_v1 }
 0xad5   : > { %v5465_v15 = vsel %vm396_vm11, %v12980_v3, %v5460_v9  ;;  %v5530_v13 = vsel %vm541_vm2, %v10653_v60, %v10654_v36 }
 0xad6   : > { %v5462_v11 = vpop.permute.xlu1 %5461  ;;  %v9180_v30 = vpack.c.bf16 %v5530_v13, %v5528_v21 }
 0xad7   : > { %6036 = vmatpush1.bf16.msra.mxu1 %v5463_v59  ;;  %v5466_v63 = vsel %vm396_vm11, %v5460_v9, %v5462_v11 }
 0xad8   : > { %v10657_v6 = vpop.permute.xlu0 %10656  ;;  %6037 = vmatprep.subr.bf16.mxu1 %v5466_v63 }
 0xad9   : > { %v10659_v8 = vunpack.i.h.bf16 %v10657_v6  ;;  %v10658_v61 = vunpack.i.l.bf16 %v10657_v6 }
 0xada   : > { %v10662_v0 = vpop.permute.xlu1 %10661 }
 0xadb   : > { %6038 = vmatpush1.bf16.msra.mxu1 %v5465_v15  ;;  %v10664_v55 = vunpack.i.h.bf16 %v10662_v0  ;;  %v10663_v32 = vunpack.i.l.bf16 %v10662_v0  ;;  %v5527_v22 = vsel %vm541_vm2, %v10658_v61, %v10648_v5  ;;  %v5529_v23 = vsel %vm541_vm2, %v10659_v8, %v10653_v60 }
 0xadc   : > { %v10667_v16 = vpop.permute.xlu0 %10666  ;;  %9175 = vmatprep.subr.msk.bf16.mxu1 %vm11828_vm1, %v9174_v14  ;;  %v9183_v38 = vpack.c.bf16 %v5529_v23, %v5527_v22 }
 0xadd   : > { %v10669_v24 = vunpack.i.h.bf16 %v10667_v16  ;;  %v10668_v62 = vunpack.i.l.bf16 %v10667_v16  ;;  %v5604_v40 = vsel %vm633_vm8, %v10663_v32, %v10664_v55 }
 0xade   : > { %v10672_v3 = vpop.permute.xlu1 %10671 }
 0xadf   : > { %v5606_v34 = vsel %vm633_vm8, %v10668_v62, %v10669_v24  ;;  %v10674_v28 = vunpack.i.h.bf16 %v10672_v3  ;;  %v10673_v37 = vunpack.i.l.bf16 %v10672_v3  ;;  %9178 = vmatpush1.bf16.msk.msra.mxu1 %vm11840_vm4, %v9177_v18 }
 0xae0   : > { %v10677_v51 = vpop.permute.xlu0 %10676  ;;  %9181 = vmatprep.subr.msk.bf16.mxu1 %vm11828_vm1, %v9180_v30  ;;  %v9186_v35 = vpack.c.bf16 %v5606_v34, %v5604_v40 }
 0xae1   : > { %v5605_v43 = vsel %vm633_vm8, %v10674_v28, %v10668_v62  ;;  %v5603_v57 = vsel %vm633_vm8, %v10673_v37, %v10663_v32  ;;  %v10679_v44 = vunpack.i.h.bf16 %v10677_v51  ;;  %v10678_v52 = vunpack.i.l.bf16 %v10677_v51 }
 0xae2   : > { %v10682_v39 = vpop.permute.xlu1 %10681  ;;  %v9189_v47 = vpack.c.bf16 %v5605_v43, %v5603_v57 }
 0xae3   : > { %v10684_v46 = vunpack.i.h.bf16 %v10682_v39  ;;  %v10683_v29 = vunpack.i.l.bf16 %v10682_v39  ;;  %9184 = vmatpush1.bf16.msk.msra.mxu1 %vm11840_vm4, %v9183_v38  ;;  %v5608_v48 = vsel %vm633_vm8, %v10678_v52, %v10679_v44 }
 0xae4   : > { %v10687_v49 = vpop.permute.xlu0 %10686  ;;  %9187 = vmatprep.subr.msk.bf16.mxu1 %vm11793_vm14, %v9186_v35 }
 0xae5   : > { %v5610_v1 = vsel %vm633_vm8, %v10683_v29, %v10684_v46  ;;  %v10689_v54 = vunpack.i.h.bf16 %v10687_v49  ;;  %v10688_v33 = vunpack.i.l.bf16 %v10687_v49 }
 0xae6   : > { %v10692_v9 = vpop.permute.xlu1 %10691  ;;  %v9192_v56 = vpack.c.bf16 %v5610_v1, %v5608_v48 }
 0xae7   : > { %v5607_v58 = vsel %vm633_vm8, %v10688_v33, %v10678_v52  ;;  %v5609_v11 = vsel %vm633_vm8, %v10689_v54, %v10683_v29  ;;  %9190 = vmatpush1.bf16.msk.msra.mxu1 %vm11804_vm15, %v9189_v47  ;;  %v10694_v26 = vunpack.i.h.bf16 %v10692_v9  ;;  %v10693_v4 = vunpack.i.l.bf16 %v10692_v9 }
 0xae8   : > { %v9195_v59 = vpack.c.bf16 %v5609_v11, %v5607_v58  ;;  %v10697_v20 = vpop.permute.xlu0 %10696  ;;  %9193 = vmatprep.subr.msk.bf16.mxu1 %vm11793_vm14, %v9192_v56 }
 0xae9   : > { %v10699_v60 = vunpack.i.h.bf16 %v10697_v20  ;;  %v10698_v63 = vunpack.i.l.bf16 %v10697_v20  ;;  %v5700_v15 = vsel %vm808_vm9, %v10693_v4, %v10694_v26 }
 0xaea   : > { %v10702_v36 = vpop.permute.xlu1 %10701 }
 0xaeb   : > { %9196 = vmatpush1.bf16.msk.msra.mxu1 %vm11804_vm15, %v9195_v59  ;;  %v10704_v6 = vunpack.i.h.bf16 %v10702_v36  ;;  %v10703_v7 = vunpack.i.l.bf16 %v10702_v36  ;;  %v5702_v8 = vsel %vm808_vm9, %v10698_v63, %v10699_v60 }
 0xaec   : > { %v10707_v5 = vpop.permute.xlu0 %10706  ;;  %6047 = vmatprep.subr.bf16.mxu1 %v12893_v27  ;;  %v9198_v22 = vpack.c.bf16 %v5702_v8, %v5700_v15 }
 0xaed   : > { %v10709_v14 = vunpack.i.h.bf16 %v10707_v5  ;;  %v10708_v13 = vunpack.i.l.bf16 %v10707_v5  ;;  %v5701_v21 = vsel %vm808_vm9, %v10704_v6, %v10698_v63  ;;  %v5699_v27 = vsel %vm808_vm9, %v10703_v7, %v10693_v4 }
 0xaee   : > { %v10712_v19 = vpop.permute.xlu1 %10711 }
 0xaef   : > { %v10714_v61 = vunpack.i.h.bf16 %v10712_v19  ;;  %v10713_v0 = vunpack.i.l.bf16 %v10712_v19  ;;  %6048 = vmatpush1.bf16.msra.mxu1 %v12888_v31  ;;  %v9201_v31 = vpack.c.bf16 %v5701_v21, %v5699_v27  ;;  %v5704_v24 = vsel %vm808_vm9, %v10708_v13, %v10709_v14  ;;  %v11362_v14 = vld [vmem:[%s13859_s3 + $0xf0] ss:$12 sps:$4 sm:$0xff]   ;;  %v11365_v21 = vld [vmem:[%s13859_s3 + $0x10c] ss:$12 sps:$4 sm:$0xff]  }
 0xaf0   : > { %v10717_v18 = vpop.permute.xlu0 %10716  ;;  %6049 = vmatprep.subr.bf16.mxu1 %v12902_v10 }
 0xaf1   : > { %v10719_v55 = vunpack.i.h.bf16 %v10717_v18  ;;  %v10718_v32 = vunpack.i.l.bf16 %v10717_v18  ;;  %v5706_v23 = vsel %vm808_vm9, %v10713_v0, %v10714_v61 }
 0xaf2   : > { %v10722_v16 = vpop.permute.xlu1 %10721  ;;  %v9204_v40 = vpack.c.bf16 %v5706_v23, %v5704_v24 }
 0xaf3   : > { %6050 = vmatpush1.bf16.msra.mxu1 %v12898_v50  ;;  %v10724_v62 = vunpack.i.h.bf16 %v10722_v16  ;;  %v10723_v3 = vunpack.i.l.bf16 %v10722_v16  ;;  %v5703_v10 = vsel %vm808_vm9, %v10718_v32, %v10708_v13  ;;  %v5705_v34 = vsel %vm808_vm9, %v10719_v55, %v10713_v0 }
 0xaf4   : > { %v10727_v30 = vpop.permute.xlu0 %10726  ;;  %9199 = vmatprep.subr.msk.bf16.mxu1 %vm11828_vm1, %v9198_v22  ;;  %v9207_v57 = vpack.c.bf16 %v5705_v34, %v5703_v10 }
 0xaf5   : > { %v10729_v28 = vunpack.i.h.bf16 %v10727_v30  ;;  %v10728_v37 = vunpack.i.l.bf16 %v10727_v30  ;;  %v5780_v44 = vsel %vm900_vm10, %v10723_v3, %v10724_v62 }
 0xaf6   : > { %v10732_v38 = vpop.permute.xlu1 %10731 }
 0xaf7   : > { %v5782_v51 = vsel %vm900_vm10, %v10728_v37, %v10729_v28  ;;  %v10734_v50 = vunpack.i.h.bf16 %v10732_v38  ;;  %v10733_v43 = vunpack.i.l.bf16 %v10732_v38  ;;  %9202 = vmatpush1.bf16.msk.msra.mxu1 %vm11840_vm4, %v9201_v31 }
 0xaf8   : > { %v10737_v52 = vpop.permute.xlu0 %10736  ;;  %9205 = vmatprep.subr.msk.bf16.mxu1 %vm11828_vm1, %v9204_v40  ;;  %v9210_v49 = vpack.c.bf16 %v5782_v51, %v5780_v44  ;;  %v11367_v40 = vld [vmem:[%s13859_s3 + $0x108] ss:$12 sps:$4 sm:$0xff]  }
 0xaf9   : > { %v5781_v39 = vsel %vm900_vm10, %v10734_v50, %v10728_v37  ;;  %v5779_v35 = vsel %vm900_vm10, %v10733_v43, %v10723_v3  ;;  %v10739_v46 = vunpack.i.h.bf16 %v10737_v52  ;;  %v10738_v29 = vunpack.i.l.bf16 %v10737_v52 }
 0xafa   : > { %v10742_v47 = vpop.permute.xlu1 %10741  ;;  %v9213_v54 = vpack.c.bf16 %v5781_v39, %v5779_v35 }
 0xafb   : > { %v10744_v48 = vunpack.i.h.bf16 %v10742_v47  ;;  %v10743_v1 = vunpack.i.l.bf16 %v10742_v47  ;;  %9208 = vmatpush1.bf16.msk.msra.mxu1 %vm11840_vm4, %v9207_v57  ;;  %v5784_v9 = vsel %vm900_vm10, %v10738_v29, %v10739_v46 }
 0xafc   : > { %v10747_v33 = vpop.permute.xlu0 %10746  ;;  %9211 = vmatprep.subr.msk.bf16.mxu1 %vm11793_vm14, %v9210_v49  ;;  %v11368_v49 = vld [vmem:[%s13859_s3 + $0xf8] ss:$12 sps:$4 sm:$0xff]  }
 0xafd   : > { %v5786_v56 = vsel %vm900_vm10, %v10743_v1, %v10744_v48  ;;  %v10749_v58 = vunpack.i.h.bf16 %v10747_v33  ;;  %v10748_v11 = vunpack.i.l.bf16 %v10747_v33  ;;  %v11369_v48 = vld [vmem:[%s13859_s3 + $0x110] ss:$12 sps:$4 sm:$0xff]  }
 0xafe   : > { %v5838_v59 = vpop.permute.xlu1 %5837  ;;  %v9216_v20 = vpack.c.bf16 %v5786_v56, %v5784_v9 }
 0xaff   : > { %v5783_v36 = vsel %vm900_vm10, %v10748_v11, %v10738_v29  ;;  %v5785_v60 = vsel %vm900_vm10, %v10749_v58, %v10743_v1  ;;  %9214 = vmatpush1.bf16.msk.msra.mxu1 %vm11804_vm15, %v9213_v54  ;;  %v13112_v1 = vpack.i.bf16 %v12926_v53, %v12926_v53  ;;  %v13120_v54 = vpack.c.bf16 %v12926_v53, %v12926_v53 }
 0xb00   : > { %v9219_v63 = vpack.c.bf16 %v5785_v60, %v5783_v36  ;;  %v5840_v26 = vpop.permute.xlu0 %5839  ;;  %9217 = vmatprep.subr.msk.bf16.mxu1 %vm11793_vm14, %v9216_v20 }
 0xb01   : > { %v5848_v5 = vsel %vm1002_vm12, %v5838_v59, %v5840_v26  ;;  %10781 = vrot.lane.b32.xlu1 %v13112_v1, %s11403_s30  ;;  %10786 = vrot.lane.b32.xlu0 %v13112_v1, %s11403_s30 }
 0xb02   : > { %v5836_v4 = vpop.permute.xlu1 %5835 }
 0xb03   : > { %9220 = vmatpush1.bf16.msk.msra.mxu1 %vm11804_vm15, %v9219_v63  ;;  %v5847_v7 = vsel %vm1002_vm12, %v5836_v4, %v5838_v59  ;;  %v6137_v59 = vld [vmem:[#allocation2 + $0x8] sm:$0xff]  ;;  %v6138_v63 = vld [vmem:[#allocation2 + $0x10] sm:$0xff] }
 0xb04   : > { %v5844_v6 = vpop.permute.xlu0 %5843  ;;  %6059 = vmatprep.subr.bf16.mxu1 %v5848_v5 }
 0xb05   : > { %6279 = vrot.lane.b32.xlu1 %v13120_v54, %s11415_s23  ;;  %6285 = vrot.lane.b32.xlu0 %v13120_v54, %s11415_s23 }
 0xb06   : > { %v5846_v19 = vpop.permute.xlu1 %5845 }
 0xb07   : > { %6060 = vmatpush1.bf16.msra.mxu1 %v5847_v7  ;;  %v5850_v8 = vsel %vm1002_vm12, %v5844_v6, %v5846_v19 }
 0xb08   : > { %v5842_v61 = vpop.permute.xlu0 %5841  ;;  %6061 = vmatprep.subr.bf16.mxu1 %v5850_v8  ;;  %v6140_v8 = vld [vmem:[#allocation2 + $0x30] sm:$0xff] }
 0xb09   : > { %v5849_v0 = vsel %vm1002_vm12, %v5842_v61, %v5844_v6  ;;  %v6139_v6 = vld [vmem:[#allocation2 + $0x28] sm:$0xff] }
 0xb0a   : > { %v10752_v15 = vpop.permute.xlu1 %10751 }
 0xb0b   : > { %v10754_v13 = vunpack.i.h.bf16 %v10752_v15  ;;  %v10753_v18 = vunpack.i.l.bf16 %v10752_v15  ;;  %6062 = vmatpush1.bf16.msra.mxu1 %v5849_v0 }
 0xb0c   : > { %v10757_v27 = vpop.permute.xlu0 %10756 }
 0xb0d   : > { %v10759_v55 = vunpack.i.h.bf16 %v10757_v27  ;;  %v10758_v32 = vunpack.i.l.bf16 %v10757_v27  ;;  %v5908_v22 = vsel %vm1084_vm13, %v10753_v18, %v10754_v13 }
 0xb0e   : > { %v10762_v16 = vpop.permute.xlu1 %10761  ;;  %6064 = vmatmul.mubr.bf16.vlgmr.msra.gmra.mrb[32].mxu1 %v11362_v14 }
 0xb0f   : > { %v5910_v23 = vsel %vm1084_vm13, %v10758_v32, %v10759_v55  ;;  %v10764_v31 = vunpack.i.h.bf16 %v10762_v16  ;;  %v10763_v24 = vunpack.i.l.bf16 %v10762_v16  ;;  %6073 = vmatprep.mubr.bf16.mxu1 %v11365_v21 }
 0xb10   : > { %v10767_v62 = vpop.permute.xlu0 %10766  ;;  %v9222_v3 = vpack.c.bf16 %v5910_v23, %v5908_v22  ;;  %v6141_v22 = vld [vmem:[#allocation2 + $0x48] sm:$0xff] }
 0xb11   : > { %v5909_v30 = vsel %vm1084_vm13, %v10764_v31, %v10758_v32  ;;  %v5907_v10 = vsel %vm1084_vm13, %v10763_v24, %v10753_v18  ;;  %v10769_v34 = vunpack.i.h.bf16 %v10767_v62  ;;  %v10768_v28 = vunpack.i.l.bf16 %v10767_v62  ;;  %v6142_v62 = vld [vmem:[#allocation2 + $0x50] sm:$0xff] }
 0xb12   : > { %v9225_v37 = vpack.c.bf16 %v5909_v30, %v5907_v10  ;;  %v10772_v38 = vpop.permute.xlu1 %10771  ;;  %9223 = vmatprep.subr.msk.bf16.mxu1 %vm11828_vm1, %v9222_v3 }
 0xb13   : > { %v10774_v51 = vunpack.i.h.bf16 %v10772_v38  ;;  %v10773_v50 = vunpack.i.l.bf16 %v10772_v38  ;;  %v5912_v57 = vsel %vm1084_vm13, %v10768_v28, %v10769_v34  ;;  %v6143_v34 = vld [vmem:[#allocation2 + $0x68] sm:$0xff]  ;;  %v6144_v38 = vld [vmem:[#allocation2 + $0x70] sm:$0xff] }
 0xb14   : > { %v10777_v43 = vpop.permute.xlu0 %10776  ;;  %9226 = vmatpush1.bf16.msk.msra.mxu1 %vm11840_vm4, %v9225_v37 }
 0xb15   : > { %v5914_v44 = vsel %vm1084_vm13, %v10773_v50, %v10774_v51  ;;  %v10779_v52 = vunpack.i.h.bf16 %v10777_v43  ;;  %v10778_v39 = vunpack.i.l.bf16 %v10777_v43 }
 0xb16   : > { %6074 = vmatmul.mubr.bf16.gmra.mrb[36].mxu1 %v11367_v40  ;;  %v9228_v35 = vpack.c.bf16 %v5914_v44, %v5912_v57 }
 0xb17   : > { %v5911_v46 = vsel %vm1084_vm13, %v10778_v39, %v10768_v28  ;;  %v5913_v29 = vsel %vm1084_vm13, %v10779_v52, %v10773_v50  ;;  %6116 = vmatprep.mubr.bf16.mxu1 %v11402_v12 }
 0xb18   : > { %v9231_v47 = vpack.c.bf16 %v5913_v29, %v5911_v46  ;;  %9229 = vmatprep.subr.msk.bf16.mxu1 %vm11828_vm1, %v9228_v35  ;;  %v8764_v29 = vld [vmem:[%s13860_s4 + $0xc0] sm:$0xff] }
 0xb1a   : > { %9232 = vmatpush1.bf16.msk.msra.mxu1 %vm11840_vm4, %v9231_v47  ;;  %v8765_v47 = vld [vmem:[%s13860_s4 + $0xc8] sm:$0xff] }
 0xb1e   : > { %8754 = vmatmul.mubr.msk.bf16.vlgmr.msra.gmra.mrb[32].mxu1 %vm1908_vm3, %v11368_v49  ;;  %v8766_v49 = vld [vmem:[%s13860_s4 + $0xd0] sm:$0xff] }
 0xb1f   : > { %6126 = vmatprep.mubr.bf16.mxu1 %v11402_v12 }
 0xb23   : > { %v5978_v33 = vpop.permute.xlu1 %5977 }
 0xb25   : > { %v5983_v11 = vpop.permute.xlu0 %5982 }
 0xb26   : > { %8755 = vmatmul.mubr.msk.bf16.gmra.mrb[36].mxu1 %vm1908_vm3, %v11369_v48  ;;  %v8767_v48 = vld [vmem:[%s13860_s4 + $0xd8] sm:$0xff] }
 0xb27   : > { %v5988_v13 = vpop.permute.xlu1 %5987 }
 0xb29   : > { %v5993_v16 = vpop.permute.xlu0 %5992 }
 0xbf1   : > { %v6118_v9 = vpop.f32.mrb[32].mxu1 }
 0xbf2   : > { %v9497_v56 = vadd.f32 %v6118_v9, %v5978_v33  ;;  %v6120_v58 = vpop.f32.mrb[33].mxu1 }
 0xbf3   : > { %v9498_v20 = vadd.f32 %v6120_v58, %v5978_v33  ;;  %v6122_v36 = vpop.f32.mrb[34].mxu1  ;;  %v10787_v33 = vpop.permute.xlu0 %10786 }
 0xbf4   : > { %v6145_v60 = vadd.f32 %v9497_v56, %v6137_v59  ;;  %v9499_v26 = vadd.f32 %v6122_v36, %v5983_v11  ;;  %v6124_v4 = vpop.f32.mrb[35].mxu1 }
 0xbf5   : > { %v6146_v5 = vadd.f32 %v9498_v20, %v6138_v63  ;;  %v9500_v7 = vadd.f32 %v6124_v4, %v5983_v11 }
 0xbf6   : > { %6153 = vst [vmem:[#allocation2 + $0x8] sm:$0xff] %v6145_v60  ;;  %v6147_v19 = vadd.f32 %v9499_v26, %v6139_v6 }
 0xbf7   : > { %6154 = vst [vmem:[#allocation2 + $0x10] sm:$0xff] %v6146_v5  ;;  %v6148_v61 = vadd.f32 %v9500_v7, %v6140_v8  ;;  %v10790_v0 = vpack.i.bf16 %v6146_v5, %v6145_v60  ;;  %v10870_v52 = vpack.i.bf16 %v12926_v53, %v6146_v5  ;;  %v13224_v56 = vpop.permute.xlu0 %6285 }
 0xbf8   : > { %6155 = vst [vmem:[#allocation2 + $0x28] sm:$0xff] %v6147_v19  ;;  %v13126_v15 = vpack.c.bf16 %v6147_v19, %v6145_v60  ;;  %v13128_v14 = vpack.i.bf16 %v6147_v19, %v6145_v60 }
 0xbf9   : > { %6156 = vst [vmem:[#allocation2 + $0x30] sm:$0xff] %v6148_v61  ;;  %v6128_v18 = vpop.f32.mrb[36].mxu1  ;;  %10791 = vrot.lane.b32.xlu1 %v10790_v0, %s11403_s30  ;;  %v10800_v21 = vpack.i.bf16 %v6148_v61, %v6147_v19  ;;  %v13131_v27 = vpack.c.bf16 %v6148_v61, %v6146_v5  ;;  %v10875_v39 = vpack.i.bf16 %v12926_v53, %v6148_v61 }
 0xbfa   : > { %v9501_v55 = vadd.f32 %v6128_v18, %v5988_v13  ;;  %v6130_v32 = vpop.f32.mrb[37].mxu1 }
 0xbfb   : > { %v9502_v23 = vadd.f32 %v6130_v32, %v5988_v13  ;;  %v6132_v31 = vpop.f32.mrb[38].mxu1  ;;  %10801 = vrot.lane.b32.xlu0 %v10800_v21, %s11403_s30  ;;  %v10789_v32 = vunpack.i.h.bf16 %v10787_v33 }
 0xbfc   : > { %v6149_v24 = vadd.f32 %v9501_v55, %v6141_v22  ;;  %v9503_v3 = vadd.f32 %v6132_v31, %v5993_v16  ;;  %v6134_v30 = vpop.f32.mrb[39].mxu1 }
 0xbfd   : > { %v6150_v10 = vadd.f32 %v9502_v23, %v6142_v62  ;;  %v9504_v28 = vadd.f32 %v6134_v30, %v5993_v16  ;;  %10796 = vrot.lane.b32.xlu1 %v10790_v0, %s11404_s8  ;;  %v10788_v16 = vunpack.i.l.bf16 %v10787_v33 }
 0xbfe   : > { %6157 = vst [vmem:[#allocation2 + $0x48] sm:$0xff] %v6149_v24  ;;  %v6151_v37 = vadd.f32 %v9503_v3, %v6143_v34 }
 0xbff   : > { %6158 = vst [vmem:[#allocation2 + $0x50] sm:$0xff] %v6150_v10  ;;  %v6152_v40 = vadd.f32 %v9504_v28, %v6144_v38  ;;  %10806 = vrot.lane.b32.xlu0 %v10800_v21, %s11404_s8  ;;  %v10810_v51 = vpack.i.bf16 %v6150_v10, %v6149_v24  ;;  %v10885_v35 = vpack.i.bf16 %v12926_v53, %v6150_v10 }
 0xc00   : > { %6159 = vst [vmem:[#allocation2 + $0x68] sm:$0xff] %v6151_v37  ;;  %v13136_v50 = vpack.c.bf16 %v6151_v37, %v6149_v24  ;;  %v10895_v43 = vpack.i.bf16 %v6151_v37, %v6149_v24 }
 0xc01   : > { %6160 = vst [vmem:[#allocation2 + $0x70] sm:$0xff] %v6152_v40  ;;  %6281 = vrot.lane.b32.xlu1 %v13126_v15, %s11415_s23  ;;  %v10815_v57 = vpack.i.bf16 %v6152_v40, %v6151_v37  ;;  %v13140_v44 = vpack.c.bf16 %v6152_v40, %v6150_v10  ;;  %v10890_v46 = vpack.i.bf16 %v12926_v53, %v6152_v40  ;;  %v11372_v53 = vld [vmem:[%s13859_s3 + $0x124] ss:$12 sps:$4 sm:$0xff]  }
 0xc02   : > { %6891 = vmatprep.mubr.bf16.mxu0 %v11372_v53 }
 0xc03   : > { %6283 = vrot.lane.b32.xlu0 %v13131_v27, %s11415_s23 }
 0xc05   : > { %10816 = vrot.lane.b32.xlu1 %v10815_v57, %s11403_s30 }
 0xc07   : > { %10811 = vrot.lane.b32.xlu0 %v10810_v51, %s11403_s30 }
 0xc09   : > { %10821 = vrot.lane.b32.xlu1 %v13112_v1, %s11404_s8 }
 0xc0b   : > { %10826 = vrot.lane.b32.xlu0 %v10810_v51, %s11404_s8 }
 0xc0d   : > { %10831 = vrot.lane.b32.xlu1 %v10815_v57, %s11404_s8 }
 0xc0f   : > { %6287 = vrot.lane.b32.xlu0 %v13136_v50, %s11415_s23 }
 0xc11   : > { %6289 = vrot.lane.b32.xlu1 %v13140_v44, %s11415_s23 }
 0xc13   : > { %10836 = vrot.lane.b32.xlu0 %v13112_v1, %s11404_s8 }
 0xc15   : > { %10841 = vrot.lane.b32.xlu1 %v10790_v0, %s11406_s14 }
 0xc17   : > { %10846 = vrot.lane.b32.xlu0 %v10800_v21, %s11406_s14 }
 0xc19   : > { %10851 = vrot.lane.b32.xlu1 %v13112_v1, %s11406_s14 }
 0xc1b   : > { %10856 = vrot.lane.b32.xlu0 %v10810_v51, %s11406_s14 }
 0xc1d   : > { %10861 = vrot.lane.b32.xlu1 %v10815_v57, %s11406_s14 }
 0xc1f   : > { %10866 = vrot.lane.b32.xlu0 %v13112_v1, %s11406_s14 }
 0xc21   : > { %10871 = vrot.lane.b32.xlu1 %v10870_v52, %s11409_s17 }
 0xc23   : > { %10876 = vrot.lane.b32.xlu0 %v10875_v39, %s11409_s17 }
 0xc25   : > { %10881 = vrot.lane.b32.xlu1 %v13128_v14, %s11409_s17 }
 0xc27   : > { %10886 = vrot.lane.b32.xlu0 %v10885_v35, %s11409_s17 }
 0xc29   : > { %10891 = vrot.lane.b32.xlu1 %v10890_v46, %s11409_s17 }
 0xc2b   : > { %10896 = vrot.lane.b32.xlu0 %v10895_v43, %s11409_s17 }
 0xc2d   : > { %10901 = vrot.lane.b32.xlu1 %v10870_v52, %s11411_s19 }
 0xc2f   : > { %10906 = vrot.lane.b32.xlu0 %v10875_v39, %s11411_s19 }
 0xc31   : > { %10911 = vrot.lane.b32.xlu1 %v13128_v14, %s11411_s19 }
 0xc33   : > { %10916 = vrot.lane.b32.xlu0 %v10885_v35, %s11411_s19 }
 0xc35   : > { %10921 = vrot.lane.b32.xlu1 %v10890_v46, %s11411_s19 }
 0xc37   : > { %10926 = vrot.lane.b32.xlu0 %v10895_v43, %s11411_s19 }
 0xc39   : > { %6665 = vrot.lane.b32.xlu1 %v13131_v27, %s11408_s16 }
 0xc3b   : > { %6667 = vrot.lane.b32.xlu0 %v13120_v54, %s11408_s16 }
 0xc3d   : > { %6663 = vrot.lane.b32.xlu1 %v13126_v15, %s11408_s16 }
 0xc3f   : > { %6671 = vrot.lane.b32.xlu0 %v13140_v44, %s11408_s16 }
 0xc41   : > { %6673 = vrot.lane.b32.xlu1 %v13120_v54, %s11408_s16  ;;  %v10782_v54 = vpop.permute.xlu1 %10781 }
 0xc42   : > { %v10784_v36 = vunpack.i.h.bf16 %v10782_v54  ;;  %v10783_v60 = vunpack.i.l.bf16 %v10782_v54 }
 0xc43   : > { %6669 = vrot.lane.b32.xlu0 %v13136_v50, %s11408_s16 }
 0xc45   : > { %10931 = vrot.lane.b32.xlu1 %v10870_v52, %s11414_s22  ;;  %v6280_v9 = vpop.permute.xlu1 %6279 }
 0xc47   : > { %10936 = vrot.lane.b32.xlu0 %v10875_v39, %s11414_s22 }
 0xc49   : > { %10941 = vrot.lane.b32.xlu1 %v13128_v14, %s11414_s22 }
 0xc4b   : > { %10946 = vrot.lane.b32.xlu0 %v10885_v35, %s11414_s22 }
 0xc4d   : > { %10951 = vrot.lane.b32.xlu1 %v10890_v46, %s11414_s22 }
 0xc4f   : > { %10956 = vrot.lane.b32.xlu0 %v10895_v43, %s11414_s22 }
 0xc51   : > { %6805 = vperm.xlu1 %9699, %v8764_v29  }
 0xc53   : > { %6810 = vperm.xlu0 %9698, %v8765_v47  }
 0xc55   : > { %6815 = vperm.xlu1 %9699, %v8766_v49  }
 0xc57   : > { %6820 = vperm.xlu0 %9698, %v8767_v48  }
 0xc59   : > { %10961 = vrot.lane.b32.xlu1 %v13112_v1, %s11403_s30 }
 0xc5b   : > { %10966 = vrot.lane.b32.xlu0 %v13112_v1, %s11403_s30 }
 0xc5d   : > { %7099 = vrot.lane.b32.xlu1 %v11418_v17, %s11415_s23 }
 0xc5f   : > { %7105 = vrot.lane.b32.xlu0 %v11418_v17, %s11415_s23 }
 0xc6b   : > { %v10792_v58 = vpop.permute.xlu1 %10791 }
 0xc6c   : > { %v10794_v11 = vunpack.i.h.bf16 %v10792_v58  ;;  %v10793_v59 = vunpack.i.l.bf16 %v10792_v58 }
 0xc6d   : > { %v10802_v20 = vpop.permute.xlu0 %10801 }
 0xc6e   : > { %v10804_v63 = vunpack.i.h.bf16 %v10802_v20  ;;  %v10803_v26 = vunpack.i.l.bf16 %v10802_v20  ;;  %v6223_v4 = vsel %vm357_vm0, %v10783_v60, %v10793_v59  ;;  %v6224_v5 = vsel %vm357_vm0, %v10793_v59, %v10794_v11 }
 0xc6f   : > { %v10797_v1 = vpop.permute.xlu1 %10796 }
 0xc70   : > { %v6225_v6 = vsel %vm357_vm0, %v10784_v36, %v10803_v26  ;;  %v6226_v7 = vsel %vm357_vm0, %v10803_v26, %v10804_v63  ;;  %v10799_v43 = vunpack.i.h.bf16 %v10797_v1  ;;  %v10798_v57 = vunpack.i.l.bf16 %v10797_v1 }
 0xc71   : > { %v9237_v19 = vpack.c.bf16 %v6225_v6, %v6223_v4  ;;  %v10807_v8 = vpop.permute.xlu0 %10806  ;;  %v9234_v61 = vpack.c.bf16 %v6226_v7, %v6224_v5 }
 0xc72   : > { %v10809_v38 = vunpack.i.h.bf16 %v10807_v8  ;;  %v10808_v40 = vunpack.i.l.bf16 %v10807_v8  ;;  %v6352_v54 = vsel %vm541_vm2, %v10798_v57, %v10799_v43 }
 0xc73   : > { %v6282_v0 = vpop.permute.xlu1 %6281  ;;  %9235 = vmatprep.subr.msk.bf16.mxu0 %vm11793_vm14, %v9234_v61 }
 0xc74   : > { %9238 = vmatpush1.bf16.msk.msra.mxu0 %vm11804_vm15, %v9237_v19  ;;  %v6291_v53 = vsel %vm396_vm11, %v6280_v9, %v6282_v0  ;;  %v6354_v29 = vsel %vm541_vm2, %v10808_v40, %v10809_v38 }
 0xc75   : > { %v6284_v14 = vpop.permute.xlu0 %6283  ;;  %v9246_v26 = vpack.c.bf16 %v6354_v29, %v6352_v54 }
 0xc76   : > { %v6292_v51 = vsel %vm396_vm11, %v6282_v0, %v6284_v14 }
 0xc77   : > { %v10817_v13 = vpop.permute.xlu1 %10816 }
 0xc78   : > { %v10819_v18 = vunpack.i.h.bf16 %v10817_v13  ;;  %v10818_v21 = vunpack.i.l.bf16 %v10817_v13 }
 0xc79   : > { %v10812_v55 = vpop.permute.xlu0 %10811 }
 0xc7a   : > { %v10814_v22 = vunpack.i.h.bf16 %v10812_v55  ;;  %v10813_v23 = vunpack.i.l.bf16 %v10812_v55  ;;  %v6229_v24 = vsel %vm357_vm0, %v10789_v32, %v10818_v21  ;;  %v6230_v62 = vsel %vm357_vm0, %v10818_v21, %v10819_v18 }
 0xc7b   : > { %v10822_v31 = vpop.permute.xlu1 %10821 }
 0xc7c   : > { %v6227_v3 = vsel %vm357_vm0, %v10788_v16, %v10813_v23  ;;  %v6228_v30 = vsel %vm357_vm0, %v10813_v23, %v10814_v22  ;;  %v10824_v39 = vunpack.i.h.bf16 %v10822_v31  ;;  %v10823_v35 = vunpack.i.l.bf16 %v10822_v31 }
 0xc7d   : > { %v9243_v10 = vpack.c.bf16 %v6229_v24, %v6227_v3  ;;  %v10827_v34 = vpop.permute.xlu0 %10826  ;;  %v9240_v28 = vpack.c.bf16 %v6230_v62, %v6228_v30 }
 0xc7e   : > { %v10829_v33 = vunpack.i.h.bf16 %v10827_v34  ;;  %v10828_v58 = vunpack.i.l.bf16 %v10827_v34  ;;  %v6353_v59 = vsel %vm541_vm2, %v10824_v39, %v10808_v40  ;;  %v6351_v20 = vsel %vm541_vm2, %v10823_v35, %v10798_v57 }
 0xc7f   : > { %v10832_v37 = vpop.permute.xlu1 %10831  ;;  %9241 = vmatprep.subr.msk.bf16.mxu0 %vm11793_vm14, %v9240_v28  ;;  %v9249_v4 = vpack.c.bf16 %v6353_v59, %v6351_v20 }
 0xc80   : > { %9244 = vmatpush1.bf16.msk.msra.mxu0 %vm11804_vm15, %v9243_v10  ;;  %v10834_v47 = vunpack.i.h.bf16 %v10832_v37  ;;  %v10833_v49 = vunpack.i.l.bf16 %v10832_v37  ;;  %v6356_v5 = vsel %vm541_vm2, %v10828_v58, %v10829_v33 }
 0xc81   : > { %v6288_v52 = vpop.permute.xlu0 %6287  ;;  %6863 = vmatprep.subr.bf16.mxu0 %v6292_v51 }
 0xc82   : > { %v6293_v63 = vsel %vm396_vm11, %v13224_v56, %v6288_v52  ;;  %v6358_v1 = vsel %vm541_vm2, %v10833_v49, %v10834_v47 }
 0xc83   : > { %v6290_v46 = vpop.permute.xlu1 %6289  ;;  %v9252_v13 = vpack.c.bf16 %v6358_v1, %v6356_v5 }
 0xc84   : > { %6864 = vmatpush1.bf16.msra.mxu0 %v6291_v53  ;;  %v6294_v48 = vsel %vm396_vm11, %v6288_v52, %v6290_v46 }
 0xc85   : > { %v10837_v11 = vpop.permute.xlu0 %10836  ;;  %6865 = vmatprep.subr.bf16.mxu0 %v6294_v48 }
 0xc86   : > { %v10839_v36 = vunpack.i.h.bf16 %v10837_v11  ;;  %v10838_v60 = vunpack.i.l.bf16 %v10837_v11 }
 0xc87   : > { %v10842_v9 = vpop.permute.xlu1 %10841 }
 0xc88   : > { %6866 = vmatpush1.bf16.msra.mxu0 %v6293_v63  ;;  %v10844_v6 = vunpack.i.h.bf16 %v10842_v9  ;;  %v10843_v7 = vunpack.i.l.bf16 %v10842_v9  ;;  %v6355_v8 = vsel %vm541_vm2, %v10838_v60, %v10828_v58  ;;  %v6357_v61 = vsel %vm541_vm2, %v10839_v36, %v10833_v49 }
 0xc89   : > { %v10847_v19 = vpop.permute.xlu0 %10846  ;;  %9247 = vmatprep.subr.msk.bf16.mxu0 %vm11828_vm1, %v9246_v26  ;;  %v9255_v32 = vpack.c.bf16 %v6357_v61, %v6355_v8 }
 0xc8a   : > { %v10849_v0 = vunpack.i.h.bf16 %v10847_v19  ;;  %v10848_v14 = vunpack.i.l.bf16 %v10847_v19  ;;  %v6432_v16 = vsel %vm633_vm8, %v10843_v7, %v10844_v6 }
 0xc8b   : > { %v10852_v56 = vpop.permute.xlu1 %10851 }
 0xc8c   : > { %v6434_v18 = vsel %vm633_vm8, %v10848_v14, %v10849_v0  ;;  %v10854_v21 = vunpack.i.h.bf16 %v10852_v56  ;;  %v10853_v55 = vunpack.i.l.bf16 %v10852_v56  ;;  %9250 = vmatpush1.bf16.msk.msra.mxu0 %vm11840_vm4, %v9249_v4 }
 0xc8d   : > { %v10857_v22 = vpop.permute.xlu0 %10856  ;;  %9253 = vmatprep.subr.msk.bf16.mxu0 %vm11828_vm1, %v9252_v13  ;;  %v9258_v30 = vpack.c.bf16 %v6434_v18, %v6432_v16 }
 0xc8e   : > { %v6433_v23 = vsel %vm633_vm8, %v10854_v21, %v10848_v14  ;;  %v6431_v31 = vsel %vm633_vm8, %v10853_v55, %v10843_v7  ;;  %v10859_v24 = vunpack.i.h.bf16 %v10857_v22  ;;  %v10858_v62 = vunpack.i.l.bf16 %v10857_v22 }
 0xc8f   : > { %v10862_v3 = vpop.permute.xlu1 %10861  ;;  %v9261_v28 = vpack.c.bf16 %v6433_v23, %v6431_v31 }
 0xc90   : > { %v10864_v10 = vunpack.i.h.bf16 %v10862_v3  ;;  %v10863_v34 = vunpack.i.l.bf16 %v10862_v3  ;;  %9256 = vmatpush1.bf16.msk.msra.mxu0 %vm11840_vm4, %v9255_v32  ;;  %v6436_v38 = vsel %vm633_vm8, %v10858_v62, %v10859_v24 }
 0xc91   : > { %v10867_v37 = vpop.permute.xlu0 %10866  ;;  %9259 = vmatprep.subr.msk.bf16.mxu0 %vm11793_vm14, %v9258_v30 }
 0xc92   : > { %v6438_v40 = vsel %vm633_vm8, %v10863_v34, %v10864_v10  ;;  %v10869_v51 = vunpack.i.h.bf16 %v10867_v37  ;;  %v10868_v43 = vunpack.i.l.bf16 %v10867_v37 }
 0xc93   : > { %v10872_v57 = vpop.permute.xlu1 %10871  ;;  %v9264_v52 = vpack.c.bf16 %v6438_v40, %v6436_v38 }
 0xc94   : > { %v6435_v39 = vsel %vm633_vm8, %v10868_v43, %v10858_v62  ;;  %v6437_v35 = vsel %vm633_vm8, %v10869_v51, %v10863_v34  ;;  %9262 = vmatpush1.bf16.msk.msra.mxu0 %vm11804_vm15, %v9261_v28  ;;  %v10874_v48 = vunpack.i.h.bf16 %v10872_v57  ;;  %v10873_v54 = vunpack.i.l.bf16 %v10872_v57 }
 0xc95   : > { %v9267_v46 = vpack.c.bf16 %v6437_v35, %v6435_v39  ;;  %v10877_v53 = vpop.permute.xlu0 %10876  ;;  %9265 = vmatprep.subr.msk.bf16.mxu0 %vm11793_vm14, %v9264_v52 }
 0xc96   : > { %v10879_v47 = vunpack.i.h.bf16 %v10877_v53  ;;  %v10878_v49 = vunpack.i.l.bf16 %v10877_v53  ;;  %v6528_v9 = vsel %vm808_vm9, %v10873_v54, %v10874_v48 }
 0xc97   : > { %v10882_v29 = vpop.permute.xlu1 %10881 }
 0xc98   : > { %9268 = vmatpush1.bf16.msk.msra.mxu0 %vm11804_vm15, %v9267_v46  ;;  %v10884_v58 = vunpack.i.h.bf16 %v10882_v29  ;;  %v10883_v11 = vunpack.i.l.bf16 %v10882_v29  ;;  %v6530_v20 = vsel %vm808_vm9, %v10878_v49, %v10879_v47 }
 0xc99   : > { %v10887_v33 = vpop.permute.xlu0 %10886  ;;  %6875 = vmatprep.subr.bf16.mxu0 %v13131_v27  ;;  %v9270_v19 = vpack.c.bf16 %v6530_v20, %v6528_v9  ;;  %v11370_v9 = vld [vmem:[%s13859_s3 + $0x120] ss:$12 sps:$4 sm:$0xff]  }
 0xc9a   : > { %v10889_v63 = vunpack.i.h.bf16 %v10887_v33  ;;  %v10888_v26 = vunpack.i.l.bf16 %v10887_v33  ;;  %v6529_v4 = vsel %vm808_vm9, %v10884_v58, %v10878_v49  ;;  %v6527_v27 = vsel %vm808_vm9, %v10883_v11, %v10873_v54 }
 0xc9b   : > { %v10892_v59 = vpop.permute.xlu1 %10891 }
 0xc9c   : > { %v10894_v36 = vunpack.i.h.bf16 %v10892_v59  ;;  %v10893_v60 = vunpack.i.l.bf16 %v10892_v59  ;;  %6876 = vmatpush1.bf16.msra.mxu0 %v13126_v15  ;;  %v9273_v15 = vpack.c.bf16 %v6529_v4, %v6527_v27  ;;  %v6532_v61 = vsel %vm808_vm9, %v10888_v26, %v10889_v63 }
 0xc9d   : > { %v10897_v1 = vpop.permute.xlu0 %10896  ;;  %6877 = vmatprep.subr.bf16.mxu0 %v13140_v44 }
 0xc9e   : > { %v10899_v5 = vunpack.i.h.bf16 %v10897_v1  ;;  %v10898_v6 = vunpack.i.l.bf16 %v10897_v1  ;;  %v6534_v8 = vsel %vm808_vm9, %v10893_v60, %v10894_v36  ;;  %v11373_v1 = vld [vmem:[%s13859_s3 + $0x13c] ss:$12 sps:$4 sm:$0xff]  }
 0xc9f   : > { %v10902_v7 = vpop.permute.xlu1 %10901  ;;  %v9276_v32 = vpack.c.bf16 %v6534_v8, %v6532_v61 }
 0xca0   : > { %6878 = vmatpush1.bf16.msra.mxu0 %v13136_v50  ;;  %v10904_v0 = vunpack.i.h.bf16 %v10902_v7  ;;  %v10903_v14 = vunpack.i.l.bf16 %v10902_v7  ;;  %v6531_v44 = vsel %vm808_vm9, %v10898_v6, %v10888_v26  ;;  %v6533_v13 = vsel %vm808_vm9, %v10899_v5, %v10893_v60 }
 0xca1   : > { %v10907_v56 = vpop.permute.xlu0 %10906  ;;  %9271 = vmatprep.subr.msk.bf16.mxu0 %vm11828_vm1, %v9270_v19  ;;  %v9279_v23 = vpack.c.bf16 %v6533_v13, %v6531_v44 }
 0xca2   : > { %v10909_v18 = vunpack.i.h.bf16 %v10907_v56  ;;  %v10908_v21 = vunpack.i.l.bf16 %v10907_v56  ;;  %v6608_v31 = vsel %vm900_vm10, %v10903_v14, %v10904_v0 }
 0xca3   : > { %v10912_v55 = vpop.permute.xlu1 %10911 }
 0xca4   : > { %v6610_v16 = vsel %vm900_vm10, %v10908_v21, %v10909_v18  ;;  %v10914_v50 = vunpack.i.h.bf16 %v10912_v55  ;;  %v10913_v22 = vunpack.i.l.bf16 %v10912_v55  ;;  %9274 = vmatpush1.bf16.msk.msra.mxu0 %vm11840_vm4, %v9273_v15  ;;  %v11375_v55 = vld [vmem:[%s13859_s3 + $0x138] ss:$12 sps:$4 sm:$0xff]  }
 0xca5   : > { %v10917_v24 = vpop.permute.xlu0 %10916  ;;  %9277 = vmatprep.subr.msk.bf16.mxu0 %vm11828_vm1, %v9276_v32  ;;  %v9282_v28 = vpack.c.bf16 %v6610_v16, %v6608_v31 }
 0xca6   : > { %v6609_v62 = vsel %vm900_vm10, %v10914_v50, %v10908_v21  ;;  %v6607_v3 = vsel %vm900_vm10, %v10913_v22, %v10903_v14  ;;  %v10919_v30 = vunpack.i.h.bf16 %v10917_v24  ;;  %v10918_v10 = vunpack.i.l.bf16 %v10917_v24 }
 0xca7   : > { %v10922_v34 = vpop.permute.xlu1 %10921  ;;  %v9285_v40 = vpack.c.bf16 %v6609_v62, %v6607_v3 }
 0xca8   : > { %v10924_v37 = vunpack.i.h.bf16 %v10922_v34  ;;  %v10923_v38 = vunpack.i.l.bf16 %v10922_v34  ;;  %9280 = vmatpush1.bf16.msk.msra.mxu0 %vm11840_vm4, %v9279_v23  ;;  %v6612_v43 = vsel %vm900_vm10, %v10918_v10, %v10919_v30  ;;  %v11376_v34 = vld [vmem:[%s13859_s3 + $0x128] ss:$12 sps:$4 sm:$0xff]  }
 0xca9   : > { %v10927_v51 = vpop.permute.xlu0 %10926  ;;  %9283 = vmatprep.subr.msk.bf16.mxu0 %vm11793_vm14, %v9282_v28  ;;  %v11377_v28 = vld [vmem:[%s13859_s3 + $0x140] ss:$12 sps:$4 sm:$0xff]  }
 0xcaa   : > { %v6614_v57 = vsel %vm900_vm10, %v10923_v38, %v10924_v37  ;;  %v10929_v52 = vunpack.i.h.bf16 %v10927_v51  ;;  %v10928_v39 = vunpack.i.l.bf16 %v10927_v51 }
 0xcab   : > { %v6666_v35 = vpop.permute.xlu1 %6665  ;;  %v9288_v46 = vpack.c.bf16 %v6614_v57, %v6612_v43 }
 0xcac   : > { %v6611_v53 = vsel %vm900_vm10, %v10928_v39, %v10918_v10  ;;  %v6613_v29 = vsel %vm900_vm10, %v10929_v52, %v10923_v38  ;;  %9286 = vmatpush1.bf16.msk.msra.mxu0 %vm11804_vm15, %v9285_v40 }
 0xcad   : > { %v9291_v47 = vpack.c.bf16 %v6613_v29, %v6611_v53  ;;  %v6668_v49 = vpop.permute.xlu0 %6667  ;;  %9289 = vmatprep.subr.msk.bf16.mxu0 %vm11793_vm14, %v9288_v46 }
 0xcae   : > { %v6676_v54 = vsel %vm1002_vm12, %v6666_v35, %v6668_v49 }
 0xcaf   : > { %v6664_v48 = vpop.permute.xlu1 %6663 }
 0xcb0   : > { %9292 = vmatpush1.bf16.msk.msra.mxu0 %vm11804_vm15, %v9291_v47  ;;  %v6675_v58 = vsel %vm1002_vm12, %v6664_v48, %v6666_v35 }
 0xcb1   : > { %v6672_v33 = vpop.permute.xlu0 %6671  ;;  %6887 = vmatprep.subr.bf16.mxu0 %v6676_v54 }
 0xcb3   : > { %v6674_v11 = vpop.permute.xlu1 %6673 }
 0xcb4   : > { %6888 = vmatpush1.bf16.msra.mxu0 %v6675_v58  ;;  %v6678_v59 = vsel %vm1002_vm12, %v6672_v33, %v6674_v11 }
 0xcb5   : > { %v6670_v20 = vpop.permute.xlu0 %6669  ;;  %6889 = vmatprep.subr.bf16.mxu0 %v6678_v59 }
 0xcb6   : > { %v6677_v36 = vsel %vm1002_vm12, %v6670_v20, %v6672_v33 }
 0xcb7   : > { %v10932_v60 = vpop.permute.xlu1 %10931 }
 0xcb8   : > { %v10934_v63 = vunpack.i.h.bf16 %v10932_v60  ;;  %v10933_v26 = vunpack.i.l.bf16 %v10932_v60  ;;  %6890 = vmatpush1.bf16.msra.mxu0 %v6677_v36 }
 0xcb9   : > { %v10937_v4 = vpop.permute.xlu0 %10936 }
 0xcba   : > { %v10939_v27 = vunpack.i.h.bf16 %v10937_v4  ;;  %v10938_v5 = vunpack.i.l.bf16 %v10937_v4  ;;  %v6736_v7 = vsel %vm1084_vm13, %v10933_v26, %v10934_v63 }
 0xcbb   : > { %v10942_v6 = vpop.permute.xlu1 %10941  ;;  %6892 = vmatmul.mubr.bf16.vlgmr.msra.gmra.mrb[24].mxu0 %v11370_v9 }
 0xcbc   : > { %v6738_v19 = vsel %vm1084_vm13, %v10938_v5, %v10939_v27  ;;  %v10944_v8 = vunpack.i.h.bf16 %v10942_v6  ;;  %v10943_v15 = vunpack.i.l.bf16 %v10942_v6  ;;  %6901 = vmatprep.mubr.bf16.mxu0 %v11373_v1 }
 0xcbd   : > { %v10947_v61 = vpop.permute.xlu0 %10946  ;;  %v9294_v0 = vpack.c.bf16 %v6738_v19, %v6736_v7 }
 0xcbe   : > { %v6737_v14 = vsel %vm1084_vm13, %v10944_v8, %v10938_v5  ;;  %v6735_v56 = vsel %vm1084_vm13, %v10943_v15, %v10933_v26  ;;  %v10949_v44 = vunpack.i.h.bf16 %v10947_v61  ;;  %v10948_v13 = vunpack.i.l.bf16 %v10947_v61 }
 0xcbf   : > { %v9297_v18 = vpack.c.bf16 %v6737_v14, %v6735_v56  ;;  %v10952_v21 = vpop.permute.xlu1 %10951  ;;  %9295 = vmatprep.subr.msk.bf16.mxu0 %vm11828_vm1, %v9294_v0  ;;  %v13373_v56 = vld [vmem:[#allocation2] sm:$0xff] }
 0xcc0   : > { %v10954_v32 = vunpack.i.h.bf16 %v10952_v21  ;;  %v10953_v16 = vunpack.i.l.bf16 %v10952_v21  ;;  %v6740_v22 = vsel %vm1084_vm13, %v10948_v13, %v10949_v44  ;;  %v13377_v44 = vpack.i.bf16 %v13373_v56, %v13373_v56 }
 0xcc1   : > { %v10957_v50 = vpop.permute.xlu0 %10956  ;;  %9298 = vmatpush1.bf16.msk.msra.mxu0 %vm11840_vm4, %v9297_v18 }
 0xcc2   : > { %v6742_v23 = vsel %vm1084_vm13, %v10953_v16, %v10954_v32  ;;  %v10959_v31 = vunpack.i.h.bf16 %v10957_v50  ;;  %v10958_v24 = vunpack.i.l.bf16 %v10957_v50  ;;  %v11380_v32 = vld [vmem:[%s13859_s3 + $0x154] ss:$12 sps:$4 sm:$0xff]  }
 0xcc3   : > { %6902 = vmatmul.mubr.bf16.gmra.mrb[28].mxu0 %v11375_v55  ;;  %v9300_v62 = vpack.c.bf16 %v6742_v23, %v6740_v22  ;;  %7711 = vmatprep.mubr.bf16.mxu1 %v11380_v32  ;;  %v8786_v50 = vld [vmem:[%s13860_s4 + $0xf0] sm:$0xff]  ;;  %v8787_v22 = vld [vmem:[%s13860_s4 + $0xf8] sm:$0xff] }
 0xcc4   : > { %v6739_v3 = vsel %vm1084_vm13, %v10958_v24, %v10948_v13  ;;  %v6741_v30 = vsel %vm1084_vm13, %v10959_v31, %v10953_v16  ;;  %6944 = vmatprep.mubr.bf16.mxu0 %v11402_v12  ;;  %v8784_v16 = vld [vmem:[%s13860_s4 + $0xe0] sm:$0xff] }
 0xcc5   : > { %v9303_v10 = vpack.c.bf16 %v6741_v30, %v6739_v3  ;;  %9301 = vmatprep.subr.msk.bf16.mxu0 %vm11828_vm1, %v9300_v62 }
 0xcc7   : > { %9304 = vmatpush1.bf16.msk.msra.mxu0 %vm11840_vm4, %v9303_v10 }
 0xccb   : > { %8774 = vmatmul.mubr.msk.bf16.vlgmr.msra.gmra.mrb[24].mxu0 %vm1908_vm3, %v11376_v34 }
 0xccc   : > { %6954 = vmatprep.mubr.bf16.mxu0 %v11402_v12 }
 0xcd0   : > { %v6806_v37 = vpop.permute.xlu1 %6805 }
 0xcd2   : > { %v6811_v43 = vpop.permute.xlu0 %6810 }
 0xcd3   : > { %8775 = vmatmul.mubr.msk.bf16.gmra.mrb[28].mxu0 %vm1908_vm3, %v11377_v28 }
 0xcd4   : > { %v6816_v58 = vpop.permute.xlu1 %6815 }
 0xcd6   : > { %v6821_v9 = vpop.permute.xlu0 %6820 }
 0xcd8   : > { %v10962_v23 = vpop.permute.xlu1 %10961 }
 0xcd9   : > { %v10964_v28 = vunpack.i.h.bf16 %v10962_v23 }
 0xcda   : > { %v10967_v31 = vpop.permute.xlu0 %10966 }
 0xcdc   : > { %v7100_v24 = vpop.permute.xlu1 %7099 }
 0xcde   : > { %v13454_v62 = vpop.permute.xlu0 %7105 }
 0xd9e   : > { %v6946_v38 = vpop.f32.mrb[24].mxu0 }
 0xd9f   : > { %v9505_v40 = vadd.f32 %v6946_v38, %v6806_v37  ;;  %v6948_v51 = vpop.f32.mrb[25].mxu0 }
 0xda0   : > { %v9506_v57 = vadd.f32 %v6948_v51, %v6806_v37  ;;  %v6950_v52 = vpop.f32.mrb[26].mxu0  ;;  %v10963_v37 = vunpack.i.l.bf16 %v10962_v23 }
 0xda1   : > { %v6965_v39 = vmax.f32 %v9505_v40, 0.0  ;;  %v9507_v35 = vadd.f32 %v6950_v52, %v6811_v43  ;;  %v6952_v46 = vpop.f32.mrb[27].mxu0 }
 0xda2   : > { %v6966_v53 = vmax.f32 %v9506_v57, 0.0  ;;  %v9508_v29 = vadd.f32 %v6952_v46, %v6811_v43 }
 0xda3   : > { %v6967_v47 = vmax.f32 %v9507_v35, 0.0 }
 0xda4   : > { %v6968_v49 = vmax.f32 %v9508_v29, 0.0  ;;  %v10970_v48 = vpack.i.bf16 %v6966_v53, %v6965_v39  ;;  %v11050_v13 = vpack.i.bf16 %v13373_v56, %v6966_v53 }
 0xda5   : > { %v13354_v54 = vpack.c.bf16 %v6967_v47, %v6965_v39  ;;  %v13356_v33 = vpack.i.bf16 %v6967_v47, %v6965_v39 }
 0xda6   : > { %v6956_v11 = vpop.f32.mrb[28].mxu0  ;;  %10971 = vrot.lane.b32.xlu1 %v10970_v48, %s11403_s30  ;;  %v10980_v59 = vpack.i.bf16 %v6968_v49, %v6967_v47  ;;  %v13359_v20 = vpack.c.bf16 %v6968_v49, %v6966_v53  ;;  %v11055_v18 = vpack.i.bf16 %v13373_v56, %v6968_v49 }
 0xda7   : > { %v9509_v36 = vadd.f32 %v6956_v11, %v6816_v58  ;;  %v6958_v60 = vpop.f32.mrb[29].mxu0  ;;  %v10969_v11 = vunpack.i.h.bf16 %v10967_v31 }
 0xda8   : > { %v9510_v63 = vadd.f32 %v6958_v60, %v6816_v58  ;;  %v6960_v26 = vpop.f32.mrb[30].mxu0  ;;  %10981 = vrot.lane.b32.xlu0 %v10980_v59, %s11403_s30 }
 0xda9   : > { %v6969_v1 = vmax.f32 %v9509_v36, 0.0  ;;  %v9511_v4 = vadd.f32 %v6960_v26, %v6821_v9  ;;  %v6962_v27 = vpop.f32.mrb[31].mxu0 }
 0xdaa   : > { %v6970_v5 = vmax.f32 %v9510_v63, 0.0  ;;  %v9512_v6 = vadd.f32 %v6962_v27, %v6821_v9  ;;  %10976 = vrot.lane.b32.xlu1 %v10970_v48, %s11404_s8 }
 0xdab   : > { %v6971_v7 = vmax.f32 %v9511_v4, 0.0 }
 0xdac   : > { %v6972_v19 = vmax.f32 %v9512_v6, 0.0  ;;  %10986 = vrot.lane.b32.xlu0 %v10980_v59, %s11404_s8  ;;  %v10990_v8 = vpack.i.bf16 %v6970_v5, %v6969_v1  ;;  %v11065_v21 = vpack.i.bf16 %v13373_v56, %v6970_v5 }
 0xdad   : > { %v13364_v15 = vpack.c.bf16 %v6971_v7, %v6969_v1  ;;  %v11075_v61 = vpack.i.bf16 %v6971_v7, %v6969_v1 }
 0xdae   : > { %7101 = vrot.lane.b32.xlu1 %v13354_v54, %s11415_s23  ;;  %v10995_v0 = vpack.i.bf16 %v6972_v19, %v6971_v7  ;;  %v13368_v14 = vpack.c.bf16 %v6972_v19, %v6970_v5  ;;  %v11070_v55 = vpack.i.bf16 %v13373_v56, %v6972_v19 }
 0xdb0   : > { %7103 = vrot.lane.b32.xlu0 %v13359_v20, %s11415_s23 }
 0xdb2   : > { %10996 = vrot.lane.b32.xlu1 %v10995_v0, %s11403_s30 }
 0xdb4   : > { %10991 = vrot.lane.b32.xlu0 %v10990_v8, %s11403_s30 }
 0xdb6   : > { %11001 = vrot.lane.b32.xlu1 %v13377_v44, %s11404_s8 }
 0xdb8   : > { %11006 = vrot.lane.b32.xlu0 %v10990_v8, %s11404_s8 }
 0xdba   : > { %11011 = vrot.lane.b32.xlu1 %v10995_v0, %s11404_s8 }
 0xdbc   : > { %7107 = vrot.lane.b32.xlu0 %v13364_v15, %s11415_s23 }
 0xdbe   : > { %7109 = vrot.lane.b32.xlu1 %v13368_v14, %s11415_s23 }
 0xdc0   : > { %11016 = vrot.lane.b32.xlu0 %v13377_v44, %s11404_s8 }
 0xdc2   : > { %11021 = vrot.lane.b32.xlu1 %v10970_v48, %s11406_s14 }
 0xdc4   : > { %11026 = vrot.lane.b32.xlu0 %v10980_v59, %s11406_s14  ;;  %v10968_v59 = vunpack.i.l.bf16 %v10967_v31 }
 0xdc6   : > { %11031 = vrot.lane.b32.xlu1 %v13377_v44, %s11406_s14 }
 0xdc8   : > { %11036 = vrot.lane.b32.xlu0 %v10990_v8, %s11406_s14 }
 0xdca   : > { %11041 = vrot.lane.b32.xlu1 %v10995_v0, %s11406_s14 }
 0xdcc   : > { %11046 = vrot.lane.b32.xlu0 %v13377_v44, %s11406_s14 }
 0xdce   : > { %11051 = vrot.lane.b32.xlu1 %v11050_v13, %s11409_s17 }
 0xdd0   : > { %11056 = vrot.lane.b32.xlu0 %v11055_v18, %s11409_s17 }
 0xdd2   : > { %11061 = vrot.lane.b32.xlu1 %v13356_v33, %s11409_s17 }
 0xdd4   : > { %11066 = vrot.lane.b32.xlu0 %v11065_v21, %s11409_s17 }
 0xdd6   : > { %11071 = vrot.lane.b32.xlu1 %v11070_v55, %s11409_s17 }
 0xdd8   : > { %11076 = vrot.lane.b32.xlu0 %v11075_v61, %s11409_s17 }
 0xdda   : > { %11081 = vrot.lane.b32.xlu1 %v11050_v13, %s11411_s19 }
 0xddc   : > { %11086 = vrot.lane.b32.xlu0 %v11055_v18, %s11411_s19 }
 0xdde   : > { %11091 = vrot.lane.b32.xlu1 %v13356_v33, %s11411_s19 }
 0xde0   : > { %11096 = vrot.lane.b32.xlu0 %v11065_v21, %s11411_s19 }
 0xde2   : > { %11101 = vrot.lane.b32.xlu1 %v11070_v55, %s11411_s19 }
 0xde4   : > { %11106 = vrot.lane.b32.xlu0 %v11075_v61, %s11411_s19 }
 0xde6   : > { %7485 = vrot.lane.b32.xlu1 %v13359_v20, %s11408_s16 }
 0xde8   : > { %7487 = vrot.lane.b32.xlu0 %v11418_v17, %s11408_s16 }
 0xdea   : > { %7483 = vrot.lane.b32.xlu1 %v13354_v54, %s11408_s16 }
 0xdec   : > { %7491 = vrot.lane.b32.xlu0 %v13368_v14, %s11408_s16 }
 0xdee   : > { %7493 = vrot.lane.b32.xlu1 %v11418_v17, %s11408_s16  ;;  %v8785_v17 = vld [vmem:[%s13860_s4 + $0xe8] sm:$0xff] }
 0xdf0   : > { %7489 = vrot.lane.b32.xlu0 %v13364_v15, %s11408_s16 }
 0xdf2   : > { %11111 = vrot.lane.b32.xlu1 %v11050_v13, %s11414_s22 }
 0xdf4   : > { %11116 = vrot.lane.b32.xlu0 %v11055_v18, %s11414_s22 }
 0xdf6   : > { %11121 = vrot.lane.b32.xlu1 %v13356_v33, %s11414_s22 }
 0xdf8   : > { %11126 = vrot.lane.b32.xlu0 %v11065_v21, %s11414_s22 }
 0xdfa   : > { %11131 = vrot.lane.b32.xlu1 %v11070_v55, %s11414_s22 }
 0xdfc   : > { %11136 = vrot.lane.b32.xlu0 %v11075_v61, %s11414_s22 }
 0xdfe   : > { %7625 = vperm.xlu1 %9699, %v8784_v16  }
 0xe00   : > { %7630 = vperm.xlu0 %9698, %v8785_v17  }
 0xe02   : > { %7635 = vperm.xlu1 %9699, %v8786_v50  }
 0xe04   : > { %7640 = vperm.xlu0 %9698, %v8787_v22  }
 0xe06   : > { %11141 = vrot.lane.b32.xlu1 %v13377_v44, %s11403_s30 }
 0xe08   : > { %11146 = vrot.lane.b32.xlu0 %v13377_v44, %s11403_s30 }
 0xe18   : > { %v10972_v3 = vpop.permute.xlu1 %10971 }
 0xe19   : > { %v10974_v30 = vunpack.i.h.bf16 %v10972_v3  ;;  %v10973_v10 = vunpack.i.l.bf16 %v10972_v3 }
 0xe1a   : > { %v10982_v34 = vpop.permute.xlu0 %10981 }
 0xe1b   : > { %v10984_v38 = vunpack.i.h.bf16 %v10982_v34  ;;  %v10983_v40 = vunpack.i.l.bf16 %v10982_v34  ;;  %v7043_v43 = vsel %vm357_vm0, %v10963_v37, %v10973_v10  ;;  %v7044_v57 = vsel %vm357_vm0, %v10973_v10, %v10974_v30 }
 0xe1c   : > { %v10977_v51 = vpop.permute.xlu1 %10976 }
 0xe1d   : > { %v7045_v52 = vsel %vm357_vm0, %v10964_v28, %v10983_v40  ;;  %v7046_v39 = vsel %vm357_vm0, %v10983_v40, %v10984_v38  ;;  %v10979_v0 = vunpack.i.h.bf16 %v10977_v51  ;;  %v10978_v13 = vunpack.i.l.bf16 %v10977_v51 }
 0xe1e   : > { %v9306_v35 = vpack.c.bf16 %v7046_v39, %v7044_v57  ;;  %v9309_v46 = vpack.c.bf16 %v7045_v52, %v7043_v43  ;;  %v10987_v53 = vpop.permute.xlu0 %10986 }
 0xe1f   : > { %v10989_v19 = vunpack.i.h.bf16 %v10987_v53  ;;  %v10988_v8 = vunpack.i.l.bf16 %v10987_v53  ;;  %v7172_v31 = vsel %vm541_vm2, %v10978_v13, %v10979_v0 }
 0xe20   : > { %9307 = vmatprep.subr.msk.bf16.mxu1 %vm11793_vm14, %v9306_v35  ;;  %v7102_v29 = vpop.permute.xlu1 %7101 }
 0xe21   : > { %9310 = vmatpush1.bf16.msk.msra.mxu1 %vm11804_vm15, %v9309_v46  ;;  %v7111_v32 = vsel %vm396_vm11, %v7100_v24, %v7102_v29  ;;  %v7174_v17 = vsel %vm541_vm2, %v10988_v8, %v10989_v19 }
 0xe22   : > { %v7104_v47 = vpop.permute.xlu0 %7103  ;;  %v9318_v38 = vpack.c.bf16 %v7174_v17, %v7172_v31 }
 0xe23   : > { %v7112_v61 = vsel %vm396_vm11, %v7102_v29, %v7104_v47 }
 0xe24   : > { %v10997_v49 = vpop.permute.xlu1 %10996 }
 0xe25   : > { %v10999_v48 = vunpack.i.h.bf16 %v10997_v49  ;;  %v10998_v33 = vunpack.i.l.bf16 %v10997_v49 }
 0xe26   : > { %v10992_v58 = vpop.permute.xlu0 %10991 }
 0xe27   : > { %v10994_v36 = vunpack.i.h.bf16 %v10992_v58  ;;  %v10993_v60 = vunpack.i.l.bf16 %v10992_v58  ;;  %v7049_v63 = vsel %vm357_vm0, %v10969_v11, %v10998_v33  ;;  %v7050_v26 = vsel %vm357_vm0, %v10998_v33, %v10999_v48 }
 0xe28   : > { %v11002_v9 = vpop.permute.xlu1 %11001 }
 0xe29   : > { %v7047_v1 = vsel %vm357_vm0, %v10968_v59, %v10993_v60  ;;  %v7048_v4 = vsel %vm357_vm0, %v10993_v60, %v10994_v36  ;;  %v11004_v21 = vunpack.i.h.bf16 %v11002_v9  ;;  %v11003_v55 = vunpack.i.l.bf16 %v11002_v9 }
 0xe2a   : > { %v9312_v27 = vpack.c.bf16 %v7050_v26, %v7048_v4  ;;  %v9315_v5 = vpack.c.bf16 %v7049_v63, %v7047_v1  ;;  %v11007_v6 = vpop.permute.xlu0 %11006 }
 0xe2b   : > { %v11009_v3 = vunpack.i.h.bf16 %v11007_v6  ;;  %v11008_v30 = vunpack.i.l.bf16 %v11007_v6  ;;  %v7173_v34 = vsel %vm541_vm2, %v11004_v21, %v10988_v8  ;;  %v7171_v28 = vsel %vm541_vm2, %v11003_v55, %v10978_v13 }
 0xe2c   : > { %v11012_v7 = vpop.permute.xlu1 %11011  ;;  %9313 = vmatprep.subr.msk.bf16.mxu1 %vm11793_vm14, %v9312_v27  ;;  %v9321_v57 = vpack.c.bf16 %v7173_v34, %v7171_v28 }
 0xe2d   : > { %9316 = vmatpush1.bf16.msk.msra.mxu1 %vm11804_vm15, %v9315_v5  ;;  %v11014_v50 = vunpack.i.h.bf16 %v11012_v7  ;;  %v11013_v22 = vunpack.i.l.bf16 %v11012_v7  ;;  %v7176_v52 = vsel %vm541_vm2, %v11008_v30, %v11009_v3 }
 0xe2e   : > { %v7108_v18 = vpop.permute.xlu0 %7107  ;;  %7683 = vmatprep.subr.bf16.mxu1 %v7112_v61 }
 0xe2f   : > { %v7113_v40 = vsel %vm396_vm11, %v13454_v62, %v7108_v18  ;;  %v7178_v43 = vsel %vm541_vm2, %v11013_v22, %v11014_v50 }
 0xe30   : > { %v7110_v16 = vpop.permute.xlu1 %7109  ;;  %v9324_v62 = vpack.c.bf16 %v7178_v43, %v7176_v52 }
 0xe31   : > { %7684 = vmatpush1.bf16.msra.mxu1 %v7111_v32  ;;  %v7114_v23 = vsel %vm396_vm11, %v7108_v18, %v7110_v16 }
 0xe32   : > { %v11017_v10 = vpop.permute.xlu0 %11016  ;;  %7685 = vmatprep.subr.bf16.mxu1 %v7114_v23 }
 0xe33   : > { %v11019_v37 = vunpack.i.h.bf16 %v11017_v10  ;;  %v11018_v24 = vunpack.i.l.bf16 %v11017_v10 }
 0xe34   : > { %v11022_v51 = vpop.permute.xlu1 %11021 }
 0xe35   : > { %7686 = vmatpush1.bf16.msra.mxu1 %v7113_v40  ;;  %v11024_v39 = vunpack.i.h.bf16 %v11022_v51  ;;  %v11023_v35 = vunpack.i.l.bf16 %v11022_v51  ;;  %v7175_v53 = vsel %vm541_vm2, %v11018_v24, %v11008_v30  ;;  %v7177_v29 = vsel %vm541_vm2, %v11019_v37, %v11013_v22 }
 0xe36   : > { %v11027_v46 = vpop.permute.xlu0 %11026  ;;  %9319 = vmatprep.subr.msk.bf16.mxu1 %vm11828_vm1, %v9318_v38  ;;  %v9327_v59 = vpack.c.bf16 %v7177_v29, %v7175_v53 }
 0xe37   : > { %v11029_v47 = vunpack.i.h.bf16 %v11027_v46  ;;  %v11028_v49 = vunpack.i.l.bf16 %v11027_v46  ;;  %v7252_v36 = vsel %vm633_vm8, %v11023_v35, %v11024_v39 }
 0xe38   : > { %v11032_v48 = vpop.permute.xlu1 %11031 }
 0xe39   : > { %v7254_v33 = vsel %vm633_vm8, %v11028_v49, %v11029_v47  ;;  %v11034_v58 = vunpack.i.h.bf16 %v11032_v48  ;;  %v11033_v11 = vunpack.i.l.bf16 %v11032_v48  ;;  %9322 = vmatpush1.bf16.msk.msra.mxu1 %vm11840_vm4, %v9321_v57 }
 0xe3a   : > { %v11037_v60 = vpop.permute.xlu0 %11036  ;;  %9325 = vmatprep.subr.msk.bf16.mxu1 %vm11828_vm1, %v9324_v62  ;;  %v9330_v4 = vpack.c.bf16 %v7254_v33, %v7252_v36 }
 0xe3b   : > { %v7253_v9 = vsel %vm633_vm8, %v11034_v58, %v11028_v49  ;;  %v7251_v63 = vsel %vm633_vm8, %v11033_v11, %v11023_v35  ;;  %v11039_v26 = vunpack.i.h.bf16 %v11037_v60  ;;  %v11038_v1 = vunpack.i.l.bf16 %v11037_v60 }
 0xe3c   : > { %v11042_v27 = vpop.permute.xlu1 %11041  ;;  %v9333_v7 = vpack.c.bf16 %v7253_v9, %v7251_v63 }
 0xe3d   : > { %v11044_v5 = vunpack.i.h.bf16 %v11042_v27  ;;  %v11043_v6 = vunpack.i.l.bf16 %v11042_v27  ;;  %9328 = vmatpush1.bf16.msk.msra.mxu1 %vm11840_vm4, %v9327_v59  ;;  %v7256_v8 = vsel %vm633_vm8, %v11038_v1, %v11039_v26 }
 0xe3e   : > { %v11047_v19 = vpop.permute.xlu0 %11046  ;;  %9331 = vmatprep.subr.msk.bf16.mxu1 %vm11793_vm14, %v9330_v4 }
 0xe3f   : > { %v7258_v61 = vsel %vm633_vm8, %v11043_v6, %v11044_v5  ;;  %v11049_v0 = vunpack.i.h.bf16 %v11047_v19  ;;  %v11048_v13 = vunpack.i.l.bf16 %v11047_v19 }
 0xe40   : > { %v9336_v18 = vpack.c.bf16 %v7258_v61, %v7256_v8  ;;  %v11052_v21 = vpop.permute.xlu1 %11051 }
 0xe41   : > { %v7255_v55 = vsel %vm633_vm8, %v11048_v13, %v11038_v1  ;;  %v7257_v32 = vsel %vm633_vm8, %v11049_v0, %v11043_v6  ;;  %9334 = vmatpush1.bf16.msk.msra.mxu1 %vm11804_vm15, %v9333_v7  ;;  %v11054_v31 = vunpack.i.h.bf16 %v11052_v21  ;;  %v11053_v3 = vunpack.i.l.bf16 %v11052_v21 }
 0xe42   : > { %v9339_v16 = vpack.c.bf16 %v7257_v32, %v7255_v55  ;;  %v11057_v17 = vpop.permute.xlu0 %11056  ;;  %9337 = vmatprep.subr.msk.bf16.mxu1 %vm11793_vm14, %v9336_v18 }
 0xe43   : > { %v11059_v22 = vunpack.i.h.bf16 %v11057_v17  ;;  %v11058_v23 = vunpack.i.l.bf16 %v11057_v17  ;;  %v7348_v40 = vsel %vm808_vm9, %v11053_v3, %v11054_v31 }
 0xe44   : > { %v11062_v50 = vpop.permute.xlu1 %11061 }
 0xe45   : > { %9340 = vmatpush1.bf16.msk.msra.mxu1 %vm11804_vm15, %v9339_v16  ;;  %v11064_v10 = vunpack.i.h.bf16 %v11062_v50  ;;  %v11063_v34 = vunpack.i.l.bf16 %v11062_v50  ;;  %v7350_v37 = vsel %vm808_vm9, %v11058_v23, %v11059_v22 }
 0xe46   : > { %v11067_v30 = vpop.permute.xlu0 %11066  ;;  %7695 = vmatprep.subr.bf16.mxu1 %v13359_v20  ;;  %v9342_v46 = vpack.c.bf16 %v7350_v37, %v7348_v40 }
 0xe47   : > { %v11069_v51 = vunpack.i.h.bf16 %v11067_v30  ;;  %v11068_v43 = vunpack.i.l.bf16 %v11067_v30  ;;  %v7349_v52 = vsel %vm808_vm9, %v11064_v10, %v11058_v23  ;;  %v7347_v20 = vsel %vm808_vm9, %v11063_v34, %v11053_v3 }
 0xe48   : > { %v11072_v28 = vpop.permute.xlu1 %11071 }
 0xe49   : > { %v11074_v24 = vunpack.i.h.bf16 %v11072_v28  ;;  %v11073_v38 = vunpack.i.l.bf16 %v11072_v28  ;;  %7696 = vmatpush1.bf16.msra.mxu1 %v13354_v54  ;;  %v9345_v54 = vpack.c.bf16 %v7349_v52, %v7347_v20  ;;  %v7352_v47 = vsel %vm808_vm9, %v11068_v43, %v11069_v51  ;;  %v11378_v51 = vld [vmem:[%s13859_s3 + $0x150] ss:$12 sps:$4 sm:$0xff]   ;;  %v11381_v52 = vld [vmem:[%s13859_s3 + $0x16c] ss:$12 sps:$4 sm:$0xff]  }
 0xe4a   : > { %v11077_v57 = vpop.permute.xlu0 %11076  ;;  %7697 = vmatprep.subr.bf16.mxu1 %v13368_v14 }
 0xe4b   : > { %v11079_v39 = vunpack.i.h.bf16 %v11077_v57  ;;  %v11078_v35 = vunpack.i.l.bf16 %v11077_v57  ;;  %v7354_v29 = vsel %vm808_vm9, %v11073_v38, %v11074_v24 }
 0xe4c   : > { %v11082_v53 = vpop.permute.xlu1 %11081  ;;  %v9348_v59 = vpack.c.bf16 %v7354_v29, %v7352_v47 }
 0xe4d   : > { %7698 = vmatpush1.bf16.msra.mxu1 %v13364_v15  ;;  %v11084_v49 = vunpack.i.h.bf16 %v11082_v53  ;;  %v11083_v62 = vunpack.i.l.bf16 %v11082_v53  ;;  %v7351_v14 = vsel %vm808_vm9, %v11078_v35, %v11068_v43  ;;  %v7353_v33 = vsel %vm808_vm9, %v11079_v39, %v11073_v38 }
 0xe4e   : > { %v11087_v48 = vpop.permute.xlu0 %11086  ;;  %9343 = vmatprep.subr.msk.bf16.mxu1 %vm11828_vm1, %v9342_v46  ;;  %v9351_v63 = vpack.c.bf16 %v7353_v33, %v7351_v14 }
 0xe4f   : > { %v11089_v58 = vunpack.i.h.bf16 %v11087_v48  ;;  %v11088_v11 = vunpack.i.l.bf16 %v11087_v48  ;;  %v7428_v26 = vsel %vm900_vm10, %v11083_v62, %v11084_v49 }
 0xe50   : > { %v11092_v36 = vpop.permute.xlu1 %11091 }
 0xe51   : > { %v7430_v60 = vsel %vm900_vm10, %v11088_v11, %v11089_v58  ;;  %v11094_v15 = vunpack.i.h.bf16 %v11092_v36  ;;  %v11093_v9 = vunpack.i.l.bf16 %v11092_v36  ;;  %9346 = vmatpush1.bf16.msk.msra.mxu1 %vm11840_vm4, %v9345_v54  ;;  %v11383_v36 = vld [vmem:[%s13859_s3 + $0x168] ss:$12 sps:$4 sm:$0xff]  }
 0xe52   : > { %v11097_v1 = vpop.permute.xlu0 %11096  ;;  %9349 = vmatprep.subr.msk.bf16.mxu1 %vm11828_vm1, %v9348_v59  ;;  %v9354_v7 = vpack.c.bf16 %v7430_v60, %v7428_v26 }
 0xe53   : > { %v7429_v4 = vsel %vm900_vm10, %v11094_v15, %v11088_v11  ;;  %v7427_v27 = vsel %vm900_vm10, %v11093_v9, %v11083_v62  ;;  %v11099_v5 = vunpack.i.h.bf16 %v11097_v1  ;;  %v11098_v6 = vunpack.i.l.bf16 %v11097_v1 }
 0xe54   : > { %v11102_v19 = vpop.permute.xlu1 %11101  ;;  %v9357_v0 = vpack.c.bf16 %v7429_v4, %v7427_v27 }
 0xe55   : > { %v11104_v8 = vunpack.i.h.bf16 %v11102_v19  ;;  %v11103_v61 = vunpack.i.l.bf16 %v11102_v19  ;;  %9352 = vmatpush1.bf16.msk.msra.mxu1 %vm11840_vm4, %v9351_v63  ;;  %v7432_v18 = vsel %vm900_vm10, %v11098_v6, %v11099_v5  ;;  %v11384_v19 = vld [vmem:[%s13859_s3 + $0x158] ss:$12 sps:$4 sm:$0xff]  }
 0xe56   : > { %v11107_v13 = vpop.permute.xlu0 %11106  ;;  %9355 = vmatprep.subr.msk.bf16.mxu1 %vm11793_vm14, %v9354_v7 }
 0xe57   : > { %v7434_v21 = vsel %vm900_vm10, %v11103_v61, %v11104_v8  ;;  %v11109_v55 = vunpack.i.h.bf16 %v11107_v13  ;;  %v11108_v32 = vunpack.i.l.bf16 %v11107_v13  ;;  %v11385_v8 = vld [vmem:[%s13859_s3 + $0x170] ss:$12 sps:$4 sm:$0xff]  }
 0xe58   : > { %v9360_v16 = vpack.c.bf16 %v7434_v21, %v7432_v18  ;;  %v7486_v17 = vpop.permute.xlu1 %7485 }
 0xe59   : > { %v7431_v50 = vsel %vm900_vm10, %v11108_v32, %v11098_v6  ;;  %v7433_v22 = vsel %vm900_vm10, %v11109_v55, %v11103_v61  ;;  %9358 = vmatpush1.bf16.msk.msra.mxu1 %vm11804_vm15, %v9357_v0  ;;  %v13587_v61 = vpack.c.bf16 %v13373_v56, %v13373_v56  ;;  %v7785_v55 = vld [vmem:[#allocation2 + $0x8] sm:$0xff] }
 0xe5a   : > { %v9363_v23 = vpack.c.bf16 %v7433_v22, %v7431_v50  ;;  %v7488_v31 = vpop.permute.xlu0 %7487  ;;  %9361 = vmatprep.subr.msk.bf16.mxu1 %vm11793_vm14, %v9360_v16  ;;  %v7786_v50 = vld [vmem:[#allocation2 + $0x10] sm:$0xff] }
 0xe5b   : > { %v7496_v30 = vsel %vm1002_vm12, %v7486_v17, %v7488_v31  ;;  %7915 = vrot.lane.b32.xlu1 %v13587_v61, %s11415_s23  ;;  %7921 = vrot.lane.b32.xlu0 %v13587_v61, %s11415_s23 }
 0xe5c   : > { %v7484_v3 = vpop.permute.xlu1 %7483 }
 0xe5d   : > { %9364 = vmatpush1.bf16.msk.msra.mxu1 %vm11804_vm15, %v9363_v23  ;;  %v7495_v34 = vsel %vm1002_vm12, %v7484_v3, %v7486_v17  ;;  %v7787_v3 = vld [vmem:[#allocation2 + $0x28] sm:$0xff] }
 0xe5e   : > { %v7492_v10 = vpop.permute.xlu0 %7491  ;;  %7707 = vmatprep.subr.bf16.mxu1 %v7496_v30 }
 0xe5f   : > { %11151 = vrot.lane.b32.xlu1 %v13377_v44, %s11404_s8  ;;  %11156 = vrot.lane.b32.xlu0 %v13377_v44, %s11404_s8 }
 0xe60   : > { %v7494_v28 = vpop.permute.xlu1 %7493 }
 0xe61   : > { %7708 = vmatpush1.bf16.msra.mxu1 %v7495_v34  ;;  %v7498_v37 = vsel %vm1002_vm12, %v7492_v10, %v7494_v28  ;;  %v7788_v34 = vld [vmem:[#allocation2 + $0x30] sm:$0xff] }
 0xe62   : > { %v7490_v24 = vpop.permute.xlu0 %7489  ;;  %7709 = vmatprep.subr.bf16.mxu1 %v7498_v37 }
 0xe63   : > { %v7497_v38 = vsel %vm1002_vm12, %v7490_v24, %v7492_v10  ;;  %11161 = vrot.lane.b32.xlu1 %v13377_v44, %s11406_s14 }
 0xe64   : > { %v11112_v40 = vpop.permute.xlu1 %11111 }
 0xe65   : > { %v11114_v43 = vunpack.i.h.bf16 %v11112_v40  ;;  %v11113_v57 = vunpack.i.l.bf16 %v11112_v40  ;;  %7710 = vmatpush1.bf16.msra.mxu1 %v7497_v38 }
 0xe66   : > { %v11117_v20 = vpop.permute.xlu0 %11116 }
 0xe67   : > { %v11119_v39 = vunpack.i.h.bf16 %v11117_v20  ;;  %v11118_v35 = vunpack.i.l.bf16 %v11117_v20  ;;  %v7556_v53 = vsel %vm1084_vm13, %v11113_v57, %v11114_v43 }
 0xe68   : > { %v11122_v46 = vpop.permute.xlu1 %11121  ;;  %7712 = vmatmul.mubr.bf16.vlgmr.msra.gmra.mrb[40].mxu1 %v11378_v51 }
 0xe69   : > { %v7558_v29 = vsel %vm1084_vm13, %v11118_v35, %v11119_v39  ;;  %v11124_v54 = vunpack.i.h.bf16 %v11122_v46  ;;  %v11123_v47 = vunpack.i.l.bf16 %v11122_v46  ;;  %7721 = vmatprep.mubr.bf16.mxu1 %v11381_v52 }
 0xe6a   : > { %v9366_v49 = vpack.c.bf16 %v7558_v29, %v7556_v53  ;;  %v11127_v62 = vpop.permute.xlu0 %11126 }
 0xe6b   : > { %v7557_v48 = vsel %vm1084_vm13, %v11124_v54, %v11118_v35  ;;  %v7555_v14 = vsel %vm1084_vm13, %v11123_v47, %v11113_v57  ;;  %v11129_v33 = vunpack.i.h.bf16 %v11127_v62  ;;  %v11128_v58 = vunpack.i.l.bf16 %v11127_v62  ;;  %v7789_v35 = vld [vmem:[#allocation2 + $0x48] sm:$0xff]  ;;  %v7790_v54 = vld [vmem:[#allocation2 + $0x50] sm:$0xff] }
 0xe6c   : > { %v9369_v11 = vpack.c.bf16 %v7557_v48, %v7555_v14  ;;  %v11132_v59 = vpop.permute.xlu1 %11131  ;;  %9367 = vmatprep.subr.msk.bf16.mxu1 %vm11828_vm1, %v9366_v49  ;;  %v7791_v48 = vld [vmem:[#allocation2 + $0x68] sm:$0xff] }
 0xe6d   : > { %v11134_v60 = vunpack.i.h.bf16 %v11132_v59  ;;  %v11133_v15 = vunpack.i.l.bf16 %v11132_v59  ;;  %v7560_v63 = vsel %vm1084_vm13, %v11128_v58, %v11129_v33 }
 0xe6e   : > { %v11137_v9 = vpop.permute.xlu0 %11136  ;;  %9370 = vmatpush1.bf16.msk.msra.mxu1 %vm11840_vm4, %v9369_v11 }
 0xe6f   : > { %v7562_v26 = vsel %vm1084_vm13, %v11133_v15, %v11134_v60  ;;  %v11139_v1 = vunpack.i.h.bf16 %v11137_v9  ;;  %v11138_v4 = vunpack.i.l.bf16 %v11137_v9 }
 0xe70   : > { %v9372_v27 = vpack.c.bf16 %v7562_v26, %v7560_v63  ;;  %7722 = vmatmul.mubr.bf16.gmra.mrb[44].mxu1 %v11383_v36 }
 0xe71   : > { %v7559_v5 = vsel %vm1084_vm13, %v11138_v4, %v11128_v58  ;;  %v7561_v6 = vsel %vm1084_vm13, %v11139_v1, %v11133_v15  ;;  %7764 = vmatprep.mubr.bf16.mxu1 %v11402_v12  ;;  %v7792_v58 = vld [vmem:[#allocation2 + $0x70] sm:$0xff] }
 0xe72   : > { %v9375_v7 = vpack.c.bf16 %v7561_v6, %v7559_v5  ;;  %9373 = vmatprep.subr.msk.bf16.mxu1 %vm11828_vm1, %v9372_v27  ;;  %v7809_v6 = vld [vmem:[%s13861_s5] sm:$0x3f] }
 0xe74   : > { %9376 = vmatpush1.bf16.msk.msra.mxu1 %vm11840_vm4, %v9375_v7 }
 0xe78   : > { %8794 = vmatmul.mubr.msk.bf16.vlgmr.msra.gmra.mrb[40].mxu1 %vm1908_vm3, %v11384_v19 }
 0xe79   : > { %7774 = vmatprep.mubr.bf16.mxu1 %v11402_v12 }
 0xe7f   : > { %v7631_v21 = vpop.permute.xlu0 %7630 }
 0xe80   : > { %8795 = vmatmul.mubr.msk.bf16.gmra.mrb[44].mxu1 %vm1908_vm3, %v11385_v8 }
 0xe81   : > { %8539 = vmatprep.mubr.bf16.mxu1 %v11402_v12  ;;  %v7626_v12 = vpop.permute.xlu1 %7625 }
 0xe83   : > { %v7641_v39 = vpop.permute.xlu0 %7640 }
 0xe85   : > { %v7636_v40 = vpop.permute.xlu1 %7635 }
 0xf4b   : > { %v7766_v0 = vpop.f32.mrb[40].mxu1 }
 0xf4c   : > { %v9513_v13 = vadd.f32 %v7766_v0, %v7626_v12  ;;  %v7768_v18 = vpop.f32.mrb[41].mxu1  ;;  %v11142_v0 = vpop.permute.xlu1 %11141 }
 0xf4d   : > { %v9514_v32 = vadd.f32 %v7768_v18, %v7626_v12  ;;  %v7770_v16 = vpop.f32.mrb[42].mxu1  ;;  %v7810_v12 = vld [vmem:[%s13862_s6] sm:$0xf]  ;;  %v11147_v18 = vpop.permute.xlu0 %11146 }
 0xf4e   : > { %v7793_v17 = vadd.f32 %v9513_v13, %v7785_v55  ;;  %v9515_v22 = vadd.f32 %v7770_v16, %v7631_v21  ;;  %v7772_v23 = vpop.f32.mrb[43].mxu1 }
 0xf4f   : > { %v7794_v31 = vadd.f32 %v9514_v32, %v7786_v50  ;;  %v9516_v30 = vadd.f32 %v7772_v23, %v7631_v21  ;;  %v11144_v23 = vunpack.i.h.bf16 %v11142_v0 }
 0xf50   : > { %7801 = vst [vmem:[#allocation2 + $0x8] sm:$0xff] %v7793_v17  ;;  %v7795_v10 = vadd.f32 %v9515_v22, %v7787_v3  ;;  %v7916_v13 = vpop.permute.xlu1 %7915 }
 0xf51   : > { %7802 = vst [vmem:[#allocation2 + $0x10] sm:$0xff] %v7794_v31  ;;  %v7796_v28 = vadd.f32 %v9516_v30, %v7788_v34  ;;  %v11165_v37 = vpack.i.bf16 %v7794_v31, %v7793_v17  ;;  %v11230_v63 = vpack.i.bf16 %v13373_v56, %v7794_v31 }
 0xf52   : > { %7803 = vst [vmem:[#allocation2 + $0x28] sm:$0xff] %v7795_v10  ;;  %v13599_v24 = vpack.c.bf16 %v7795_v10, %v7793_v17  ;;  %v13601_v38 = vpack.i.bf16 %v7795_v10, %v7793_v17 }
 0xf53   : > { %7804 = vst [vmem:[#allocation2 + $0x30] sm:$0xff] %v7796_v28  ;;  %v7776_v51 = vpop.f32.mrb[44].mxu1  ;;  %11166 = vrot.lane.b32.xlu1 %v11165_v37, %s11403_s30  ;;  %v11180_v43 = vpack.i.bf16 %v7796_v28, %v7795_v10  ;;  %v13604_v57 = vpack.c.bf16 %v7796_v28, %v7794_v31  ;;  %v11235_v26 = vpack.i.bf16 %v13373_v56, %v7796_v28  ;;  %v11143_v31 = vunpack.i.l.bf16 %v11142_v0 }
 0xf54   : > { %v9517_v52 = vadd.f32 %v7776_v51, %v7636_v40  ;;  %v7778_v20 = vpop.f32.mrb[45].mxu1  ;;  %v13681_v21 = vpop.permute.xlu1 %11151 }
 0xf55   : > { %v9518_v46 = vadd.f32 %v7778_v20, %v7636_v40  ;;  %v7780_v53 = vpop.f32.mrb[46].mxu1  ;;  %11181 = vrot.lane.b32.xlu0 %v11180_v43, %s11403_s30 }
 0xf56   : > { %v7797_v29 = vadd.f32 %v9517_v52, %v7789_v35  ;;  %v9519_v47 = vadd.f32 %v7780_v53, %v7641_v39  ;;  %v7782_v49 = vpop.f32.mrb[47].mxu1 }
 0xf57   : > { %v7798_v62 = vadd.f32 %v9518_v46, %v7790_v54  ;;  %v9520_v14 = vadd.f32 %v7782_v49, %v7641_v39  ;;  %11171 = vrot.lane.b32.xlu1 %v11165_v37, %s11404_s8  ;;  %v11148_v49 = vunpack.i.l.bf16 %v11147_v18 }
 0xf58   : > { %7805 = vst [vmem:[#allocation2 + $0x48] sm:$0xff] %v7797_v29  ;;  %v7799_v33 = vadd.f32 %v9519_v47, %v7791_v48  ;;  %v13685_v55 = vpop.permute.xlu1 %11161  ;;  %v11149_v47 = vunpack.i.h.bf16 %v11147_v18  ;;  %v11154_v18 = vunpack.i.h.bf16 %v13681_v21 }
 0xf59   : > { %7806 = vst [vmem:[#allocation2 + $0x50] sm:$0xff] %v7798_v62  ;;  %v7800_v11 = vadd.f32 %v9520_v14, %v7792_v58  ;;  %11186 = vrot.lane.b32.xlu0 %v11180_v43, %s11404_s8  ;;  %v11195_v59 = vpack.i.bf16 %v7798_v62, %v7797_v29  ;;  %v11245_v4 = vpack.i.bf16 %v13373_v56, %v7798_v62 }
 0xf5a   : > { %7807 = vst [vmem:[#allocation2 + $0x68] sm:$0xff] %v7799_v33  ;;  %v13609_v36 = vpack.c.bf16 %v7799_v33, %v7797_v29  ;;  %v11255_v60 = vpack.i.bf16 %v7799_v33, %v7797_v29 }
 0xf5b   : > { %7808 = vst [vmem:[#allocation2 + $0x70] sm:$0xff] %v7800_v11  ;;  %11176 = vrot.lane.b32.xlu1 %v11165_v37, %s11406_s14  ;;  %v11210_v15 = vpack.i.bf16 %v7800_v11, %v7799_v33  ;;  %v13612_v9 = vpack.c.bf16 %v7800_v11, %v7798_v62  ;;  %v11250_v1 = vpack.i.bf16 %v13373_v56, %v7800_v11  ;;  %v11419_v56 = vmov 1983009808  }
 0xf5d   : > { %11191 = vrot.lane.b32.xlu0 %v11180_v43, %s11406_s14 }
 0xf5f   : > { %7917 = vrot.lane.b32.xlu1 %v13599_v24, %s11415_s23 }
 0xf61   : > { %7919 = vrot.lane.b32.xlu0 %v13604_v57, %s11415_s23 }
 0xf63   : > { %11211 = vrot.lane.b32.xlu1 %v11210_v15, %s11403_s30 }
 0xf65   : > { %11196 = vrot.lane.b32.xlu0 %v11195_v59, %s11403_s30 }
 0xf67   : > { %11216 = vrot.lane.b32.xlu1 %v11210_v15, %s11404_s8 }
 0xf69   : > { %11201 = vrot.lane.b32.xlu0 %v11195_v59, %s11404_s8 }
 0xf6b   : > { %7925 = vrot.lane.b32.xlu1 %v13612_v9, %s11415_s23 }
 0xf6d   : > { %11206 = vrot.lane.b32.xlu0 %v11195_v59, %s11406_s14 }
 0xf6f   : > { %11221 = vrot.lane.b32.xlu1 %v11210_v15, %s11406_s14 }
 0xf71   : > { %7923 = vrot.lane.b32.xlu0 %v13609_v36, %s11415_s23 }
 0xf73   : > { %11231 = vrot.lane.b32.xlu1 %v11230_v63, %s11409_s17 }
 0xf75   : > { %11226 = vrot.lane.b32.xlu0 %v13377_v44, %s11406_s14  ;;  %v8447_v44 = vunpack.c.l.s4 %v11419_v56 }
 0xf77   : > { %11241 = vrot.lane.b32.xlu1 %v13601_v38, %s11409_s17  ;;  %v8448_v27 = vunpack.c.0.s8 %v8447_v44 }
 0xf79   : > { %11236 = vrot.lane.b32.xlu0 %v11235_v26, %s11409_s17  ;;  %v8451_v5 = vsub.s32 %v8448_v27, %v11473_v2  ;;  %v8445_v2 = vcombine.high %v7809_v6, %v7809_v6 }
 0xf7b   : > { %11251 = vrot.lane.b32.xlu1 %v11250_v1, %s11409_s17  ;;  %v13661_v7 = vrot.slane %v7809_v6, %v8451_v5  ;;  %v13672_v8 = vrot.slane %v8445_v2, %v8451_v5 }
 0xf7d   : > { %11246 = vrot.lane.b32.xlu0 %v11245_v4, %s11409_s17  ;;  %v8460_v19 = vcombine.high %v13661_v7, %v13661_v7 }
 0xf7f   : > { %11261 = vrot.lane.b32.xlu1 %v11230_v63, %s11411_s19  ;;  %8498 = vmatprep.mubr.bf16.mxu0 %v8460_v19 }
 0xf81   : > { %11256 = vrot.lane.b32.xlu0 %v11255_v60, %s11409_s17 }
 0xf83   : > { %11271 = vrot.lane.b32.xlu1 %v13601_v38, %s11411_s19 }
 0xf85   : > { %11266 = vrot.lane.b32.xlu0 %v11235_v26, %s11411_s19 }
 0xf87   : > { %11281 = vrot.lane.b32.xlu1 %v11250_v1, %s11411_s19 }
 0xf89   : > { %11276 = vrot.lane.b32.xlu0 %v11245_v4, %s11411_s19 }
 0xf8b   : > { %8301 = vrot.lane.b32.xlu1 %v13604_v57, %s11408_s16 }
 0xf8d   : > { %11286 = vrot.lane.b32.xlu0 %v11255_v60, %s11411_s19 }
 0xf8f   : > { %11291 = vrot.lane.b32.xlu1 %v11230_v63, %s11414_s22 }
 0xf91   : > { %8303 = vrot.lane.b32.xlu0 %v13587_v61, %s11408_s16 }
 0xf93   : > { %8299 = vrot.lane.b32.xlu1 %v13599_v24, %s11408_s16 }
 0xf95   : > { %11296 = vrot.lane.b32.xlu0 %v11235_v26, %s11414_s22 }
 0xf97   : > { %11306 = vrot.lane.b32.xlu1 %v11245_v4, %s11414_s22 }
 0xf99   : > { %11301 = vrot.lane.b32.xlu0 %v13601_v38, %s11414_s22 }
 0xf9b   : > { %8307 = vrot.lane.b32.xlu1 %v13612_v9, %s11408_s16 }
 0xf9d   : > { %8309 = vrot.lane.b32.xlu0 %v13587_v61, %s11408_s16  ;;  %v13683_v61 = vpop.permute.xlu0 %7921 }
 0xf9f   : > { %8305 = vrot.lane.b32.xlu1 %v13609_v36, %s11408_s16  ;;  %s8800_s16 = sshll.u32 %s13881_s25, 3 }
 0xfa0   : > { %s278_s23 = scalar_lea.vmem %s13863_s7, %s8800_s16 }
 0xfa1   : > { %11311 = vrot.lane.b32.xlu0 %v11250_v1, %s11414_s22  ;;  %v13687_v32 = vpop.permute.xlu0 %11156 }
 0xfa3   : > { %8441 = vperm.xlu1 %9699, %v7810_v12  }
 0xfa5   : > { %11316 = vrot.lane.b32.xlu0 %v11255_v60, %s11414_s22 }
 0xfc5   : > { %v11167_v16 = vpop.permute.xlu1 %11166 }
 0xfc6   : > { %v11169_v17 = vunpack.i.h.bf16 %v11167_v16  ;;  %v11168_v50 = vunpack.i.l.bf16 %v11167_v16 }
 0xfc7   : > { %v11182_v22 = vpop.permute.xlu0 %11181 }
 0xfc8   : > { %v11184_v3 = vunpack.i.h.bf16 %v11182_v22  ;;  %v11183_v30 = vunpack.i.l.bf16 %v11182_v22  ;;  %v7859_v34 = vsel %vm357_vm0, %v11143_v31, %v11168_v50  ;;  %v7860_v28 = vsel %vm357_vm0, %v11168_v50, %v11169_v17 }
 0xfc9   : > { %v13689_v10 = vpop.permute.xlu1 %11171 }
 0xfca   : > { %v7861_v37 = vsel %vm357_vm0, %v11144_v23, %v11183_v30  ;;  %v7862_v38 = vsel %vm357_vm0, %v11183_v30, %v11184_v3  ;;  %v11174_v44 = vunpack.i.h.bf16 %v13689_v10  ;;  %v11173_v27 = vunpack.i.l.bf16 %v13689_v10 }
 0xfcb   : > { %v9378_v40 = vpack.c.bf16 %v7862_v38, %v7860_v28  ;;  %v9381_v51 = vpack.c.bf16 %v7861_v37, %v7859_v34  ;;  %v11187_v43 = vpop.permute.xlu0 %11186  ;;  %v11158_v38 = vunpack.i.l.bf16 %v13687_v32 }
 0xfcc   : > { %v11189_v1 = vunpack.i.h.bf16 %v11187_v43  ;;  %v11188_v4 = vunpack.i.l.bf16 %v11187_v43  ;;  %v7988_v16 = vsel %vm541_vm2, %v11173_v27, %v11174_v44 }
 0xfcd   : > { %v13695_v52 = vpop.permute.xlu1 %11176  ;;  %9379 = vmatprep.subr.msk.bf16.mxu0 %vm11793_vm14, %v9378_v40 }
 0xfce   : > { %9382 = vmatpush1.bf16.msk.msra.mxu0 %vm11804_vm15, %v9381_v51  ;;  %v7990_v2 = vsel %vm541_vm2, %v11188_v4, %v11189_v1  ;;  %v7989_v3 = vsel %vm541_vm2, %v11154_v18, %v11188_v4  ;;  %v11179_v51 = vunpack.i.h.bf16 %v13695_v52  ;;  %v11178_v43 = vunpack.i.l.bf16 %v13695_v52 }
 0xfcf   : > { %v13701_v20 = vpop.permute.xlu0 %11191  ;;  %v9390_v30 = vpack.c.bf16 %v7990_v2, %v7988_v16  ;;  %v11163_v52 = vunpack.i.l.bf16 %v13685_v55 }
 0xfd0   : > { %v11194_v34 = vunpack.i.h.bf16 %v13701_v20  ;;  %v11193_v28 = vunpack.i.l.bf16 %v13701_v20  ;;  %v11159_v20 = vunpack.i.h.bf16 %v13687_v32  ;;  %v8068_v32 = vsel %vm633_vm8, %v11178_v43, %v11179_v51 }
 0xfd1   : > { %v7918_v39 = vpop.permute.xlu1 %7917 }
 0xfd2   : > { %v7927_v6 = vsel %vm396_vm11, %v7916_v13, %v7918_v39  ;;  %v11153_v13 = vunpack.i.l.bf16 %v13681_v21 }
 0xfd3   : > { %v7920_v35 = vpop.permute.xlu0 %7919 }
 0xfd4   : > { %v7928_v56 = vsel %vm396_vm11, %v7918_v39, %v7920_v35 }
 0xfd5   : > { %v11212_v46 = vpop.permute.xlu1 %11211 }
 0xfd6   : > { %v11214_v53 = vunpack.i.h.bf16 %v11212_v46  ;;  %v11213_v29 = vunpack.i.l.bf16 %v11212_v46 }
 0xfd7   : > { %v11197_v54 = vpop.permute.xlu0 %11196 }
 0xfd8   : > { %v11199_v62 = vunpack.i.h.bf16 %v11197_v54  ;;  %v11198_v48 = vunpack.i.l.bf16 %v11197_v54  ;;  %v7865_v33 = vsel %vm357_vm0, %v11149_v47, %v11213_v29  ;;  %v7866_v58 = vsel %vm357_vm0, %v11213_v29, %v11214_v53 }
 0xfd9   : > { %v11217_v14 = vpop.permute.xlu1 %11216  ;;  %v8070_v29 = vsel %vm633_vm8, %v11193_v28, %v11194_v34 }
 0xfda   : > { %v7863_v11 = vsel %vm357_vm0, %v11148_v49, %v11198_v48  ;;  %v7864_v59 = vsel %vm357_vm0, %v11198_v48, %v11199_v62  ;;  %v11219_v50 = vunpack.i.h.bf16 %v11217_v14  ;;  %v11218_v22 = vunpack.i.l.bf16 %v11217_v14 }
 0xfdb   : > { %v9384_v60 = vpack.c.bf16 %v7866_v58, %v7864_v59  ;;  %v9387_v15 = vpack.c.bf16 %v7865_v33, %v7863_v11  ;;  %v11202_v63 = vpop.permute.xlu0 %11201  ;;  %v11164_v49 = vunpack.i.h.bf16 %v13685_v55  ;;  %v9402_v59 = vpack.c.bf16 %v8070_v29, %v8068_v32 }
 0xfdc   : > { %v11204_v12 = vunpack.i.h.bf16 %v11202_v63  ;;  %v11203_v0 = vunpack.i.l.bf16 %v11202_v63  ;;  %v7994_v39 = vsel %vm541_vm2, %v11218_v22, %v11219_v50  ;;  %v7993_v62 = vsel %vm541_vm2, %v11159_v20, %v11218_v22 }
 0xfdd   : > { %v7926_v26 = vpop.permute.xlu1 %7925  ;;  %9385 = vmatprep.subr.msk.bf16.mxu0 %vm11793_vm14, %v9384_v60  ;;  %v8069_v11 = vsel %vm633_vm8, %v11164_v49, %v11193_v28 }
 0xfde   : > { %9388 = vmatpush1.bf16.msk.msra.mxu0 %vm11804_vm15, %v9387_v15  ;;  %v7992_v37 = vsel %vm541_vm2, %v11203_v0, %v11204_v12  ;;  %v7991_v35 = vsel %vm541_vm2, %v11158_v38, %v11203_v0 }
 0xfdf   : > { %v13714_v5 = vpop.permute.xlu0 %11206  ;;  %8470 = vmatprep.subr.bf16.mxu0 %v7928_v56  ;;  %v9396_v46 = vpack.c.bf16 %v7994_v39, %v7992_v37  ;;  %v9399_v14 = vpack.c.bf16 %v7993_v62, %v7991_v35 }
 0xfe0   : > { %v11209_v33 = vunpack.i.h.bf16 %v13714_v5  ;;  %v11208_v58 = vunpack.i.l.bf16 %v13714_v5 }
 0xfe1   : > { %v11222_v19 = vpop.permute.xlu1 %11221 }
 0xfe2   : > { %8471 = vmatpush1.bf16.msra.mxu0 %v7927_v6  ;;  %v11224_v54 = vunpack.i.h.bf16 %v11222_v19  ;;  %v11223_v47 = vunpack.i.l.bf16 %v11222_v19  ;;  %v8072_v56 = vsel %vm633_vm8, %v11208_v58, %v11209_v33 }
 0xfe3   : > { %v7924_v17 = vpop.permute.xlu0 %7923 }
 0xfe4   : > { %v7929_v23 = vsel %vm396_vm11, %v13683_v61, %v7924_v17  ;;  %v7930_v31 = vsel %vm396_vm11, %v7924_v17, %v7926_v26  ;;  %v7987_v61 = vsel %vm541_vm2, %v11153_v13, %v11173_v27  ;;  %v8074_v55 = vsel %vm633_vm8, %v11223_v47, %v11224_v54 }
 0xfe5   : > { %v13725_v10 = vpop.permute.xlu1 %11231  ;;  %8472 = vmatprep.subr.bf16.mxu0 %v7930_v31  ;;  %v9393_v21 = vpack.c.bf16 %v7989_v3, %v7987_v61  ;;  %v8067_v26 = vsel %vm633_vm8, %v11163_v52, %v11178_v43  ;;  %v9408_v44 = vpack.c.bf16 %v8074_v55, %v8072_v56 }
 0xfe6   : > { %8473 = vmatpush1.bf16.msra.mxu0 %v7929_v23  ;;  %v9405_v4 = vpack.c.bf16 %v8069_v11, %v8067_v26  ;;  %v11234_v17 = vunpack.i.h.bf16 %v13725_v10  ;;  %v11233_v50 = vunpack.i.l.bf16 %v13725_v10 }
 0xfe7   : > { %v11227_v40 = vpop.permute.xlu0 %11226  ;;  %9391 = vmatprep.subr.msk.bf16.mxu0 %vm11828_vm1, %v9390_v30 }
 0xfe8   : > { %v11229_v60 = vunpack.i.h.bf16 %v11227_v40  ;;  %v11228_v15 = vunpack.i.l.bf16 %v11227_v40 }
 0xfe9   : > { %v13739_v53 = vpop.permute.xlu1 %11241 }
 0xfea   : > { %9394 = vmatpush1.bf16.msk.msra.mxu0 %vm11840_vm4, %v9393_v21  ;;  %v8071_v27 = vsel %vm633_vm8, %v11228_v15, %v11208_v58  ;;  %v8073_v5 = vsel %vm633_vm8, %v11229_v60, %v11223_v47  ;;  %v11244_v3 = vunpack.i.h.bf16 %v13739_v53  ;;  %v11243_v30 = vunpack.i.l.bf16 %v13739_v53 }
 0xfeb   : > { %v11237_v48 = vpop.permute.xlu0 %11236  ;;  %9397 = vmatprep.subr.msk.bf16.mxu0 %vm11828_vm1, %v9396_v46  ;;  %v9411_v2 = vpack.c.bf16 %v8073_v5, %v8071_v27 }
 0xfec   : > { %v11239_v0 = vunpack.i.h.bf16 %v11237_v48  ;;  %v11238_v18 = vunpack.i.l.bf16 %v11237_v48  ;;  %v8163_v39 = vsel %vm808_vm9, %v11243_v30, %v11233_v50 }
 0xfed   : > { %v11252_v63 = vpop.permute.xlu1 %11251 }
 0xfee   : > { %9400 = vmatpush1.bf16.msk.msra.mxu0 %vm11840_vm4, %v9399_v14  ;;  %v8166_v23 = vsel %vm808_vm9, %v11238_v18, %v11239_v0  ;;  %v11254_v28 = vunpack.i.h.bf16 %v11252_v63  ;;  %v11253_v37 = vunpack.i.l.bf16 %v11252_v63  ;;  %v8165_v10 = vsel %vm808_vm9, %v11244_v3, %v11238_v18 }
 0xfef   : > { %v11247_v1 = vpop.permute.xlu0 %11246  ;;  %9403 = vmatprep.subr.msk.bf16.mxu0 %vm11793_vm14, %v9402_v59  ;;  %v9417_v20 = vpack.c.bf16 %v8165_v10, %v8163_v39 }
 0xff0   : > { %v11249_v31 = vunpack.i.h.bf16 %v11247_v1  ;;  %v11248_v13 = vunpack.i.l.bf16 %v11247_v1  ;;  %v8170_v35 = vsel %vm808_vm9, %v11253_v37, %v11254_v28 }
 0xff1   : > { %v13762_v6 = vpop.permute.xlu1 %11261 }
 0xff2   : > { %9406 = vmatpush1.bf16.msk.msra.mxu0 %vm11804_vm15, %v9405_v4  ;;  %v11264_v46 = vunpack.i.h.bf16 %v13762_v6  ;;  %v11263_v53 = vunpack.i.l.bf16 %v13762_v6 }
 0xff3   : > { %v11257_v19 = vpop.permute.xlu0 %11256  ;;  %9409 = vmatprep.subr.msk.bf16.mxu0 %vm11793_vm14, %v9408_v44 }
 0xff4   : > { %v11259_v61 = vunpack.i.h.bf16 %v11257_v19  ;;  %v11258_v40 = vunpack.i.l.bf16 %v11257_v19  ;;  %v8244_v33 = vsel %vm900_vm10, %v11263_v53, %v11264_v46 }
 0xff5   : > { %v13768_v12 = vpop.permute.xlu1 %11271 }
 0xff6   : > { %9412 = vmatpush1.bf16.msk.msra.mxu0 %vm11804_vm15, %v9411_v2  ;;  %v8167_v54 = vsel %vm808_vm9, %v11258_v40, %v11248_v13  ;;  %v8169_v47 = vsel %vm808_vm9, %v11259_v61, %v11253_v37  ;;  %v11274_v48 = vunpack.i.h.bf16 %v13768_v12  ;;  %v11273_v32 = vunpack.i.l.bf16 %v13768_v12 }
 0xff7   : > { %v11267_v16 = vpop.permute.xlu0 %11266  ;;  %8482 = vmatprep.subr.bf16.mxu0 %v13604_v57  ;;  %v8164_v57 = vsel %vm808_vm9, %v11233_v50, %v11234_v17  ;;  %v9423_v58 = vpack.c.bf16 %v8169_v47, %v8167_v54 }
 0xff8   : > { %v9414_v38 = vpack.c.bf16 %v8166_v23, %v8164_v57  ;;  %v11269_v51 = vunpack.i.h.bf16 %v11267_v16  ;;  %v11268_v43 = vunpack.i.l.bf16 %v11267_v16  ;;  %v8243_v44 = vsel %vm900_vm10, %v11273_v32, %v11263_v53 }
 0xff9   : > { %v13775_v22 = vpop.permute.xlu1 %11281 }
 0xffa   : > { %8483 = vmatpush1.bf16.msra.mxu0 %v13599_v24  ;;  %v8168_v24 = vsel %vm808_vm9, %v11248_v13, %v11249_v31  ;;  %v11284_v11 = vunpack.i.h.bf16 %v13775_v22  ;;  %v11283_v59 = vunpack.i.l.bf16 %v13775_v22  ;;  %v8245_v60 = vsel %vm900_vm10, %v11274_v48, %v11268_v43 }
 0xffb   : > { %v11277_v34 = vpop.permute.xlu0 %11276  ;;  %8484 = vmatprep.subr.bf16.mxu0 %v13612_v9  ;;  %v9420_v29 = vpack.c.bf16 %v8170_v35, %v8168_v24  ;;  %v9429_v5 = vpack.c.bf16 %v8245_v60, %v8243_v44 }
 0xffc   : > { %v11279_v52 = vunpack.i.h.bf16 %v11277_v34  ;;  %v11278_v62 = vunpack.i.l.bf16 %v11277_v34  ;;  %v8250_v6 = vsel %vm900_vm10, %v11283_v59, %v11284_v11 }
 0xffd   : > { %v13784_v21 = vpop.permute.xlu1 %8301 }
 0xffe   : > { %8485 = vmatpush1.bf16.msra.mxu0 %v13609_v36  ;;  %v8246_v36 = vsel %vm900_vm10, %v11268_v43, %v11269_v51  ;;  %v8248_v1 = vsel %vm900_vm10, %v11278_v62, %v11279_v52 }
 0xfff   : > { %v11287_v9 = vpop.permute.xlu0 %11286  ;;  %9415 = vmatprep.subr.msk.bf16.mxu0 %vm11828_vm1, %v9414_v38  ;;  %v9426_v15 = vpack.c.bf16 %v8246_v36, %v8244_v33  ;;  %v9432_v12 = vpack.c.bf16 %v8250_v6, %v8248_v1 }
0x1000   : > { %v11289_v63 = vunpack.i.h.bf16 %v11287_v9  ;;  %v11288_v55 = vunpack.i.l.bf16 %v11287_v9 }
0x1001   : > { %v11292_v49 = vpop.permute.xlu1 %11291 }
0x1002   : > { %9418 = vmatpush1.bf16.msk.msra.mxu0 %vm11840_vm4, %v9417_v20  ;;  %v11294_v4 = vunpack.i.h.bf16 %v11292_v49  ;;  %v11293_v56 = vunpack.i.l.bf16 %v11292_v49  ;;  %v8247_v0 = vsel %vm900_vm10, %v11288_v55, %v11278_v62  ;;  %v8249_v18 = vsel %vm900_vm10, %v11289_v63, %v11283_v59 }
0x1003   : > { %v8304_v14 = vpop.permute.xlu0 %8303  ;;  %9421 = vmatprep.subr.msk.bf16.mxu0 %vm11828_vm1, %v9420_v29  ;;  %v9435_v31 = vpack.c.bf16 %v8249_v18, %v8247_v0 }
0x1004   : > { %v8372_v17 = vsel %vm1084_vm13, %v11293_v56, %v11294_v4  ;;  %v8312_v28 = vsel %vm1002_vm12, %v13784_v21, %v8304_v14 }
0x1005   : > { %v8300_v26 = vpop.permute.xlu1 %8299 }
0x1006   : > { %9424 = vmatpush1.bf16.msk.msra.mxu0 %vm11840_vm4, %v9423_v58  ;;  %v8311_v10 = vsel %vm1002_vm12, %v8300_v26, %v13784_v21 }
0x1007   : > { %v11297_v27 = vpop.permute.xlu0 %11296  ;;  %9427 = vmatprep.subr.msk.bf16.mxu0 %vm11793_vm14, %v9426_v15  ;;  %v11392_v15 = vld [vmem:[%s11480_s29 + $0x8] sm:$0x1f] }
0x1008   : > { %v11299_v19 = vunpack.i.h.bf16 %v11297_v27  ;;  %v11298_v2 = vunpack.i.l.bf16 %v11297_v27 }
0x1009   : > { %v11307_v16 = vpop.permute.xlu1 %11306 }
0x100a   : > { %v8374_v50 = vsel %vm1084_vm13, %v11298_v2, %v11299_v19  ;;  %9430 = vmatpush1.bf16.msk.msra.mxu0 %vm11804_vm15, %v9429_v5  ;;  %v11309_v38 = vunpack.i.h.bf16 %v11307_v16  ;;  %v11308_v61 = vunpack.i.l.bf16 %v11307_v16 }
0x100b   : > { %v9438_v22 = vpack.c.bf16 %v8374_v50, %v8372_v17  ;;  %v11302_v23 = vpop.permute.xlu0 %11301  ;;  %9433 = vmatprep.subr.msk.bf16.mxu0 %vm11793_vm14, %v9432_v12 }
0x100c   : > { %v11304_v13 = vunpack.i.h.bf16 %v11302_v23  ;;  %v11303_v3 = vunpack.i.l.bf16 %v11302_v23  ;;  %v8376_v9 = vsel %vm1084_vm13, %v11308_v61, %v11309_v38 }
0x100d   : > { %v8308_v30 = vpop.permute.xlu1 %8307  ;;  %9439 = vmatprep.subr.msk.bf16.mxu1 %vm11828_vm1, %v9438_v22 }
0x100e   : > { %v8373_v34 = vsel %vm1084_vm13, %v11304_v13, %v11298_v2  ;;  %v8371_v57 = vsel %vm1084_vm13, %v11303_v3, %v11293_v56  ;;  %9436 = vmatpush1.bf16.msk.msra.mxu0 %vm11804_vm15, %v9435_v31 }
0x100f   : > { %v9441_v37 = vpack.c.bf16 %v8373_v34, %v8371_v57  ;;  %v8310_v42 = vpop.permute.xlu0 %8309  ;;  %8494 = vmatprep.subr.bf16.mxu0 %v8312_v28 }
0x1010   : > { %v8314_v24 = vsel %vm1002_vm12, %v8308_v30, %v8310_v42 }
0x1011   : > { %9442 = vmatpush1.bf16.msk.msra.mxu1 %vm11840_vm4, %v9441_v37  ;;  %v8306_v40 = vpop.permute.xlu1 %8305 }
0x1012   : > { %8495 = vmatpush1.bf16.msra.mxu0 %v8311_v10  ;;  %v8313_v39 = vsel %vm1002_vm12, %v8306_v40, %v8308_v30 }
0x1013   : > { %v11312_v45 = vpop.permute.xlu0 %11311  ;;  %8496 = vmatprep.subr.bf16.mxu0 %v8314_v24 }
0x1014   : > { %v11314_v51 = vunpack.i.h.bf16 %v11312_v45  ;;  %v11313_v43 = vunpack.i.l.bf16 %v11312_v45 }
0x1016   : > { %v8378_v20 = vsel %vm1084_vm13, %v11313_v43, %v11314_v51  ;;  %8497 = vmatpush1.bf16.msra.mxu0 %v8313_v39 }
0x1017   : > { %v9444_v21 = vpack.c.bf16 %v8378_v20, %v8376_v9  ;;  %v11317_v35 = vpop.permute.xlu0 %11316 }
0x1018   : > { %v11319_v46 = vunpack.i.h.bf16 %v11317_v35  ;;  %v11318_v53 = vunpack.i.l.bf16 %v11317_v35 }
0x1019   : > { %8499 = vmatmul.mubr.bf16.vlgmr.msra.gmra.mrb[32].mxu0 %v13661_v7  ;;  %9445 = vmatprep.subr.msk.bf16.mxu1 %vm11828_vm1, %v9444_v21 }
0x101a   : > { %v8375_v29 = vsel %vm1084_vm13, %v11318_v53, %v11308_v61  ;;  %v8377_v54 = vsel %vm1084_vm13, %v11319_v46, %v11313_v43 }
0x101b   : > { %v9447_v47 = vpack.c.bf16 %v8377_v54, %v8375_v29 }
0x101d   : > { %9448 = vmatpush1.bf16.msk.msra.mxu1 %vm11840_vm4, %v9447_v47 }
0x1020   : > { %8796 = vmatmul.mubr.msk.bf16.vlgmr.msra.gmra.mrb[48].mxu1 %vm1908_vm3, %v13672_v8 }
0x1022   : > { %v8442_v25 = vpop.permute.xlu1 %8441 }
0x10ec   : > { %v8500_v49 = vpop.f32.mrb[32].mxu0 }
0x10ed   : > { %v8502_v36 = vpop.f32.mrb[33].mxu0  ;;  %v8501_v62 = vadd.f32 %v8500_v49, %v8442_v25 }
0x10ee   : > { %v8504_v7 = vpop.f32.mrb[34].mxu0  ;;  %v8503_v48 = vadd.f32 %v8502_v36, %v8442_v25 }
0x10ef   : > { %v8505_v52 = vpop.f32.mrb[35].mxu0 }
0x10f3   : > { %v8541_v32 = vpop.f32.mrb[48].mxu1 }
0x10f4   : > { %v8542_v14 = vadd.f32 %v8541_v32, %v8501_v62  ;;  %v8543_v33 = vpop.f32.mrb[49].mxu1 }
0x10f5   : > { %v8544_v58 = vadd.f32 %v8543_v33, %v8503_v48  ;;  %v8545_v11 = vpop.f32.mrb[50].mxu1 }
0x10f6   : > { %v8548_v59 = vadd.f32 %v11391_v41, %v8542_v14  ;;  %v8546_v60 = vpop.f32.mrb[51].mxu1 }
0x10f7   : > { %v8549_v63 = vadd.f32 %v11392_v15, %v8544_v58 }
0x10f9   : > { %v8552_v8 = vcombine.low %v8548_v59, %v8549_v63 }
0x10fb   : > { %8554 = vst [vmem:[%s278_s23] sm:$0xff] %v8552_v8 }
0x10fc PF: > { %s17_s24 = sadd.s32 1, %s11399_s24  }
0x10fd   : > { %p14_p4 = scmp.ge.s32.totalorder %s17_s24, 4  }
0x10ff   :  { %16 = sbr.rel (!%p14_p4) target bundleno = 1 (0x1), region = 92 }

</bundles_post_ra>
